<compile_context>
chip_gen: v6e
topology: v6e:2x2x1
jax: 0.10.0
libtpu: 0.0.40
codegen_flags: <defaults>
</compile_context>

<pallas_src>
import jax
import jax.numpy as jnp
from jax.experimental import pallas as pl
from jax.experimental.pallas import tpu as pltpu

N_EMBD = 384
N_HEAD_SA = 4                   # Block builds MultiHeadAttention(4, head_size)
HEAD_SIZE = N_EMBD // 6         # head_size = n_embd // n_head with n_head = 6 -> 64
SA_DIM = N_HEAD_SA * HEAD_SIZE  # 256
QKV_DIM = 3 * SA_DIM            # 768 (fused q|k|v)
FF_HIDDEN = 4 * N_EMBD          # 1536
EPS = 1e-5
NEG_BIG = -1e30                 # finite "-inf" for the causal mask


def _layernorm(x, g, b):
    mu = jnp.mean(x, axis=-1, keepdims=True)
    var = jnp.mean((x - mu) ** 2, axis=-1, keepdims=True)
    return (x - mu) * jax.lax.rsqrt(var + EPS) * g + b


def block_kernel(x_ref, ln1_g, ln1_b, wqkv, wproj, bproj,
                 ln2_g, ln2_b, w1, b1, w2, b2, out_ref):
    BB, T, C = x_ref.shape
    R = BB * T
    # Flatten the (BB, T, C) slab so all dense matmuls see M = BB*T rows.
    x = x_ref[...].astype(jnp.float32).reshape(R, C)

    # ---- self-attention branch: x + sa(ln1(x)) ----
    xn = _layernorm(x, ln1_g[...], ln1_b[...])
    # One fused QKV matmul, bf16 operands, f32 accumulation.
    qkv = jnp.dot(xn.astype(jnp.bfloat16), wqkv[...],
                  preferred_element_type=jnp.float32)              # (R, 768) f32
    qkv = qkv.reshape(BB, T, QKV_DIM)

    # Causal mask, shared by all batch elements and heads.
    row = jax.lax.broadcasted_iota(jnp.int32, (T, T), 0)
    col = jax.lax.broadcasted_iota(jnp.int32, (T, T), 1)
    causal = (col <= row)[None, :, :]                              # (1, T, T)

    head_outs = []
    for h in range(N_HEAD_SA):    # static 4-way unroll; each head batched over BB
        lo = h * HEAD_SIZE
        qh = qkv[..., lo:lo + HEAD_SIZE]                           # (BB, T, 64)
        kh = qkv[..., SA_DIM + lo:SA_DIM + lo + HEAD_SIZE]
        vh = qkv[..., 2 * SA_DIM + lo:2 * SA_DIM + lo + HEAD_SIZE]
        s = jnp.einsum('bqd,bkd->bqk',
                       qh.astype(jnp.bfloat16), kh.astype(jnp.bfloat16),
                       preferred_element_type=jnp.float32)         # (BB, T, T) f32
        s = jnp.where(causal, s, jnp.float32(NEG_BIG))
        # Exact softmax in f32 (score tensors are tiny; accuracy > micro-savings).
        e = jnp.exp(s - jnp.max(s, axis=-1, keepdims=True))
        p = e / jnp.sum(e, axis=-1, keepdims=True)
        # dropout on `p` is identity in eval mode
        head_outs.append(jnp.einsum('bqk,bkd->bqd',
                                    p.astype(jnp.bfloat16), vh.astype(jnp.bfloat16),
                                    preferred_element_type=jnp.float32))
    cat = jnp.concatenate(head_outs, axis=-1).reshape(R, SA_DIM)   # (R, 256)

    sa = jnp.dot(cat.astype(jnp.bfloat16), wproj[...],
                 preferred_element_type=jnp.float32) + bproj[...]
    x1 = x + sa                                                    # residual 1

    # ---- feed-forward branch: x1 + ffwd(ln2(x1)) ----
    xn2 = _layernorm(x1, ln2_g[...], ln2_b[...])
    h1 = jnp.maximum(
        jnp.dot(xn2.astype(jnp.bfloat16), w1[...],
                preferred_element_type=jnp.float32) + b1[...], 0.0)
    ff = jnp.dot(h1.astype(jnp.bfloat16), w2[...],
                 preferred_element_type=jnp.float32) + b2[...]
    out_ref[...] = (x1 + ff).reshape(BB, T, C).astype(out_ref.dtype)  # residual 2


def _tpu_mem_config():
    """(vmem_limit_bytes, target_rows) derived from the local TPU generation."""
    cap = 64 << 20  # conservative fallback (v7x-sized)
    try:
        info = pltpu.get_tpu_info()
        cap = int(getattr(info, "vmem_capacity_bytes", cap)) or cap
    except Exception:
        pass
    vmem_limit = min(cap // 2, 96 << 20)        # ~64 MiB on v5e/v6e, ~32 MiB on v7x
    target_rows = 1024 if cap >= (96 << 20) else 512
    return vmem_limit, target_rows


def _pick_block_batch(B, T, target_rows):
    """Pack batch elements per grid step to reach ~target_rows matmul rows,
    while keeping >= 2 grid steps (when possible) so v7x can use both TCs."""
    bb = max(1, min(B, max(1, target_rows // max(T, 1))))
    if B >= 2:
        bb = min(bb, B // 2)          # guarantee >= 2 grid steps for megacore
    bb = max(bb, 1)
    while B % bb != 0:                # TODO(synk): prime B degrades to BB=1; pad batch if hot
        bb -= 1
    return bb


def block_forward(x, p):
    B, T, C = x.shape
    assert C == N_EMBD
    vmem_limit, target_rows = _tpu_mem_config()
    BB = _pick_block_batch(B, T, target_rows)
    grid = (B // BB,)

    # Wrapper-side layout work: fuse q/k/v, fold the attention scale
    # (n_embd ** -0.5, as in the PyTorch Head) into the Q columns, cast MXU
    # weights to bf16 (biases / LN params stay f32).
    scale = float(N_EMBD) ** -0.5
    wqkv = jnp.concatenate([p["wq"] * scale, p["wk"], p["wv"]],
                           axis=1).astype(jnp.bfloat16)             # (384, 768)
    wproj = p["wproj"].astype(jnp.bfloat16)
    w1 = p["w1"].astype(jnp.bfloat16)
    w2 = p["w2"].astype(jnp.bfloat16)

    weights = (p["ln1_g"], p["ln1_b"], wqkv, wproj, p["bproj"],
               p["ln2_g"], p["ln2_b"], w1, p["b1"], w2, p["b2"])

    x_spec = pl.BlockSpec((BB, T, C), lambda g: (g, 0, 0))

    # Scheduler hint around the custom call.
    dense_flops = 2 * B * T * (C * QKV_DIM + SA_DIM * C + C * FF_HIDDEN + FF_HIDDEN * C)
    attn_flops = 4 * B * N_HEAD_SA * T * T * HEAD_SIZE
    weight_bytes = sum(int(w.size) * w.dtype.itemsize for w in weights)
    cost = pl.CostEstimate(
        flops=dense_flops + attn_flops,
        transcendentals=B * N_HEAD_SA * T * T + 2 * B * T,
        bytes_accessed=weight_bytes + 2 * B * T * C * x.dtype.itemsize,
    )

    def build(weight_buffers):
        def w_spec(shape):
            r = len(shape)
            kwargs = {}
            if weight_buffers is not None:
                # Constant block index -> single buffer is enough; frees VMEM.
                kwargs["pipeline_mode"] = pl.Buffered(weight_buffers)
            return pl.BlockSpec(shape, lambda g, _r=r: (0,) * _r, **kwargs)

        in_specs = [x_spec] + [w_spec(w.shape) for w in weights]
        return pl.pallas_call(
            block_kernel,
            out_shape=jax.ShapeDtypeStruct((B, T, C), x.dtype),
            grid_spec=pltpu.PrefetchScalarGridSpec(
                num_scalar_prefetch=0,
                grid=grid,
                in_specs=in_specs,
                out_specs=x_spec,
            ),
            compiler_params=pltpu.CompilerParams(
                dimension_semantics=("parallel",),
                vmem_limit_bytes=vmem_limit,
            ),
            cost_estimate=cost,
        )

    try:
        return build(1)(x, *weights)
    except Exception:
        # Fallback: default (double-buffered) weight specs if Buffered(1)
        # is rejected by this JAX/Mosaic version.
        return build(None)(x, *weights)


def init_params(key):
    ks = jax.random.split(key, 8)
    s = 0.02
    return {
        "ln1_g": jnp.ones((1, N_EMBD), jnp.float32),
        "ln1_b": jnp.zeros((1, N_EMBD), jnp.float32),
        # q/k/v weights already transposed to (in, out) with 4 heads concatenated
        "wq": jax.random.normal(ks[0], (N_EMBD, SA_DIM), jnp.float32) * s,
        "wk": jax.random.normal(ks[1], (N_EMBD, SA_DIM), jnp.float32) * s,
        "wv": jax.random.normal(ks[2], (N_EMBD, SA_DIM), jnp.float32) * s,
        "wproj": jax.random.normal(ks[3], (SA_DIM, N_EMBD), jnp.float32) * s,
        "bproj": jnp.zeros((1, N_EMBD), jnp.float32),
        "ln2_g": jnp.ones((1, N_EMBD), jnp.float32),
        "ln2_b": jnp.zeros((1, N_EMBD), jnp.float32),
        "w1": jax.random.normal(ks[4], (N_EMBD, FF_HIDDEN), jnp.float32) * s,
        "b1": jnp.zeros((1, FF_HIDDEN), jnp.float32),
        "w2": jax.random.normal(ks[5], (FF_HIDDEN, N_EMBD), jnp.float32) * s,
        "b2": jnp.zeros((1, N_EMBD), jnp.float32),
    }


def ref_block(x, p):
    """Pure-f32 JAX reference matching the PyTorch Block forward exactly."""
    def ln(z, g, b):
        mu = z.mean(-1, keepdims=True)
        var = ((z - mu) ** 2).mean(-1, keepdims=True)
        return (z - mu) / jnp.sqrt(var + EPS) * g + b

    B, T, C = x.shape
    xn = ln(x, p["ln1_g"][0], p["ln1_b"][0])
    q, k, v = xn @ p["wq"], xn @ p["wk"], xn @ p["wv"]
    mask = jnp.tril(jnp.ones((T, T), bool))
    outs = []
    for h in range(N_HEAD_SA):
        sl = slice(h * HEAD_SIZE, (h + 1) * HEAD_SIZE)
        wei = (q[..., sl] @ jnp.swapaxes(k[..., sl], -1, -2)) * (N_EMBD ** -0.5)
        wei = jnp.where(mask, wei, -jnp.inf)
        wei = jax.nn.softmax(wei, -1)
        outs.append(wei @ v[..., sl])
    sa = jnp.concatenate(outs, -1) @ p["wproj"] + p["bproj"][0]
    x1 = x + sa
    xn2 = ln(x1, p["ln2_g"][0], p["ln2_b"][0])
    ff = jnp.maximum(xn2 @ p["w1"] + p["b1"][0], 0.0) @ p["w2"] + p["b2"][0]
    return x1 + ff


if __name__ == "__main__":
    key = jax.random.PRNGKey(0)
    kx, kp = jax.random.split(key)
    B, T = 2, 8
    x = jax.random.normal(kx, (B, T, N_EMBD), jnp.float32)
    params = init_params(kp)

    out = block_forward(x, params)
    out = jax.block_until_ready(out)

    ref = ref_block(x, params)
    assert out.shape == (B, T, N_EMBD)
    # Kernel feeds the MXU bf16 operands (f32 accumulation); compare to the pure
    # f32 reference with a bf16-appropriate tolerance.
    assert jnp.allclose(out, ref, atol=2e-2, rtol=2e-2), "mismatch vs JAX reference"
    print("KERNEL_OK")
</pallas_src>

<mosaic_0001>
module attributes {stable_mosaic.version = 11 : i64} {
  func.func @block_kernel(%arg0: i32, %arg1: memref<1x8x384xf32, #tpu.memory_space<vmem>>, %arg2: memref<1x384xf32, #tpu.memory_space<vmem>>, %arg3: memref<1x384xf32, #tpu.memory_space<vmem>>, %arg4: memref<384x768xbf16, #tpu.memory_space<vmem>>, %arg5: memref<256x384xbf16, #tpu.memory_space<vmem>>, %arg6: memref<1x384xf32, #tpu.memory_space<vmem>>, %arg7: memref<1x384xf32, #tpu.memory_space<vmem>>, %arg8: memref<1x384xf32, #tpu.memory_space<vmem>>, %arg9: memref<384x1536xbf16, #tpu.memory_space<vmem>>, %arg10: memref<1x1536xf32, #tpu.memory_space<vmem>>, %arg11: memref<1536x384xbf16, #tpu.memory_space<vmem>>, %arg12: memref<1x384xf32, #tpu.memory_space<vmem>>, %arg13: memref<1x8x384xf32, #tpu.memory_space<vmem>>) attributes {dimension_semantics = [#tpu.dimension_semantics<parallel>], iteration_bounds = array<i64: 2>, scalar_prefetch = 0 : i64, scratch_operands = 0 : i64, tpu.core_type = #tpu.core_type<tc>, window_params = [{transform_indices = @transform_0, window_bounds = array<i64: 1, 8, 384>}, {pipeline_mode = #tpu.pipeline_mode<synchronous>, transform_indices = @transform_1, window_bounds = array<i64: 1, 384>}, {pipeline_mode = #tpu.pipeline_mode<synchronous>, transform_indices = @transform_2, window_bounds = array<i64: 1, 384>}, {pipeline_mode = #tpu.pipeline_mode<synchronous>, transform_indices = @transform_3, window_bounds = array<i64: 384, 768>}, {pipeline_mode = #tpu.pipeline_mode<synchronous>, transform_indices = @transform_4, window_bounds = array<i64: 256, 384>}, {pipeline_mode = #tpu.pipeline_mode<synchronous>, transform_indices = @transform_5, window_bounds = array<i64: 1, 384>}, {pipeline_mode = #tpu.pipeline_mode<synchronous>, transform_indices = @transform_6, window_bounds = array<i64: 1, 384>}, {pipeline_mode = #tpu.pipeline_mode<synchronous>, transform_indices = @transform_7, window_bounds = array<i64: 1, 384>}, {pipeline_mode = #tpu.pipeline_mode<synchronous>, transform_indices = @transform_8, window_bounds = array<i64: 384, 1536>}, {pipeline_mode = #tpu.pipeline_mode<synchronous>, transform_indices = @transform_9, window_bounds = array<i64: 1, 1536>}, {pipeline_mode = #tpu.pipeline_mode<synchronous>, transform_indices = @transform_10, window_bounds = array<i64: 1536, 384>}, {pipeline_mode = #tpu.pipeline_mode<synchronous>, transform_indices = @transform_11, window_bounds = array<i64: 1, 384>}, {transform_indices = @transform_12, window_bounds = array<i64: 1, 8, 384>}]} {
    %c0 = arith.constant 0 : index
    %c0_0 = arith.constant 0 : index
    %c0_1 = arith.constant 0 : index
    %0 = vector.load %arg1[%c0, %c0_0, %c0_1] : memref<1x8x384xf32, #tpu.memory_space<vmem>>, vector<1x8x384xf32>
    %1 = vector.shape_cast %0 : vector<1x8x384xf32> to vector<8x384xf32>
    %c0_2 = arith.constant 0 : index
    %c0_3 = arith.constant 0 : index
    %2 = vector.load %arg2[%c0_2, %c0_3] : memref<1x384xf32, #tpu.memory_space<vmem>>, vector<1x384xf32>
    %c0_4 = arith.constant 0 : index
    %c0_5 = arith.constant 0 : index
    %3 = vector.load %arg3[%c0_4, %c0_5] : memref<1x384xf32, #tpu.memory_space<vmem>>, vector<1x384xf32>
    %cst = arith.constant dense<0.000000e+00> : vector<8xf32>
    %4 = vector.multi_reduction <add>, %1, %cst [1] : vector<8x384xf32> to vector<8xf32>
    %5 = vector.shape_cast %4 : vector<8xf32> to vector<8x1xf32>
    %cst_6 = arith.constant 3.840000e+02 : f32
    %6 = vector.broadcast %cst_6 : f32 to vector<8x1xf32>
    %7 = arith.divf %5, %6 : vector<8x1xf32>
    %8 = vector.broadcast %7 : vector<8x1xf32> to vector<8x384xf32>
    %9 = arith.subf %1, %8 : vector<8x384xf32>
    %10 = arith.mulf %9, %9 : vector<8x384xf32>
    %cst_7 = arith.constant dense<0.000000e+00> : vector<8xf32>
    %11 = vector.multi_reduction <add>, %10, %cst_7 [1] : vector<8x384xf32> to vector<8xf32>
    %12 = vector.shape_cast %11 : vector<8xf32> to vector<8x1xf32>
    %cst_8 = arith.constant 3.840000e+02 : f32
    %13 = vector.broadcast %cst_8 : f32 to vector<8x1xf32>
    %14 = arith.divf %12, %13 : vector<8x1xf32>
    %15 = vector.broadcast %7 : vector<8x1xf32> to vector<8x384xf32>
    %16 = arith.subf %1, %15 : vector<8x384xf32>
    %cst_9 = arith.constant 9.99999974E-6 : f32
    %17 = vector.broadcast %cst_9 : f32 to vector<8x1xf32>
    %18 = arith.addf %14, %17 : vector<8x1xf32>
    %19 = math.rsqrt %18 : vector<8x1xf32>
    %20 = vector.broadcast %19 : vector<8x1xf32> to vector<8x384xf32>
    %21 = arith.mulf %16, %20 : vector<8x384xf32>
    %22 = vector.broadcast %2 : vector<1x384xf32> to vector<8x384xf32>
    %23 = arith.mulf %21, %22 : vector<8x384xf32>
    %24 = vector.broadcast %3 : vector<1x384xf32> to vector<8x384xf32>
    %25 = arith.addf %23, %24 : vector<8x384xf32>
    %26 = arith.truncf %25 : vector<8x384xf32> to vector<8x384xbf16>
    %c0_10 = arith.constant 0 : index
    %c0_11 = arith.constant 0 : index
    %27 = vector.load %arg4[%c0_10, %c0_11] : memref<384x768xbf16, #tpu.memory_space<vmem>>, vector<384x768xbf16>
    %cst_12 = arith.constant dense<0.000000e+00> : vector<8x768xf32>
    %28 = tpu.matmul %26, %27, %cst_12 {dimension_numbers = #tpu.dot_dimension_numbers<[1], [0], [0], [1], [0, 0, 1, 1], [], []>} : vector<8x384xbf16>, vector<384x768xbf16>, vector<8x768xf32> -> vector<8x768xf32>
    %29 = vector.shape_cast %28 : vector<8x768xf32> to vector<1x8x768xf32>
    %30 = tpu.iota {dimensions = array<i32: 0>} : vector<8x8xi32>
    %31 = tpu.iota {dimensions = array<i32: 1>} : vector<8x8xi32>
    %32 = arith.cmpi sle, %31, %30 : vector<8x8xi32>
    %33 = vector.shape_cast %32 : vector<8x8xi1> to vector<1x8x8xi1>
    %34 = vector.extract_strided_slice %29 {offsets = [0, 0, 0], sizes = [1, 8, 64], strides = [1, 1, 1]} : vector<1x8x768xf32> to vector<1x8x64xf32>
    %35 = vector.extract_strided_slice %29 {offsets = [0, 0, 256], sizes = [1, 8, 64], strides = [1, 1, 1]} : vector<1x8x768xf32> to vector<1x8x64xf32>
    %36 = vector.extract_strided_slice %29 {offsets = [0, 0, 512], sizes = [1, 8, 64], strides = [1, 1, 1]} : vector<1x8x768xf32> to vector<1x8x64xf32>
    %37 = arith.truncf %34 : vector<1x8x64xf32> to vector<1x8x64xbf16>
    %38 = arith.truncf %35 : vector<1x8x64xf32> to vector<1x8x64xbf16>
    "tpu.trace_start"() <{level = 10 : i32, message = "bqd,bkd->bqk"}> : () -> ()
    %cst_13 = arith.constant dense<0.000000e+00> : vector<1x8x8xf32>
    %39 = tpu.matmul %37, %38, %cst_13 {dimension_numbers = #tpu.dot_dimension_numbers<[2], [2], [1], [1], [0, 0, 0, 1, 1, 1], [0], [0]>} : vector<1x8x64xbf16>, vector<1x8x64xbf16>, vector<1x8x8xf32> -> vector<1x8x8xf32>
    %cst_14 = arith.constant -1.000000e+30 : f32
    "tpu.trace_stop"() : () -> ()
    %40 = vector.broadcast %cst_14 : f32 to vector<1x8x8xf32>
    %41 = arith.select %33, %39, %40 : vector<1x8x8xi1>, vector<1x8x8xf32>
    %cst_15 = arith.constant dense<0xFF800000> : vector<1x8xf32>
    %42 = vector.multi_reduction <maximumf>, %41, %cst_15 [2] : vector<1x8x8xf32> to vector<1x8xf32>
    %43 = vector.shape_cast %42 : vector<1x8xf32> to vector<1x8x1xf32>
    %44 = vector.broadcast %43 : vector<1x8x1xf32> to vector<1x8x8xf32>
    %45 = arith.subf %41, %44 : vector<1x8x8xf32>
    %46 = math.exp %45 : vector<1x8x8xf32>
    %cst_16 = arith.constant dense<0.000000e+00> : vector<1x8xf32>
    %47 = vector.multi_reduction <add>, %46, %cst_16 [2] : vector<1x8x8xf32> to vector<1x8xf32>
    %48 = vector.shape_cast %47 : vector<1x8xf32> to vector<1x8x1xf32>
    %49 = vector.broadcast %48 : vector<1x8x1xf32> to vector<1x8x8xf32>
    %50 = arith.divf %46, %49 : vector<1x8x8xf32>
    %51 = arith.truncf %50 : vector<1x8x8xf32> to vector<1x8x8xbf16>
    %52 = arith.truncf %36 : vector<1x8x64xf32> to vector<1x8x64xbf16>
    "tpu.trace_start"() <{level = 10 : i32, message = "bqk,bkd->bqd"}> : () -> ()
    %cst_17 = arith.constant dense<0.000000e+00> : vector<1x8x64xf32>
    %53 = tpu.matmul %51, %52, %cst_17 {dimension_numbers = #tpu.dot_dimension_numbers<[2], [1], [1], [2], [0, 0, 0, 1, 1, 2], [0], [0]>} : vector<1x8x8xbf16>, vector<1x8x64xbf16>, vector<1x8x64xf32> -> vector<1x8x64xf32>
    "tpu.trace_stop"() : () -> ()
    %54 = vector.extract_strided_slice %29 {offsets = [0, 0, 64], sizes = [1, 8, 64], strides = [1, 1, 1]} : vector<1x8x768xf32> to vector<1x8x64xf32>
    %55 = vector.extract_strided_slice %29 {offsets = [0, 0, 320], sizes = [1, 8, 64], strides = [1, 1, 1]} : vector<1x8x768xf32> to vector<1x8x64xf32>
    %56 = vector.extract_strided_slice %29 {offsets = [0, 0, 576], sizes = [1, 8, 64], strides = [1, 1, 1]} : vector<1x8x768xf32> to vector<1x8x64xf32>
    %57 = arith.truncf %54 : vector<1x8x64xf32> to vector<1x8x64xbf16>
    %58 = arith.truncf %55 : vector<1x8x64xf32> to vector<1x8x64xbf16>
    "tpu.trace_start"() <{level = 10 : i32, message = "bqd,bkd->bqk"}> : () -> ()
    %cst_18 = arith.constant dense<0.000000e+00> : vector<1x8x8xf32>
    %59 = tpu.matmul %57, %58, %cst_18 {dimension_numbers = #tpu.dot_dimension_numbers<[2], [2], [1], [1], [0, 0, 0, 1, 1, 1], [0], [0]>} : vector<1x8x64xbf16>, vector<1x8x64xbf16>, vector<1x8x8xf32> -> vector<1x8x8xf32>
    %cst_19 = arith.constant -1.000000e+30 : f32
    "tpu.trace_stop"() : () -> ()
    %60 = vector.broadcast %cst_19 : f32 to vector<1x8x8xf32>
    %61 = arith.select %33, %59, %60 : vector<1x8x8xi1>, vector<1x8x8xf32>
    %cst_20 = arith.constant dense<0xFF800000> : vector<1x8xf32>
    %62 = vector.multi_reduction <maximumf>, %61, %cst_20 [2] : vector<1x8x8xf32> to vector<1x8xf32>
    %63 = vector.shape_cast %62 : vector<1x8xf32> to vector<1x8x1xf32>
    %64 = vector.broadcast %63 : vector<1x8x1xf32> to vector<1x8x8xf32>
    %65 = arith.subf %61, %64 : vector<1x8x8xf32>
    %66 = math.exp %65 : vector<1x8x8xf32>
    %cst_21 = arith.constant dense<0.000000e+00> : vector<1x8xf32>
    %67 = vector.multi_reduction <add>, %66, %cst_21 [2] : vector<1x8x8xf32> to vector<1x8xf32>
    %68 = vector.shape_cast %67 : vector<1x8xf32> to vector<1x8x1xf32>
    %69 = vector.broadcast %68 : vector<1x8x1xf32> to vector<1x8x8xf32>
    %70 = arith.divf %66, %69 : vector<1x8x8xf32>
    %71 = arith.truncf %70 : vector<1x8x8xf32> to vector<1x8x8xbf16>
    %72 = arith.truncf %56 : vector<1x8x64xf32> to vector<1x8x64xbf16>
    "tpu.trace_start"() <{level = 10 : i32, message = "bqk,bkd->bqd"}> : () -> ()
    %cst_22 = arith.constant dense<0.000000e+00> : vector<1x8x64xf32>
    %73 = tpu.matmul %71, %72, %cst_22 {dimension_numbers = #tpu.dot_dimension_numbers<[2], [1], [1], [2], [0, 0, 0, 1, 1, 2], [0], [0]>} : vector<1x8x8xbf16>, vector<1x8x64xbf16>, vector<1x8x64xf32> -> vector<1x8x64xf32>
    "tpu.trace_stop"() : () -> ()
    %74 = vector.extract_strided_slice %29 {offsets = [0, 0, 128], sizes = [1, 8, 64], strides = [1, 1, 1]} : vector<1x8x768xf32> to vector<1x8x64xf32>
    %75 = vector.extract_strided_slice %29 {offsets = [0, 0, 384], sizes = [1, 8, 64], strides = [1, 1, 1]} : vector<1x8x768xf32> to vector<1x8x64xf32>
    %76 = vector.extract_strided_slice %29 {offsets = [0, 0, 640], sizes = [1, 8, 64], strides = [1, 1, 1]} : vector<1x8x768xf32> to vector<1x8x64xf32>
    %77 = arith.truncf %74 : vector<1x8x64xf32> to vector<1x8x64xbf16>
    %78 = arith.truncf %75 : vector<1x8x64xf32> to vector<1x8x64xbf16>
    "tpu.trace_start"() <{level = 10 : i32, message = "bqd,bkd->bqk"}> : () -> ()
    %cst_23 = arith.constant dense<0.000000e+00> : vector<1x8x8xf32>
    %79 = tpu.matmul %77, %78, %cst_23 {dimension_numbers = #tpu.dot_dimension_numbers<[2], [2], [1], [1], [0, 0, 0, 1, 1, 1], [0], [0]>} : vector<1x8x64xbf16>, vector<1x8x64xbf16>, vector<1x8x8xf32> -> vector<1x8x8xf32>
    %cst_24 = arith.constant -1.000000e+30 : f32
    "tpu.trace_stop"() : () -> ()
    %80 = vector.broadcast %cst_24 : f32 to vector<1x8x8xf32>
    %81 = arith.select %33, %79, %80 : vector<1x8x8xi1>, vector<1x8x8xf32>
    %cst_25 = arith.constant dense<0xFF800000> : vector<1x8xf32>
    %82 = vector.multi_reduction <maximumf>, %81, %cst_25 [2] : vector<1x8x8xf32> to vector<1x8xf32>
    %83 = vector.shape_cast %82 : vector<1x8xf32> to vector<1x8x1xf32>
    %84 = vector.broadcast %83 : vector<1x8x1xf32> to vector<1x8x8xf32>
    %85 = arith.subf %81, %84 : vector<1x8x8xf32>
    %86 = math.exp %85 : vector<1x8x8xf32>
    %cst_26 = arith.constant dense<0.000000e+00> : vector<1x8xf32>
    %87 = vector.multi_reduction <add>, %86, %cst_26 [2] : vector<1x8x8xf32> to vector<1x8xf32>
    %88 = vector.shape_cast %87 : vector<1x8xf32> to vector<1x8x1xf32>
    %89 = vector.broadcast %88 : vector<1x8x1xf32> to vector<1x8x8xf32>
    %90 = arith.divf %86, %89 : vector<1x8x8xf32>
    %91 = arith.truncf %90 : vector<1x8x8xf32> to vector<1x8x8xbf16>
    %92 = arith.truncf %76 : vector<1x8x64xf32> to vector<1x8x64xbf16>
    "tpu.trace_start"() <{level = 10 : i32, message = "bqk,bkd->bqd"}> : () -> ()
    %cst_27 = arith.constant dense<0.000000e+00> : vector<1x8x64xf32>
    %93 = tpu.matmul %91, %92, %cst_27 {dimension_numbers = #tpu.dot_dimension_numbers<[2], [1], [1], [2], [0, 0, 0, 1, 1, 2], [0], [0]>} : vector<1x8x8xbf16>, vector<1x8x64xbf16>, vector<1x8x64xf32> -> vector<1x8x64xf32>
    "tpu.trace_stop"() : () -> ()
    %94 = vector.extract_strided_slice %29 {offsets = [0, 0, 192], sizes = [1, 8, 64], strides = [1, 1, 1]} : vector<1x8x768xf32> to vector<1x8x64xf32>
    %95 = vector.extract_strided_slice %29 {offsets = [0, 0, 448], sizes = [1, 8, 64], strides = [1, 1, 1]} : vector<1x8x768xf32> to vector<1x8x64xf32>
    %96 = vector.extract_strided_slice %29 {offsets = [0, 0, 704], sizes = [1, 8, 64], strides = [1, 1, 1]} : vector<1x8x768xf32> to vector<1x8x64xf32>
    %97 = arith.truncf %94 : vector<1x8x64xf32> to vector<1x8x64xbf16>
    %98 = arith.truncf %95 : vector<1x8x64xf32> to vector<1x8x64xbf16>
    "tpu.trace_start"() <{level = 10 : i32, message = "bqd,bkd->bqk"}> : () -> ()
    %cst_28 = arith.constant dense<0.000000e+00> : vector<1x8x8xf32>
    %99 = tpu.matmul %97, %98, %cst_28 {dimension_numbers = #tpu.dot_dimension_numbers<[2], [2], [1], [1], [0, 0, 0, 1, 1, 1], [0], [0]>} : vector<1x8x64xbf16>, vector<1x8x64xbf16>, vector<1x8x8xf32> -> vector<1x8x8xf32>
    %cst_29 = arith.constant -1.000000e+30 : f32
    "tpu.trace_stop"() : () -> ()
    %100 = vector.broadcast %cst_29 : f32 to vector<1x8x8xf32>
    %101 = arith.select %33, %99, %100 : vector<1x8x8xi1>, vector<1x8x8xf32>
    %cst_30 = arith.constant dense<0xFF800000> : vector<1x8xf32>
    %102 = vector.multi_reduction <maximumf>, %101, %cst_30 [2] : vector<1x8x8xf32> to vector<1x8xf32>
    %103 = vector.shape_cast %102 : vector<1x8xf32> to vector<1x8x1xf32>
    %104 = vector.broadcast %103 : vector<1x8x1xf32> to vector<1x8x8xf32>
    %105 = arith.subf %101, %104 : vector<1x8x8xf32>
    %106 = math.exp %105 : vector<1x8x8xf32>
    %cst_31 = arith.constant dense<0.000000e+00> : vector<1x8xf32>
    %107 = vector.multi_reduction <add>, %106, %cst_31 [2] : vector<1x8x8xf32> to vector<1x8xf32>
    %108 = vector.shape_cast %107 : vector<1x8xf32> to vector<1x8x1xf32>
    %109 = vector.broadcast %108 : vector<1x8x1xf32> to vector<1x8x8xf32>
    %110 = arith.divf %106, %109 : vector<1x8x8xf32>
    %111 = arith.truncf %110 : vector<1x8x8xf32> to vector<1x8x8xbf16>
    %112 = arith.truncf %96 : vector<1x8x64xf32> to vector<1x8x64xbf16>
    "tpu.trace_start"() <{level = 10 : i32, message = "bqk,bkd->bqd"}> : () -> ()
    %cst_32 = arith.constant dense<0.000000e+00> : vector<1x8x64xf32>
    %113 = tpu.matmul %111, %112, %cst_32 {dimension_numbers = #tpu.dot_dimension_numbers<[2], [1], [1], [2], [0, 0, 0, 1, 1, 2], [0], [0]>} : vector<1x8x8xbf16>, vector<1x8x64xbf16>, vector<1x8x64xf32> -> vector<1x8x64xf32>
    "tpu.trace_stop"() : () -> ()
    %114 = tpu.concatenate %53, %73, %93, %113 in 2 : vector<1x8x64xf32>, vector<1x8x64xf32>, vector<1x8x64xf32>, vector<1x8x64xf32> -> vector<1x8x256xf32>
    %115 = vector.shape_cast %114 : vector<1x8x256xf32> to vector<8x256xf32>
    %116 = arith.truncf %115 : vector<8x256xf32> to vector<8x256xbf16>
    %c0_33 = arith.constant 0 : index
    %c0_34 = arith.constant 0 : index
    %117 = vector.load %arg5[%c0_33, %c0_34] : memref<256x384xbf16, #tpu.memory_space<vmem>>, vector<256x384xbf16>
    %cst_35 = arith.constant dense<0.000000e+00> : vector<8x384xf32>
    %118 = tpu.matmul %116, %117, %cst_35 {dimension_numbers = #tpu.dot_dimension_numbers<[1], [0], [0], [1], [0, 0, 1, 1], [], []>} : vector<8x256xbf16>, vector<256x384xbf16>, vector<8x384xf32> -> vector<8x384xf32>
    %c0_36 = arith.constant 0 : index
    %c0_37 = arith.constant 0 : index
    %119 = vector.load %arg6[%c0_36, %c0_37] : memref<1x384xf32, #tpu.memory_space<vmem>>, vector<1x384xf32>
    %120 = vector.broadcast %119 : vector<1x384xf32> to vector<8x384xf32>
    %121 = arith.addf %118, %120 : vector<8x384xf32>
    %122 = arith.addf %1, %121 : vector<8x384xf32>
    %c0_38 = arith.constant 0 : index
    %c0_39 = arith.constant 0 : index
    %123 = vector.load %arg7[%c0_38, %c0_39] : memref<1x384xf32, #tpu.memory_space<vmem>>, vector<1x384xf32>
    %c0_40 = arith.constant 0 : index
    %c0_41 = arith.constant 0 : index
    %124 = vector.load %arg8[%c0_40, %c0_41] : memref<1x384xf32, #tpu.memory_space<vmem>>, vector<1x384xf32>
    %cst_42 = arith.constant dense<0.000000e+00> : vector<8xf32>
    %125 = vector.multi_reduction <add>, %122, %cst_42 [1] : vector<8x384xf32> to vector<8xf32>
    %126 = vector.shape_cast %125 : vector<8xf32> to vector<8x1xf32>
    %cst_43 = arith.constant 3.840000e+02 : f32
    %127 = vector.broadcast %cst_43 : f32 to vector<8x1xf32>
    %128 = arith.divf %126, %127 : vector<8x1xf32>
    %129 = vector.broadcast %128 : vector<8x1xf32> to vector<8x384xf32>
    %130 = arith.subf %122, %129 : vector<8x384xf32>
    %131 = arith.mulf %130, %130 : vector<8x384xf32>
    %cst_44 = arith.constant dense<0.000000e+00> : vector<8xf32>
    %132 = vector.multi_reduction <add>, %131, %cst_44 [1] : vector<8x384xf32> to vector<8xf32>
    %133 = vector.shape_cast %132 : vector<8xf32> to vector<8x1xf32>
    %cst_45 = arith.constant 3.840000e+02 : f32
    %134 = vector.broadcast %cst_45 : f32 to vector<8x1xf32>
    %135 = arith.divf %133, %134 : vector<8x1xf32>
    %136 = vector.broadcast %128 : vector<8x1xf32> to vector<8x384xf32>
    %137 = arith.subf %122, %136 : vector<8x384xf32>
    %cst_46 = arith.constant 9.99999974E-6 : f32
    %138 = vector.broadcast %cst_46 : f32 to vector<8x1xf32>
    %139 = arith.addf %135, %138 : vector<8x1xf32>
    %140 = math.rsqrt %139 : vector<8x1xf32>
    %141 = vector.broadcast %140 : vector<8x1xf32> to vector<8x384xf32>
    %142 = arith.mulf %137, %141 : vector<8x384xf32>
    %143 = vector.broadcast %123 : vector<1x384xf32> to vector<8x384xf32>
    %144 = arith.mulf %142, %143 : vector<8x384xf32>
    %145 = vector.broadcast %124 : vector<1x384xf32> to vector<8x384xf32>
    %146 = arith.addf %144, %145 : vector<8x384xf32>
    %147 = arith.truncf %146 : vector<8x384xf32> to vector<8x384xbf16>
    %c0_47 = arith.constant 0 : index
    %c0_48 = arith.constant 0 : index
    %148 = vector.load %arg9[%c0_47, %c0_48] : memref<384x1536xbf16, #tpu.memory_space<vmem>>, vector<384x1536xbf16>
    %cst_49 = arith.constant dense<0.000000e+00> : vector<8x1536xf32>
    %149 = tpu.matmul %147, %148, %cst_49 {dimension_numbers = #tpu.dot_dimension_numbers<[1], [0], [0], [1], [0, 0, 1, 1], [], []>} : vector<8x384xbf16>, vector<384x1536xbf16>, vector<8x1536xf32> -> vector<8x1536xf32>
    %c0_50 = arith.constant 0 : index
    %c0_51 = arith.constant 0 : index
    %150 = vector.load %arg10[%c0_50, %c0_51] : memref<1x1536xf32, #tpu.memory_space<vmem>>, vector<1x1536xf32>
    %151 = vector.broadcast %150 : vector<1x1536xf32> to vector<8x1536xf32>
    %152 = arith.addf %149, %151 : vector<8x1536xf32>
    %cst_52 = arith.constant 0.000000e+00 : f32
    %153 = vector.broadcast %cst_52 : f32 to vector<8x1536xf32>
    %154 = arith.maximumf %152, %153 : vector<8x1536xf32>
    %155 = arith.truncf %154 : vector<8x1536xf32> to vector<8x1536xbf16>
    %c0_53 = arith.constant 0 : index
    %c0_54 = arith.constant 0 : index
    %156 = vector.load %arg11[%c0_53, %c0_54] : memref<1536x384xbf16, #tpu.memory_space<vmem>>, vector<1536x384xbf16>
    %cst_55 = arith.constant dense<0.000000e+00> : vector<8x384xf32>
    %157 = tpu.matmul %155, %156, %cst_55 {dimension_numbers = #tpu.dot_dimension_numbers<[1], [0], [0], [1], [0, 0, 1, 1], [], []>} : vector<8x1536xbf16>, vector<1536x384xbf16>, vector<8x384xf32> -> vector<8x384xf32>
    %c0_56 = arith.constant 0 : index
    %c0_57 = arith.constant 0 : index
    %158 = vector.load %arg12[%c0_56, %c0_57] : memref<1x384xf32, #tpu.memory_space<vmem>>, vector<1x384xf32>
    %159 = vector.broadcast %158 : vector<1x384xf32> to vector<8x384xf32>
    %160 = arith.addf %157, %159 : vector<8x384xf32>
    %161 = arith.addf %122, %160 : vector<8x384xf32>
    %162 = vector.shape_cast %161 : vector<8x384xf32> to vector<1x8x384xf32>
    %c0_58 = arith.constant 0 : index
    %c0_59 = arith.constant 0 : index
    %c0_60 = arith.constant 0 : index
    %163 = vector.load %arg13[%c0_58, %c0_59, %c0_60] : memref<1x8x384xf32, #tpu.memory_space<vmem>>, vector<1x8x384xf32>
    tpu.vector_store %arg13[%c0_58, %c0_59, %c0_60], %162 {strides = array<i32>} : memref<1x8x384xf32, #tpu.memory_space<vmem>>, vector<1x8x384xf32>,
    return
  }
  func.func @transform_0(%arg0: i32) -> (i32, i32, i32) {
    %c0_i32 = arith.constant 0 : i32
    %c0_i32_0 = arith.constant 0 : i32
    %c0_i32_1 = arith.constant 0 : i32
    return %arg0, %c0_i32, %c0_i32_0 : i32, i32, i32
  }
  func.func @transform_1(%arg0: i32) -> (i32, i32) {
    %c0_i32 = arith.constant 0 : i32
    %c0_i32_0 = arith.constant 0 : i32
    %c0_i32_1 = arith.constant 0 : i32
    return %c0_i32, %c0_i32_0 : i32, i32
  }
  func.func @transform_2(%arg0: i32) -> (i32, i32) {
    %c0_i32 = arith.constant 0 : i32
    %c0_i32_0 = arith.constant 0 : i32
    %c0_i32_1 = arith.constant 0 : i32
    return %c0_i32, %c0_i32_0 : i32, i32
  }
  func.func @transform_3(%arg0: i32) -> (i32, i32) {
    %c0_i32 = arith.constant 0 : i32
    %c0_i32_0 = arith.constant 0 : i32
    %c0_i32_1 = arith.constant 0 : i32
    return %c0_i32, %c0_i32_0 : i32, i32
  }
  func.func @transform_4(%arg0: i32) -> (i32, i32) {
    %c0_i32 = arith.constant 0 : i32
    %c0_i32_0 = arith.constant 0 : i32
    %c0_i32_1 = arith.constant 0 : i32
    return %c0_i32, %c0_i32_0 : i32, i32
  }
  func.func @transform_5(%arg0: i32) -> (i32, i32) {
    %c0_i32 = arith.constant 0 : i32
    %c0_i32_0 = arith.constant 0 : i32
    %c0_i32_1 = arith.constant 0 : i32
    return %c0_i32, %c0_i32_0 : i32, i32
  }
  func.func @transform_6(%arg0: i32) -> (i32, i32) {
    %c0_i32 = arith.constant 0 : i32
    %c0_i32_0 = arith.constant 0 : i32
    %c0_i32_1 = arith.constant 0 : i32
    return %c0_i32, %c0_i32_0 : i32, i32
  }
  func.func @transform_7(%arg0: i32) -> (i32, i32) {
    %c0_i32 = arith.constant 0 : i32
    %c0_i32_0 = arith.constant 0 : i32
    %c0_i32_1 = arith.constant 0 : i32
    return %c0_i32, %c0_i32_0 : i32, i32
  }
  func.func @transform_8(%arg0: i32) -> (i32, i32) {
    %c0_i32 = arith.constant 0 : i32
    %c0_i32_0 = arith.constant 0 : i32
    %c0_i32_1 = arith.constant 0 : i32
    return %c0_i32, %c0_i32_0 : i32, i32
  }
  func.func @transform_9(%arg0: i32) -> (i32, i32) {
    %c0_i32 = arith.constant 0 : i32
    %c0_i32_0 = arith.constant 0 : i32
    %c0_i32_1 = arith.constant 0 : i32
    return %c0_i32, %c0_i32_0 : i32, i32
  }
  func.func @transform_10(%arg0: i32) -> (i32, i32) {
    %c0_i32 = arith.constant 0 : i32
    %c0_i32_0 = arith.constant 0 : i32
    %c0_i32_1 = arith.constant 0 : i32
    return %c0_i32, %c0_i32_0 : i32, i32
  }
  func.func @transform_11(%arg0: i32) -> (i32, i32) {
    %c0_i32 = arith.constant 0 : i32
    %c0_i32_0 = arith.constant 0 : i32
    %c0_i32_1 = arith.constant 0 : i32
    return %c0_i32, %c0_i32_0 : i32, i32
  }
  func.func @transform_12(%arg0: i32) -> (i32, i32, i32) {
    %c0_i32 = arith.constant 0 : i32
    %c0_i32_0 = arith.constant 0 : i32
    %c0_i32_1 = arith.constant 0 : i32
    return %arg0, %c0_i32, %c0_i32_0 : i32, i32, i32
  }
}

module attributes {stable_mosaic.version = 11 : i64} {
  func.func @block_kernel(%arg0: i32, %arg1: memref<1x8x384xf32, #tpu.memory_space<vmem>>, %arg2: memref<1x384xf32, #tpu.memory_space<vmem>>, %arg3: memref<1x384xf32, #tpu.memory_space<vmem>>, %arg4: memref<384x768xbf16, #tpu.memory_space<vmem>>, %arg5: memref<256x384xbf16, #tpu.memory_space<vmem>>, %arg6: memref<1x384xf32, #tpu.memory_space<vmem>>, %arg7: memref<1x384xf32, #tpu.memory_space<vmem>>, %arg8: memref<1x384xf32, #tpu.memory_space<vmem>>, %arg9: memref<384x1536xbf16, #tpu.memory_space<vmem>>, %arg10: memref<1x1536xf32, #tpu.memory_space<vmem>>, %arg11: memref<1536x384xbf16, #tpu.memory_space<vmem>>, %arg12: memref<1x384xf32, #tpu.memory_space<vmem>>, %arg13: memref<1x8x384xf32, #tpu.memory_space<vmem>>) attributes {dimension_semantics = [#tpu.dimension_semantics<parallel>], iteration_bounds = array<i64: 2>, scalar_prefetch = 0 : i64, scratch_operands = 0 : i64, tpu.core_type = #tpu.core_type<tc>, window_params = [{transform_indices = @transform_0, window_bounds = array<i64: 1, 8, 384>}, {pipeline_mode = #tpu.pipeline_mode<synchronous>, transform_indices = @transform_1, window_bounds = array<i64: 1, 384>}, {pipeline_mode = #tpu.pipeline_mode<synchronous>, transform_indices = @transform_2, window_bounds = array<i64: 1, 384>}, {pipeline_mode = #tpu.pipeline_mode<synchronous>, transform_indices = @transform_3, window_bounds = array<i64: 384, 768>}, {pipeline_mode = #tpu.pipeline_mode<synchronous>, transform_indices = @transform_4, window_bounds = array<i64: 256, 384>}, {pipeline_mode = #tpu.pipeline_mode<synchronous>, transform_indices = @transform_5, window_bounds = array<i64: 1, 384>}, {pipeline_mode = #tpu.pipeline_mode<synchronous>, transform_indices = @transform_6, window_bounds = array<i64: 1, 384>}, {pipeline_mode = #tpu.pipeline_mode<synchronous>, transform_indices = @transform_7, window_bounds = array<i64: 1, 384>}, {pipeline_mode = #tpu.pipeline_mode<synchronous>, transform_indices = @transform_8, window_bounds = array<i64: 384, 1536>}, {pipeline_mode = #tpu.pipeline_mode<synchronous>, transform_indices = @transform_9, window_bounds = array<i64: 1, 1536>}, {pipeline_mode = #tpu.pipeline_mode<synchronous>, transform_indices = @transform_10, window_bounds = array<i64: 1536, 384>}, {pipeline_mode = #tpu.pipeline_mode<synchronous>, transform_indices = @transform_11, window_bounds = array<i64: 1, 384>}, {transform_indices = @transform_12, window_bounds = array<i64: 1, 8, 384>}]} {
    %c0 = arith.constant 0 : index
    %c0_0 = arith.constant 0 : index
    %c0_1 = arith.constant 0 : index
    %0 = vector.load %arg1[%c0, %c0_0, %c0_1] : memref<1x8x384xf32, #tpu.memory_space<vmem>>, vector<1x8x384xf32>
    %1 = vector.shape_cast %0 : vector<1x8x384xf32> to vector<8x384xf32>
    %c0_2 = arith.constant 0 : index
    %c0_3 = arith.constant 0 : index
    %2 = vector.load %arg2[%c0_2, %c0_3] : memref<1x384xf32, #tpu.memory_space<vmem>>, vector<1x384xf32>
    %c0_4 = arith.constant 0 : index
    %c0_5 = arith.constant 0 : index
    %3 = vector.load %arg3[%c0_4, %c0_5] : memref<1x384xf32, #tpu.memory_space<vmem>>, vector<1x384xf32>
    %cst = arith.constant dense<0.000000e+00> : vector<8xf32>
    %4 = vector.multi_reduction <add>, %1, %cst [1] : vector<8x384xf32> to vector<8xf32>
    %5 = vector.shape_cast %4 : vector<8xf32> to vector<8x1xf32>
    %cst_6 = arith.constant 3.840000e+02 : f32
    %6 = vector.broadcast %cst_6 : f32 to vector<8x1xf32>
    %7 = arith.divf %5, %6 : vector<8x1xf32>
    %8 = vector.broadcast %7 : vector<8x1xf32> to vector<8x384xf32>
    %9 = arith.subf %1, %8 : vector<8x384xf32>
    %10 = arith.mulf %9, %9 : vector<8x384xf32>
    %cst_7 = arith.constant dense<0.000000e+00> : vector<8xf32>
    %11 = vector.multi_reduction <add>, %10, %cst_7 [1] : vector<8x384xf32> to vector<8xf32>
    %12 = vector.shape_cast %11 : vector<8xf32> to vector<8x1xf32>
    %cst_8 = arith.constant 3.840000e+02 : f32
    %13 = vector.broadcast %cst_8 : f32 to vector<8x1xf32>
    %14 = arith.divf %12, %13 : vector<8x1xf32>
    %15 = vector.broadcast %7 : vector<8x1xf32> to vector<8x384xf32>
    %16 = arith.subf %1, %15 : vector<8x384xf32>
    %cst_9 = arith.constant 9.99999974E-6 : f32
    %17 = vector.broadcast %cst_9 : f32 to vector<8x1xf32>
    %18 = arith.addf %14, %17 : vector<8x1xf32>
    %19 = math.rsqrt %18 : vector<8x1xf32>
    %20 = vector.broadcast %19 : vector<8x1xf32> to vector<8x384xf32>
    %21 = arith.mulf %16, %20 : vector<8x384xf32>
    %22 = vector.broadcast %2 : vector<1x384xf32> to vector<8x384xf32>
    %23 = arith.mulf %21, %22 : vector<8x384xf32>
    %24 = vector.broadcast %3 : vector<1x384xf32> to vector<8x384xf32>
    %25 = arith.addf %23, %24 : vector<8x384xf32>
    %26 = arith.truncf %25 : vector<8x384xf32> to vector<8x384xbf16>
    %c0_10 = arith.constant 0 : index
    %c0_11 = arith.constant 0 : index
    %27 = vector.load %arg4[%c0_10, %c0_11] : memref<384x768xbf16, #tpu.memory_space<vmem>>, vector<384x768xbf16>
    %cst_12 = arith.constant dense<0.000000e+00> : vector<8x768xf32>
    %28 = tpu.matmul %26, %27, %cst_12 {dimension_numbers = #tpu.dot_dimension_numbers<[1], [0], [0], [1], [0, 0, 1, 1], [], []>} : vector<8x384xbf16>, vector<384x768xbf16>, vector<8x768xf32> -> vector<8x768xf32>
    %29 = vector.shape_cast %28 : vector<8x768xf32> to vector<1x8x768xf32>
    %30 = tpu.iota {dimensions = array<i32: 0>} : vector<8x8xi32>
    %31 = tpu.iota {dimensions = array<i32: 1>} : vector<8x8xi32>
    %32 = arith.cmpi sle, %31, %30 : vector<8x8xi32>
    %33 = vector.shape_cast %32 : vector<8x8xi1> to vector<1x8x8xi1>
    %34 = vector.extract_strided_slice %29 {offsets = [0, 0, 0], sizes = [1, 8, 64], strides = [1, 1, 1]} : vector<1x8x768xf32> to vector<1x8x64xf32>
    %35 = vector.extract_strided_slice %29 {offsets = [0, 0, 256], sizes = [1, 8, 64], strides = [1, 1, 1]} : vector<1x8x768xf32> to vector<1x8x64xf32>
    %36 = vector.extract_strided_slice %29 {offsets = [0, 0, 512], sizes = [1, 8, 64], strides = [1, 1, 1]} : vector<1x8x768xf32> to vector<1x8x64xf32>
    %37 = arith.truncf %34 : vector<1x8x64xf32> to vector<1x8x64xbf16>
    %38 = arith.truncf %35 : vector<1x8x64xf32> to vector<1x8x64xbf16>
    "tpu.trace_start"() <{level = 10 : i32, message = "bqd,bkd->bqk"}> : () -> ()
    %cst_13 = arith.constant dense<0.000000e+00> : vector<1x8x8xf32>
    %39 = tpu.matmul %37, %38, %cst_13 {dimension_numbers = #tpu.dot_dimension_numbers<[2], [2], [1], [1], [0, 0, 0, 1, 1, 1], [0], [0]>} : vector<1x8x64xbf16>, vector<1x8x64xbf16>, vector<1x8x8xf32> -> vector<1x8x8xf32>
    %cst_14 = arith.constant -1.000000e+30 : f32
    "tpu.trace_stop"() : () -> ()
    %40 = vector.broadcast %cst_14 : f32 to vector<1x8x8xf32>
    %41 = arith.select %33, %39, %40 : vector<1x8x8xi1>, vector<1x8x8xf32>
    %cst_15 = arith.constant dense<0xFF800000> : vector<1x8xf32>
    %42 = vector.multi_reduction <maximumf>, %41, %cst_15 [2] : vector<1x8x8xf32> to vector<1x8xf32>
    %43 = vector.shape_cast %42 : vector<1x8xf32> to vector<1x8x1xf32>
    %44 = vector.broadcast %43 : vector<1x8x1xf32> to vector<1x8x8xf32>
    %45 = arith.subf %41, %44 : vector<1x8x8xf32>
    %46 = math.exp %45 : vector<1x8x8xf32>
    %cst_16 = arith.constant dense<0.000000e+00> : vector<1x8xf32>
    %47 = vector.multi_reduction <add>, %46, %cst_16 [2] : vector<1x8x8xf32> to vector<1x8xf32>
    %48 = vector.shape_cast %47 : vector<1x8xf32> to vector<1x8x1xf32>
    %49 = vector.broadcast %48 : vector<1x8x1xf32> to vector<1x8x8xf32>
    %50 = arith.divf %46, %49 : vector<1x8x8xf32>
    %51 = arith.truncf %50 : vector<1x8x8xf32> to vector<1x8x8xbf16>
    %52 = arith.truncf %36 : vector<1x8x64xf32> to vector<1x8x64xbf16>
    "tpu.trace_start"() <{level = 10 : i32, message = "bqk,bkd->bqd"}> : () -> ()
    %cst_17 = arith.constant dense<0.000000e+00> : vector<1x8x64xf32>
    %53 = tpu.matmul %51, %52, %cst_17 {dimension_numbers = #tpu.dot_dimension_numbers<[2], [1], [1], [2], [0, 0, 0, 1, 1, 2], [0], [0]>} : vector<1x8x8xbf16>, vector<1x8x64xbf16>, vector<1x8x64xf32> -> vector<1x8x64xf32>
    "tpu.trace_stop"() : () -> ()
    %54 = vector.extract_strided_slice %29 {offsets = [0, 0, 64], sizes = [1, 8, 64], strides = [1, 1, 1]} : vector<1x8x768xf32> to vector<1x8x64xf32>
    %55 = vector.extract_strided_slice %29 {offsets = [0, 0, 320], sizes = [1, 8, 64], strides = [1, 1, 1]} : vector<1x8x768xf32> to vector<1x8x64xf32>
    %56 = vector.extract_strided_slice %29 {offsets = [0, 0, 576], sizes = [1, 8, 64], strides = [1, 1, 1]} : vector<1x8x768xf32> to vector<1x8x64xf32>
    %57 = arith.truncf %54 : vector<1x8x64xf32> to vector<1x8x64xbf16>
    %58 = arith.truncf %55 : vector<1x8x64xf32> to vector<1x8x64xbf16>
    "tpu.trace_start"() <{level = 10 : i32, message = "bqd,bkd->bqk"}> : () -> ()
    %cst_18 = arith.constant dense<0.000000e+00> : vector<1x8x8xf32>
    %59 = tpu.matmul %57, %58, %cst_18 {dimension_numbers = #tpu.dot_dimension_numbers<[2], [2], [1], [1], [0, 0, 0, 1, 1, 1], [0], [0]>} : vector<1x8x64xbf16>, vector<1x8x64xbf16>, vector<1x8x8xf32> -> vector<1x8x8xf32>
    %cst_19 = arith.constant -1.000000e+30 : f32
    "tpu.trace_stop"() : () -> ()
    %60 = vector.broadcast %cst_19 : f32 to vector<1x8x8xf32>
    %61 = arith.select %33, %59, %60 : vector<1x8x8xi1>, vector<1x8x8xf32>
    %cst_20 = arith.constant dense<0xFF800000> : vector<1x8xf32>
    %62 = vector.multi_reduction <maximumf>, %61, %cst_20 [2] : vector<1x8x8xf32> to vector<1x8xf32>
    %63 = vector.shape_cast %62 : vector<1x8xf32> to vector<1x8x1xf32>
    %64 = vector.broadcast %63 : vector<1x8x1xf32> to vector<1x8x8xf32>
    %65 = arith.subf %61, %64 : vector<1x8x8xf32>
    %66 = math.exp %65 : vector<1x8x8xf32>
    %cst_21 = arith.constant dense<0.000000e+00> : vector<1x8xf32>
    %67 = vector.multi_reduction <add>, %66, %cst_21 [2] : vector<1x8x8xf32> to vector<1x8xf32>
    %68 = vector.shape_cast %67 : vector<1x8xf32> to vector<1x8x1xf32>
    %69 = vector.broadcast %68 : vector<1x8x1xf32> to vector<1x8x8xf32>
    %70 = arith.divf %66, %69 : vector<1x8x8xf32>
    %71 = arith.truncf %70 : vector<1x8x8xf32> to vector<1x8x8xbf16>
    %72 = arith.truncf %56 : vector<1x8x64xf32> to vector<1x8x64xbf16>
    "tpu.trace_start"() <{level = 10 : i32, message = "bqk,bkd->bqd"}> : () -> ()
    %cst_22 = arith.constant dense<0.000000e+00> : vector<1x8x64xf32>
    %73 = tpu.matmul %71, %72, %cst_22 {dimension_numbers = #tpu.dot_dimension_numbers<[2], [1], [1], [2], [0, 0, 0, 1, 1, 2], [0], [0]>} : vector<1x8x8xbf16>, vector<1x8x64xbf16>, vector<1x8x64xf32> -> vector<1x8x64xf32>
    "tpu.trace_stop"() : () -> ()
    %74 = vector.extract_strided_slice %29 {offsets = [0, 0, 128], sizes = [1, 8, 64], strides = [1, 1, 1]} : vector<1x8x768xf32> to vector<1x8x64xf32>
    %75 = vector.extract_strided_slice %29 {offsets = [0, 0, 384], sizes = [1, 8, 64], strides = [1, 1, 1]} : vector<1x8x768xf32> to vector<1x8x64xf32>
    %76 = vector.extract_strided_slice %29 {offsets = [0, 0, 640], sizes = [1, 8, 64], strides = [1, 1, 1]} : vector<1x8x768xf32> to vector<1x8x64xf32>
    %77 = arith.truncf %74 : vector<1x8x64xf32> to vector<1x8x64xbf16>
    %78 = arith.truncf %75 : vector<1x8x64xf32> to vector<1x8x64xbf16>
    "tpu.trace_start"() <{level = 10 : i32, message = "bqd,bkd->bqk"}> : () -> ()
    %cst_23 = arith.constant dense<0.000000e+00> : vector<1x8x8xf32>
    %79 = tpu.matmul %77, %78, %cst_23 {dimension_numbers = #tpu.dot_dimension_numbers<[2], [2], [1], [1], [0, 0, 0, 1, 1, 1], [0], [0]>} : vector<1x8x64xbf16>, vector<1x8x64xbf16>, vector<1x8x8xf32> -> vector<1x8x8xf32>
    %cst_24 = arith.constant -1.000000e+30 : f32
    "tpu.trace_stop"() : () -> ()
    %80 = vector.broadcast %cst_24 : f32 to vector<1x8x8xf32>
    %81 = arith.select %33, %79, %80 : vector<1x8x8xi1>, vector<1x8x8xf32>
    %cst_25 = arith.constant dense<0xFF800000> : vector<1x8xf32>
    %82 = vector.multi_reduction <maximumf>, %81, %cst_25 [2] : vector<1x8x8xf32> to vector<1x8xf32>
    %83 = vector.shape_cast %82 : vector<1x8xf32> to vector<1x8x1xf32>
    %84 = vector.broadcast %83 : vector<1x8x1xf32> to vector<1x8x8xf32>
    %85 = arith.subf %81, %84 : vector<1x8x8xf32>
    %86 = math.exp %85 : vector<1x8x8xf32>
    %cst_26 = arith.constant dense<0.000000e+00> : vector<1x8xf32>
    %87 = vector.multi_reduction <add>, %86, %cst_26 [2] : vector<1x8x8xf32> to vector<1x8xf32>
    %88 = vector.shape_cast %87 : vector<1x8xf32> to vector<1x8x1xf32>
    %89 = vector.broadcast %88 : vector<1x8x1xf32> to vector<1x8x8xf32>
    %90 = arith.divf %86, %89 : vector<1x8x8xf32>
    %91 = arith.truncf %90 : vector<1x8x8xf32> to vector<1x8x8xbf16>
    %92 = arith.truncf %76 : vector<1x8x64xf32> to vector<1x8x64xbf16>
    "tpu.trace_start"() <{level = 10 : i32, message = "bqk,bkd->bqd"}> : () -> ()
    %cst_27 = arith.constant dense<0.000000e+00> : vector<1x8x64xf32>
    %93 = tpu.matmul %91, %92, %cst_27 {dimension_numbers = #tpu.dot_dimension_numbers<[2], [1], [1], [2], [0, 0, 0, 1, 1, 2], [0], [0]>} : vector<1x8x8xbf16>, vector<1x8x64xbf16>, vector<1x8x64xf32> -> vector<1x8x64xf32>
    "tpu.trace_stop"() : () -> ()
    %94 = vector.extract_strided_slice %29 {offsets = [0, 0, 192], sizes = [1, 8, 64], strides = [1, 1, 1]} : vector<1x8x768xf32> to vector<1x8x64xf32>
    %95 = vector.extract_strided_slice %29 {offsets = [0, 0, 448], sizes = [1, 8, 64], strides = [1, 1, 1]} : vector<1x8x768xf32> to vector<1x8x64xf32>
    %96 = vector.extract_strided_slice %29 {offsets = [0, 0, 704], sizes = [1, 8, 64], strides = [1, 1, 1]} : vector<1x8x768xf32> to vector<1x8x64xf32>
    %97 = arith.truncf %94 : vector<1x8x64xf32> to vector<1x8x64xbf16>
    %98 = arith.truncf %95 : vector<1x8x64xf32> to vector<1x8x64xbf16>
    "tpu.trace_start"() <{level = 10 : i32, message = "bqd,bkd->bqk"}> : () -> ()
    %cst_28 = arith.constant dense<0.000000e+00> : vector<1x8x8xf32>
    %99 = tpu.matmul %97, %98, %cst_28 {dimension_numbers = #tpu.dot_dimension_numbers<[2], [2], [1], [1], [0, 0, 0, 1, 1, 1], [0], [0]>} : vector<1x8x64xbf16>, vector<1x8x64xbf16>, vector<1x8x8xf32> -> vector<1x8x8xf32>
    %cst_29 = arith.constant -1.000000e+30 : f32
    "tpu.trace_stop"() : () -> ()
    %100 = vector.broadcast %cst_29 : f32 to vector<1x8x8xf32>
    %101 = arith.select %33, %99, %100 : vector<1x8x8xi1>, vector<1x8x8xf32>
    %cst_30 = arith.constant dense<0xFF800000> : vector<1x8xf32>
    %102 = vector.multi_reduction <maximumf>, %101, %cst_30 [2] : vector<1x8x8xf32> to vector<1x8xf32>
    %103 = vector.shape_cast %102 : vector<1x8xf32> to vector<1x8x1xf32>
    %104 = vector.broadcast %103 : vector<1x8x1xf32> to vector<1x8x8xf32>
    %105 = arith.subf %101, %104 : vector<1x8x8xf32>
    %106 = math.exp %105 : vector<1x8x8xf32>
    %cst_31 = arith.constant dense<0.000000e+00> : vector<1x8xf32>
    %107 = vector.multi_reduction <add>, %106, %cst_31 [2] : vector<1x8x8xf32> to vector<1x8xf32>
    %108 = vector.shape_cast %107 : vector<1x8xf32> to vector<1x8x1xf32>
    %109 = vector.broadcast %108 : vector<1x8x1xf32> to vector<1x8x8xf32>
    %110 = arith.divf %106, %109 : vector<1x8x8xf32>
    %111 = arith.truncf %110 : vector<1x8x8xf32> to vector<1x8x8xbf16>
    %112 = arith.truncf %96 : vector<1x8x64xf32> to vector<1x8x64xbf16>
    "tpu.trace_start"() <{level = 10 : i32, message = "bqk,bkd->bqd"}> : () -> ()
    %cst_32 = arith.constant dense<0.000000e+00> : vector<1x8x64xf32>
    %113 = tpu.matmul %111, %112, %cst_32 {dimension_numbers = #tpu.dot_dimension_numbers<[2], [1], [1], [2], [0, 0, 0, 1, 1, 2], [0], [0]>} : vector<1x8x8xbf16>, vector<1x8x64xbf16>, vector<1x8x64xf32> -> vector<1x8x64xf32>
    "tpu.trace_stop"() : () -> ()
    %114 = tpu.concatenate %53, %73, %93, %113 in 2 : vector<1x8x64xf32>, vector<1x8x64xf32>, vector<1x8x64xf32>, vector<1x8x64xf32> -> vector<1x8x256xf32>
    %115 = vector.shape_cast %114 : vector<1x8x256xf32> to vector<8x256xf32>
    %116 = arith.truncf %115 : vector<8x256xf32> to vector<8x256xbf16>
    %c0_33 = arith.constant 0 : index
    %c0_34 = arith.constant 0 : index
    %117 = vector.load %arg5[%c0_33, %c0_34] : memref<256x384xbf16, #tpu.memory_space<vmem>>, vector<256x384xbf16>
    %cst_35 = arith.constant dense<0.000000e+00> : vector<8x384xf32>
    %118 = tpu.matmul %116, %117, %cst_35 {dimension_numbers = #tpu.dot_dimension_numbers<[1], [0], [0], [1], [0, 0, 1, 1], [], []>} : vector<8x256xbf16>, vector<256x384xbf16>, vector<8x384xf32> -> vector<8x384xf32>
    %c0_36 = arith.constant 0 : index
    %c0_37 = arith.constant 0 : index
    %119 = vector.load %arg6[%c0_36, %c0_37] : memref<1x384xf32, #tpu.memory_space<vmem>>, vector<1x384xf32>
    %120 = vector.broadcast %119 : vector<1x384xf32> to vector<8x384xf32>
    %121 = arith.addf %118, %120 : vector<8x384xf32>
    %122 = arith.addf %1, %121 : vector<8x384xf32>
    %c0_38 = arith.constant 0 : index
    %c0_39 = arith.constant 0 : index
    %123 = vector.load %arg7[%c0_38, %c0_39] : memref<1x384xf32, #tpu.memory_space<vmem>>, vector<1x384xf32>
    %c0_40 = arith.constant 0 : index
    %c0_41 = arith.constant 0 : index
    %124 = vector.load %arg8[%c0_40, %c0_41] : memref<1x384xf32, #tpu.memory_space<vmem>>, vector<1x384xf32>
    %cst_42 = arith.constant dense<0.000000e+00> : vector<8xf32>
    %125 = vector.multi_reduction <add>, %122, %cst_42 [1] : vector<8x384xf32> to vector<8xf32>
    %126 = vector.shape_cast %125 : vector<8xf32> to vector<8x1xf32>
    %cst_43 = arith.constant 3.840000e+02 : f32
    %127 = vector.broadcast %cst_43 : f32 to vector<8x1xf32>
    %128 = arith.divf %126, %127 : vector<8x1xf32>
    %129 = vector.broadcast %128 : vector<8x1xf32> to vector<8x384xf32>
    %130 = arith.subf %122, %129 : vector<8x384xf32>
    %131 = arith.mulf %130, %130 : vector<8x384xf32>
    %cst_44 = arith.constant dense<0.000000e+00> : vector<8xf32>
    %132 = vector.multi_reduction <add>, %131, %cst_44 [1] : vector<8x384xf32> to vector<8xf32>
    %133 = vector.shape_cast %132 : vector<8xf32> to vector<8x1xf32>
    %cst_45 = arith.constant 3.840000e+02 : f32
    %134 = vector.broadcast %cst_45 : f32 to vector<8x1xf32>
    %135 = arith.divf %133, %134 : vector<8x1xf32>
    %136 = vector.broadcast %128 : vector<8x1xf32> to vector<8x384xf32>
    %137 = arith.subf %122, %136 : vector<8x384xf32>
    %cst_46 = arith.constant 9.99999974E-6 : f32
    %138 = vector.broadcast %cst_46 : f32 to vector<8x1xf32>
    %139 = arith.addf %135, %138 : vector<8x1xf32>
    %140 = math.rsqrt %139 : vector<8x1xf32>
    %141 = vector.broadcast %140 : vector<8x1xf32> to vector<8x384xf32>
    %142 = arith.mulf %137, %141 : vector<8x384xf32>
    %143 = vector.broadcast %123 : vector<1x384xf32> to vector<8x384xf32>
    %144 = arith.mulf %142, %143 : vector<8x384xf32>
    %145 = vector.broadcast %124 : vector<1x384xf32> to vector<8x384xf32>
    %146 = arith.addf %144, %145 : vector<8x384xf32>
    %147 = arith.truncf %146 : vector<8x384xf32> to vector<8x384xbf16>
    %c0_47 = arith.constant 0 : index
    %c0_48 = arith.constant 0 : index
    %148 = vector.load %arg9[%c0_47, %c0_48] : memref<384x1536xbf16, #tpu.memory_space<vmem>>, vector<384x1536xbf16>
    %cst_49 = arith.constant dense<0.000000e+00> : vector<8x1536xf32>
    %149 = tpu.matmul %147, %148, %cst_49 {dimension_numbers = #tpu.dot_dimension_numbers<[1], [0], [0], [1], [0, 0, 1, 1], [], []>} : vector<8x384xbf16>, vector<384x1536xbf16>, vector<8x1536xf32> -> vector<8x1536xf32>
    %c0_50 = arith.constant 0 : index
    %c0_51 = arith.constant 0 : index
    %150 = vector.load %arg10[%c0_50, %c0_51] : memref<1x1536xf32, #tpu.memory_space<vmem>>, vector<1x1536xf32>
    %151 = vector.broadcast %150 : vector<1x1536xf32> to vector<8x1536xf32>
    %152 = arith.addf %149, %151 : vector<8x1536xf32>
    %cst_52 = arith.constant 0.000000e+00 : f32
    %153 = vector.broadcast %cst_52 : f32 to vector<8x1536xf32>
    %154 = arith.maximumf %152, %153 : vector<8x1536xf32>
    %155 = arith.truncf %154 : vector<8x1536xf32> to vector<8x1536xbf16>
    %c0_53 = arith.constant 0 : index
    %c0_54 = arith.constant 0 : index
    %156 = vector.load %arg11[%c0_53, %c0_54] : memref<1536x384xbf16, #tpu.memory_space<vmem>>, vector<1536x384xbf16>
    %cst_55 = arith.constant dense<0.000000e+00> : vector<8x384xf32>
    %157 = tpu.matmul %155, %156, %cst_55 {dimension_numbers = #tpu.dot_dimension_numbers<[1], [0], [0], [1], [0, 0, 1, 1], [], []>} : vector<8x1536xbf16>, vector<1536x384xbf16>, vector<8x384xf32> -> vector<8x384xf32>
    %c0_56 = arith.constant 0 : index
    %c0_57 = arith.constant 0 : index
    %158 = vector.load %arg12[%c0_56, %c0_57] : memref<1x384xf32, #tpu.memory_space<vmem>>, vector<1x384xf32>
    %159 = vector.broadcast %158 : vector<1x384xf32> to vector<8x384xf32>
    %160 = arith.addf %157, %159 : vector<8x384xf32>
    %161 = arith.addf %122, %160 : vector<8x384xf32>
    %162 = vector.shape_cast %161 : vector<8x384xf32> to vector<1x8x384xf32>
    %c0_58 = arith.constant 0 : index
    %c0_59 = arith.constant 0 : index
    %c0_60 = arith.constant 0 : index
    %163 = vector.load %arg13[%c0_58, %c0_59, %c0_60] : memref<1x8x384xf32, #tpu.memory_space<vmem>>, vector<1x8x384xf32>
    tpu.vector_store %arg13[%c0_58, %c0_59, %c0_60], %162 {strides = array<i32>} : memref<1x8x384xf32, #tpu.memory_space<vmem>>, vector<1x8x384xf32>,
    return
  }
  func.func @transform_0(%arg0: i32) -> (i32, i32, i32) {
    %c0_i32 = arith.constant 0 : i32
    %c0_i32_0 = arith.constant 0 : i32
    %c0_i32_1 = arith.constant 0 : i32
    return %arg0, %c0_i32, %c0_i32_0 : i32, i32, i32
  }
  func.func @transform_1(%arg0: i32) -> (i32, i32) {
    %c0_i32 = arith.constant 0 : i32
    %c0_i32_0 = arith.constant 0 : i32
    %c0_i32_1 = arith.constant 0 : i32
    return %c0_i32, %c0_i32_0 : i32, i32
  }
  func.func @transform_2(%arg0: i32) -> (i32, i32) {
    %c0_i32 = arith.constant 0 : i32
    %c0_i32_0 = arith.constant 0 : i32
    %c0_i32_1 = arith.constant 0 : i32
    return %c0_i32, %c0_i32_0 : i32, i32
  }
  func.func @transform_3(%arg0: i32) -> (i32, i32) {
    %c0_i32 = arith.constant 0 : i32
    %c0_i32_0 = arith.constant 0 : i32
    %c0_i32_1 = arith.constant 0 : i32
    return %c0_i32, %c0_i32_0 : i32, i32
  }
  func.func @transform_4(%arg0: i32) -> (i32, i32) {
    %c0_i32 = arith.constant 0 : i32
    %c0_i32_0 = arith.constant 0 : i32
    %c0_i32_1 = arith.constant 0 : i32
    return %c0_i32, %c0_i32_0 : i32, i32
  }
  func.func @transform_5(%arg0: i32) -> (i32, i32) {
    %c0_i32 = arith.constant 0 : i32
    %c0_i32_0 = arith.constant 0 : i32
    %c0_i32_1 = arith.constant 0 : i32
    return %c0_i32, %c0_i32_0 : i32, i32
  }
  func.func @transform_6(%arg0: i32) -> (i32, i32) {
    %c0_i32 = arith.constant 0 : i32
    %c0_i32_0 = arith.constant 0 : i32
    %c0_i32_1 = arith.constant 0 : i32
    return %c0_i32, %c0_i32_0 : i32, i32
  }
  func.func @transform_7(%arg0: i32) -> (i32, i32) {
    %c0_i32 = arith.constant 0 : i32
    %c0_i32_0 = arith.constant 0 : i32
    %c0_i32_1 = arith.constant 0 : i32
    return %c0_i32, %c0_i32_0 : i32, i32
  }
  func.func @transform_8(%arg0: i32) -> (i32, i32) {
    %c0_i32 = arith.constant 0 : i32
    %c0_i32_0 = arith.constant 0 : i32
    %c0_i32_1 = arith.constant 0 : i32
    return %c0_i32, %c0_i32_0 : i32, i32
  }
  func.func @transform_9(%arg0: i32) -> (i32, i32) {
    %c0_i32 = arith.constant 0 : i32
    %c0_i32_0 = arith.constant 0 : i32
    %c0_i32_1 = arith.constant 0 : i32
    return %c0_i32, %c0_i32_0 : i32, i32
  }
  func.func @transform_10(%arg0: i32) -> (i32, i32) {
    %c0_i32 = arith.constant 0 : i32
    %c0_i32_0 = arith.constant 0 : i32
    %c0_i32_1 = arith.constant 0 : i32
    return %c0_i32, %c0_i32_0 : i32, i32
  }
  func.func @transform_11(%arg0: i32) -> (i32, i32) {
    %c0_i32 = arith.constant 0 : i32
    %c0_i32_0 = arith.constant 0 : i32
    %c0_i32_1 = arith.constant 0 : i32
    return %c0_i32, %c0_i32_0 : i32, i32
  }
  func.func @transform_12(%arg0: i32) -> (i32, i32, i32) {
    %c0_i32 = arith.constant 0 : i32
    %c0_i32_0 = arith.constant 0 : i32
    %c0_i32_1 = arith.constant 0 : i32
    return %arg0, %c0_i32, %c0_i32_0 : i32, i32, i32
  }
}

</mosaic_0001>

<bundles_post_ra>
// kernel: tpu_custom_call.1
= control target key start
LH: loop header
LB: loop body
LE: loop exit
PB: predicated region body
PF: predicated region fallthrough
CT: control target
= control target key end

     0   :  { %s11070_s0 = inlined_call_operand.hbm [shape: f32[2,8,384], index: 0, kind: input, shape index: {}]   ;;  %s11071_s1 = inlined_call_operand.hbm [shape: f32[1,384], index: 1, kind: input, shape index: {}]   ;;  %s11072_s2 = inlined_call_operand.hbm [shape: f32[1,384], index: 2, kind: input, shape index: {}]   ;;  %s11073_s3 = inlined_call_operand.hbm [shape: bf16[384,768], index: 3, kind: input, shape index: {}]   ;;  %s11074_s4 = inlined_call_operand.hbm [shape: bf16[256,384], index: 4, kind: input, shape index: {}]   ;;  %s11075_s5 = inlined_call_operand.hbm [shape: f32[1,384], index: 5, kind: input, shape index: {}]   ;;  %s11076_s6 = inlined_call_operand.hbm [shape: f32[1,384], index: 6, kind: input, shape index: {}]   ;;  %s11077_s7 = inlined_call_operand.hbm [shape: f32[1,384], index: 7, kind: input, shape index: {}]   ;;  %s11078_s8 = inlined_call_operand.hbm [shape: bf16[384,1536], index: 8, kind: input, shape index: {}]   ;;  %s11079_s9 = inlined_call_operand.hbm [shape: f32[1,1536], index: 9, kind: input, shape index: {}]   ;;  %s11080_s10 = inlined_call_operand.hbm [shape: bf16[1536,384], index: 10, kind: input, shape index: {}]   ;;  %s11081_s11 = inlined_call_operand.hbm [shape: f32[1,384], index: 11, kind: input, shape index: {}]   ;;  %s11082_s12 = inlined_call_operand.hbm [shape: f32[2,8,384], index: 12, kind: output, shape index: {}]  }
   0x1   :  { %11089 = sst [smem:[#allocation31_spill]] %s11071_s1 }
   0x2   :  { %11090 = sst [smem:[#allocation32_spill]] %s11072_s2 }
   0x3   :  { %11091 = sst [smem:[#allocation33_spill]] %s11073_s3 }
   0x4   :  { %11092 = sst [smem:[#allocation34_spill]] %s11074_s4 }
   0x5   :  { %11093 = sst [smem:[#allocation35_spill]] %s11075_s5 }
   0x6   :  { %11094 = sst [smem:[#allocation36_spill]] %s11076_s6 }
   0x7   :  { %11095 = sst [smem:[#allocation37_spill]] %s11077_s7 }
   0x8   :  { %17 = vsyncpa [#allocation3], 0 }
   0x9   :  { %19 = vsyncpa [#allocation3 + $0x1], 0 }
   0xa   :  { %20 = vsyncpa [#allocation6], 0 }
   0xb   :  { %21 = vsyncpa [#allocation9], 0 }
   0xc   :  { %22 = vsyncpa [#allocation12], 0 }
   0xd   :  { %23 = vsyncpa [#allocation15], 0 }
   0xe   :  { %24 = vsyncpa [#allocation18], 0 }
   0xf   :  { %25 = vsyncpa [#allocation21], 0 }
  0x10   :  { %26 = vsyncpa [#allocation4], 0 }
  0x11   :  { %28 = vsyncpa [#allocation4 + $0x1], 0  ;;  %s10442_s21 = smov 0   ;;  %s10444_s22 = smov 0  }
  0x12   :  { %s10446_s23 = smov 0   ;;  %s10448_s24 = smov 0  }
  0x13 LB: > { %s10354_s25 = smov [#allocation5]   ;;  %s10463_s27 = sadd.s32 4294967295, %s10352_s24   ;;  %s10352_s24 = sphi %s10448_s24, %s11133_s24   ;;  %s10348_s23 = sphi %s10446_s23, %s11132_s23   ;;  %s10344_s22 = sphi %s10444_s22, %s11131_s22   ;;  %s10340_s21 = sphi %s10442_s21, %s11130_s21  }
  0x14   : > { %s335_s26 = sshll.u32 %s10354_s25, 4  ;;  %p7632_p0 = scmp.ge.s32.totalorder %s10352_s24, 1  ;;  %s336_s26 = int_to_ptr.vmem [resolvable:$true] %s335_s26 }
  0x15   : > { %p11083_p1 = scmp.eq.s32.totalorder %s10463_s27, 0  ;;  %p322_p2 = scmp.lt.s32.totalorder %s10352_s24, 3 }
  0x16   : > { %s10355_s29 = smov [#allocation8]   ;;  %s10356_s14 = smov [#allocation11]  }
  0x17   : > { %p10468_p3 = pnand %p7632_p0, %p322_p2  ;;  %s356_s30 = sshll.u32 %s10355_s29, 4  ;;  %s10475_s30 = int_to_ptr.vmem [resolvable:$true] %s356_s30 }
  0x18   : > { %s383_s15 = sshll.u32 %s10356_s14, 4  ;;  %s9961_s17 = scalar_lea.vmem %s336_s26, 48  ;;  %s10483_s15 = int_to_ptr.vmem [resolvable:$true] %s383_s15 }
  0x19   : > { %s11096_s28 = scalar_select %p10468_p3, 1, 0 }
  0x1a   : > { %p8707_p5 = pneg %p10468_p3  ;;  %p9962_p8 = scmp.ne.s32.totalorder %s336_s26, %s9961_s17 }
  0x1b   : > { %s9968_s18 = scalar_lea.vmem %s336_s26, 64  ;;  %p9969_p11 = scmp.lt.s32.totalorder %s336_s26, %s336_s26 }
  0x1c   : > { %p10479_p6 = pnand %p8707_p5, %p11083_p1  ;;  %p9970_p12 = scmp.lt.s32.totalorder %s9968_s18, %s9961_s17 }
  0x1e   : > { %p10487_p7 = pneg %p10479_p6  ;;  %p9971_p13 = por %p9970_p12, %p9969_p11 }
  0x20   : > { %p9964_p9 = pnand %p9962_p8, %p10487_p7 }
  0x22   : > { %p9965_p10 = pneg %p9964_p9 }
  0x24   : > { %p9972_p0 = pnand %p9971_p13, %p9965_p10 }
  0x26   : > { %9975 = shalt.err (!%p9972_p0)
}
  0x27   : > { %s11099_s1 = sld [smem:[#allocation31_spill]]  ;;  %s9987_s25 = scalar_lea.vmem %s10475_s30, 18432 }
  0x28   : > { %p9988_p2 = scmp.ne.s32.totalorder %s10475_s30, %s9987_s25  ;;  %p9995_p9 = scmp.lt.s32.totalorder %s10475_s30, %s10475_s30 }
  0x29   : > { %p9996_p11 = scmp.lt.s32.totalorder %s9987_s25, %s9987_s25 }
  0x2a   : > { %p9990_p5 = pnand %p9988_p2, %p10487_p7 }
  0x2b   : > { %p9997_p10 = por %p9996_p11, %p9995_p9 }
  0x2c   : > { %p9991_p8 = pneg %p9990_p5 }
  0x2d   : > { %8710 = dma.hbm_to_vmem [thread:$0]  (!%p10479_p6), %s11099_s1, 48, %s336_s26, [#allocation6]  }
  0x2e   : > { %p9998_p12 = pnand %p9997_p10, %p9991_p8 }
  0x30   : > { %10001 = shalt.err (!%p9998_p12)
}
  0x31   : > { %s10357_s29 = smov 384   ;;  %s10358_s26 = smov 24  }
  0x32   : > { %s11100_s3 = sld [smem:[#allocation33_spill]]  ;;  %s10013_s18 = scalar_lea.vmem %s10483_s15, 48 }
  0x33   : > { %p10014_p13 = scmp.ne.s32.totalorder %s10483_s15, %s10013_s18  ;;  %s10020_s19 = scalar_lea.vmem %s10483_s15, 64 }
  0x34   : > { %p10021_p5 = scmp.lt.s32.totalorder %s10483_s15, %s10483_s15  ;;  %p10022_p8 = scmp.lt.s32.totalorder %s10020_s19, %s10013_s18 }
  0x35   : > { %p10016_p0 = pnand %p10014_p13, %p10487_p7 }
  0x36   : > { %p10023_p9 = por %p10022_p8, %p10021_p5 }
  0x37   : > { %p10017_p2 = pneg %p10016_p0 }
  0x38   : > { %8716 = dma.hbm_to_vmem [thread:$0]  (!%p10479_p6), %s11100_s3, 18432, %s10475_s30, [#allocation9], %s10357_s29, %s10357_s29, %s10358_s26  }
  0x39   : > { %p10024_p11 = pnand %p10023_p9, %p10017_p2 }
  0x3b   : > { %10027 = shalt.err (!%p10024_p11)
}
  0x3c   : > { %s11101_s5 = sld [smem:[#allocation35_spill]]  ;;  %s10359_s30 = smov [#allocation14]  }
  0x3d   : > { %s405_s29 = sshll.u32 %s10359_s30, 4  ;;  %s10360_s26 = smov [#allocation17]   ;;  %s406_s29 = int_to_ptr.vmem [resolvable:$true] %s405_s29 }
  0x3e   : > { %s429_s14 = sshll.u32 %s10360_s26, 4  ;;  %s10039_s17 = scalar_lea.vmem %s406_s29, 48  ;;  %s430_s14 = int_to_ptr.vmem [resolvable:$true] %s429_s14 }
  0x3f   : > { %p10040_p10 = scmp.ne.s32.totalorder %s406_s29, %s10039_s17  ;;  %s10046_s18 = scalar_lea.vmem %s406_s29, 64 }
  0x40   : > { %p10047_p0 = scmp.lt.s32.totalorder %s406_s29, %s406_s29  ;;  %p10048_p2 = scmp.lt.s32.totalorder %s10046_s18, %s10039_s17 }
  0x41   : > { %p10042_p12 = pnand %p10040_p10, %p10487_p7 }
  0x42   : > { %8722 = dma.hbm_to_vmem [thread:$0]  (!%p10479_p6), %s11101_s5, 48, %s10483_s15, [#allocation12]  }
  0x43   : > { %p10043_p13 = pneg %p10042_p12  ;;  %p10049_p5 = por %p10048_p2, %p10047_p0 }
  0x45   : > { %p10050_p8 = pnand %p10049_p5, %p10043_p13 }
  0x47   : > { %10053 = shalt.err (!%p10050_p8)
}
  0x48   : > { %s11102_s7 = sld [smem:[#allocation37_spill]]  ;;  %s10065_s20 = scalar_lea.vmem %s430_s14, 192 }
  0x49   : > { %p10066_p9 = scmp.ne.s32.totalorder %s430_s14, %s10065_s20  ;;  %p10073_p12 = scmp.lt.s32.totalorder %s430_s14, %s430_s14 }
  0x4a   : > { %p10074_p4 = scmp.lt.s32.totalorder %s10065_s20, %s10065_s20 }
  0x4b   : > { %p10068_p11 = pnand %p10066_p9, %p10487_p7 }
  0x4c   : > { %p10075_p1 = por %p10074_p4, %p10073_p12 }
  0x4d   : > { %p10069_p10 = pneg %p10068_p11 }
  0x4e   : > { %8728 = dma.hbm_to_vmem [thread:$0]  (!%p10479_p6), %s11102_s7, 48, %s406_s29, [#allocation15]  }
  0x4f   : > { %p10076_p3 = pnand %p10075_p1, %p10069_p10 }
  0x51   : > { %10079 = shalt.err (!%p10076_p3)
}
  0x52   : > { %8734 = dma.hbm_to_vmem [thread:$0]  (!%p10479_p6), %s11079_s9, 192, %s430_s14, [#allocation18]  }
  0x53   : > { %s10361_s26 = smov [#allocation7]   ;;  %s10362_s17 = smov [#allocation10]  }
  0x54   : > { %s346_s29 = sshll.u32 %s10361_s26, 4  ;;  %s369_s18 = sshll.u32 %s10362_s17, 4  ;;  %s347_s29 = int_to_ptr.vmem [resolvable:$true] %s346_s29  ;;  %s370_s18 = int_to_ptr.vmem [resolvable:$true] %s369_s18 }
  0x55   : > { %s10091_s19 = scalar_lea.vmem %s347_s29, 48  ;;  %s10098_s15 = scalar_lea.vmem %s347_s29, 64 }
  0x56   : > { %p10092_p13 = scmp.ne.s32.totalorder %s347_s29, %s10091_s19  ;;  %p10099_p1 = scmp.lt.s32.totalorder %s347_s29, %s347_s29 }
  0x57   : > { %p10100_p3 = scmp.lt.s32.totalorder %s10098_s15, %s10091_s19 }
  0x58   : > { %p10094_p0 = pnand %p10092_p13, %p10487_p7 }
  0x59   : > { %p10101_p4 = por %p10100_p3, %p10099_p1 }
  0x5a   : > { %p10095_p2 = pneg %p10094_p0 }
  0x5c   : > { %p10102_p5 = pnand %p10101_p4, %p10095_p2 }
  0x5e   : > { %10105 = shalt.err (!%p10102_p5)
}
  0x5f   : > { %s11103_s2 = sld [smem:[#allocation32_spill]]  ;;  %s10117_s25 = scalar_lea.vmem %s370_s18, 6144 }
  0x60   : > { %p10118_p8 = scmp.ne.s32.totalorder %s370_s18, %s10117_s25  ;;  %p10125_p10 = scmp.lt.s32.totalorder %s370_s18, %s370_s18 }
  0x61   : > { %p10126_p12 = scmp.lt.s32.totalorder %s10117_s25, %s10117_s25 }
  0x62   : > { %p10120_p9 = pnand %p10118_p8, %p10487_p7 }
  0x63   : > { %p10127_p13 = por %p10126_p12, %p10125_p10 }
  0x64   : > { %p10121_p11 = pneg %p10120_p9 }
  0x65   : > { %8713 = dma.hbm_to_vmem [thread:$0]  (!%p10479_p6), %s11103_s2, 48, %s347_s29, [#allocation6]  }
  0x66   : > { %p10128_p0 = pnand %p10127_p13, %p10121_p11 }
  0x68   : > { %10131 = shalt.err (!%p10128_p0)
}
  0x69   : > { %s11085_s30 = smov 192   ;;  %s11086_s26 = smov 12  }
  0x6a   : > { %s11104_s4 = sld [smem:[#allocation34_spill]]  ;;  %s10365_s19 = smov [#allocation13]  }
  0x6b   : > { %s394_s15 = sshll.u32 %s10365_s19, 4  ;;  %s10366_s20 = smov [#allocation16]   ;;  %s395_s15 = int_to_ptr.vmem [resolvable:$true] %s394_s15 }
  0x6c   : > { %s415_s14 = sshll.u32 %s10366_s20, 4  ;;  %s10143_s25 = scalar_lea.vmem %s395_s15, 48  ;;  %s416_s14 = int_to_ptr.vmem [resolvable:$true] %s415_s14 }
  0x6d   : > { %p10144_p2 = scmp.ne.s32.totalorder %s395_s15, %s10143_s25  ;;  %s10150_s1 = scalar_lea.vmem %s395_s15, 64 }
  0x6e   : > { %p10151_p4 = scmp.lt.s32.totalorder %s395_s15, %s395_s15  ;;  %p10152_p5 = scmp.lt.s32.totalorder %s10150_s1, %s10143_s25 }
  0x6f   : > { %p10146_p1 = pnand %p10144_p2, %p10487_p7 }
  0x70   : > { %8719 = dma.hbm_to_vmem [thread:$0]  (!%p10479_p6), %s11104_s4, 6144, %s370_s18, [#allocation9], %s11085_s30, %s11085_s30, %s11086_s26  }
  0x71   : > { %p10147_p3 = pneg %p10146_p1  ;;  %p10153_p8 = por %p10152_p5, %p10151_p4 }
  0x73   : > { %p10154_p9 = pnand %p10153_p8, %p10147_p3 }
  0x75   : > { %10157 = shalt.err (!%p10154_p9)
}
  0x76   : > { %s11105_s6 = sld [smem:[#allocation36_spill]]  ;;  %s10169_s17 = scalar_lea.vmem %s416_s14, 36864 }
  0x77   : > { %p10170_p11 = scmp.ne.s32.totalorder %s416_s14, %s10169_s17  ;;  %p10177_p13 = scmp.lt.s32.totalorder %s416_s14, %s416_s14 }
  0x78   : > { %p10178_p0 = scmp.lt.s32.totalorder %s10169_s17, %s10169_s17 }
  0x79   : > { %p10172_p10 = pnand %p10170_p11, %p10487_p7 }
  0x7a   : > { %p10179_p2 = por %p10178_p0, %p10177_p13 }
  0x7b   : > { %p10173_p12 = pneg %p10172_p10 }
  0x7c   : > { %8725 = dma.hbm_to_vmem [thread:$0]  (!%p10479_p6), %s11105_s6, 48, %s395_s15, [#allocation12]  }
  0x7d   : > { %p10180_p1 = pnand %p10179_p2, %p10173_p12 }
  0x7f   : > { %10183 = shalt.err (!%p10180_p1)
}
  0x80   : > { %s10367_s1 = smov 768   ;;  %s10368_s19 = smov 48  }
  0x81   : > { %8731 = dma.hbm_to_vmem [thread:$0]  (!%p10479_p6), %s11078_s8, 36864, %s416_s14, [#allocation15], %s10367_s1, %s10367_s1, %s10368_s19  }
  0x82   : > { %s10369_s15 = smov [#allocation19]   ;;  %s10370_s18 = smov [#allocation20]  }
  0x83   : > { %s439_s29 = sshll.u32 %s10369_s15, 4  ;;  %s453_s30 = sshll.u32 %s10370_s18, 4  ;;  %s440_s29 = int_to_ptr.vmem [resolvable:$true] %s439_s29  ;;  %s454_s30 = int_to_ptr.vmem [resolvable:$true] %s453_s30 }
  0x84   : > { %s10195_s26 = scalar_lea.vmem %s440_s29, 36864  ;;  %p10203_p8 = scmp.lt.s32.totalorder %s440_s29, %s440_s29 }
  0x85   : > { %p10196_p3 = scmp.ne.s32.totalorder %s440_s29, %s10195_s26  ;;  %p10204_p9 = scmp.lt.s32.totalorder %s10195_s26, %s10195_s26 }
  0x87   : > { %p10198_p4 = pnand %p10196_p3, %p10487_p7  ;;  %p10205_p11 = por %p10204_p9, %p10203_p8 }
  0x89   : > { %p10199_p5 = pneg %p10198_p4 }
  0x8b   : > { %p10206_p10 = pnand %p10205_p11, %p10199_p5 }
  0x8d   : > { %10209 = shalt.err (!%p10206_p10)
}
  0x8e   : > { %s11106_s17 = smov 12   ;;  %s11107_s20 = smov 192  }
  0x8f   : > { %8737 = dma.hbm_to_vmem [thread:$0]  (!%p10479_p6), %s11080_s10, 36864, %s440_s29, [#allocation18], %s11107_s20, %s11107_s20, %s11106_s17  }
  0x90   : > { %s10221_s19 = scalar_lea.vmem %s454_s30, 48  ;;  %s10228_s26 = scalar_lea.vmem %s454_s30, 64 }
  0x91   : > { %p10222_p12 = scmp.ne.s32.totalorder %s454_s30, %s10221_s19  ;;  %p10229_p2 = scmp.lt.s32.totalorder %s454_s30, %s454_s30 }
  0x92   : > { %p10230_p1 = scmp.lt.s32.totalorder %s10228_s26, %s10221_s19 }
  0x93   : > { %p10224_p13 = pnand %p10222_p12, %p10487_p7 }
  0x94   : > { %p10231_p3 = por %p10230_p1, %p10229_p2 }
  0x95   : > { %p10225_p0 = pneg %p10224_p13 }
  0x97   : > { %p10232_p4 = pnand %p10231_p3, %p10225_p0 }
  0x99   : > { %10235 = shalt.err (!%p10232_p4)
}
  0x9a   : > { %8740 = dma.hbm_to_vmem [thread:$0]  (!%p10479_p6), %s11081_s11, 48, %s454_s30, [#allocation21]  }
  0x9b   : > { %s7631_s16 = sadd.s32 4294967294, %s10352_s24   ;;  %s10587_s13 = sadd.s32 1, %s10352_s24  }
  0x9c   : > { %s41_s29 = sadd.s32 1, %s10348_s23  ;;  %s38_s18 = ssub.s32 %s10352_s24, %s10587_s13 }
  0x9d   : > { %p48_p7 = scmp.ne.s32.totalorder %s10348_s23, %s10344_s22  ;;  %p39_p5 = scmp.eq.s32.totalorder %s38_s18, 0 }
  0x9e   : > { %p49_p8 = scmp.eq.s32.totalorder %s10352_s24, 0  ;;  %p54_p9 = scmp.ne.s32.totalorder %s10344_s22, %s10340_s21 }
  0x9f   : > { %p309_p11 = scmp.eq.s32.totalorder %s10463_s27, 1  ;;  %p11108_p12 = scmp.eq.s32.totalorder %s10463_s27, 0 }
  0xa0   : > { %s10599_s17 = scalar_select %p39_p5, %s10348_s23, %s41_s29  }
  0xa1   : > { %p50_p10 = por %p49_p8, %p48_p7  ;;  %p10603_p13 = por %p11108_p12, %p54_p9 }
  0xa2   : > { %p10607_p6 = por %p309_p11, %p48_p7  ;;  %p315_p0 = scmp.eq.s32.totalorder %s7631_s16, 1 }
  0xa3   : > { %s11109_s20 = scalar_select %p10603_p13, 1, 0 }
  0xa4   : > { %s11110_s30 = scalar_select %p10607_p6, 1, 0 }
  0xa5   : > { %p8760_p2 = scmp.lt.s32.totalorder %s10352_s24, 2  ;;  %s464_s14 = sand.u32 1, %s10348_s23  }
  0xa6   : > { %p10613_p1 = por %p315_p0, %p54_p9  ;;  %s8655_s19 = smul.u32 24, %s464_s14 }
  0xa7   : > { %p10617_p3 = pnand %p8760_p2, %p50_p10  ;;  %s8656_s25 = smul.u32 384, %s10352_s24 }
  0xa8   : > { %s11111_s1 = scalar_select %p10613_p1, 1, 0 }
  0xa9   : > { %s10625_s18 = scalar_lea.hbm %s11070_s0, %s8656_s25  ;;  %s468_s16 = scalar_lea.vmem [#allocation2], %s8655_s19 }
  0xaa   : > { %s476_s2 = sshll.u32 %s468_s16, 4  ;;  %s465_s3 = scalar_lea.sflag [#allocation3], %s464_s14  ;;  %s477_s2 = int_to_ptr.vmem [resolvable:$true] %s476_s2 }
  0xab   : > { %s10236_s4 = scalar_lea.hbm %s10625_s18, 384  ;;  %p10238_p7 = pneg %p10617_p3 }
  0xac   : > { %p10237_p4 = scmp.ne.s32.totalorder %s10625_s18, %s10236_s4  ;;  %s10241_s7 = scalar_lea.hbm %s11070_s0, 768 }
  0xad   : > { %p10242_p9 = scmp.lt.s32.totalorder %s10625_s18, %s11070_s0  ;;  %p10243_p11 = scmp.lt.s32.totalorder %s10241_s7, %s10236_s4 }
  0xae   : > { %p10239_p5 = pnand %p10238_p7, %p10237_p4 }
  0xaf   : > { %p10244_p10 = por %p10243_p11, %p10242_p9 }
  0xb0   : > { %p10240_p8 = pneg %p10239_p5 }
  0xb2   : > { %p10245_p12 = pnand %p10244_p10, %p10240_p8 }
  0xb4   : > { %10248 = shalt.err (!%p10245_p12)
}
  0xb5   : > { %s10249_s19 = scalar_lea.vmem %s477_s2, 384  ;;  %s10371_s14 = smov [#allocation2]  }
  0xb6   : > { %p10250_p0 = scmp.ne.s32.totalorder %s477_s2, %s10249_s19  ;;  %s10254_s29 = sshll.u32 %s10371_s14, 4  ;;  %s10255_s29 = int_to_ptr.vmem [resolvable:$false] %s10254_s29 }
  0xb7   : > { %s10256_s16 = scalar_lea.vmem %s10255_s29, 768  ;;  %p10257_p4 = scmp.lt.s32.totalorder %s477_s2, %s10255_s29 }
  0xb8   : > { %p10252_p2 = pnand %p10250_p0, %p10238_p7  ;;  %p10258_p5 = scmp.lt.s32.totalorder %s10256_s16, %s10249_s19 }
  0xba   : > { %p10253_p1 = pneg %p10252_p2  ;;  %p10259_p6 = por %p10258_p5, %p10257_p4 }
  0xbc   : > { %p10260_p13 = pnand %p10259_p6, %p10253_p1 }
  0xbe   : > { %10263 = shalt.err (!%p10260_p13)
}
  0xbf   : > { %8744 = dma.hbm_to_vmem [thread:$0]  (!%p10617_p3), %s10625_s18, 384, %s477_s2, %s465_s3  }
  0xc0   : > { %p11113_p8 = scmp.ne.s32.totalorder %s11096_s28, 0 }
  0xc1   : > { %s10644_s4 = sand.u32 (!%p11113_p8), 1, %s10344_s22   ;;  %p11114_p13 = scmp.ne.s32.totalorder (!%p11113_p8), %s11109_s20, 0 }
  0xc2   : > { %485 = sbr.rel (%p11113_p8) target bundleno = 4462 (0x116e), region = 68  ;;  %s488_s6 = scalar_lea.sflag (!%p11113_p8), [#allocation3], %s10644_s4 }
  0xc3   : > { %s8657_s5 = smul.u32 (!%p11113_p8), 24, %s10644_s4 }
  0xc5   : > { %s10650_s7 = scalar_lea.vmem (!%p11113_p8), [#allocation2], %s8657_s5 }
  0xc7   : > { %10307 = dma.done.wait (%p11114_p13), %s488_s6, 384  }
  0xc8   : > { %10309 = vsyncadd (%p11114_p13), %s488_s6, 4294966912  ;;  %p11115_p6 = scmp.eq.s32.totalorder %s10463_s27, 0 }
  0xca   : > { %10311 = dma.done.wait (%p11115_p6), [#allocation6], 96   ;;  %p11116_p1 = pmov %p11115_p6 }
  0xcc   : > { %10313 = vsyncadd (%p11116_p1), [#allocation6], 4294967200  ;;  %p11117_p3 = pmov %p11116_p1 }
  0xcd   : > { %p11118_p7 = pmov %p11116_p1 }
  0xce   : > { %10315 = dma.done.wait (%p11117_p3), [#allocation9], 24576  }
  0xcf   : > { %10317 = vsyncadd (%p11118_p7), [#allocation9], 4294942720  ;;  %p11119_p9 = pmov %p11116_p1 }
  0xd0   : > { %p11120_p11 = pmov %p11116_p1 }
  0xd1   : > { %10319 = dma.done.wait (%p11119_p9), [#allocation12], 96  }
  0xd2   : > { %10321 = vsyncadd (%p11120_p11), [#allocation12], 4294967200  ;;  %p11121_p10 = pmov %p11116_p1 }
  0xd3   : > { %p11122_p12 = pmov %p11116_p1 }
  0xd4   : > { %10323 = dma.done.wait (%p11121_p10), [#allocation15], 36912  }
  0xd5   : > { %10325 = vsyncadd (%p11122_p12), [#allocation15], 4294930384  ;;  %p11123_p0 = pmov %p11116_p1 }
  0xd7   : > { %10327 = dma.done.wait (%p11123_p0), [#allocation18], 37056   ;;  %p11124_p2 = pmov %p11123_p0 }
  0xd8   : > { %p11125_p4 = pmov %p11123_p0 }
  0xd9   : > { %10329 = vsyncadd (%p11124_p2), [#allocation18], 4294930240 }
  0xda   : > { %10331 = dma.done.wait (%p11125_p4), [#allocation21], 48   ;;  %p11126_p5 = pmov %p11123_p0 }
  0xdb   : > { %v577_v0 = vld [vmem:[%s10650_s7] sm:$0xff]  ;;  %v578_v1 = vld [vmem:[%s10650_s7 + $0x8] sm:$0xff]  ;;  %v579_v2 = vld [vmem:[%s10650_s7 + $0x10] sm:$0xff]  ;;  %v10372_v58 = vmov 0   ;;  %vm10374_vm0 = vmmov 0   ;;  %vm1762_vm1 = vcmask 523264  }
  0xdc   : > { %10333 = vsyncadd (%p11126_p5), [#allocation21], 4294967248  ;;  %v582_v3 = vadd.f32 %v578_v1, %v577_v0  ;;  %v8831_v5 = vld [vmem:[#allocation8 + $0x154] ss:$24 sps:$4 sm:$0xff]   ;;  %v8833_v6 = vld [vmem:[#allocation8 + $0x150] ss:$24 sps:$4 sm:$0xff]   ;;  %1582 = vmatprep.mubr.bf16.mxu1 %v10372_v58 }
  0xdd   : > { %v8834_v7 = vld [vmem:[#allocation8 + $0x124] ss:$24 sps:$4 sm:$0xff]   ;;  %1509 = vmatprep.subr.bf16.mxu0 %v8831_v5  ;;  %v8836_v8 = vld [vmem:[#allocation8 + $0x120] ss:$24 sps:$4 sm:$0xff]   ;;  %v8837_v9 = vld [vmem:[#allocation8 + $0xf4] ss:$24 sps:$4 sm:$0xff]  }
  0xde   : > { %v583_v4 = vadd.f32 %v582_v3, %v579_v2  ;;  %1510 = vmatpush1.bf16.msra.mxu0 %v8833_v6  ;;  %v8855_v10 = vld [vmem:[#allocation8 + $0x454] ss:$24 sps:$4 sm:$0xff]   ;;  %v8859_v11 = vld [vmem:[#allocation8 + $0x450] ss:$24 sps:$4 sm:$0xff]   ;;  %v8861_v12 = vld [vmem:[#allocation8 + $0x424] ss:$24 sps:$4 sm:$0xff]  }
  0xdf   : > { %1511 = vmatprep.subr.bf16.mxu0 %v8834_v7  ;;  %v8839_v13 = vld [vmem:[#allocation8 + $0xf0] ss:$24 sps:$4 sm:$0xff]   ;;  %v8840_v14 = vld [vmem:[#allocation8 + $0xc4] ss:$24 sps:$4 sm:$0xff]   ;;  %1550 = vmatprep.subr.bf16.mxu1 %v8855_v10  ;;  %v8865_v15 = vld [vmem:[#allocation8 + $0x420] ss:$24 sps:$4 sm:$0xff]  }
  0xe0   : > { %584 = vadd.xlane.f32.xlu0 %v583_v4  ;;  %1551 = vmatpush1.bf16.msra.mxu1 %v8859_v11  ;;  %v8842_v16 = vld [vmem:[#allocation8 + $0xc0] ss:$24 sps:$4 sm:$0xff]   ;;  %v8843_v17 = vld [vmem:[#allocation8 + $0x94] ss:$24 sps:$4 sm:$0xff]   ;;  %v8845_v18 = vld [vmem:[#allocation8 + $0x90] ss:$24 sps:$4 sm:$0xff]  }
  0xe1   : > { %1552 = vmatprep.subr.bf16.mxu1 %v8861_v12  ;;  %v8846_v19 = vld [vmem:[#allocation8 + $0x64] ss:$24 sps:$4 sm:$0xff]   ;;  %v8848_v20 = vld [vmem:[#allocation8 + $0x60] ss:$24 sps:$4 sm:$0xff]   ;;  %v8849_v21 = vld [vmem:[#allocation8 + $0x34] ss:$24 sps:$4 sm:$0xff]  }
  0xe2   : > { %1512 = vmatpush1.bf16.msra.mxu0 %v8836_v8  ;;  %v8851_v22 = vld [vmem:[#allocation8 + $0x30] ss:$24 sps:$4 sm:$0xff]   ;;  %v8852_v23 = vld [vmem:[#allocation8 + $0x4] ss:$24 sps:$4 sm:$0xff]   ;;  %v8854_v24 = vld [vmem:[#allocation8] ss:$24 sps:$4 sm:$0xff]  }
  0xe3   : > { %1513 = vmatprep.subr.bf16.mxu0 %v8837_v9  ;;  %v8857_v25 = vld [vmem:[#allocation8 + $0x2d4] ss:$24 sps:$4 sm:$0xff]   ;;  %v8860_v26 = vld [vmem:[#allocation8 + $0x2d0] ss:$24 sps:$4 sm:$0xff]   ;;  %v8863_v27 = vld [vmem:[#allocation8 + $0x2a4] ss:$24 sps:$4 sm:$0xff]  }
  0xe4   : > { %1553 = vmatpush1.bf16.msra.mxu1 %v8865_v15  ;;  %v8866_v28 = vld [vmem:[#allocation8 + $0x2a0] ss:$24 sps:$4 sm:$0xff]   ;;  %v8867_v39 = vld [vmem:[#allocation8 + $0x3f4] ss:$24 sps:$4 sm:$0xff]   ;;  %v8871_v41 = vld [vmem:[#allocation8 + $0x3f0] ss:$24 sps:$4 sm:$0xff]  }
  0xe5   : > { %v8869_v40 = vld [vmem:[#allocation8 + $0x274] ss:$24 sps:$4 sm:$0xff]   ;;  %1554 = vmatprep.subr.bf16.mxu1 %v8867_v39  ;;  %v8872_v42 = vld [vmem:[#allocation8 + $0x270] ss:$24 sps:$4 sm:$0xff]   ;;  %v8873_v43 = vld [vmem:[#allocation8 + $0x3c4] ss:$24 sps:$4 sm:$0xff]  }
  0xe6   : > { %1514 = vmatpush1.bf16.msra.mxu0 %v8839_v13  ;;  %v8875_v44 = vld [vmem:[#allocation8 + $0x244] ss:$24 sps:$4 sm:$0xff]   ;;  %v8877_v45 = vld [vmem:[#allocation8 + $0x3c0] ss:$24 sps:$4 sm:$0xff]   ;;  %v8879_v47 = vld [vmem:[#allocation8 + $0x394] ss:$24 sps:$4 sm:$0xff]  }
  0xe7   : > { %1515 = vmatprep.subr.bf16.mxu0 %v8840_v14  ;;  %v8878_v46 = vld [vmem:[#allocation8 + $0x240] ss:$24 sps:$4 sm:$0xff]   ;;  %v8881_v48 = vld [vmem:[#allocation8 + $0x214] ss:$24 sps:$4 sm:$0xff]   ;;  %v8883_v49 = vld [vmem:[#allocation8 + $0x390] ss:$24 sps:$4 sm:$0xff]  }
  0xe8   : > { %1555 = vmatpush1.bf16.msra.mxu1 %v8871_v41  ;;  %v8884_v50 = vld [vmem:[#allocation8 + $0x210] ss:$24 sps:$4 sm:$0xff]   ;;  %v8885_v51 = vld [vmem:[#allocation8 + $0x364] ss:$24 sps:$4 sm:$0xff]   ;;  %v8889_v53 = vld [vmem:[#allocation8 + $0x360] ss:$24 sps:$4 sm:$0xff]  }
  0xe9   : > { %1556 = vmatprep.subr.bf16.mxu1 %v8873_v43  ;;  %v8887_v52 = vld [vmem:[#allocation8 + $0x1e4] ss:$24 sps:$4 sm:$0xff]   ;;  %v8890_v54 = vld [vmem:[#allocation8 + $0x1e0] ss:$24 sps:$4 sm:$0xff]   ;;  %v8891_v55 = vld [vmem:[#allocation8 + $0x334] ss:$24 sps:$4 sm:$0xff]  }
  0xea   : > { %1516 = vmatpush1.bf16.msra.mxu0 %v8842_v16  ;;  %v8893_v56 = vld [vmem:[#allocation8 + $0x1b4] ss:$24 sps:$4 sm:$0xff]   ;;  %v8895_v57 = vld [vmem:[#allocation8 + $0x330] ss:$24 sps:$4 sm:$0xff]   ;;  %v8897_v60 = vld [vmem:[#allocation8 + $0x304] ss:$24 sps:$4 sm:$0xff]  }
  0xeb   : > { %1517 = vmatprep.subr.bf16.mxu0 %v8843_v17  ;;  %v8896_v59 = vld [vmem:[#allocation8 + $0x1b0] ss:$24 sps:$4 sm:$0xff]   ;;  %v8899_v61 = vld [vmem:[#allocation8 + $0x184] ss:$24 sps:$4 sm:$0xff]   ;;  %v8901_v62 = vld [vmem:[#allocation8 + $0x300] ss:$24 sps:$4 sm:$0xff]  }
  0xec   : > { %1557 = vmatpush1.bf16.msra.mxu1 %v8877_v45  ;;  %v8902_v63 = vld [vmem:[#allocation8 + $0x180] ss:$24 sps:$4 sm:$0xff]   ;;  %v581_v11 = vld [vmem:[#allocation7] sm:$0x7]  ;;  %v8923_v41 = vld [vmem:[#allocation8 + $0xcc] ss:$24 sps:$4 sm:$0xff]  }
  0xed   : > { %1558 = vmatprep.subr.bf16.mxu1 %v8879_v47  ;;  %v580_v10 = vld [vmem:[#allocation5] sm:$0x7]  ;;  %v8921_v43 = vld [vmem:[#allocation8 + $0xc8] ss:$24 sps:$4 sm:$0xff]   ;;  %v8929_v45 = vld [vmem:[#allocation8 + $0x9c] ss:$24 sps:$4 sm:$0xff]  }
  0xee   : > { %1518 = vmatpush1.bf16.msra.mxu0 %v8845_v18  ;;  %v8915_v39 = vld [vmem:[#allocation8 + $0xf8] ss:$24 sps:$4 sm:$0xff]   ;;  %s10375_s2 = smov 64   ;;  %vm1827_vm2 = vcmask 1043456   ;;  %vm1810_vm4 = vcmask 64512   ;;  %s11025_s3 = scalar_lea.vmem [#allocation22], %s8657_s5 }
  0xef   : > { %1519 = vmatprep.subr.bf16.mxu0 %v8846_v19  ;;  %v8927_v47 = vld [vmem:[#allocation8 + $0x98] ss:$24 sps:$4 sm:$0xff]   ;;  %s8658_s28 = smul.u32 384, %s10463_s27  ;;  %s7456_s20 = sshll.u32 %s11025_s3, 4  ;;  %s7457_s20 = int_to_ptr.vmem [resolvable:$true] %s7456_s20 }
  0xf0   : > { %1559 = vmatpush1.bf16.msra.mxu1 %v8883_v49  ;;  %v8935_v49 = vld [vmem:[#allocation8 + $0x6c] ss:$24 sps:$4 sm:$0xff]   ;;  %s7442_s25 = scalar_lea.sflag [#allocation4], %s10644_s4  ;;  %s10264_s19 = scalar_lea.vmem %s7457_s20, 384 }
  0xf1   : > { %1560 = vmatprep.subr.bf16.mxu1 %v8885_v51  ;;  %v8933_v51 = vld [vmem:[#allocation8 + $0x68] ss:$24 sps:$4 sm:$0xff]   ;;  %s7454_s15 = scalar_lea.hbm %s11082_s12, %s8658_s28  ;;  %p10265_p8 = scmp.ne.s32.totalorder %s7457_s20, %s10264_s19 }
  0xf2   : > { %1520 = vmatpush1.bf16.msra.mxu0 %v8848_v20  ;;  %p11127_p13 = scmp.ne.s32.totalorder %s11110_s30, 0  ;;  %s10376_s14 = smov [#allocation22]  }
  0xf3   : > { %1521 = vmatprep.subr.bf16.mxu0 %v8849_v21  ;;  %s10268_s27 = sshll.u32 %s10376_s14, 4  ;;  %s10269_s27 = int_to_ptr.vmem [resolvable:$false] %s10268_s27 }
  0xf4   : > { %1561 = vmatpush1.bf16.msra.mxu1 %v8889_v53  ;;  %v8941_v53 = vld [vmem:[#allocation8 + $0x3c] ss:$24 sps:$4 sm:$0xff]   ;;  %p10266_p6 = pnand %p10265_p8, %p11127_p13  ;;  %s10270_s29 = scalar_lea.vmem %s10269_s27, 768 }
  0xf5   : > { %1562 = vmatprep.subr.bf16.mxu1 %v8891_v55  ;;  %v8939_v55 = vld [vmem:[#allocation8 + $0x38] ss:$24 sps:$4 sm:$0xff]   ;;  %p10271_p3 = scmp.lt.s32.totalorder %s7457_s20, %s10269_s27  ;;  %p10272_p7 = scmp.lt.s32.totalorder %s10270_s29, %s10264_s19 }
  0xf6   : > { %1522 = vmatpush1.bf16.msra.mxu0 %v8851_v22  ;;  %p10267_p1 = pneg %p10266_p6 }
  0xf7   : > { %1523 = vmatprep.subr.bf16.mxu0 %v8852_v23  ;;  %p10273_p9 = por %p10272_p7, %p10271_p3 }
  0xf8   : > { %1563 = vmatpush1.bf16.msra.mxu1 %v8895_v57  ;;  %v8947_v57 = vld [vmem:[#allocation8 + $0xc] ss:$24 sps:$4 sm:$0xff]  }
  0xf9   : > { %1564 = vmatprep.subr.bf16.mxu1 %v8897_v60  ;;  %v8945_v60 = vld [vmem:[#allocation8 + $0x8] ss:$24 sps:$4 sm:$0xff]   ;;  %p10274_p11 = pnand %p10273_p9, %p10267_p1 }
  0xfa   : > { %1524 = vmatpush1.bf16.msra.mxu0 %v8854_v24 }
  0xfb   : > { %1525 = vmatprep.subr.bf16.mxu0 %v8857_v25  ;;  %v8903_v25 = vld [vmem:[#allocation8 + $0x158] ss:$24 sps:$4 sm:$0xff]  }
  0xfc   : > { %1565 = vmatpush1.bf16.msra.mxu1 %v8901_v62  ;;  %v8953_v62 = vld [vmem:[#allocation8 + $0x2dc] ss:$24 sps:$4 sm:$0xff]  }
  0xfe   : > { %1526 = vmatpush2.bf16.msra.mxu0 %v8860_v26 }
  0xff   : > { %1527 = vmatprep.subr.bf16.mxu0 %v8863_v27 }
 0x102   : > { %1528 = vmatpush2.bf16.msra.mxu0 %v8866_v28  ;;  %v8906_v28 = vld [vmem:[#allocation8 + $0x458] ss:$24 sps:$4 sm:$0xff]  }
 0x103   : > { %1529 = vmatprep.subr.bf16.mxu0 %v8869_v40  ;;  %v8918_v40 = vld [vmem:[#allocation8 + $0x3f8] ss:$24 sps:$4 sm:$0xff]  }
 0x106   : > { %1530 = vmatpush2.bf16.msra.mxu0 %v8872_v42  ;;  %v8926_v42 = vld [vmem:[#allocation8 + $0x3cc] ss:$24 sps:$4 sm:$0xff]  }
 0x107   : > { %1531 = vmatprep.subr.bf16.mxu0 %v8875_v44  ;;  %v8924_v44 = vld [vmem:[#allocation8 + $0x3c8] ss:$24 sps:$4 sm:$0xff]  }
 0x10a   : > { %1532 = vmatpush2.bf16.msra.mxu0 %v8878_v46  ;;  %v8932_v46 = vld [vmem:[#allocation8 + $0x39c] ss:$24 sps:$4 sm:$0xff]  }
 0x10b   : > { %1533 = vmatprep.subr.bf16.mxu0 %v8881_v48  ;;  %v8930_v48 = vld [vmem:[#allocation8 + $0x398] ss:$24 sps:$4 sm:$0xff]  }
 0x10e   : > { %1534 = vmatpush2.bf16.msra.mxu0 %v8884_v50  ;;  %v8938_v50 = vld [vmem:[#allocation8 + $0x36c] ss:$24 sps:$4 sm:$0xff]  }
 0x10f   : > { %1535 = vmatprep.subr.bf16.mxu0 %v8887_v52  ;;  %v8936_v52 = vld [vmem:[#allocation8 + $0x368] ss:$24 sps:$4 sm:$0xff]  }
 0x112   : > { %1536 = vmatpush2.bf16.msra.mxu0 %v8890_v54  ;;  %v8944_v54 = vld [vmem:[#allocation8 + $0x33c] ss:$24 sps:$4 sm:$0xff]  }
 0x113   : > { %1537 = vmatprep.subr.bf16.mxu0 %v8893_v56  ;;  %v8942_v56 = vld [vmem:[#allocation8 + $0x338] ss:$24 sps:$4 sm:$0xff]  }
 0x116   : > { %1538 = vmatpush2.bf16.msra.mxu0 %v8896_v59  ;;  %v8950_v59 = vld [vmem:[#allocation8 + $0x30c] ss:$24 sps:$4 sm:$0xff]  }
 0x117   : > { %1539 = vmatprep.subr.bf16.mxu0 %v8899_v61  ;;  %v8948_v61 = vld [vmem:[#allocation8 + $0x308] ss:$24 sps:$4 sm:$0xff]  }
 0x11a   : > { %1540 = vmatpush2.bf16.msra.mxu0 %v8902_v63  ;;  %v8956_v63 = vld [vmem:[#allocation8 + $0x164] ss:$24 sps:$4 sm:$0xff]  }
 0x169   : > { %v585_v29 = vpop.xlane.xlu0 %584 }
 0x16a   : > { %v587_v30 = vmul.f32 0.0026041667, %v585_v29 }
 0x16c   : > { %v10683_v31 = vsub.f32 %v577_v0, %v587_v30  ;;  %v10685_v32 = vsub.f32 %v578_v1, %v587_v30  ;;  %v10687_v33 = vsub.f32 %v579_v2, %v587_v30  ;;  %v8905_v0 = vld [vmem:[#allocation8 + $0x15c] ss:$24 sps:$4 sm:$0xff]   ;;  %v605_v2 = vlaneseq  ;;  %v8911_v30 = vld [vmem:[#allocation8 + $0x12c] ss:$24 sps:$4 sm:$0xff]  }
 0x16d   : > { %1591 = vmatprep.subr.bf16.mxu1 %v8905_v0  ;;  %v8908_v1 = vld [vmem:[#allocation8 + $0x45c] ss:$24 sps:$4 sm:$0xff]   ;;  %v8951_v0 = vld [vmem:[#allocation8 + $0x2d8] ss:$24 sps:$4 sm:$0xff]  }
 0x16e   : > { %v591_v34 = vmul.f32 %v10683_v31, %v10683_v31  ;;  %v592_v35 = vmul.f32 %v10685_v32, %v10685_v32  ;;  %v593_v36 = vmul.f32 %v10687_v33, %v10687_v33  ;;  %1632 = vmatprep.subr.bf16.mxu0 %v8908_v1  ;;  %v10697_v3 = vshrl.u32 %v605_v2, 7  ;;  %v8954_v1 = vld [vmem:[#allocation8 + $0x160] ss:$24 sps:$4 sm:$0xff]  }
 0x170   : > { %v594_v37 = vadd.f32 %v592_v35, %v591_v34  ;;  %v10700_v5 = vsub.s32 1, %v10697_v3  ;;  %v10703_v7 = vsub.s32 2, %v10697_v3  ;;  %v10706_v8 = vsub.s32 0, %v10697_v3  ;;  %v8914_v34 = vld [vmem:[#allocation8 + $0x42c] ss:$24 sps:$4 sm:$0xff]  }
 0x172   : > { %v595_v38 = vadd.f32 %v594_v37, %v593_v36  ;;  %v612_v12 = vrot.slane %v580_v10, %v10700_v5  ;;  %v616_v13 = vrot.slane %v580_v10, %v10703_v7  ;;  %v608_v14 = vrot.slane %v580_v10, %v10706_v8  ;;  %v8917_v37 = vld [vmem:[#allocation8 + $0xfc] ss:$24 sps:$4 sm:$0xff]   ;;  %v8960_v10 = vld [vmem:[#allocation8 + $0x130] ss:$24 sps:$4 sm:$0xff]  }
 0x173   : > { %v631_v16 = vrot.slane %v581_v11, %v10700_v5  ;;  %v635_v17 = vrot.slane %v581_v11, %v10703_v7  ;;  %v627_v21 = vrot.slane %v581_v11, %v10706_v8  ;;  %v8965_v11 = vld [vmem:[#allocation8 + $0x27c] ss:$24 sps:$4 sm:$0xff]  }
 0x174   : > { %596 = vadd.xlane.f32.xlu0 %v595_v38  ;;  %v8920_v38 = vld [vmem:[#allocation8 + $0x3fc] ss:$24 sps:$4 sm:$0xff]  }
 0x1fd   : > { %v597_v4 = vpop.xlane.xlu0 %596 }
 0x1fe   : > { %v598_v6 = vmul.f32 0.0026041667, %v597_v4  ;;  %v8959_v4 = vld [vmem:[#allocation8 + $0x2ac] ss:$24 sps:$4 sm:$0xff]  }
 0x200   : > { %v599_v9 = vadd.f32 1e-05, %v598_v6  ;;  %v8962_v6 = vld [vmem:[#allocation8 + $0x134] ss:$24 sps:$4 sm:$0xff]  }
 0x202   : > { %9927 = vrsqrt.f32 %v599_v9  ;;  %v8957_v9 = vld [vmem:[#allocation8 + $0x2a8] ss:$24 sps:$4 sm:$0xff]  }
 0x20f   : > { %v9928_v15 = vpop.eup %9927 }
 0x210   : > { %v602_v18 = vmul.f32 %v9928_v15, %v10685_v32  ;;  %v603_v19 = vmul.f32 %v9928_v15, %v10687_v33  ;;  %v601_v20 = vmul.f32 %v9928_v15, %v10683_v31  ;;  %v8909_v33 = vld [vmem:[#allocation8 + $0x128] ss:$24 sps:$4 sm:$0xff]   ;;  %v8971_v15 = vld [vmem:[#allocation8 + $0x24c] ss:$24 sps:$4 sm:$0xff]  }
 0x211   : > { %v8912_v31 = vld [vmem:[#allocation8 + $0x428] ss:$24 sps:$4 sm:$0xff]  }
 0x212   : > { %v621_v22 = vmul.f32 %v612_v12, %v602_v18  ;;  %v622_v23 = vmul.f32 %v616_v13, %v603_v19  ;;  %v620_v24 = vmul.f32 %v608_v14, %v601_v20  ;;  %v8968_v12 = vld [vmem:[#allocation8 + $0x104] ss:$24 sps:$4 sm:$0xff]   ;;  %v8963_v13 = vld [vmem:[#allocation8 + $0x278] ss:$24 sps:$4 sm:$0xff]  }
 0x213   : > { %v8966_v14 = vld [vmem:[#allocation8 + $0x100] ss:$24 sps:$4 sm:$0xff]   ;;  %v8972_v18 = vld [vmem:[#allocation8 + $0xd0] ss:$24 sps:$4 sm:$0xff]   ;;  %v8977_v19 = vld [vmem:[#allocation8 + $0x21c] ss:$24 sps:$4 sm:$0xff]  }
 0x214   : > { %v640_v26 = vadd.f32 %v631_v16, %v621_v22  ;;  %v641_v27 = vadd.f32 %v635_v17, %v622_v23  ;;  %v639_v29 = vadd.f32 %v627_v21, %v620_v24  ;;  %v8974_v16 = vld [vmem:[#allocation8 + $0xd4] ss:$24 sps:$4 sm:$0xff]   ;;  %v8969_v17 = vld [vmem:[#allocation8 + $0x248] ss:$24 sps:$4 sm:$0xff]   ;;  %v8980_v20 = vld [vmem:[#allocation8 + $0xa4] ss:$24 sps:$4 sm:$0xff]  }
 0x215   : > { %v8975_v21 = vld [vmem:[#allocation8 + $0x218] ss:$24 sps:$4 sm:$0xff]   ;;  %v8983_v23 = vld [vmem:[#allocation8 + $0x1ec] ss:$24 sps:$4 sm:$0xff]  }
 0x216   : > { %v10717_v35 = vpack.c.bf16 %v640_v26, %v640_v26  ;;  %v10719_v36 = vpack.c.bf16 %v641_v27, %v641_v27  ;;  %v10721_v32 = vpack.c.bf16 %v639_v29, %v639_v29  ;;  %v8978_v22 = vld [vmem:[#allocation8 + $0xa0] ss:$24 sps:$4 sm:$0xff]   ;;  %v8986_v24 = vld [vmem:[#allocation8 + $0x74] ss:$24 sps:$4 sm:$0xff]   ;;  %v8984_v26 = vld [vmem:[#allocation8 + $0x70] ss:$24 sps:$4 sm:$0xff]  }
 0x217   : > { %v8989_v27 = vld [vmem:[#allocation8 + $0x1bc] ss:$24 sps:$4 sm:$0xff]   ;;  %v8987_v29 = vld [vmem:[#allocation8 + $0x1b8] ss:$24 sps:$4 sm:$0xff]  }
 0x218   : > { %1541 = vmatprep.mubr.bf16.mxu0 %v10717_v35  ;;  %1583 = vmatmul.mubr.bf16.vlgmr.msra.gmra.mxu1 %v10719_v36 }
 0x219   : > { %1592 = vmatpush1.bf16.msra.mxu1 %v8903_v25  ;;  %1542 = vmatmul.mubr.bf16.vlgmr.msra.gmra.mxu0 %v10721_v32  ;;  %v8981_v25 = vld [vmem:[#allocation8 + $0x1e8] ss:$24 sps:$4 sm:$0xff]  }
 0x21a   : > { %1623 = vmatprep.mubr.bf16.mxu1 %v10717_v35  ;;  %1633 = vmatpush1.bf16.msra.mxu0 %v8906_v28  ;;  %v8992_v28 = vld [vmem:[#allocation8 + $0x44] ss:$24 sps:$4 sm:$0xff]  }
 0x21b   : > { %1593 = vmatprep.subr.bf16.mxu1 %v8911_v30  ;;  %1634 = vmatprep.subr.bf16.mxu0 %v8914_v34  ;;  %v8990_v30 = vld [vmem:[#allocation8 + $0x40] ss:$24 sps:$4 sm:$0xff]   ;;  %v8995_v34 = vld [vmem:[#allocation8 + $0x18c] ss:$24 sps:$4 sm:$0xff]  }
 0x21c   : > { %1664 = vmatprep.mubr.bf16.mxu0 %v10372_v58 }
 0x21d   : > { %1594 = vmatpush1.bf16.msra.mxu1 %v8909_v33  ;;  %v8993_v33 = vld [vmem:[#allocation8 + $0x188] ss:$24 sps:$4 sm:$0xff]  }
 0x21e   : > { %1635 = vmatpush1.bf16.msra.mxu0 %v8912_v31  ;;  %1595 = vmatprep.subr.bf16.mxu1 %v8917_v37  ;;  %v8996_v31 = vld [vmem:[#allocation8 + $0x10] ss:$24 sps:$4 sm:$0xff]   ;;  %v9001_v37 = vld [vmem:[#allocation8 + $0x464] ss:$24 sps:$4 sm:$0xff]  }
 0x21f   : > { %1636 = vmatprep.subr.bf16.mxu0 %v8920_v38  ;;  %v9004_v38 = vld [vmem:[#allocation8 + $0x2e4] ss:$24 sps:$4 sm:$0xff]  }
 0x221   : > { %1596 = vmatpush1.bf16.msra.mxu1 %v8915_v39  ;;  %v8999_v39 = vld [vmem:[#allocation8 + $0x460] ss:$24 sps:$4 sm:$0xff]  }
 0x222   : > { %1637 = vmatpush1.bf16.msra.mxu0 %v8918_v40  ;;  %1597 = vmatprep.subr.bf16.mxu1 %v8923_v41  ;;  %v9002_v40 = vld [vmem:[#allocation8 + $0x2e0] ss:$24 sps:$4 sm:$0xff]   ;;  %v9007_v41 = vld [vmem:[#allocation8 + $0x434] ss:$24 sps:$4 sm:$0xff]  }
 0x223   : > { %1638 = vmatprep.subr.bf16.mxu0 %v8926_v42  ;;  %v9010_v42 = vld [vmem:[#allocation8 + $0x2b4] ss:$24 sps:$4 sm:$0xff]  }
 0x225   : > { %1598 = vmatpush1.bf16.msra.mxu1 %v8921_v43  ;;  %v9005_v43 = vld [vmem:[#allocation8 + $0x430] ss:$24 sps:$4 sm:$0xff]  }
 0x226   : > { %1639 = vmatpush1.bf16.msra.mxu0 %v8924_v44  ;;  %1599 = vmatprep.subr.bf16.mxu1 %v8929_v45  ;;  %v9008_v44 = vld [vmem:[#allocation8 + $0x2b0] ss:$24 sps:$4 sm:$0xff]   ;;  %v9013_v45 = vld [vmem:[#allocation8 + $0x404] ss:$24 sps:$4 sm:$0xff]  }
 0x227   : > { %1640 = vmatprep.subr.bf16.mxu0 %v8932_v46  ;;  %v9016_v46 = vld [vmem:[#allocation8 + $0x284] ss:$24 sps:$4 sm:$0xff]  }
 0x229   : > { %1600 = vmatpush1.bf16.msra.mxu1 %v8927_v47  ;;  %v9011_v47 = vld [vmem:[#allocation8 + $0x400] ss:$24 sps:$4 sm:$0xff]  }
 0x22a   : > { %1641 = vmatpush1.bf16.msra.mxu0 %v8930_v48  ;;  %1601 = vmatprep.subr.bf16.mxu1 %v8935_v49  ;;  %v9014_v48 = vld [vmem:[#allocation8 + $0x280] ss:$24 sps:$4 sm:$0xff]   ;;  %v9019_v49 = vld [vmem:[#allocation8 + $0x3d4] ss:$24 sps:$4 sm:$0xff]  }
 0x22b   : > { %1642 = vmatprep.subr.bf16.mxu0 %v8938_v50  ;;  %v9022_v50 = vld [vmem:[#allocation8 + $0x254] ss:$24 sps:$4 sm:$0xff]  }
 0x22d   : > { %1602 = vmatpush1.bf16.msra.mxu1 %v8933_v51  ;;  %v9017_v51 = vld [vmem:[#allocation8 + $0x3d0] ss:$24 sps:$4 sm:$0xff]  }
 0x22e   : > { %1643 = vmatpush1.bf16.msra.mxu0 %v8936_v52  ;;  %1603 = vmatprep.subr.bf16.mxu1 %v8941_v53  ;;  %v9020_v52 = vld [vmem:[#allocation8 + $0x250] ss:$24 sps:$4 sm:$0xff]   ;;  %v9025_v53 = vld [vmem:[#allocation8 + $0x3a4] ss:$24 sps:$4 sm:$0xff]  }
 0x22f   : > { %1644 = vmatprep.subr.bf16.mxu0 %v8944_v54  ;;  %v9028_v54 = vld [vmem:[#allocation8 + $0x224] ss:$24 sps:$4 sm:$0xff]  }
 0x231   : > { %1604 = vmatpush1.bf16.msra.mxu1 %v8939_v55  ;;  %v9023_v55 = vld [vmem:[#allocation8 + $0x3a0] ss:$24 sps:$4 sm:$0xff]  }
 0x232   : > { %1645 = vmatpush1.bf16.msra.mxu0 %v8942_v56  ;;  %1605 = vmatprep.subr.bf16.mxu1 %v8947_v57  ;;  %v9026_v56 = vld [vmem:[#allocation8 + $0x220] ss:$24 sps:$4 sm:$0xff]   ;;  %v9031_v57 = vld [vmem:[#allocation8 + $0x374] ss:$24 sps:$4 sm:$0xff]  }
 0x233   : > { %1646 = vmatprep.subr.bf16.mxu0 %v8950_v59  ;;  %v9034_v59 = vld [vmem:[#allocation8 + $0x1f4] ss:$24 sps:$4 sm:$0xff]  }
 0x235   : > { %1606 = vmatpush1.bf16.msra.mxu1 %v8945_v60  ;;  %v9029_v60 = vld [vmem:[#allocation8 + $0x370] ss:$24 sps:$4 sm:$0xff]  }
 0x236   : > { %1647 = vmatpush1.bf16.msra.mxu0 %v8948_v61  ;;  %1607 = vmatprep.subr.bf16.mxu1 %v8953_v62  ;;  %v9032_v61 = vld [vmem:[#allocation8 + $0x1f0] ss:$24 sps:$4 sm:$0xff]   ;;  %v9037_v62 = vld [vmem:[#allocation8 + $0x344] ss:$24 sps:$4 sm:$0xff]  }
 0x237   : > { %1673 = vmatprep.subr.bf16.mxu0 %v8956_v63  ;;  %v9040_v63 = vld [vmem:[#allocation8 + $0x1c4] ss:$24 sps:$4 sm:$0xff]  }
 0x239   : > { %1608 = vmatpush2.bf16.msra.mxu1 %v8951_v0  ;;  %1665 = vmatmul.mubr.bf16.vlgmr.msra.gmra.mxu0 %v10719_v36  ;;  %v9035_v0 = vld [vmem:[#allocation8 + $0x340] ss:$24 sps:$4 sm:$0xff]  }
 0x23a   : > { %1674 = vmatpush1.bf16.msra.mxu0 %v8954_v1  ;;  %1705 = vmatprep.mubr.bf16.mxu0 %v10717_v35  ;;  %v8998_v35 = vld [vmem:[#allocation8 + $0x14] ss:$24 sps:$4 sm:$0xff]   ;;  %v9038_v1 = vld [vmem:[#allocation8 + $0x1c0] ss:$24 sps:$4 sm:$0xff]  }
 0x23b   : > { %1609 = vmatprep.subr.bf16.mxu1 %v8959_v4  ;;  %1675 = vmatprep.subr.bf16.mxu0 %v8962_v6  ;;  %v9043_v4 = vld [vmem:[#allocation8 + $0x314] ss:$24 sps:$4 sm:$0xff]  }
 0x23c   : > { %v9046_v6 = vld [vmem:[#allocation8 + $0x194] ss:$24 sps:$4 sm:$0xff]  }
 0x23d   : > { %1610 = vmatpush2.bf16.msra.mxu1 %v8957_v9  ;;  %v9041_v9 = vld [vmem:[#allocation8 + $0x310] ss:$24 sps:$4 sm:$0xff]  }
 0x23e   : > { %1676 = vmatpush1.bf16.msra.mxu0 %v8960_v10  ;;  %1611 = vmatprep.subr.bf16.mxu1 %v8965_v11  ;;  %v9044_v10 = vld [vmem:[#allocation8 + $0x190] ss:$24 sps:$4 sm:$0xff]   ;;  %v10373_v11 = vmov 0.0  }
 0x23f   : > { %1677 = vmatprep.subr.bf16.mxu0 %v8968_v12 }
 0x241   : > { %1612 = vmatpush2.bf16.msra.mxu1 %v8963_v13 }
 0x242   : > { %1678 = vmatpush1.bf16.msra.mxu0 %v8966_v14  ;;  %1613 = vmatprep.subr.bf16.mxu1 %v8971_v15 }
 0x243   : > { %1679 = vmatprep.subr.bf16.mxu0 %v8974_v16 }
 0x245   : > { %1614 = vmatpush2.bf16.msra.mxu1 %v8969_v17 }
 0x246   : > { %1680 = vmatpush1.bf16.msra.mxu0 %v8972_v18  ;;  %1615 = vmatprep.subr.bf16.mxu1 %v8977_v19 }
 0x247   : > { %1681 = vmatprep.subr.bf16.mxu0 %v8980_v20 }
 0x249   : > { %1616 = vmatpush2.bf16.msra.mxu1 %v8975_v21 }
 0x24a   : > { %1682 = vmatpush1.bf16.msra.mxu0 %v8978_v22  ;;  %1617 = vmatprep.subr.bf16.mxu1 %v8983_v23 }
 0x24b   : > { %1683 = vmatprep.subr.bf16.mxu0 %v8986_v24 }
 0x24d   : > { %1618 = vmatpush2.bf16.msra.mxu1 %v8981_v25 }
 0x24e   : > { %1684 = vmatpush1.bf16.msra.mxu0 %v8984_v26  ;;  %1619 = vmatprep.subr.bf16.mxu1 %v8989_v27 }
 0x24f   : > { %1685 = vmatprep.subr.bf16.mxu0 %v8992_v28 }
 0x251   : > { %1620 = vmatpush2.bf16.msra.mxu1 %v8987_v29 }
 0x252   : > { %1686 = vmatpush1.bf16.msra.mxu0 %v8990_v30  ;;  %1621 = vmatprep.subr.bf16.mxu1 %v8995_v34 }
 0x253   : > { %1687 = vmatprep.subr.bf16.mxu0 %v8998_v35 }
 0x255   : > { %1622 = vmatpush2.bf16.msra.mxu1 %v8993_v33 }
 0x256   : > { %1688 = vmatpush1.bf16.msra.mxu0 %v8996_v31  ;;  %1714 = vmatprep.subr.bf16.mxu1 %v9001_v37 }
 0x257   : > { %1689 = vmatprep.subr.bf16.mxu0 %v9004_v38 }
 0x258   : > { %1624 = vmatmul.mubr.bf16.vlgmr.msra.gmra.mxu1 %v10721_v32 }
 0x259   : > { %1715 = vmatpush1.bf16.msra.mxu1 %v8999_v39  ;;  %1746 = vmatprep.mubr.bf16.mxu1 %v10372_v58 }
 0x25a   : > { %1690 = vmatpush2.bf16.msra.mxu0 %v9002_v40  ;;  %1716 = vmatprep.subr.bf16.mxu1 %v9007_v41 }
 0x25b   : > { %1691 = vmatprep.subr.bf16.mxu0 %v9010_v42 }
 0x25d   : > { %1717 = vmatpush1.bf16.msra.mxu1 %v9005_v43 }
 0x25e   : > { %1692 = vmatpush2.bf16.msra.mxu0 %v9008_v44  ;;  %1718 = vmatprep.subr.bf16.mxu1 %v9013_v45 }
 0x25f   : > { %1693 = vmatprep.subr.bf16.mxu0 %v9016_v46 }
 0x261   : > { %1719 = vmatpush1.bf16.msra.mxu1 %v9011_v47  ;;  %v10752_v47 = vand.u32 127, %v605_v2 }
 0x262   : > { %1694 = vmatpush2.bf16.msra.mxu0 %v9014_v48  ;;  %1720 = vmatprep.subr.bf16.mxu1 %v9019_v49 }
 0x263   : > { %1695 = vmatprep.subr.bf16.mxu0 %v9022_v50  ;;  %vm1759_vm3 = vcmp.le.s32.totalorder %v10752_v47, %v10697_v3 }
 0x265   : > { %1721 = vmatpush1.bf16.msra.mxu1 %v9017_v51 }
 0x266   : > { %1696 = vmatpush2.bf16.msra.mxu0 %v9020_v52  ;;  %1722 = vmatprep.subr.bf16.mxu1 %v9025_v53 }
 0x267   : > { %1697 = vmatprep.subr.bf16.mxu0 %v9028_v54 }
 0x269   : > { %1723 = vmatpush1.bf16.msra.mxu1 %v9023_v55 }
 0x26a   : > { %1698 = vmatpush2.bf16.msra.mxu0 %v9026_v56  ;;  %1724 = vmatprep.subr.bf16.mxu1 %v9031_v57 }
 0x26b   : > { %1699 = vmatprep.subr.bf16.mxu0 %v9034_v59 }
 0x26d   : > { %1725 = vmatpush1.bf16.msra.mxu1 %v9029_v60 }
 0x26e   : > { %1700 = vmatpush2.bf16.msra.mxu0 %v9032_v61  ;;  %1726 = vmatprep.subr.bf16.mxu1 %v9037_v62 }
 0x26f   : > { %1701 = vmatprep.subr.bf16.mxu0 %v9040_v63 }
 0x271   : > { %1727 = vmatpush1.bf16.msra.mxu1 %v9035_v0 }
 0x272   : > { %1702 = vmatpush2.bf16.msra.mxu0 %v9038_v1  ;;  %1728 = vmatprep.subr.bf16.mxu1 %v9043_v4 }
 0x273   : > { %1703 = vmatprep.subr.bf16.mxu0 %v9046_v6 }
 0x275   : > { %1729 = vmatpush1.bf16.msra.mxu1 %v9041_v9 }
 0x276   : > { %1704 = vmatpush2.bf16.msra.mxu0 %v9044_v10  ;;  %8607 = vmatprep.subr.bf16.mxu1 %v10373_v11 }
 0x278   : > { %1747 = vmatmul.mubr.bf16.vlgmr.msra.gmra.mxu1 %v10719_v36 }
 0x279   : > { %1706 = vmatmul.mubr.bf16.vlgmr.msra.gmra.mxu0 %v10721_v32  ;;  %8609 = vmatprep.mubr.msk.bf16.mxu1 %vm10374_vm0, %v10373_v11 }
 0x2d8   : > { %v1584_v12 = vpop.f32.mrf.mxu1 }
 0x2d9   : > { %v1543_v13 = vpop.f32.mrf.mxu0 }
 0x2da   : > { %v1585_v14 = vadd.f32 %v1584_v12, %v1543_v13  ;;  %v1586_v15 = vpop.f32.mrf.mxu1 }
 0x2db   : > { %v1545_v16 = vpop.f32.mrf.mxu0 }
 0x2dc   : > { %v10737_v17 = vadd.f32 %v1586_v15, %v1545_v16  ;;  %v1588_v18 = vpop.f32.mrf.mxu1  ;;  %v1760_v35 = vpack.c.bf16 %v1585_v14, %v1585_v14 }
 0x2dd   : > { %v1547_v19 = vpop.f32.mrf.mxu0 }
 0x2de   : > { %v1589_v20 = vpop.f32.mrf.mxu1 }
 0x2df   : > { %v1548_v36 = vpop.f32.mrf.mxu0 }
 0x2f9   : > { %v1666_v21 = vpop.f32.mrf.mxu0 }
 0x2fb   : > { %v1668_v32 = vpop.f32.mrf.mxu0 }
 0x2fd   : > { %v1670_v22 = vpop.f32.mrf.mxu0 }
 0x2fe   : > { %v1985_v22 = vpack.c.bf16 %v10737_v17, %v10737_v17 }
 0x2ff   : > { %v1671_v23 = vpop.f32.mrf.mxu0 }
 0x318   : > { %v1625_v24 = vpop.f32.mrf.mxu1 }
 0x319   : > { %v1667_v25 = vadd.f32 %v1666_v21, %v1625_v24 }
 0x31a   : > { %v1627_v26 = vpop.f32.mrf.mxu1 }
 0x31b   : > { %v1761_v27 = vpack.c.bf16 %v1667_v25, %v1667_v25  ;;  %v10739_v28 = vadd.f32 %v1668_v32, %v1627_v26 }
 0x31c   : > { %v1629_v29 = vpop.f32.mrf.mxu1 }
 0x31d   : > { %v1767_v30 = vsel %vm1762_vm1, %v1761_v27, 0  ;;  %1875 = vrot.lane.b32.xlu0 %v1761_v27, %s10375_s2  ;;  %v1986_v27 = vpack.c.bf16 %v10739_v28, %v10739_v28 }
 0x31e   : > { %v1630_v34 = vpop.f32.mrf.mxu1  ;;  %8608 = vmatpush3.bf16.xpose.msra.mxu1 %v1767_v30 }
 0x31f   : > { %8613 = vmatprep.subr.bf16.mxu1 %v10373_v11  ;;  %v1991_v34 = vsel %vm1762_vm1, %v1986_v27, 0 }
 0x325   : > { %8610 = vmatmul.mubr.msk.bf16.vlgmr.msra.gmra.mxu1 %vm1762_vm1, %v1760_v35 }
 0x326   : > { %8615 = vmatprep.mubr.msk.bf16.mxu1 %vm10374_vm0, %v10373_v11 }
 0x338   : > { %v1748_v33 = vpop.f32.mrf.mxu1 }
 0x339   : > { %v1707_v31 = vpop.f32.mrf.mxu0 }
 0x33a   : > { %v1749_v37 = vadd.f32 %v1748_v33, %v1707_v31  ;;  %v1750_v38 = vpop.f32.mrf.mxu1 }
 0x33b   : > { %v1709_v39 = vpop.f32.mrf.mxu0 }
 0x33c   : > { %v1823_v40 = vpack.c.bf16 %v1749_v37, %v1749_v37  ;;  %v10747_v41 = vadd.f32 %v1750_v38, %v1709_v39  ;;  %v1752_v42 = vpop.f32.mrf.mxu1 }
 0x33d   : > { %v1711_v43 = vpop.f32.mrf.mxu0 }
 0x33e   : > { %v1829_v44 = vsel %vm1827_vm2, %v1823_v40, 0  ;;  %v1753_v45 = vpop.f32.mrf.mxu1  ;;  %v2046_v17 = vpack.c.bf16 %v10747_v41, %v10747_v41 }
 0x33f   : > { %v1712_v46 = vpop.f32.mrf.mxu0  ;;  %8614 = vmatpush3.bf16.msra.mxu1 %v1829_v44 }
 0x340   : > { %8619 = vmatprep.subr.bf16.mxu1 %v10373_v11 }
 0x38f   : > { %v1876_v62 = vpop.permute.xlu0 %1875 }
 0x390   : > { %v1881_v0 = vsel %vm1762_vm1, %v1876_v62, 0 }
 0x3e5   : > { %v1803_v48 = vpop.f32.mrf.mxu1 }
 0x3e6   : > { %v1809_v49 = vsel %vm1759_vm3, %v1803_v48, -1e+30 }
 0x3e7   : > { %v8611_v50 = vpop.f32.mrf.mxu1  ;;  %v1811_v51 = vsel %vm1810_vm4, %v1809_v49, -inf }
 0x3e8   : > { %1812 = vmax.xlane.f32.xlu1 %v1811_v51 }
 0x3e9   : > { %v1806_v52 = vpop.f32.mrf.mxu1 }
 0x3eb   : > { %v8612_v53 = vpop.f32.mrf.mxu1 }
 0x471   : > { %v1813_v54 = vpop.xlane.xlu1 %1812 }
 0x472   : > { %v1814_v55 = vsub.f32 %v1809_v49, %v1813_v54 }
 0x474   : > { %v1815_v56 = vmul.f32 1.442695, %v1814_v55 }
 0x476   : > { %9929 = vpow2.f32 %v1815_v56 }
 0x483   : > { %v9930_v2 = vpop.eup %9929 }
 0x484   : > { %v1817_v57 = vsel %vm1810_vm4, %v9930_v2, 0.0 }
 0x485   : > { %1818 = vadd.xlane.f32.xlu1 %v1817_v57 }
 0x496   : > { %1872 = vrot.lane.b32.xlu1 %v1760_v35, %s10375_s2  ;;  %v2051_v35 = vsel %vm1827_vm2, %v2046_v17, 0 }
 0x50e   : > { %v1819_v59 = vpop.xlane.xlu1 %1818 }
 0x50f   : > { %9931 = vrcp.f32 %v1819_v59 }
 0x512   : > { %v1873_v1 = vpop.permute.xlu1 %1872 }
 0x51c   : > { %v9932_v60 = vpop.eup %9931 }
 0x51d   : > { %v1821_v61 = vmul.f32 %v9932_v60, %v9930_v2 }
 0x51f   : > { %v1822_v63 = vpack.c.bf16 %v1821_v61, %v1821_v61 }
 0x521   : > { %8616 = vmatmul.mubr.msk.bf16.vlgmr.msra.gmra.mxu1 %vm1810_vm4, %v1822_v63 }
 0x522   : > { %8620 = vmatpush3.bf16.xpose.msra.mxu1 %v1881_v0  ;;  %8621 = vmatprep.mubr.msk.bf16.mxu1 %vm10374_vm0, %v10373_v11 }
 0x523   : > { %8625 = vmatprep.subr.bf16.mxu1 %v10373_v11 }
 0x529   : > { %8622 = vmatmul.mubr.msk.bf16.vlgmr.msra.gmra.mxu1 %vm1762_vm1, %v1873_v1 }
 0x52a   : > { %8627 = vmatprep.mubr.msk.bf16.mxu1 %vm10374_vm0, %v10373_v11 }
 0x5e1   : > { %v10770_v4 = vpop.f32.mrf.mxu1 }
 0x5e3   : > { %v8617_v6 = vpop.f32.mrf.mxu1 }
 0x5e5   : > { %v1868_v9 = vpop.f32.mrf.mxu1 }
 0x5e7   : > { %v8618_v10 = vpop.f32.mrf.mxu1 }
 0x5e9   : > { %v1917_v12 = vpop.f32.mrf.mxu1 }
 0x5ea   : > { %v1923_v13 = vsel %vm1759_vm3, %v1917_v12, -1e+30 }
 0x5eb   : > { %v8623_v14 = vpop.f32.mrf.mxu1  ;;  %v1924_v15 = vsel %vm1810_vm4, %v1923_v13, -inf }
 0x5ec   : > { %1925 = vmax.xlane.f32.xlu1 %v1924_v15 }
 0x5ed   : > { %v1920_v16 = vpop.f32.mrf.mxu1 }
 0x5ef   : > { %v8624_v18 = vpop.f32.mrf.mxu1 }
 0x675   : > { %v1926_v19 = vpop.xlane.xlu1 %1925 }
 0x676   : > { %v1927_v20 = vsub.f32 %v1923_v13, %v1926_v19 }
 0x678   : > { %v1928_v36 = vmul.f32 1.442695, %v1927_v20  ;;  %v9047_v20 = vld [vmem:[#allocation10 + $0xa8] ss:$12 sps:$4 sm:$0xff]  }
 0x67a   : > { %9933 = vpow2.f32 %v1928_v36  ;;  %v9049_v36 = vld [vmem:[#allocation10 + $0xac] ss:$12 sps:$4 sm:$0xff]  }
 0x67b   : > { %2556 = vmatprep.subr.bf16.mxu0 %v9049_v36 }
 0x67c   : > { %2557 = vmatpush1.bf16.msra.mxu0 %v9047_v20 }
 0x687   : > { %v9934_v21 = vpop.eup %9933 }
 0x688   : > { %v1930_v32 = vsel %vm1810_vm4, %v9934_v21, 0.0 }
 0x689   : > { %1931 = vadd.xlane.f32.xlu0 %v1930_v32  ;;  %v9050_v32 = vld [vmem:[#allocation10 + $0x90] ss:$12 sps:$4 sm:$0xff]  }
 0x69f   : > { %1937 = vrot.lane.b32.xlu0 %v1823_v40, %s10375_s2 }
 0x6a3   : > { %2094 = vrot.lane.b32.xlu0 %v1985_v22, %s10375_s2 }
 0x712   : > { %v1932_v23 = vpop.xlane.xlu0 %1931 }
 0x713   : > { %9935 = vrcp.f32 %v1932_v23  ;;  %v9074_v23 = vld [vmem:[#allocation10 + $0x170] ss:$12 sps:$4 sm:$0xff]  }
 0x716   : > { %v1938_v24 = vpop.permute.xlu0 %1937 }
 0x717   : > { %v1943_v25 = vsel %vm1827_vm2, %v1938_v24, 0  ;;  %v9075_v24 = vld [vmem:[#allocation10 + $0xb0] ss:$12 sps:$4 sm:$0xff]  }
 0x718   : > { %8626 = vmatpush3.bf16.msra.mxu1 %v1943_v25  ;;  %v9053_v25 = vld [vmem:[#allocation10 + $0x78] ss:$12 sps:$4 sm:$0xff]  }
 0x719   : > { %8631 = vmatprep.subr.bf16.mxu1 %v10373_v11 }
 0x71a   : > { %v2095_v56 = vpop.permute.xlu0 %2094 }
 0x720   : > { %v9936_v26 = vpop.eup %9935 }
 0x721   : > { %v1934_v29 = vmul.f32 %v9936_v26, %v9934_v21  ;;  %v9052_v21 = vld [vmem:[#allocation10 + $0x94] ss:$12 sps:$4 sm:$0xff]   ;;  %v9079_v26 = vld [vmem:[#allocation10 + $0x158] ss:$12 sps:$4 sm:$0xff]  }
 0x722   : > { %2558 = vmatprep.subr.bf16.mxu0 %v9052_v21 }
 0x723   : > { %v1935_v30 = vpack.c.bf16 %v1934_v29, %v1934_v29  ;;  %2559 = vmatpush1.bf16.msra.mxu0 %v9050_v32  ;;  %v9080_v29 = vld [vmem:[#allocation10 + $0x98] ss:$12 sps:$4 sm:$0xff]  }
 0x725   : > { %8628 = vmatmul.mubr.msk.bf16.vlgmr.msra.gmra.mxu1 %vm1810_vm4, %v1935_v30  ;;  %v9084_v30 = vld [vmem:[#allocation10 + $0x140] ss:$12 sps:$4 sm:$0xff]  }
 0x726   : > { %8632 = vmatpush3.bf16.xpose.msra.mxu1 %v1991_v34  ;;  %8633 = vmatprep.mubr.msk.bf16.mxu1 %vm10374_vm0, %v10373_v11  ;;  %v9056_v34 = vld [vmem:[#allocation10 + $0x60] ss:$12 sps:$4 sm:$0xff]  }
 0x727   : > { %8637 = vmatprep.subr.bf16.mxu1 %v10373_v11 }
 0x72d   : > { %8634 = vmatmul.mubr.msk.bf16.vlgmr.msra.gmra.mxu1 %vm1762_vm1, %v1985_v22  ;;  %v9055_v22 = vld [vmem:[#allocation10 + $0x7c] ss:$12 sps:$4 sm:$0xff]  }
 0x72e   : > { %8638 = vmatpush3.bf16.msra.mxu1 %v2051_v35  ;;  %8639 = vmatprep.mubr.msk.bf16.mxu1 %vm10374_vm0, %v10373_v11  ;;  %v9085_v35 = vld [vmem:[#allocation10 + $0x80] ss:$12 sps:$4 sm:$0xff]  }
 0x72f   : > { %8643 = vmatprep.subr.bf16.mxu1 %v10373_v11  ;;  %2560 = vmatprep.subr.bf16.mxu0 %v9055_v22 }
 0x730   : > { %2561 = vmatpush1.bf16.msra.mxu0 %v9053_v25 }
 0x7e5   : > { %v10797_v28 = vpop.f32.mrf.mxu1 }
 0x7e7   : > { %v8629_v33 = vpop.f32.mrf.mxu1 }
 0x7e8   : > { %v9089_v33 = vld [vmem:[#allocation10 + $0x128] ss:$12 sps:$4 sm:$0xff]  }
 0x7e9   : > { %v1982_v31 = vpop.f32.mrf.mxu1 }
 0x7ea   : > { %v9059_v31 = vld [vmem:[#allocation10 + $0x48] ss:$12 sps:$4 sm:$0xff]  }
 0x7eb   : > { %v8630_v37 = vpop.f32.mrf.mxu1 }
 0x7ec   : > { %v9064_v37 = vld [vmem:[#allocation10 + $0x34] ss:$12 sps:$4 sm:$0xff]  }
 0x7ed   : > { %v2027_v38 = vpop.f32.mrf.mxu1 }
 0x7ee   : > { %v2033_v39 = vsel %vm1759_vm3, %v2027_v38, -1e+30  ;;  %v9090_v38 = vld [vmem:[#allocation10 + $0x68] ss:$12 sps:$4 sm:$0xff]  }
 0x7ef   : > { %v8635_v40 = vpop.f32.mrf.mxu1  ;;  %v2034_v41 = vsel %vm1810_vm4, %v2033_v39, -inf }
 0x7f0   : > { %2035 = vmax.xlane.f32.xlu1 %v2034_v41  ;;  %v9062_v40 = vld [vmem:[#allocation10 + $0x30] ss:$12 sps:$4 sm:$0xff]  }
 0x7f1   : > { %v2030_v42 = vpop.f32.mrf.mxu1  ;;  %v9067_v41 = vld [vmem:[#allocation10 + $0x1c] ss:$12 sps:$4 sm:$0xff]  }
 0x7f2   : > { %v9095_v42 = vld [vmem:[#allocation10 + $0x50] ss:$12 sps:$4 sm:$0xff]  }
 0x7f3   : > { %v8636_v43 = vpop.f32.mrf.mxu1 }
 0x7f4   : > { %v9099_v43 = vld [vmem:[#allocation10 + $0xf8] ss:$12 sps:$4 sm:$0xff]  }
 0x879   : > { %v2036_v44 = vpop.xlane.xlu1 %2035 }
 0x87a   : > { %v2037_v45 = vsub.f32 %v2033_v39, %v2036_v44  ;;  %v9094_v39 = vld [vmem:[#allocation10 + $0x110] ss:$12 sps:$4 sm:$0xff]   ;;  %v9065_v44 = vld [vmem:[#allocation10 + $0x18] ss:$12 sps:$4 sm:$0xff]  }
 0x87c   : > { %v2038_v46 = vmul.f32 1.442695, %v2037_v45  ;;  %v9070_v45 = vld [vmem:[#allocation10 + $0x4] ss:$12 sps:$4 sm:$0xff]  }
 0x87e   : > { %9937 = vpow2.f32 %v2038_v46  ;;  %v9100_v46 = vld [vmem:[#allocation10 + $0x38] ss:$12 sps:$4 sm:$0xff]  }
 0x88b   : > { %v9938_v48 = vpop.eup %9937 }
 0x88c   : > { %v2040_v49 = vsel %vm1810_vm4, %v9938_v48, 0.0 }
 0x88d   : > { %2041 = vadd.xlane.f32.xlu1 %v2040_v49  ;;  %v9068_v49 = vld [vmem:[#allocation10] ss:$12 sps:$4 sm:$0xff]  }
 0x89e   : > { %2097 = vrot.lane.b32.xlu1 %v1986_v27, %s10375_s2  ;;  %v9058_v27 = vld [vmem:[#allocation10 + $0x64] ss:$12 sps:$4 sm:$0xff]  }
 0x89f   : > { %2562 = vmatprep.subr.bf16.mxu0 %v9058_v27 }
 0x8a0   : > { %2563 = vmatpush1.bf16.msra.mxu0 %v9056_v34 }
 0x916   : > { %v2042_v50 = vpop.xlane.xlu1 %2041 }
 0x917   : > { %9939 = vrcp.f32 %v2042_v50  ;;  %v9073_v50 = vld [vmem:[#allocation10 + $0x16c] ss:$12 sps:$4 sm:$0xff]  }
 0x91a   : > { %v2098_v53 = vpop.permute.xlu1 %2097 }
 0x91b   : > { %v2103_v55 = vsel %vm1762_vm1, %v2098_v53, 0  ;;  %v9078_v53 = vld [vmem:[#allocation10 + $0x154] ss:$12 sps:$4 sm:$0xff]  }
 0x924   : > { %v9940_v51 = vpop.eup %9939 }
 0x925   : > { %v2044_v52 = vmul.f32 %v9940_v51, %v9938_v48  ;;  %v9104_v48 = vld [vmem:[#allocation10 + $0xe0] ss:$12 sps:$4 sm:$0xff]  }
 0x926   : > { %v9105_v51 = vld [vmem:[#allocation10 + $0x20] ss:$12 sps:$4 sm:$0xff]  }
 0x927   : > { %v2045_v54 = vpack.c.bf16 %v2044_v52, %v2044_v52  ;;  %v9071_v52 = vld [vmem:[#allocation10 + $0x168] ss:$12 sps:$4 sm:$0xff]  }
 0x929   : > { %8640 = vmatmul.mubr.msk.bf16.vlgmr.msra.gmra.mxu1 %vm1810_vm4, %v2045_v54  ;;  %v9076_v54 = vld [vmem:[#allocation10 + $0x150] ss:$12 sps:$4 sm:$0xff]  }
 0x92a   : > { %8644 = vmatpush3.bf16.xpose.msra.mxu1 %v2103_v55  ;;  %8645 = vmatprep.mubr.msk.bf16.mxu1 %vm10374_vm0, %v10373_v11  ;;  %v9083_v55 = vld [vmem:[#allocation10 + $0x13c] ss:$12 sps:$4 sm:$0xff]  }
 0x92b   : > { %8649 = vmatprep.subr.bf16.mxu1 %v10373_v11 }
 0x931   : > { %8646 = vmatmul.mubr.msk.bf16.vlgmr.msra.gmra.mxu1 %vm1762_vm1, %v2095_v56  ;;  %v9081_v56 = vld [vmem:[#allocation10 + $0x138] ss:$12 sps:$4 sm:$0xff]  }
 0x932   : > { %8651 = vmatprep.mubr.msk.bf16.mxu1 %vm10374_vm0, %v10373_v11 }
 0x9e9   : > { %v10813_v2 = vpop.f32.mrf.mxu1 }
 0x9eb   : > { %v8641_v57 = vpop.f32.mrf.mxu1 }
 0x9ec   : > { %v9088_v57 = vld [vmem:[#allocation10 + $0x124] ss:$12 sps:$4 sm:$0xff]  }
 0x9ed   : > { %v2090_v59 = vpop.f32.mrf.mxu1 }
 0x9ee   : > { %v9086_v59 = vld [vmem:[#allocation10 + $0x120] ss:$12 sps:$4 sm:$0xff]  }
 0x9ef   : > { %v8642_v60 = vpop.f32.mrf.mxu1 }
 0x9f0   : > { %v9093_v60 = vld [vmem:[#allocation10 + $0x10c] ss:$12 sps:$4 sm:$0xff]  }
 0x9f1   : > { %v2139_v61 = vpop.f32.mrf.mxu1 }
 0x9f2   : > { %v2145_v62 = vsel %vm1759_vm3, %v2139_v61, -1e+30  ;;  %v9091_v61 = vld [vmem:[#allocation10 + $0x108] ss:$12 sps:$4 sm:$0xff]  }
 0x9f3   : > { %v8647_v63 = vpop.f32.mrf.mxu1  ;;  %v2146_v0 = vsel %vm1810_vm4, %v2145_v62, -inf }
 0x9f4   : > { %2147 = vmax.xlane.f32.xlu1 %v2146_v0  ;;  %v9096_v63 = vld [vmem:[#allocation10 + $0xf0] ss:$12 sps:$4 sm:$0xff]  }
 0x9f5   : > { %v2142_v1 = vpop.f32.mrf.mxu1  ;;  %v9103_v0 = vld [vmem:[#allocation10 + $0xdc] ss:$12 sps:$4 sm:$0xff]  }
 0x9f6   : > { %v9101_v1 = vld [vmem:[#allocation10 + $0xd8] ss:$12 sps:$4 sm:$0xff]  }
 0x9f7   : > { %v8648_v6 = vpop.f32.mrf.mxu1 }
 0x9f8   : > { %v9108_v6 = vld [vmem:[#allocation10 + $0xc4] ss:$12 sps:$4 sm:$0xff]  }
 0xa7d   : > { %v2148_v9 = vpop.xlane.xlu1 %2147 }
 0xa7e   : > { %v2149_v10 = vsub.f32 %v2145_v62, %v2148_v9  ;;  %v9098_v62 = vld [vmem:[#allocation10 + $0xf4] ss:$12 sps:$4 sm:$0xff]  }
 0xa7f   : > { %v9109_v9 = vld [vmem:[#allocation10 + $0xc8] ss:$12 sps:$4 sm:$0xff]  }
 0xa80   : > { %v2150_v12 = vmul.f32 1.442695, %v2149_v10  ;;  %v9106_v10 = vld [vmem:[#allocation10 + $0xc0] ss:$12 sps:$4 sm:$0xff]  }
 0xa82   : > { %9941 = vpow2.f32 %v2150_v12  ;;  %v9110_v12 = vld [vmem:[#allocation10 + $0x8] ss:$12 sps:$4 sm:$0xff]  }
 0xa8f   : > { %v9942_v11 = vpop.eup %9941 }
 0xa90   : > { %v2152_v13 = vsel %vm1810_vm4, %v9942_v11, 0.0 }
 0xa91   : > { %2153 = vadd.xlane.f32.xlu0 %v2152_v13 }
 0xaa7   : > { %2159 = vrot.lane.b32.xlu0 %v2046_v17, %s10375_s2  ;;  %v9061_v17 = vld [vmem:[#allocation10 + $0x4c] ss:$12 sps:$4 sm:$0xff]  }
 0xaa8   : > { %2564 = vmatprep.subr.bf16.mxu0 %v9061_v17 }
 0xaa9   : > { %2565 = vmatpush1.bf16.msra.mxu0 %v9059_v31  ;;  %v9948_v31 = vld [vmem:[%s10650_s7 + $0x8] sm:$0xff] }
 0xaaa   : > { %2566 = vmatprep.subr.bf16.mxu0 %v9064_v37 }
 0xaad   : > { %2567 = vmatpush1.bf16.msra.mxu0 %v9062_v40 }
 0xaae   : > { %2568 = vmatprep.subr.bf16.mxu0 %v9067_v41  ;;  %v9949_v41 = vld [vmem:[%s10650_s7 + $0x10] sm:$0xff] }
 0xab1   : > { %2569 = vmatpush1.bf16.msra.mxu0 %v9065_v44 }
 0xab2   : > { %2570 = vmatprep.subr.bf16.mxu0 %v9070_v45  ;;  %v9111_v45 = vld [vmem:[#allocation16 + $0x2a0] ss:$48 sps:$4 sm:$0xff]  }
 0xab5   : > { %2571 = vmatpush1.bf16.msra.mxu0 %v9068_v49  ;;  %v9114_v49 = vld [vmem:[#allocation16 + $0x240] ss:$48 sps:$4 sm:$0xff]  }
 0xab6   : > { %2572 = vmatprep.subr.bf16.mxu0 %v9073_v50  ;;  %v9119_v50 = vld [vmem:[#allocation16 + $0x1e4] ss:$48 sps:$4 sm:$0xff]  }
 0xab9   : > { %2573 = vmatpush2.bf16.msra.mxu0 %v9071_v52  ;;  %v9137_v52 = vld [vmem:[#allocation16 + $0x8a4] ss:$48 sps:$4 sm:$0xff]  }
 0xaba   : > { %2574 = vmatprep.subr.bf16.mxu0 %v9078_v53  ;;  %v9117_v53 = vld [vmem:[#allocation16 + $0x1e0] ss:$48 sps:$4 sm:$0xff]  }
 0xabd   : > { %2575 = vmatpush2.bf16.msra.mxu0 %v9076_v54  ;;  %v9143_v54 = vld [vmem:[#allocation16 + $0x844] ss:$48 sps:$4 sm:$0xff]  }
 0xabe   : > { %2576 = vmatprep.subr.bf16.mxu0 %v9083_v55  ;;  %v9122_v55 = vld [vmem:[#allocation16 + $0x184] ss:$48 sps:$4 sm:$0xff]  }
 0xac1   : > { %2577 = vmatpush2.bf16.msra.mxu0 %v9081_v56  ;;  %v9141_v56 = vld [vmem:[#allocation16 + $0x840] ss:$48 sps:$4 sm:$0xff]  }
 0xac2   : > { %2578 = vmatprep.subr.bf16.mxu0 %v9088_v57  ;;  %v9120_v57 = vld [vmem:[#allocation16 + $0x180] ss:$48 sps:$4 sm:$0xff]  }
 0xac5   : > { %2579 = vmatpush2.bf16.msra.mxu0 %v9086_v59  ;;  %v9125_v59 = vld [vmem:[#allocation16 + $0x124] ss:$48 sps:$4 sm:$0xff]  }
 0xac6   : > { %2580 = vmatprep.subr.bf16.mxu0 %v9093_v60  ;;  %v9123_v60 = vld [vmem:[#allocation16 + $0x120] ss:$48 sps:$4 sm:$0xff]  }
 0xac9   : > { %2581 = vmatpush2.bf16.msra.mxu0 %v9091_v61  ;;  %v9128_v61 = vld [vmem:[#allocation16 + $0xc4] ss:$48 sps:$4 sm:$0xff]  }
 0xaca   : > { %2582 = vmatprep.subr.bf16.mxu0 %v9098_v62  ;;  %v9126_v62 = vld [vmem:[#allocation16 + $0xc0] ss:$48 sps:$4 sm:$0xff]  }
 0xacd   : > { %2583 = vmatpush2.bf16.msra.mxu0 %v9096_v63  ;;  %v9131_v63 = vld [vmem:[#allocation16 + $0x64] ss:$48 sps:$4 sm:$0xff]  }
 0xace   : > { %2584 = vmatprep.subr.bf16.mxu0 %v9103_v0  ;;  %v9129_v0 = vld [vmem:[#allocation16 + $0x60] ss:$48 sps:$4 sm:$0xff]  }
 0xad1   : > { %2585 = vmatpush2.bf16.msra.mxu0 %v9101_v1  ;;  %v9134_v1 = vld [vmem:[#allocation16 + $0x4] ss:$48 sps:$4 sm:$0xff]  }
 0xad2   : > { %2586 = vmatprep.subr.bf16.mxu0 %v9108_v6  ;;  %v9132_v6 = vld [vmem:[#allocation16] ss:$48 sps:$4 sm:$0xff]  }
 0xad5   : > { %2587 = vmatpush2.bf16.msra.mxu0 %v9106_v10  ;;  %v9138_v10 = vld [vmem:[#allocation16 + $0x5a0] ss:$48 sps:$4 sm:$0xff]  }
 0xad6   : > { %4537 = vmatprep.subr.bf16.mxu0 %v9137_v52 }
 0xb1a   : > { %v2154_v14 = vpop.xlane.xlu0 %2153 }
 0xb1b   : > { %9943 = vrcp.f32 %v2154_v14 }
 0xb1e   : > { %v2160_v47 = vpop.permute.xlu0 %2159 }
 0xb1f   : > { %v2165_v15 = vsel %vm1827_vm2, %v2160_v47, 0 }
 0xb20   : > { %8650 = vmatpush3.bf16.msra.mxu1 %v2165_v15 }
 0xb21   : > { %8453 = vmatprep.subr.bf16.mxu1 %v9074_v23 }
 0xb28   : > { %v9944_v16 = vpop.eup %9943 }
 0xb29   : > { %v2156_v18 = vmul.f32 %v9944_v16, %v9942_v11 }
 0xb2b   : > { %v2157_v19 = vpack.c.bf16 %v2156_v18, %v2156_v18 }
 0xb2d   : > { %8652 = vmatmul.mubr.msk.bf16.vlgmr.msra.gmra.mxu1 %vm1810_vm4, %v2157_v19 }
 0xb2e   : > { %8454 = vmatpush3.bf16.msra.mxu1 %v9075_v24 }
 0xb2f   : > { %8455 = vmatprep.subr.bf16.mxu1 %v9079_v26 }
 0xb32   : > { %8456 = vmatpush3.bf16.msra.mxu1 %v9080_v29 }
 0xb33   : > { %8457 = vmatprep.subr.bf16.mxu1 %v9084_v30 }
 0xb36   : > { %8458 = vmatpush3.bf16.msra.mxu1 %v9085_v35  ;;  %v9947_v35 = vld [vmem:[%s10650_s7] sm:$0xff] }
 0xb37   : > { %8459 = vmatprep.subr.bf16.mxu1 %v9089_v33 }
 0xb3a   : > { %8460 = vmatpush3.bf16.msra.mxu1 %v9090_v38 }
 0xb3b   : > { %8461 = vmatprep.subr.bf16.mxu1 %v9094_v39 }
 0xb3e   : > { %8462 = vmatpush3.bf16.msra.mxu1 %v9095_v42 }
 0xb3f   : > { %8463 = vmatprep.subr.bf16.mxu1 %v9099_v43 }
 0xb42   : > { %8464 = vmatpush3.bf16.msra.mxu1 %v9100_v46  ;;  %v9113_v46 = vld [vmem:[#allocation16 + $0x2a4] ss:$48 sps:$4 sm:$0xff]  }
 0xb43   : > { %8465 = vmatprep.subr.bf16.mxu1 %v9104_v48  ;;  %v9116_v48 = vld [vmem:[#allocation16 + $0x244] ss:$48 sps:$4 sm:$0xff]  }
 0xb46   : > { %8466 = vmatpush3.bf16.msra.mxu1 %v9105_v51  ;;  %v9135_v51 = vld [vmem:[#allocation16 + $0x8a0] ss:$48 sps:$4 sm:$0xff]  }
 0xb47   : > { %8467 = vmatprep.subr.bf16.mxu1 %v9109_v9  ;;  %v9140_v9 = vld [vmem:[#allocation16 + $0x5a4] ss:$48 sps:$4 sm:$0xff]  }
 0xb4a   : > { %8468 = vmatpush3.bf16.msra.mxu1 %v9110_v12  ;;  %v9146_v12 = vld [vmem:[#allocation16 + $0x544] ss:$48 sps:$4 sm:$0xff]  }
 0xb4b   : > { %4496 = vmatprep.subr.bf16.mxu1 %v9113_v46  ;;  %v9180_v46 = vld [vmem:[#allocation16 + $0x300] ss:$48 sps:$4 sm:$0xff]  }
 0xbed   : > { %v2201_v11 = vpop.f32.mrf.mxu1 }
 0xbee   : > { %v8826_v13 = vpack.i.bf16 %v10797_v28, %v2201_v11  ;;  %v2283_v28 = vld [vmem:[#allocation11] sm:$0x7]  ;;  %v9144_v11 = vld [vmem:[#allocation16 + $0x540] ss:$48 sps:$4 sm:$0xff]  }
 0xbef   : > { %v8653_v14 = vpop.f32.mrf.mxu1  ;;  %v2288_v22 = vrot.slane %v2283_v28, %v10706_v8  ;;  %v2292_v23 = vrot.slane %v2283_v28, %v10700_v5 }
 0xbf0   : > { %8827 = vrot.lane.b32.xlu1 %v8826_v13, %s10375_s2 }
 0xbf1   : > { %v2204_v47 = vpop.f32.mrf.mxu1 }
 0xbf3   : > { %v8654_v15 = vpop.f32.mrf.mxu1 }
 0xc62   : > { %v8828_v16 = vpop.permute.xlu1 %8827 }
 0xc63   : > { %v8830_v18 = vunpack.i.h.bf16 %v8828_v16  ;;  %v8829_v19 = vunpack.i.l.bf16 %v8828_v16 }
 0xc65   : > { %v2215_v20 = vsel %vm1762_vm1, %v10770_v4, %v8830_v18  ;;  %v2216_v36 = vsel %vm1762_vm1, %v10813_v2, %v8829_v19  ;;  %v2296_v2 = vrot.slane %v2283_v28, %v10703_v7  ;;  %v9147_v28 = vld [vmem:[#allocation16 + $0x7e0] ss:$48 sps:$4 sm:$0xff]  }
 0xc66   : > { %v2217_v21 = vpack.c.bf16 %v2215_v20, %v2215_v20  ;;  %v2218_v32 = vpack.c.bf16 %v2216_v36, %v2216_v36 }
 0xc68   : > { %2588 = vmatprep.mubr.bf16.mxu0 %v2218_v32  ;;  %2629 = vmatprep.mubr.bf16.mxu1 %v2218_v32  ;;  %v9149_v32 = vld [vmem:[#allocation16 + $0x7e4] ss:$48 sps:$4 sm:$0xff]  }
 0xc69   : > { %2589 = vmatmul.mubr.bf16.vlgmr.msra.gmra.mxu0 %v2217_v21  ;;  %2630 = vmatmul.mubr.bf16.vlgmr.msra.gmra.mxu1 %v2217_v21 }
 0xc6a   : > { %4569 = vmatprep.mubr.bf16.mxu0 %v10372_v58  ;;  %4497 = vmatpush1.bf16.msra.mxu1 %v9111_v45  ;;  %v9177_v45 = vld [vmem:[#allocation16 + $0x600] ss:$48 sps:$4 sm:$0xff]  }
 0xc6b   : > { %4498 = vmatprep.subr.bf16.mxu1 %v9116_v48  ;;  %4538 = vmatpush1.bf16.msra.mxu0 %v9135_v51  ;;  %v9185_v48 = vld [vmem:[#allocation16 + $0x2ac] ss:$48 sps:$4 sm:$0xff]  }
 0xc6c   : > { %4539 = vmatprep.subr.bf16.mxu0 %v9143_v54  ;;  %v2641_v54 = vld [vmem:[#allocation14] sm:$0x7] }
 0xc6e   : > { %4499 = vmatpush1.bf16.msra.mxu1 %v9114_v49  ;;  %v9188_v49 = vld [vmem:[#allocation16 + $0x8ac] ss:$48 sps:$4 sm:$0xff]  }
 0xc6f   : > { %4500 = vmatprep.subr.bf16.mxu1 %v9119_v50  ;;  %4540 = vmatpush1.bf16.msra.mxu0 %v9141_v56 }
 0xc70   : > { %4541 = vmatprep.subr.bf16.mxu0 %v9149_v32  ;;  %v9197_v32 = vld [vmem:[#allocation16 + $0x1ec] ss:$48 sps:$4 sm:$0xff]  }
 0xc72   : > { %4501 = vmatpush1.bf16.msra.mxu1 %v9117_v53  ;;  %v2640_v53 = vld [vmem:[#allocation13] sm:$0x7] }
 0xc73   : > { %4502 = vmatprep.subr.bf16.mxu1 %v9122_v55  ;;  %4542 = vmatpush1.bf16.msra.mxu0 %v9147_v28  ;;  %v2671_v55 = vrot.slane %v2640_v53, %v10700_v5  ;;  %v2675_v56 = vrot.slane %v2640_v53, %v10703_v7  ;;  %v9200_v28 = vld [vmem:[#allocation16 + $0x7ec] ss:$48 sps:$4 sm:$0xff]  }
 0xc76   : > { %4503 = vmatpush1.bf16.msra.mxu1 %v9120_v57  ;;  %v2667_v57 = vrot.slane %v2640_v53, %v10706_v8  ;;  %v9242_v53 = vld [vmem:[#allocation16 + $0x254] ss:$48 sps:$4 sm:$0xff]  }
 0xc77   : > { %4504 = vmatprep.subr.bf16.mxu1 %v9125_v59 }
 0xc7a   : > { %4505 = vmatpush1.bf16.msra.mxu1 %v9123_v60  ;;  %v2690_v60 = vrot.slane %v2641_v54, %v10700_v5 }
 0xc7b   : > { %4506 = vmatprep.subr.bf16.mxu1 %v9128_v61  ;;  %v2694_v61 = vrot.slane %v2641_v54, %v10703_v7 }
 0xc7e   : > { %4507 = vmatpush1.bf16.msra.mxu1 %v9126_v62 }
 0xc7f   : > { %4508 = vmatprep.subr.bf16.mxu1 %v9131_v63 }
 0xc82   : > { %4509 = vmatpush1.bf16.msra.mxu1 %v9129_v0 }
 0xc83   : > { %4510 = vmatprep.subr.bf16.mxu1 %v9134_v1  ;;  %v2686_v1 = vrot.slane %v2641_v54, %v10706_v8  ;;  %v9237_v54 = vld [vmem:[#allocation16 + $0x548] ss:$48 sps:$4 sm:$0xff]  }
 0xc86   : > { %4511 = vmatpush1.bf16.msra.mxu1 %v9132_v6 }
 0xc87   : > { %4512 = vmatprep.subr.bf16.mxu1 %v9140_v9 }
 0xc8a   : > { %4513 = vmatpush2.bf16.msra.mxu1 %v9138_v10 }
 0xc8b   : > { %4514 = vmatprep.subr.bf16.mxu1 %v9146_v12 }
 0xc8e   : > { %4515 = vmatpush2.bf16.msra.mxu1 %v9144_v11 }
 0xd29   : > { %v2590_v24 = vpop.f32.mrf.mxu0  ;;  %v8469_v4 = vpop.f32.mrf.mxu1 }
 0xd2a   : > { %v2591_v25 = vadd.f32 %v2590_v24, %v2288_v22  ;;  %v9152_v22 = vld [vmem:[#allocation16 + $0x4e4] ss:$48 sps:$4 sm:$0xff]   ;;  %v9153_v24 = vld [vmem:[#allocation16 + $0x780] ss:$48 sps:$4 sm:$0xff]  }
 0xd2b   : > { %v2592_v26 = vpop.f32.mrf.mxu0  ;;  %v8470_v27 = vpop.f32.mrf.mxu1  ;;  %4516 = vmatprep.subr.bf16.mxu1 %v9152_v22  ;;  %v9195_v22 = vld [vmem:[#allocation16 + $0x1e8] ss:$48 sps:$4 sm:$0xff]  }
 0xd2c   : > { %v2593_v29 = vadd.f32 %v2592_v26, %v2292_v23  ;;  %v8471_v30 = vadd.f32 %v8470_v27, %v8469_v4  ;;  %v10834_v33 = vadd.f32 %v9947_v35, %v2591_v25  ;;  %v9150_v23 = vld [vmem:[#allocation16 + $0x4e0] ss:$48 sps:$4 sm:$0xff]   ;;  %v9155_v4 = vld [vmem:[#allocation16 + $0x784] ss:$48 sps:$4 sm:$0xff]  }
 0xd2d   : > { %v2594_v34 = vpop.f32.mrf.mxu0  ;;  %v8472_v17 = vpop.f32.mrf.mxu1  ;;  %4517 = vmatpush2.bf16.msra.mxu1 %v9150_v23  ;;  %v9156_v25 = vld [vmem:[#allocation16 + $0x480] ss:$48 sps:$4 sm:$0xff]   ;;  %v9161_v26 = vld [vmem:[#allocation16 + $0x724] ss:$48 sps:$4 sm:$0xff]   ;;  %4543 = vmatprep.subr.bf16.mxu0 %v9155_v4  ;;  %v9198_v23 = vld [vmem:[#allocation16 + $0x7e8] ss:$48 sps:$4 sm:$0xff]  }
 0xd2e   : > { %v10837_v37 = vadd.f32 %v9948_v31, %v2593_v29  ;;  %v2632_v38 = vadd.f32 %v8471_v30, %v2296_v2  ;;  %v9158_v2 = vld [vmem:[#allocation16 + $0x484] ss:$48 sps:$4 sm:$0xff]   ;;  %4544 = vmatpush1.bf16.msra.mxu0 %v9153_v24  ;;  %v9159_v29 = vld [vmem:[#allocation16 + $0x720] ss:$48 sps:$4 sm:$0xff]   ;;  %v9203_v24 = vld [vmem:[#allocation16 + $0x18c] ss:$48 sps:$4 sm:$0xff]  }
 0xd2f   : > { %v2595_v39 = vpop.f32.mrf.mxu0  ;;  %v8473_v40 = vpop.f32.mrf.mxu1  ;;  %v9164_v27 = vld [vmem:[#allocation16 + $0x424] ss:$48 sps:$4 sm:$0xff]   ;;  %4518 = vmatprep.subr.bf16.mxu1 %v9158_v2  ;;  %4545 = vmatprep.subr.bf16.mxu0 %v9161_v26  ;;  %v9162_v30 = vld [vmem:[#allocation16 + $0x420] ss:$48 sps:$4 sm:$0xff]   ;;  %v9206_v4 = vld [vmem:[#allocation16 + $0x78c] ss:$48 sps:$4 sm:$0xff]  }
 0xd30   : > { %v10840_v42 = vadd.f32 %v9949_v41, %v2632_v38  ;;  %v2642_v43 = vadd.f32 %v10837_v37, %v10834_v33  ;;  %v9167_v34 = vld [vmem:[#allocation16 + $0x6c4] ss:$48 sps:$4 sm:$0xff]   ;;  %v9165_v35 = vld [vmem:[#allocation16 + $0x6c0] ss:$48 sps:$4 sm:$0xff]   ;;  %v9204_v2 = vld [vmem:[#allocation16 + $0x788] ss:$48 sps:$4 sm:$0xff]  }
 0xd31   : > { %4519 = vmatpush2.bf16.msra.mxu1 %v9156_v25  ;;  %v9170_v17 = vld [vmem:[#allocation16 + $0x3c4] ss:$48 sps:$4 sm:$0xff]   ;;  %v9168_v31 = vld [vmem:[#allocation16 + $0x3c0] ss:$48 sps:$4 sm:$0xff]   ;;  %v9201_v25 = vld [vmem:[#allocation16 + $0x188] ss:$48 sps:$4 sm:$0xff]  }
 0xd32   : > { %v2643_v44 = vadd.f32 %v2642_v43, %v10840_v42  ;;  %4520 = vmatprep.subr.bf16.mxu1 %v9164_v27  ;;  %4546 = vmatpush1.bf16.msra.mxu0 %v9159_v29  ;;  %v9173_v38 = vld [vmem:[#allocation16 + $0x664] ss:$48 sps:$4 sm:$0xff]   ;;  %v9171_v40 = vld [vmem:[#allocation16 + $0x660] ss:$48 sps:$4 sm:$0xff]   ;;  %v9209_v26 = vld [vmem:[#allocation16 + $0x12c] ss:$48 sps:$4 sm:$0xff]  }
 0xd33   : > { %4547 = vmatprep.subr.bf16.mxu0 %v9167_v34  ;;  %v9176_v39 = vld [vmem:[#allocation16 + $0x364] ss:$48 sps:$4 sm:$0xff]   ;;  %v9174_v41 = vld [vmem:[#allocation16 + $0x360] ss:$48 sps:$4 sm:$0xff]   ;;  %v9212_v27 = vld [vmem:[#allocation16 + $0x72c] ss:$48 sps:$4 sm:$0xff]  }
 0xd34   : > { %2644 = vadd.xlane.f32.xlu1 %v2643_v44  ;;  %v9179_v43 = vld [vmem:[#allocation16 + $0x604] ss:$48 sps:$4 sm:$0xff]   ;;  %v9207_v29 = vld [vmem:[#allocation16 + $0x128] ss:$48 sps:$4 sm:$0xff]   ;;  %v9215_v34 = vld [vmem:[#allocation16 + $0xcc] ss:$48 sps:$4 sm:$0xff]  }
 0xd35   : > { %4521 = vmatpush2.bf16.msra.mxu1 %v9162_v30  ;;  %v9182_v44 = vld [vmem:[#allocation16 + $0x304] ss:$48 sps:$4 sm:$0xff]   ;;  %v9210_v30 = vld [vmem:[#allocation16 + $0x728] ss:$48 sps:$4 sm:$0xff]  }
 0xd36   : > { %4522 = vmatprep.subr.bf16.mxu1 %v9170_v17  ;;  %4548 = vmatpush1.bf16.msra.mxu0 %v9165_v35  ;;  %v9218_v17 = vld [vmem:[#allocation16 + $0x6cc] ss:$48 sps:$4 sm:$0xff]   ;;  %v9213_v35 = vld [vmem:[#allocation16 + $0xc8] ss:$48 sps:$4 sm:$0xff]  }
 0xd37   : > { %4549 = vmatprep.subr.bf16.mxu0 %v9173_v38  ;;  %v9221_v38 = vld [vmem:[#allocation16 + $0x6c] ss:$48 sps:$4 sm:$0xff]  }
 0xd39   : > { %4523 = vmatpush2.bf16.msra.mxu1 %v9168_v31  ;;  %v9216_v31 = vld [vmem:[#allocation16 + $0x6c8] ss:$48 sps:$4 sm:$0xff]  }
 0xd3a   : > { %4524 = vmatprep.subr.bf16.mxu1 %v9176_v39  ;;  %4550 = vmatpush1.bf16.msra.mxu0 %v9171_v40  ;;  %v9224_v39 = vld [vmem:[#allocation16 + $0x66c] ss:$48 sps:$4 sm:$0xff]   ;;  %v9219_v40 = vld [vmem:[#allocation16 + $0x68] ss:$48 sps:$4 sm:$0xff]  }
 0xd3b   : > { %4551 = vmatprep.subr.bf16.mxu0 %v9179_v43  ;;  %v9227_v43 = vld [vmem:[#allocation16 + $0xc] ss:$48 sps:$4 sm:$0xff]  }
 0xd3d   : > { %4525 = vmatpush2.bf16.msra.mxu1 %v9174_v41  ;;  %v9222_v41 = vld [vmem:[#allocation16 + $0x668] ss:$48 sps:$4 sm:$0xff]  }
 0xd3e   : > { %4526 = vmatprep.subr.bf16.mxu1 %v9182_v44  ;;  %4552 = vmatpush1.bf16.msra.mxu0 %v9177_v45  ;;  %v9230_v44 = vld [vmem:[#allocation16 + $0x60c] ss:$48 sps:$4 sm:$0xff]   ;;  %v9225_v45 = vld [vmem:[#allocation16 + $0x8] ss:$48 sps:$4 sm:$0xff]  }
 0xd3f   : > { %4578 = vmatprep.subr.bf16.mxu0 %v9185_v48  ;;  %v9233_v48 = vld [vmem:[#allocation16 + $0x5ac] ss:$48 sps:$4 sm:$0xff]  }
 0xd41   : > { %4527 = vmatpush2.bf16.msra.mxu1 %v9180_v46  ;;  %v9228_v46 = vld [vmem:[#allocation16 + $0x608] ss:$48 sps:$4 sm:$0xff]  }
 0xd42   : > { %4619 = vmatprep.subr.bf16.mxu1 %v9188_v49  ;;  %v9236_v49 = vld [vmem:[#allocation16 + $0x2b4] ss:$48 sps:$4 sm:$0xff]  }
 0xdbd   : > { %v2645_v13 = vpop.xlane.xlu1 %2644 }
 0xdbe   : > { %v2646_v14 = vmul.f32 0.0026041667, %v2645_v13 }
 0xdc0   : > { %v10846_v47 = vsub.f32 %v10834_v33, %v2646_v14  ;;  %v10849_v15 = vsub.f32 %v10837_v37, %v2646_v14  ;;  %v10852_v16 = vsub.f32 %v10840_v42, %v2646_v14  ;;  %v9183_v14 = vld [vmem:[#allocation16 + $0x2a8] ss:$48 sps:$4 sm:$0xff]  }
 0xdc2   : > { %v2650_v18 = vmul.f32 %v10846_v47, %v10846_v47  ;;  %v2651_v19 = vmul.f32 %v10849_v15, %v10849_v15  ;;  %v2652_v20 = vmul.f32 %v10852_v16, %v10852_v16 }
 0xdc4   : > { %v2653_v36 = vadd.f32 %v2651_v19, %v2650_v18 }
 0xdc6   : > { %v2654_v21 = vadd.f32 %v2653_v36, %v2652_v20  ;;  %v9186_v20 = vld [vmem:[#allocation16 + $0x8a8] ss:$48 sps:$4 sm:$0xff]  }
 0xdc8   : > { %2655 = vadd.xlane.f32.xlu0 %v2654_v21  ;;  %v9192_v21 = vld [vmem:[#allocation16 + $0x848] ss:$48 sps:$4 sm:$0xff]  }
 0xe51   : > { %v2656_v50 = vpop.xlane.xlu0 %2655 }
 0xe52   : > { %v2657_v51 = vmul.f32 0.0026041667, %v2656_v50  ;;  %v9231_v50 = vld [vmem:[#allocation16 + $0x5a8] ss:$48 sps:$4 sm:$0xff]  }
 0xe54   : > { %v2658_v52 = vadd.f32 1e-05, %v2657_v51  ;;  %v9234_v51 = vld [vmem:[#allocation16 + $0x2b0] ss:$48 sps:$4 sm:$0xff]  }
 0xe56   : > { %9945 = vrsqrt.f32 %v2658_v52  ;;  %v9239_v52 = vld [vmem:[#allocation16 + $0x54c] ss:$48 sps:$4 sm:$0xff]  }
 0xe63   : > { %v9946_v59 = vpop.eup %9945 }
 0xe64   : > { %v2661_v62 = vmul.f32 %v9946_v59, %v10849_v15  ;;  %v2662_v63 = vmul.f32 %v9946_v59, %v10852_v16  ;;  %v2660_v0 = vmul.f32 %v9946_v59, %v10846_v47  ;;  %v9191_v15 = vld [vmem:[#allocation16 + $0x24c] ss:$48 sps:$4 sm:$0xff]   ;;  %v9189_v47 = vld [vmem:[#allocation16 + $0x248] ss:$48 sps:$4 sm:$0xff]  }
 0xe65   : > { %v9194_v16 = vld [vmem:[#allocation16 + $0x84c] ss:$48 sps:$4 sm:$0xff]   ;;  %v9243_v59 = vld [vmem:[#allocation16 + $0x4e8] ss:$48 sps:$4 sm:$0xff]  }
 0xe66   : > { %v2680_v6 = vmul.f32 %v2671_v55, %v2661_v62  ;;  %v2681_v9 = vmul.f32 %v2675_v56, %v2662_v63  ;;  %v2679_v10 = vmul.f32 %v2667_v57, %v2660_v0  ;;  %v9240_v55 = vld [vmem:[#allocation16 + $0x250] ss:$48 sps:$4 sm:$0xff]   ;;  %v9245_v56 = vld [vmem:[#allocation16 + $0x4ec] ss:$48 sps:$4 sm:$0xff]   ;;  %v9248_v57 = vld [vmem:[#allocation16 + $0x1f4] ss:$48 sps:$4 sm:$0xff]  }
 0xe67   : > { %v9254_v62 = vld [vmem:[#allocation16 + $0x194] ss:$48 sps:$4 sm:$0xff]   ;;  %v9249_v63 = vld [vmem:[#allocation16 + $0x488] ss:$48 sps:$4 sm:$0xff]   ;;  %v9252_v0 = vld [vmem:[#allocation16 + $0x190] ss:$48 sps:$4 sm:$0xff]  }
 0xe68   : > { %v2699_v12 = vadd.f32 %v2690_v60, %v2680_v6  ;;  %v2700_v11 = vadd.f32 %v2694_v61, %v2681_v9  ;;  %v2698_v13 = vadd.f32 %v2686_v1, %v2679_v10  ;;  %v9246_v60 = vld [vmem:[#allocation16 + $0x1f0] ss:$48 sps:$4 sm:$0xff]   ;;  %v9251_v61 = vld [vmem:[#allocation16 + $0x48c] ss:$48 sps:$4 sm:$0xff]   ;;  %v9260_v6 = vld [vmem:[#allocation16 + $0x134] ss:$48 sps:$4 sm:$0xff]  }
 0xe69   : > { %v9257_v1 = vld [vmem:[#allocation16 + $0x42c] ss:$48 sps:$4 sm:$0xff]   ;;  %v9255_v9 = vld [vmem:[#allocation16 + $0x428] ss:$48 sps:$4 sm:$0xff]   ;;  %v9258_v10 = vld [vmem:[#allocation16 + $0x130] ss:$48 sps:$4 sm:$0xff]  }
 0xe6a   : > { %v10869_v18 = vpack.c.bf16 %v2699_v12, %v2699_v12  ;;  %v10871_v19 = vpack.c.bf16 %v2700_v11, %v2700_v11  ;;  %v10873_v36 = vpack.c.bf16 %v2698_v13, %v2698_v13  ;;  %v9263_v12 = vld [vmem:[#allocation16 + $0x3cc] ss:$48 sps:$4 sm:$0xff]   ;;  %v9266_v11 = vld [vmem:[#allocation16 + $0xd4] ss:$48 sps:$4 sm:$0xff]   ;;  %v9261_v13 = vld [vmem:[#allocation16 + $0x3c8] ss:$48 sps:$4 sm:$0xff]  }
 0xe6c   : > { %4528 = vmatprep.mubr.bf16.mxu1 %v10869_v18  ;;  %4570 = vmatmul.mubr.bf16.vlgmr.msra.gmra.mxu0 %v10871_v19 }
 0xe6d   : > { %4579 = vmatpush1.bf16.msra.mxu0 %v9183_v14  ;;  %4529 = vmatmul.mubr.bf16.vlgmr.msra.gmra.mxu1 %v10873_v36  ;;  %v9264_v14 = vld [vmem:[#allocation16 + $0xd0] ss:$48 sps:$4 sm:$0xff]  }
 0xe6e   : > { %4610 = vmatprep.mubr.bf16.mxu0 %v10869_v18  ;;  %4620 = vmatpush1.bf16.msra.mxu1 %v9186_v20  ;;  %v9269_v20 = vld [vmem:[#allocation16 + $0x36c] ss:$48 sps:$4 sm:$0xff]  }
 0xe6f   : > { %4580 = vmatprep.subr.bf16.mxu0 %v9191_v15  ;;  %4621 = vmatprep.subr.bf16.mxu1 %v9194_v16  ;;  %v9272_v15 = vld [vmem:[#allocation16 + $0x74] ss:$48 sps:$4 sm:$0xff]   ;;  %v9267_v16 = vld [vmem:[#allocation16 + $0x368] ss:$48 sps:$4 sm:$0xff]  }
 0xe70   : > { %4651 = vmatprep.mubr.bf16.mxu1 %v10372_v58 }
 0xe71   : > { %4581 = vmatpush1.bf16.msra.mxu0 %v9189_v47  ;;  %v9270_v47 = vld [vmem:[#allocation16 + $0x70] ss:$48 sps:$4 sm:$0xff]  }
 0xe72   : > { %4622 = vmatpush1.bf16.msra.mxu1 %v9192_v21  ;;  %4582 = vmatprep.subr.bf16.mxu0 %v9197_v32  ;;  %v9275_v21 = vld [vmem:[#allocation16 + $0x30c] ss:$48 sps:$4 sm:$0xff]   ;;  %v9278_v32 = vld [vmem:[#allocation16 + $0x14] ss:$48 sps:$4 sm:$0xff]  }
 0xe73   : > { %4623 = vmatprep.subr.bf16.mxu1 %v9200_v28  ;;  %v9273_v28 = vld [vmem:[#allocation16 + $0x308] ss:$48 sps:$4 sm:$0xff]  }
 0xe75   : > { %4583 = vmatpush1.bf16.msra.mxu0 %v9195_v22  ;;  %v9276_v22 = vld [vmem:[#allocation16 + $0x10] ss:$48 sps:$4 sm:$0xff]  }
 0xe76   : > { %4624 = vmatpush1.bf16.msra.mxu1 %v9198_v23  ;;  %4584 = vmatprep.subr.bf16.mxu0 %v9203_v24  ;;  %v9281_v23 = vld [vmem:[#allocation16 + $0x8b4] ss:$48 sps:$4 sm:$0xff]  }
 0xe77   : > { %4625 = vmatprep.subr.bf16.mxu1 %v9206_v4  ;;  %v9284_v24 = vld [vmem:[#allocation16 + $0x5b4] ss:$48 sps:$4 sm:$0xff]   ;;  %v9279_v4 = vld [vmem:[#allocation16 + $0x8b0] ss:$48 sps:$4 sm:$0xff]  }
 0xe79   : > { %4585 = vmatpush1.bf16.msra.mxu0 %v9201_v25  ;;  %v9282_v25 = vld [vmem:[#allocation16 + $0x5b0] ss:$48 sps:$4 sm:$0xff]  }
 0xe7a   : > { %4626 = vmatpush1.bf16.msra.mxu1 %v9204_v2  ;;  %4586 = vmatprep.subr.bf16.mxu0 %v9209_v26  ;;  %v9287_v2 = vld [vmem:[#allocation16 + $0x854] ss:$48 sps:$4 sm:$0xff]  }
 0xe7b   : > { %4627 = vmatprep.subr.bf16.mxu1 %v9212_v27  ;;  %v9290_v26 = vld [vmem:[#allocation16 + $0x554] ss:$48 sps:$4 sm:$0xff]   ;;  %v9285_v27 = vld [vmem:[#allocation16 + $0x850] ss:$48 sps:$4 sm:$0xff]  }
 0xe7d   : > { %4587 = vmatpush1.bf16.msra.mxu0 %v9207_v29  ;;  %v9288_v29 = vld [vmem:[#allocation16 + $0x550] ss:$48 sps:$4 sm:$0xff]  }
 0xe7e   : > { %4628 = vmatpush1.bf16.msra.mxu1 %v9210_v30  ;;  %4588 = vmatprep.subr.bf16.mxu0 %v9215_v34  ;;  %v9293_v30 = vld [vmem:[#allocation16 + $0x7f4] ss:$48 sps:$4 sm:$0xff]  }
 0xe7f   : > { %4629 = vmatprep.subr.bf16.mxu1 %v9218_v17  ;;  %v9296_v34 = vld [vmem:[#allocation16 + $0x4f4] ss:$48 sps:$4 sm:$0xff]   ;;  %v9291_v17 = vld [vmem:[#allocation16 + $0x7f0] ss:$48 sps:$4 sm:$0xff]  }
 0xe81   : > { %4589 = vmatpush1.bf16.msra.mxu0 %v9213_v35  ;;  %v9294_v35 = vld [vmem:[#allocation16 + $0x4f0] ss:$48 sps:$4 sm:$0xff]  }
 0xe82   : > { %4630 = vmatpush1.bf16.msra.mxu1 %v9216_v31  ;;  %4590 = vmatprep.subr.bf16.mxu0 %v9221_v38  ;;  %v9299_v31 = vld [vmem:[#allocation16 + $0x794] ss:$48 sps:$4 sm:$0xff]  }
 0xe83   : > { %4631 = vmatprep.subr.bf16.mxu1 %v9224_v39  ;;  %v9302_v38 = vld [vmem:[#allocation16 + $0x494] ss:$48 sps:$4 sm:$0xff]   ;;  %v9297_v39 = vld [vmem:[#allocation16 + $0x790] ss:$48 sps:$4 sm:$0xff]  }
 0xe85   : > { %4591 = vmatpush1.bf16.msra.mxu0 %v9219_v40  ;;  %v9300_v40 = vld [vmem:[#allocation16 + $0x490] ss:$48 sps:$4 sm:$0xff]  }
 0xe86   : > { %4632 = vmatpush1.bf16.msra.mxu1 %v9222_v41  ;;  %4592 = vmatprep.subr.bf16.mxu0 %v9227_v43  ;;  %v9305_v41 = vld [vmem:[#allocation16 + $0x734] ss:$48 sps:$4 sm:$0xff]  }
 0xe87   : > { %4633 = vmatprep.subr.bf16.mxu1 %v9230_v44  ;;  %v9308_v43 = vld [vmem:[#allocation16 + $0x434] ss:$48 sps:$4 sm:$0xff]   ;;  %v9303_v44 = vld [vmem:[#allocation16 + $0x730] ss:$48 sps:$4 sm:$0xff]  }
 0xe89   : > { %4593 = vmatpush1.bf16.msra.mxu0 %v9225_v45  ;;  %v9306_v45 = vld [vmem:[#allocation16 + $0x430] ss:$48 sps:$4 sm:$0xff]  }
 0xe8a   : > { %4634 = vmatpush1.bf16.msra.mxu1 %v9228_v46  ;;  %4594 = vmatprep.subr.bf16.mxu0 %v9233_v48  ;;  %v9311_v46 = vld [vmem:[#allocation16 + $0x6d4] ss:$48 sps:$4 sm:$0xff]  }
 0xe8b   : > { %4660 = vmatprep.subr.bf16.mxu1 %v9236_v49  ;;  %v9314_v48 = vld [vmem:[#allocation16 + $0x3d4] ss:$48 sps:$4 sm:$0xff]   ;;  %v9309_v49 = vld [vmem:[#allocation16 + $0x6d0] ss:$48 sps:$4 sm:$0xff]  }
 0xe8d   : > { %4595 = vmatpush2.bf16.msra.mxu0 %v9231_v50  ;;  %4652 = vmatmul.mubr.bf16.vlgmr.msra.gmra.mxu1 %v10871_v19  ;;  %v9312_v50 = vld [vmem:[#allocation16 + $0x3d0] ss:$48 sps:$4 sm:$0xff]  }
 0xe8e   : > { %4661 = vmatpush1.bf16.msra.mxu1 %v9234_v51  ;;  %4692 = vmatprep.mubr.bf16.mxu1 %v10869_v18  ;;  %v9317_v51 = vld [vmem:[#allocation16 + $0x674] ss:$48 sps:$4 sm:$0xff]  }
 0xe8f   : > { %4596 = vmatprep.subr.bf16.mxu0 %v9239_v52  ;;  %4662 = vmatprep.subr.bf16.mxu1 %v9242_v53  ;;  %v9320_v52 = vld [vmem:[#allocation16 + $0x374] ss:$48 sps:$4 sm:$0xff]   ;;  %v9315_v53 = vld [vmem:[#allocation16 + $0x670] ss:$48 sps:$4 sm:$0xff]  }
 0xe91   : > { %4597 = vmatpush2.bf16.msra.mxu0 %v9237_v54  ;;  %v9318_v54 = vld [vmem:[#allocation16 + $0x370] ss:$48 sps:$4 sm:$0xff]  }
 0xe92   : > { %4663 = vmatpush1.bf16.msra.mxu1 %v9240_v55  ;;  %4598 = vmatprep.subr.bf16.mxu0 %v9245_v56  ;;  %v9323_v55 = vld [vmem:[#allocation16 + $0x614] ss:$48 sps:$4 sm:$0xff]  }
 0xe93   : > { %4664 = vmatprep.subr.bf16.mxu1 %v9248_v57  ;;  %v9326_v56 = vld [vmem:[#allocation16 + $0x314] ss:$48 sps:$4 sm:$0xff]   ;;  %v9321_v57 = vld [vmem:[#allocation16 + $0x610] ss:$48 sps:$4 sm:$0xff]  }
 0xe95   : > { %4599 = vmatpush2.bf16.msra.mxu0 %v9243_v59  ;;  %v9324_v59 = vld [vmem:[#allocation16 + $0x310] ss:$48 sps:$4 sm:$0xff]  }
 0xe96   : > { %4665 = vmatpush1.bf16.msra.mxu1 %v9246_v60  ;;  %4600 = vmatprep.subr.bf16.mxu0 %v9251_v61  ;;  %v9329_v60 = vld [vmem:[#allocation16 + $0x2bc] ss:$48 sps:$4 sm:$0xff]  }
 0xe97   : > { %4666 = vmatprep.subr.bf16.mxu1 %v9254_v62  ;;  %v9332_v61 = vld [vmem:[#allocation16 + $0x8bc] ss:$48 sps:$4 sm:$0xff]   ;;  %v9327_v62 = vld [vmem:[#allocation16 + $0x2b8] ss:$48 sps:$4 sm:$0xff]  }
 0xe99   : > { %4601 = vmatpush2.bf16.msra.mxu0 %v9249_v63  ;;  %v9330_v63 = vld [vmem:[#allocation16 + $0x8b8] ss:$48 sps:$4 sm:$0xff]  }
 0xe9a   : > { %4667 = vmatpush1.bf16.msra.mxu1 %v9252_v0  ;;  %4602 = vmatprep.subr.bf16.mxu0 %v9257_v1  ;;  %v9335_v0 = vld [vmem:[#allocation16 + $0x25c] ss:$48 sps:$4 sm:$0xff]  }
 0xe9b   : > { %4668 = vmatprep.subr.bf16.mxu1 %v9260_v6  ;;  %v9338_v1 = vld [vmem:[#allocation16 + $0x85c] ss:$48 sps:$4 sm:$0xff]   ;;  %v9333_v6 = vld [vmem:[#allocation16 + $0x258] ss:$48 sps:$4 sm:$0xff]  }
 0xe9d   : > { %4603 = vmatpush2.bf16.msra.mxu0 %v9255_v9  ;;  %v9336_v9 = vld [vmem:[#allocation16 + $0x858] ss:$48 sps:$4 sm:$0xff]  }
 0xe9e   : > { %4669 = vmatpush1.bf16.msra.mxu1 %v9258_v10  ;;  %4604 = vmatprep.subr.bf16.mxu0 %v9263_v12  ;;  %v9341_v10 = vld [vmem:[#allocation16 + $0x1fc] ss:$48 sps:$4 sm:$0xff]  }
 0xe9f   : > { %4670 = vmatprep.subr.bf16.mxu1 %v9266_v11  ;;  %v9344_v12 = vld [vmem:[#allocation16 + $0x7fc] ss:$48 sps:$4 sm:$0xff]   ;;  %v9339_v11 = vld [vmem:[#allocation16 + $0x1f8] ss:$48 sps:$4 sm:$0xff]  }
 0xea1   : > { %4605 = vmatpush2.bf16.msra.mxu0 %v9261_v13  ;;  %v9342_v13 = vld [vmem:[#allocation16 + $0x7f8] ss:$48 sps:$4 sm:$0xff]  }
 0xea2   : > { %4671 = vmatpush1.bf16.msra.mxu1 %v9264_v14  ;;  %4606 = vmatprep.subr.bf16.mxu0 %v9269_v20  ;;  %v9347_v14 = vld [vmem:[#allocation16 + $0x19c] ss:$48 sps:$4 sm:$0xff]  }
 0xea3   : > { %4672 = vmatprep.subr.bf16.mxu1 %v9272_v15  ;;  %v9350_v20 = vld [vmem:[#allocation16 + $0x79c] ss:$48 sps:$4 sm:$0xff]   ;;  %v9345_v15 = vld [vmem:[#allocation16 + $0x198] ss:$48 sps:$4 sm:$0xff]  }
 0xea5   : > { %4607 = vmatpush2.bf16.msra.mxu0 %v9267_v16  ;;  %v9348_v16 = vld [vmem:[#allocation16 + $0x798] ss:$48 sps:$4 sm:$0xff]  }
 0xea6   : > { %4673 = vmatpush1.bf16.msra.mxu1 %v9270_v47  ;;  %4608 = vmatprep.subr.bf16.mxu0 %v9275_v21  ;;  %v9353_v47 = vld [vmem:[#allocation16 + $0x13c] ss:$48 sps:$4 sm:$0xff]  }
 0xea7   : > { %4674 = vmatprep.subr.bf16.mxu1 %v9278_v32  ;;  %v9356_v21 = vld [vmem:[#allocation16 + $0x73c] ss:$48 sps:$4 sm:$0xff]   ;;  %v9351_v32 = vld [vmem:[#allocation16 + $0x138] ss:$48 sps:$4 sm:$0xff]  }
 0xea9   : > { %4609 = vmatpush2.bf16.msra.mxu0 %v9273_v28  ;;  %v9354_v28 = vld [vmem:[#allocation16 + $0x738] ss:$48 sps:$4 sm:$0xff]  }
 0xeaa   : > { %4675 = vmatpush1.bf16.msra.mxu1 %v9276_v22  ;;  %4701 = vmatprep.subr.bf16.mxu0 %v9281_v23  ;;  %v9359_v22 = vld [vmem:[#allocation16 + $0xdc] ss:$48 sps:$4 sm:$0xff]  }
 0xeab   : > { %4676 = vmatprep.subr.bf16.mxu1 %v9284_v24  ;;  %v9362_v23 = vld [vmem:[#allocation16 + $0x6dc] ss:$48 sps:$4 sm:$0xff]   ;;  %v9357_v24 = vld [vmem:[#allocation16 + $0xd8] ss:$48 sps:$4 sm:$0xff]  }
 0xeac   : > { %4611 = vmatmul.mubr.bf16.vlgmr.msra.gmra.mxu0 %v10873_v36 }
 0xead   : > { %4702 = vmatpush1.bf16.msra.mxu0 %v9279_v4  ;;  %4733 = vmatprep.mubr.bf16.mxu0 %v10372_v58  ;;  %v9360_v4 = vld [vmem:[#allocation16 + $0x6d8] ss:$48 sps:$4 sm:$0xff]  }
 0xeae   : > { %4677 = vmatpush2.bf16.msra.mxu1 %v9282_v25  ;;  %4703 = vmatprep.subr.bf16.mxu0 %v9287_v2  ;;  %v9365_v25 = vld [vmem:[#allocation16 + $0x7c] ss:$48 sps:$4 sm:$0xff]  }
 0xeaf   : > { %4678 = vmatprep.subr.bf16.mxu1 %v9290_v26  ;;  %v9368_v2 = vld [vmem:[#allocation16 + $0x67c] ss:$48 sps:$4 sm:$0xff]   ;;  %v9363_v26 = vld [vmem:[#allocation16 + $0x78] ss:$48 sps:$4 sm:$0xff]  }
 0xeb1   : > { %4704 = vmatpush1.bf16.msra.mxu0 %v9285_v27  ;;  %v9366_v27 = vld [vmem:[#allocation16 + $0x678] ss:$48 sps:$4 sm:$0xff]  }
 0xeb2   : > { %4679 = vmatpush2.bf16.msra.mxu1 %v9288_v29  ;;  %4705 = vmatprep.subr.bf16.mxu0 %v9293_v30  ;;  %v9371_v29 = vld [vmem:[#allocation16 + $0x1c] ss:$48 sps:$4 sm:$0xff]  }
 0xeb3   : > { %4680 = vmatprep.subr.bf16.mxu1 %v9296_v34  ;;  %v9374_v30 = vld [vmem:[#allocation16 + $0x61c] ss:$48 sps:$4 sm:$0xff]   ;;  %v9369_v34 = vld [vmem:[#allocation16 + $0x18] ss:$48 sps:$4 sm:$0xff]  }
 0xeb5   : > { %4706 = vmatpush1.bf16.msra.mxu0 %v9291_v17  ;;  %v9372_v17 = vld [vmem:[#allocation16 + $0x618] ss:$48 sps:$4 sm:$0xff]  }
 0xeb6   : > { %4681 = vmatpush2.bf16.msra.mxu1 %v9294_v35  ;;  %4707 = vmatprep.subr.bf16.mxu0 %v9299_v31  ;;  %v9377_v35 = vld [vmem:[#allocation16 + $0x5bc] ss:$48 sps:$4 sm:$0xff]   ;;  %v9380_v31 = vld [vmem:[#allocation16 + $0x2c4] ss:$48 sps:$4 sm:$0xff]  }
 0xeb7   : > { %4682 = vmatprep.subr.bf16.mxu1 %v9302_v38  ;;  %v9375_v38 = vld [vmem:[#allocation16 + $0x5b8] ss:$48 sps:$4 sm:$0xff]  }
 0xeb9   : > { %4708 = vmatpush1.bf16.msra.mxu0 %v9297_v39  ;;  %v9378_v39 = vld [vmem:[#allocation16 + $0x2c0] ss:$48 sps:$4 sm:$0xff]  }
 0xeba   : > { %4683 = vmatpush2.bf16.msra.mxu1 %v9300_v40  ;;  %4709 = vmatprep.subr.bf16.mxu0 %v9305_v41  ;;  %v9383_v40 = vld [vmem:[#allocation16 + $0x55c] ss:$48 sps:$4 sm:$0xff]   ;;  %v9386_v41 = vld [vmem:[#allocation16 + $0x264] ss:$48 sps:$4 sm:$0xff]  }
 0xebb   : > { %4684 = vmatprep.subr.bf16.mxu1 %v9308_v43  ;;  %v9381_v43 = vld [vmem:[#allocation16 + $0x558] ss:$48 sps:$4 sm:$0xff]  }
 0xebd   : > { %4710 = vmatpush1.bf16.msra.mxu0 %v9303_v44  ;;  %v9384_v44 = vld [vmem:[#allocation16 + $0x260] ss:$48 sps:$4 sm:$0xff]  }
 0xebe   : > { %4685 = vmatpush2.bf16.msra.mxu1 %v9306_v45  ;;  %4711 = vmatprep.subr.bf16.mxu0 %v9311_v46  ;;  %v9389_v45 = vld [vmem:[#allocation16 + $0x4fc] ss:$48 sps:$4 sm:$0xff]   ;;  %v9392_v46 = vld [vmem:[#allocation16 + $0x204] ss:$48 sps:$4 sm:$0xff]  }
 0xebf   : > { %4686 = vmatprep.subr.bf16.mxu1 %v9314_v48  ;;  %v9387_v48 = vld [vmem:[#allocation16 + $0x4f8] ss:$48 sps:$4 sm:$0xff]  }
 0xec1   : > { %4712 = vmatpush1.bf16.msra.mxu0 %v9309_v49  ;;  %v9390_v49 = vld [vmem:[#allocation16 + $0x200] ss:$48 sps:$4 sm:$0xff]  }
 0xec2   : > { %4687 = vmatpush2.bf16.msra.mxu1 %v9312_v50  ;;  %4713 = vmatprep.subr.bf16.mxu0 %v9317_v51  ;;  %v9395_v50 = vld [vmem:[#allocation16 + $0x49c] ss:$48 sps:$4 sm:$0xff]   ;;  %v9398_v51 = vld [vmem:[#allocation16 + $0x1a4] ss:$48 sps:$4 sm:$0xff]  }
 0xec3   : > { %4688 = vmatprep.subr.bf16.mxu1 %v9320_v52  ;;  %v9393_v52 = vld [vmem:[#allocation16 + $0x498] ss:$48 sps:$4 sm:$0xff]  }
 0xec5   : > { %4714 = vmatpush1.bf16.msra.mxu0 %v9315_v53  ;;  %v9396_v53 = vld [vmem:[#allocation16 + $0x1a0] ss:$48 sps:$4 sm:$0xff]  }
 0xec6   : > { %4689 = vmatpush2.bf16.msra.mxu1 %v9318_v54  ;;  %4715 = vmatprep.subr.bf16.mxu0 %v9323_v55  ;;  %v9401_v54 = vld [vmem:[#allocation16 + $0x43c] ss:$48 sps:$4 sm:$0xff]   ;;  %v9404_v55 = vld [vmem:[#allocation16 + $0x144] ss:$48 sps:$4 sm:$0xff]  }
 0xec7   : > { %4690 = vmatprep.subr.bf16.mxu1 %v9326_v56  ;;  %v9399_v56 = vld [vmem:[#allocation16 + $0x438] ss:$48 sps:$4 sm:$0xff]  }
 0xec9   : > { %4716 = vmatpush1.bf16.msra.mxu0 %v9321_v57  ;;  %v9402_v57 = vld [vmem:[#allocation16 + $0x140] ss:$48 sps:$4 sm:$0xff]  }
 0xeca   : > { %4691 = vmatpush2.bf16.msra.mxu1 %v9324_v59  ;;  %4742 = vmatprep.subr.bf16.mxu0 %v9329_v60  ;;  %v9407_v59 = vld [vmem:[#allocation16 + $0x3dc] ss:$48 sps:$4 sm:$0xff]   ;;  %v9410_v60 = vld [vmem:[#allocation16 + $0xe4] ss:$48 sps:$4 sm:$0xff]  }
 0xecb   : > { %4783 = vmatprep.subr.bf16.mxu1 %v9332_v61  ;;  %v9405_v61 = vld [vmem:[#allocation16 + $0x3d8] ss:$48 sps:$4 sm:$0xff]  }
 0xecc   : > { %4734 = vmatmul.mubr.bf16.vlgmr.msra.gmra.mxu0 %v10871_v19 }
 0xecd   : > { %4693 = vmatmul.mubr.bf16.vlgmr.msra.gmra.mxu1 %v10873_v36  ;;  %4743 = vmatpush1.bf16.msra.mxu0 %v9327_v62  ;;  %v9408_v62 = vld [vmem:[#allocation16 + $0xe0] ss:$48 sps:$4 sm:$0xff]  }
 0xece   : > { %4774 = vmatprep.mubr.bf16.mxu0 %v10869_v18  ;;  %4784 = vmatpush1.bf16.msra.mxu1 %v9330_v63  ;;  %v9413_v63 = vld [vmem:[#allocation16 + $0x37c] ss:$48 sps:$4 sm:$0xff]  }
 0xecf   : > { %4744 = vmatprep.subr.bf16.mxu0 %v9335_v0  ;;  %4785 = vmatprep.subr.bf16.mxu1 %v9338_v1  ;;  %v9416_v0 = vld [vmem:[#allocation16 + $0x84] ss:$48 sps:$4 sm:$0xff]   ;;  %v9411_v1 = vld [vmem:[#allocation16 + $0x378] ss:$48 sps:$4 sm:$0xff]  }
 0xed0   : > { %4815 = vmatprep.mubr.bf16.mxu1 %v10372_v58 }
 0xed1   : > { %4745 = vmatpush1.bf16.msra.mxu0 %v9333_v6  ;;  %v9414_v6 = vld [vmem:[#allocation16 + $0x80] ss:$48 sps:$4 sm:$0xff]  }
 0xed2   : > { %4786 = vmatpush1.bf16.msra.mxu1 %v9336_v9  ;;  %4746 = vmatprep.subr.bf16.mxu0 %v9341_v10  ;;  %v9419_v9 = vld [vmem:[#allocation16 + $0x31c] ss:$48 sps:$4 sm:$0xff]   ;;  %v9422_v10 = vld [vmem:[#allocation16 + $0x24] ss:$48 sps:$4 sm:$0xff]  }
 0xed3   : > { %4787 = vmatprep.subr.bf16.mxu1 %v9344_v12  ;;  %v9417_v12 = vld [vmem:[#allocation16 + $0x318] ss:$48 sps:$4 sm:$0xff]  }
 0xed5   : > { %4747 = vmatpush1.bf16.msra.mxu0 %v9339_v11  ;;  %v9420_v11 = vld [vmem:[#allocation16 + $0x20] ss:$48 sps:$4 sm:$0xff]  }
 0xed6   : > { %4788 = vmatpush1.bf16.msra.mxu1 %v9342_v13  ;;  %4748 = vmatprep.subr.bf16.mxu0 %v9347_v14  ;;  %v9425_v13 = vld [vmem:[#allocation16 + $0x8c4] ss:$48 sps:$4 sm:$0xff]  }
 0xed7   : > { %4789 = vmatprep.subr.bf16.mxu1 %v9350_v20  ;;  %v9428_v14 = vld [vmem:[#allocation16 + $0x5c4] ss:$48 sps:$4 sm:$0xff]   ;;  %v9423_v20 = vld [vmem:[#allocation16 + $0x8c0] ss:$48 sps:$4 sm:$0xff]  }
 0xed9   : > { %4749 = vmatpush1.bf16.msra.mxu0 %v9345_v15  ;;  %v9426_v15 = vld [vmem:[#allocation16 + $0x5c0] ss:$48 sps:$4 sm:$0xff]  }
 0xeda   : > { %4790 = vmatpush1.bf16.msra.mxu1 %v9348_v16  ;;  %4750 = vmatprep.subr.bf16.mxu0 %v9353_v47  ;;  %v9431_v16 = vld [vmem:[#allocation16 + $0x864] ss:$48 sps:$4 sm:$0xff]  }
 0xedb   : > { %4791 = vmatprep.subr.bf16.mxu1 %v9356_v21  ;;  %v9434_v47 = vld [vmem:[#allocation16 + $0x564] ss:$48 sps:$4 sm:$0xff]   ;;  %v9429_v21 = vld [vmem:[#allocation16 + $0x860] ss:$48 sps:$4 sm:$0xff]  }
 0xedd   : > { %4751 = vmatpush1.bf16.msra.mxu0 %v9351_v32  ;;  %v9432_v32 = vld [vmem:[#allocation16 + $0x560] ss:$48 sps:$4 sm:$0xff]  }
 0xede   : > { %4792 = vmatpush1.bf16.msra.mxu1 %v9354_v28  ;;  %4752 = vmatprep.subr.bf16.mxu0 %v9359_v22  ;;  %v9437_v28 = vld [vmem:[#allocation16 + $0x804] ss:$48 sps:$4 sm:$0xff]  }
 0xedf   : > { %4793 = vmatprep.subr.bf16.mxu1 %v9362_v23  ;;  %v9440_v22 = vld [vmem:[#allocation16 + $0x504] ss:$48 sps:$4 sm:$0xff]   ;;  %v9435_v23 = vld [vmem:[#allocation16 + $0x800] ss:$48 sps:$4 sm:$0xff]  }
 0xee1   : > { %4753 = vmatpush1.bf16.msra.mxu0 %v9357_v24  ;;  %v9438_v24 = vld [vmem:[#allocation16 + $0x500] ss:$48 sps:$4 sm:$0xff]  }
 0xee2   : > { %4794 = vmatpush1.bf16.msra.mxu1 %v9360_v4  ;;  %4754 = vmatprep.subr.bf16.mxu0 %v9365_v25  ;;  %v9443_v4 = vld [vmem:[#allocation16 + $0x7a4] ss:$48 sps:$4 sm:$0xff]  }
 0xee3   : > { %4795 = vmatprep.subr.bf16.mxu1 %v9368_v2  ;;  %v9446_v25 = vld [vmem:[#allocation16 + $0x4a4] ss:$48 sps:$4 sm:$0xff]   ;;  %v9441_v2 = vld [vmem:[#allocation16 + $0x7a0] ss:$48 sps:$4 sm:$0xff]  }
 0xee5   : > { %4755 = vmatpush1.bf16.msra.mxu0 %v9363_v26  ;;  %v9444_v26 = vld [vmem:[#allocation16 + $0x4a0] ss:$48 sps:$4 sm:$0xff]  }
 0xee6   : > { %4796 = vmatpush1.bf16.msra.mxu1 %v9366_v27  ;;  %4756 = vmatprep.subr.bf16.mxu0 %v9371_v29  ;;  %v9449_v27 = vld [vmem:[#allocation16 + $0x744] ss:$48 sps:$4 sm:$0xff]  }
 0xee7   : > { %4797 = vmatprep.subr.bf16.mxu1 %v9374_v30  ;;  %v9452_v29 = vld [vmem:[#allocation16 + $0x444] ss:$48 sps:$4 sm:$0xff]   ;;  %v9447_v30 = vld [vmem:[#allocation16 + $0x740] ss:$48 sps:$4 sm:$0xff]  }
 0xee9   : > { %4757 = vmatpush1.bf16.msra.mxu0 %v9369_v34  ;;  %v9450_v34 = vld [vmem:[#allocation16 + $0x440] ss:$48 sps:$4 sm:$0xff]  }
 0xeea   : > { %4798 = vmatpush1.bf16.msra.mxu1 %v9372_v17  ;;  %4758 = vmatprep.subr.bf16.mxu0 %v9377_v35  ;;  %v9455_v17 = vld [vmem:[#allocation16 + $0x6e4] ss:$48 sps:$4 sm:$0xff]  }
 0xeeb   : > { %4824 = vmatprep.subr.bf16.mxu1 %v9380_v31  ;;  %v9458_v35 = vld [vmem:[#allocation16 + $0x3e4] ss:$48 sps:$4 sm:$0xff]   ;;  %v9453_v31 = vld [vmem:[#allocation16 + $0x6e0] ss:$48 sps:$4 sm:$0xff]  }
 0xeed   : > { %4759 = vmatpush2.bf16.msra.mxu0 %v9375_v38  ;;  %4816 = vmatmul.mubr.bf16.vlgmr.msra.gmra.mxu1 %v10871_v19  ;;  %v9456_v38 = vld [vmem:[#allocation16 + $0x3e0] ss:$48 sps:$4 sm:$0xff]  }
 0xeee   : > { %4825 = vmatpush1.bf16.msra.mxu1 %v9378_v39  ;;  %4856 = vmatprep.mubr.bf16.mxu1 %v10869_v18  ;;  %v9461_v39 = vld [vmem:[#allocation16 + $0x684] ss:$48 sps:$4 sm:$0xff]  }
 0xeef   : > { %4760 = vmatprep.subr.bf16.mxu0 %v9383_v40  ;;  %4826 = vmatprep.subr.bf16.mxu1 %v9386_v41  ;;  %v9464_v40 = vld [vmem:[#allocation16 + $0x384] ss:$48 sps:$4 sm:$0xff]   ;;  %v9459_v41 = vld [vmem:[#allocation16 + $0x680] ss:$48 sps:$4 sm:$0xff]  }
 0xef1   : > { %4761 = vmatpush2.bf16.msra.mxu0 %v9381_v43  ;;  %v9462_v43 = vld [vmem:[#allocation16 + $0x380] ss:$48 sps:$4 sm:$0xff]  }
 0xef2   : > { %4827 = vmatpush1.bf16.msra.mxu1 %v9384_v44  ;;  %4762 = vmatprep.subr.bf16.mxu0 %v9389_v45  ;;  %v9467_v44 = vld [vmem:[#allocation16 + $0x624] ss:$48 sps:$4 sm:$0xff]  }
 0xef3   : > { %4828 = vmatprep.subr.bf16.mxu1 %v9392_v46  ;;  %v9470_v45 = vld [vmem:[#allocation16 + $0x324] ss:$48 sps:$4 sm:$0xff]   ;;  %v9465_v46 = vld [vmem:[#allocation16 + $0x620] ss:$48 sps:$4 sm:$0xff]  }
 0xef5   : > { %4763 = vmatpush2.bf16.msra.mxu0 %v9387_v48  ;;  %v9468_v48 = vld [vmem:[#allocation16 + $0x320] ss:$48 sps:$4 sm:$0xff]  }
 0xef6   : > { %4829 = vmatpush1.bf16.msra.mxu1 %v9390_v49  ;;  %4764 = vmatprep.subr.bf16.mxu0 %v9395_v50  ;;  %v9473_v49 = vld [vmem:[#allocation16 + $0x2cc] ss:$48 sps:$4 sm:$0xff]  }
 0xef7   : > { %4830 = vmatprep.subr.bf16.mxu1 %v9398_v51  ;;  %v9476_v50 = vld [vmem:[#allocation16 + $0x8cc] ss:$48 sps:$4 sm:$0xff]   ;;  %v10892_v51 = vld [vmem:[#allocation17] sm:$0xff] }
 0xef9   : > { %4765 = vmatpush2.bf16.msra.mxu0 %v9393_v52  ;;  %v9471_v52 = vld [vmem:[#allocation16 + $0x2c8] ss:$48 sps:$4 sm:$0xff]  }
 0xefa   : > { %4831 = vmatpush1.bf16.msra.mxu1 %v9396_v53  ;;  %4766 = vmatprep.subr.bf16.mxu0 %v9401_v54  ;;  %v9474_v53 = vld [vmem:[#allocation16 + $0x8c8] ss:$48 sps:$4 sm:$0xff]   ;;  %v2999_v54 = vrot.slane %v10892_v51, %v10706_v8 }
 0xefb   : > { %4832 = vmatprep.subr.bf16.mxu1 %v9404_v55  ;;  %v9479_v55 = vld [vmem:[#allocation16 + $0x26c] ss:$48 sps:$4 sm:$0xff]  }
 0xefd   : > { %4767 = vmatpush2.bf16.msra.mxu0 %v9399_v56  ;;  %v9482_v56 = vld [vmem:[#allocation16 + $0x86c] ss:$48 sps:$4 sm:$0xff]  }
 0xefe   : > { %4833 = vmatpush1.bf16.msra.mxu1 %v9402_v57  ;;  %4768 = vmatprep.subr.bf16.mxu0 %v9407_v59 }
 0xeff   : > { %4834 = vmatprep.subr.bf16.mxu1 %v9410_v60  ;;  %v9477_v60 = vld [vmem:[#allocation16 + $0x268] ss:$48 sps:$4 sm:$0xff]  }
 0xf01   : > { %4769 = vmatpush2.bf16.msra.mxu0 %v9405_v61 }
 0xf02   : > { %4835 = vmatpush1.bf16.msra.mxu1 %v9408_v62  ;;  %4770 = vmatprep.subr.bf16.mxu0 %v9413_v63  ;;  %v9480_v63 = vld [vmem:[#allocation16 + $0x868] ss:$48 sps:$4 sm:$0xff]  }
 0xf03   : > { %4836 = vmatprep.subr.bf16.mxu1 %v9416_v0  ;;  %v9485_v0 = vld [vmem:[#allocation16 + $0x20c] ss:$48 sps:$4 sm:$0xff]  }
 0xf05   : > { %4771 = vmatpush2.bf16.msra.mxu0 %v9411_v1 }
 0xf06   : > { %4837 = vmatpush1.bf16.msra.mxu1 %v9414_v6  ;;  %4772 = vmatprep.subr.bf16.mxu0 %v9419_v9  ;;  %v9488_v6 = vld [vmem:[#allocation16 + $0x80c] ss:$48 sps:$4 sm:$0xff]  }
 0xf07   : > { %4838 = vmatprep.subr.bf16.mxu1 %v9422_v10 }
 0xf09   : > { %4773 = vmatpush2.bf16.msra.mxu0 %v9417_v12 }
 0xf0a   : > { %4839 = vmatpush1.bf16.msra.mxu1 %v9420_v11  ;;  %4865 = vmatprep.subr.bf16.mxu0 %v9425_v13  ;;  %v9483_v11 = vld [vmem:[#allocation16 + $0x208] ss:$48 sps:$4 sm:$0xff]  }
 0xf0b   : > { %4840 = vmatprep.subr.bf16.mxu1 %v9428_v14  ;;  %v9491_v14 = vld [vmem:[#allocation16 + $0x1ac] ss:$48 sps:$4 sm:$0xff]  }
 0xf0c   : > { %4775 = vmatmul.mubr.bf16.vlgmr.msra.gmra.mxu0 %v10873_v36 }
 0xf0d   : > { %4866 = vmatpush1.bf16.msra.mxu0 %v9423_v20  ;;  %4897 = vmatprep.mubr.bf16.mxu0 %v10372_v58 }
 0xf0e   : > { %4841 = vmatpush2.bf16.msra.mxu1 %v9426_v15  ;;  %4867 = vmatprep.subr.bf16.mxu0 %v9431_v16  ;;  %v9494_v15 = vld [vmem:[#allocation16 + $0x7ac] ss:$48 sps:$4 sm:$0xff]   ;;  %v9489_v16 = vld [vmem:[#allocation16 + $0x1a8] ss:$48 sps:$4 sm:$0xff]  }
 0xf0f   : > { %4842 = vmatprep.subr.bf16.mxu1 %v9434_v47  ;;  %v9492_v47 = vld [vmem:[#allocation16 + $0x7a8] ss:$48 sps:$4 sm:$0xff]  }
 0xf11   : > { %4868 = vmatpush1.bf16.msra.mxu0 %v9429_v21  ;;  %v9497_v21 = vld [vmem:[#allocation16 + $0x14c] ss:$48 sps:$4 sm:$0xff]  }
 0xf12   : > { %4843 = vmatpush2.bf16.msra.mxu1 %v9432_v32  ;;  %4869 = vmatprep.subr.bf16.mxu0 %v9437_v28  ;;  %v9500_v32 = vld [vmem:[#allocation16 + $0x74c] ss:$48 sps:$4 sm:$0xff]   ;;  %v9498_v28 = vld [vmem:[#allocation16 + $0x748] ss:$48 sps:$4 sm:$0xff]  }
 0xf13   : > { %4844 = vmatprep.subr.bf16.mxu1 %v9440_v22  ;;  %v9503_v22 = vld [vmem:[#allocation16 + $0xec] ss:$48 sps:$4 sm:$0xff]  }
 0xf15   : > { %4870 = vmatpush1.bf16.msra.mxu0 %v9435_v23  ;;  %v9506_v23 = vld [vmem:[#allocation16 + $0x6ec] ss:$48 sps:$4 sm:$0xff]  }
 0xf16   : > { %4845 = vmatpush2.bf16.msra.mxu1 %v9438_v24  ;;  %4871 = vmatprep.subr.bf16.mxu0 %v9443_v4  ;;  %v3003_v24 = vrot.slane %v10892_v51, %v10700_v5  ;;  %v9501_v4 = vld [vmem:[#allocation16 + $0xe8] ss:$48 sps:$4 sm:$0xff]  }
 0xf17   : > { %4846 = vmatprep.subr.bf16.mxu1 %v9446_v25  ;;  %v9504_v25 = vld [vmem:[#allocation16 + $0x6e8] ss:$48 sps:$4 sm:$0xff]  }
 0xf19   : > { %4872 = vmatpush1.bf16.msra.mxu0 %v9441_v2  ;;  %v9509_v2 = vld [vmem:[#allocation16 + $0x8c] ss:$48 sps:$4 sm:$0xff]  }
 0xf1a   : > { %4847 = vmatpush2.bf16.msra.mxu1 %v9444_v26  ;;  %4873 = vmatprep.subr.bf16.mxu0 %v9449_v27  ;;  %v9512_v26 = vld [vmem:[#allocation16 + $0x68c] ss:$48 sps:$4 sm:$0xff]  }
 0xf1b   : > { %4848 = vmatprep.subr.bf16.mxu1 %v9452_v29  ;;  %v9507_v29 = vld [vmem:[#allocation16 + $0x88] ss:$48 sps:$4 sm:$0xff]  }
 0xf1d   : > { %4874 = vmatpush1.bf16.msra.mxu0 %v9447_v30  ;;  %v9510_v30 = vld [vmem:[#allocation16 + $0x688] ss:$48 sps:$4 sm:$0xff]  }
 0xf1e   : > { %4849 = vmatpush2.bf16.msra.mxu1 %v9450_v34  ;;  %4875 = vmatprep.subr.bf16.mxu0 %v9455_v17  ;;  %v9515_v34 = vld [vmem:[#allocation16 + $0x2c] ss:$48 sps:$4 sm:$0xff]  }
 0xf1f   : > { %4850 = vmatprep.subr.bf16.mxu1 %v9458_v35  ;;  %v9518_v17 = vld [vmem:[#allocation16 + $0x62c] ss:$48 sps:$4 sm:$0xff]  }
 0xf21   : > { %4876 = vmatpush1.bf16.msra.mxu0 %v9453_v31  ;;  %v9513_v31 = vld [vmem:[#allocation16 + $0x28] ss:$48 sps:$4 sm:$0xff]  }
 0xf22   : > { %4851 = vmatpush2.bf16.msra.mxu1 %v9456_v38  ;;  %4877 = vmatprep.subr.bf16.mxu0 %v9461_v39  ;;  %v9516_v38 = vld [vmem:[#allocation16 + $0x628] ss:$48 sps:$4 sm:$0xff]   ;;  %v9521_v39 = vld [vmem:[#allocation16 + $0x5cc] ss:$48 sps:$4 sm:$0xff]  }
 0xf23   : > { %4852 = vmatprep.subr.bf16.mxu1 %v9464_v40  ;;  %v9524_v40 = vld [vmem:[#allocation19 + $0xac] ss:$12 sps:$4 sm:$0xff]  }
 0xf25   : > { %4878 = vmatpush1.bf16.msra.mxu0 %v9459_v41 }
 0xf26   : > { %4853 = vmatpush2.bf16.msra.mxu1 %v9462_v43  ;;  %4879 = vmatprep.subr.bf16.mxu0 %v9467_v44  ;;  %v9519_v43 = vld [vmem:[#allocation16 + $0x5c8] ss:$48 sps:$4 sm:$0xff]   ;;  %v9522_v44 = vld [vmem:[#allocation19 + $0xa8] ss:$12 sps:$4 sm:$0xff]  }
 0xf27   : > { %4854 = vmatprep.subr.bf16.mxu1 %v9470_v45  ;;  %v9527_v45 = vld [vmem:[#allocation16 + $0x56c] ss:$48 sps:$4 sm:$0xff]  }
 0xf29   : > { %4880 = vmatpush1.bf16.msra.mxu0 %v9465_v46  ;;  %v9530_v46 = vld [vmem:[#allocation19 + $0x94] ss:$12 sps:$4 sm:$0xff]  }
 0xf2a   : > { %4855 = vmatpush2.bf16.msra.mxu1 %v9468_v48  ;;  %4906 = vmatprep.subr.bf16.mxu0 %v9473_v49 }
 0xf2b   : > { %4947 = vmatprep.subr.bf16.mxu1 %v9476_v50  ;;  %v9525_v50 = vld [vmem:[#allocation16 + $0x568] ss:$48 sps:$4 sm:$0xff]  }
 0xf2c   : > { %4898 = vmatmul.mubr.bf16.vlgmr.msra.gmra.mxu0 %v10871_v19  ;;  %v4571_v57 = vpop.f32.mrf.mxu0 }
 0xf2d   : > { %4857 = vmatmul.mubr.bf16.vlgmr.msra.gmra.mxu1 %v10873_v36  ;;  %4907 = vmatpush1.bf16.msra.mxu0 %v9471_v52  ;;  %v4530_v59 = vpop.f32.mrf.mxu1  ;;  %v9528_v52 = vld [vmem:[#allocation19 + $0x90] ss:$12 sps:$4 sm:$0xff]  }
 0xf2e   : > { %4938 = vmatprep.mubr.bf16.mxu0 %v10869_v18  ;;  %v4531_v61 = vadd.f32 %v4530_v59, %v2999_v54  ;;  %4948 = vmatpush1.bf16.msra.mxu1 %v9474_v53  ;;  %v4573_v62 = vpop.f32.mrf.mxu0  ;;  %v9486_v18 = vld [vmem:[#allocation16 + $0x808] ss:$48 sps:$4 sm:$0xff]   ;;  %v9533_v53 = vld [vmem:[#allocation16 + $0x50c] ss:$48 sps:$4 sm:$0xff]   ;;  %v9534_v59 = vld [vmem:[#allocation19 + $0x78] ss:$12 sps:$4 sm:$0xff]  }
 0xf2f   : > { %v4532_v1 = vpop.f32.mrf.mxu1  ;;  %4908 = vmatprep.subr.bf16.mxu0 %v9479_v55  ;;  %4949 = vmatprep.subr.bf16.mxu1 %v9482_v56  ;;  %v9536_v55 = vld [vmem:[#allocation19 + $0x7c] ss:$12 sps:$4 sm:$0xff]  }
 0xf30   : > { %v10899_v9 = vadd.f32 %v4571_v57, %v4531_v61  ;;  %v4575_v10 = vpop.f32.mrf.mxu0  ;;  %4979 = vmatprep.mubr.bf16.mxu1 %v10372_v58  ;;  %v9495_v58 = vld [vmem:[#allocation16 + $0x148] ss:$48 sps:$4 sm:$0xff]   ;;  %v4533_v27 = vadd.f32 %v4532_v1, %v3003_v24  ;;  %v9567_v24 = vld [vmem:[#allocation19 + $0x228] ss:$12 sps:$4 sm:$0xff]  }
 0xf31   : > { %4909 = vmatpush1.bf16.msra.mxu0 %v9477_v60  ;;  %v4534_v12 = vpop.f32.mrf.mxu1  ;;  %v9531_v57 = vld [vmem:[#allocation16 + $0x508] ss:$48 sps:$4 sm:$0xff]   ;;  %v9539_v60 = vld [vmem:[#allocation16 + $0x4ac] ss:$48 sps:$4 sm:$0xff]   ;;  %v9546_v10 = vld [vmem:[#allocation19 + $0x48] ss:$12 sps:$4 sm:$0xff]  }
 0xf32   : > { %4950 = vmatpush1.bf16.msra.mxu1 %v9480_v63  ;;  %v4576_v13 = vpop.f32.mrf.mxu0  ;;  %4910 = vmatprep.subr.bf16.mxu0 %v9485_v0  ;;  %v4574_v35 = vadd.f32 %v4573_v62, %v4533_v27  ;;  %v9537_v62 = vld [vmem:[#allocation16 + $0x4a8] ss:$48 sps:$4 sm:$0xff]   ;;  %v9545_v0 = vld [vmem:[#allocation16 + $0x44c] ss:$48 sps:$4 sm:$0xff]  }
 0xf33   : > { %v4535_v20 = vpop.f32.mrf.mxu1  ;;  %4951 = vmatprep.subr.bf16.mxu1 %v9488_v6  ;;  %v9540_v63 = vld [vmem:[#allocation19 + $0x60] ss:$12 sps:$4 sm:$0xff]  }
 0xf34   : > { %v4989_v41 = vmax.f32 %v4574_v35, 0.0  ;;  %v9548_v1 = vld [vmem:[#allocation19 + $0x4c] ss:$12 sps:$4 sm:$0xff]   ;;  %v9551_v12 = vld [vmem:[#allocation16 + $0x3ec] ss:$48 sps:$4 sm:$0xff]  }
 0xf35   : > { %4911 = vmatpush1.bf16.msra.mxu0 %v9483_v11  ;;  %v9543_v6 = vld [vmem:[#allocation16 + $0x448] ss:$48 sps:$4 sm:$0xff]   ;;  %v9554_v11 = vld [vmem:[#allocation19 + $0x34] ss:$12 sps:$4 sm:$0xff]  }
 0xf36   : > { %4952 = vmatpush1.bf16.msra.mxu1 %v9486_v18  ;;  %4912 = vmatprep.subr.bf16.mxu0 %v9491_v14  ;;  %v10904_v48 = vpack.c.bf16 %v4989_v41, %v4989_v41  ;;  %v9549_v13 = vld [vmem:[#allocation16 + $0x3e8] ss:$48 sps:$4 sm:$0xff]   ;;  %v9557_v14 = vld [vmem:[#allocation16 + $0x38c] ss:$48 sps:$4 sm:$0xff]  }
 0xf37   : > { %4953 = vmatprep.subr.bf16.mxu1 %v9494_v15  ;;  %v9552_v18 = vld [vmem:[#allocation19 + $0x30] ss:$12 sps:$4 sm:$0xff]  }
 0xf38   : > { %v9560_v20 = vld [vmem:[#allocation19 + $0x1c] ss:$12 sps:$4 sm:$0xff]  }
 0xf39   : > { %4913 = vmatpush1.bf16.msra.mxu0 %v9489_v16  ;;  %v9555_v15 = vld [vmem:[#allocation16 + $0x388] ss:$48 sps:$4 sm:$0xff]   ;;  %v9558_v16 = vld [vmem:[#allocation19 + $0x18] ss:$12 sps:$4 sm:$0xff]  }
 0xf3a   : > { %4954 = vmatpush1.bf16.msra.mxu1 %v9492_v47  ;;  %4914 = vmatprep.subr.bf16.mxu0 %v9497_v21  ;;  %v9563_v47 = vld [vmem:[#allocation16 + $0x32c] ss:$48 sps:$4 sm:$0xff]  }
 0xf3b   : > { %4955 = vmatprep.subr.bf16.mxu1 %v9500_v32  ;;  %v9566_v21 = vld [vmem:[#allocation19 + $0x4] ss:$12 sps:$4 sm:$0xff]   ;;  %v9561_v32 = vld [vmem:[#allocation16 + $0x328] ss:$48 sps:$4 sm:$0xff]  }
 0xf3d   : > { %4915 = vmatpush1.bf16.msra.mxu0 %v9495_v58  ;;  %v9564_v58 = vld [vmem:[#allocation19] ss:$12 sps:$4 sm:$0xff]  }
 0xf3e   : > { %4956 = vmatpush1.bf16.msra.mxu1 %v9498_v28  ;;  %4916 = vmatprep.subr.bf16.mxu0 %v9503_v22  ;;  %v9569_v28 = vld [vmem:[#allocation19 + $0x22c] ss:$12 sps:$4 sm:$0xff]  }
 0xf3f   : > { %4957 = vmatprep.subr.bf16.mxu1 %v9506_v23  ;;  %v9572_v22 = vld [vmem:[#allocation19 + $0x16c] ss:$12 sps:$4 sm:$0xff]   ;;  %v3010_v23 = vsub.s32 3, %v10697_v3 }
 0xf41   : > { %4917 = vmatpush1.bf16.msra.mxu0 %v9501_v4  ;;  %v9570_v4 = vld [vmem:[#allocation19 + $0x168] ss:$12 sps:$4 sm:$0xff]  }
 0xf42   : > { %4958 = vmatpush1.bf16.msra.mxu1 %v9504_v25  ;;  %4918 = vmatprep.subr.bf16.mxu0 %v9509_v2  ;;  %v9575_v25 = vld [vmem:[#allocation19 + $0x214] ss:$12 sps:$4 sm:$0xff]   ;;  %v3011_v2 = vrot.slane %v10892_v51, %v3010_v23 }
 0xf43   : > { %4959 = vmatprep.subr.bf16.mxu1 %v9512_v26  ;;  %v9578_v26 = vld [vmem:[#allocation19 + $0x154] ss:$12 sps:$4 sm:$0xff]  }
 0xf45   : > { %4919 = vmatpush1.bf16.msra.mxu0 %v9507_v29  ;;  %v9573_v29 = vld [vmem:[#allocation19 + $0x210] ss:$12 sps:$4 sm:$0xff]  }
 0xf46   : > { %4960 = vmatpush1.bf16.msra.mxu1 %v9510_v30  ;;  %4920 = vmatprep.subr.bf16.mxu0 %v9515_v34  ;;  %v9576_v34 = vld [vmem:[#allocation19 + $0x150] ss:$12 sps:$4 sm:$0xff]  }
 0xf47   : > { %4961 = vmatprep.subr.bf16.mxu1 %v9518_v17  ;;  %v9581_v17 = vld [vmem:[#allocation19 + $0x1fc] ss:$12 sps:$4 sm:$0xff]  }
 0xf49   : > { %4921 = vmatpush1.bf16.msra.mxu0 %v9513_v31  ;;  %v9584_v31 = vld [vmem:[#allocation19 + $0x13c] ss:$12 sps:$4 sm:$0xff]  }
 0xf4a   : > { %4962 = vmatpush1.bf16.msra.mxu1 %v9516_v38  ;;  %4922 = vmatprep.subr.bf16.mxu0 %v9521_v39 }
 0xf4b   : > { %6949 = vmatprep.subr.bf16.mxu1 %v9524_v40  ;;  %v9579_v40 = vld [vmem:[#allocation19 + $0x1f8] ss:$12 sps:$4 sm:$0xff]  }
 0xf4d   : > { %v10906_v49 = vpop.f32.mrf.mxu1  ;;  %4923 = vmatpush2.bf16.msra.mxu0 %v9519_v43  ;;  %4980 = vmatmul.mubr.bf16.vlgmr.msra.gmra.mxu1 %v10871_v19  ;;  %v9542_v19 = vld [vmem:[#allocation19 + $0x64] ss:$12 sps:$4 sm:$0xff]  }
 0xf4e   : > { %6950 = vmatpush1.bf16.msra.mxu1 %v9522_v44  ;;  %6981 = vmatprep.mubr.bf16.mxu1 %v10904_v48  ;;  %v9582_v43 = vld [vmem:[#allocation19 + $0x138] ss:$12 sps:$4 sm:$0xff]  }
 0xf4f   : > { %v10910_v54 = vpop.f32.mrf.mxu1  ;;  %4924 = vmatprep.subr.bf16.mxu0 %v9527_v45  ;;  %6951 = vmatprep.subr.bf16.mxu1 %v9530_v46  ;;  %v9590_v45 = vld [vmem:[#allocation19 + $0x124] ss:$12 sps:$4 sm:$0xff]  }
 0xf51   : > { %v4657_v56 = vpop.f32.mrf.mxu1  ;;  %4925 = vmatpush2.bf16.msra.mxu0 %v9525_v50  ;;  %v9585_v50 = vld [vmem:[#allocation19 + $0x1e0] ss:$12 sps:$4 sm:$0xff]  }
 0xf52   : > { %6952 = vmatpush1.bf16.msra.mxu1 %v9528_v52  ;;  %4926 = vmatprep.subr.bf16.mxu0 %v9533_v53  ;;  %v9588_v52 = vld [vmem:[#allocation19 + $0x120] ss:$12 sps:$4 sm:$0xff]   ;;  %v9594_v56 = vld [vmem:[#allocation19 + $0x108] ss:$12 sps:$4 sm:$0xff]  }
 0xf53   : > { %v4658_v61 = vpop.f32.mrf.mxu1  ;;  %6953 = vmatprep.subr.bf16.mxu1 %v9536_v55  ;;  %v9593_v53 = vld [vmem:[#allocation19 + $0x1cc] ss:$12 sps:$4 sm:$0xff]   ;;  %v9591_v55 = vld [vmem:[#allocation19 + $0x1c8] ss:$12 sps:$4 sm:$0xff]  }
 0xf54   : > { %v9600_v61 = vld [vmem:[#allocation19 + $0xf0] ss:$12 sps:$4 sm:$0xff]  }
 0xf55   : > { %4927 = vmatpush2.bf16.msra.mxu0 %v9531_v57  ;;  %v9599_v57 = vld [vmem:[#allocation19 + $0x1b4] ss:$12 sps:$4 sm:$0xff]  }
 0xf56   : > { %6954 = vmatpush1.bf16.msra.mxu1 %v9534_v59  ;;  %4928 = vmatprep.subr.bf16.mxu0 %v9539_v60  ;;  %v9602_v59 = vld [vmem:[#allocation19 + $0xf4] ss:$12 sps:$4 sm:$0xff]   ;;  %v9597_v60 = vld [vmem:[#allocation19 + $0x1b0] ss:$12 sps:$4 sm:$0xff]  }
 0xf57   : > { %6955 = vmatprep.subr.bf16.mxu1 %v9542_v19  ;;  %v9605_v19 = vld [vmem:[#allocation19 + $0x19c] ss:$12 sps:$4 sm:$0xff]  }
 0xf59   : > { %4929 = vmatpush2.bf16.msra.mxu0 %v9537_v62  ;;  %v9608_v62 = vld [vmem:[#allocation19 + $0xdc] ss:$12 sps:$4 sm:$0xff]  }
 0xf5a   : > { %6956 = vmatpush1.bf16.msra.mxu1 %v9540_v63  ;;  %4930 = vmatprep.subr.bf16.mxu0 %v9545_v0  ;;  %v9603_v63 = vld [vmem:[#allocation19 + $0x198] ss:$12 sps:$4 sm:$0xff]  }
 0xf5b   : > { %6957 = vmatprep.subr.bf16.mxu1 %v9548_v1  ;;  %v9606_v0 = vld [vmem:[#allocation19 + $0xd8] ss:$12 sps:$4 sm:$0xff]  }
 0xf5c   : > { %v9611_v1 = vld [vmem:[#allocation19 + $0x184] ss:$12 sps:$4 sm:$0xff]  }
 0xf5d   : > { %4931 = vmatpush2.bf16.msra.mxu0 %v9543_v6  ;;  %v9614_v6 = vld [vmem:[#allocation19 + $0xc4] ss:$12 sps:$4 sm:$0xff]  }
 0xf5e   : > { %6958 = vmatpush1.bf16.msra.mxu1 %v9546_v10  ;;  %4932 = vmatprep.subr.bf16.mxu0 %v9551_v12  ;;  %v9609_v10 = vld [vmem:[#allocation19 + $0x180] ss:$12 sps:$4 sm:$0xff]  }
 0xf5f   : > { %6959 = vmatprep.subr.bf16.mxu1 %v9554_v11  ;;  %v9612_v12 = vld [vmem:[#allocation19 + $0xc0] ss:$12 sps:$4 sm:$0xff]  }
 0xf60   : > { %v9617_v11 = vld [vmem:[#allocation19 + $0x2ec] ss:$12 sps:$4 sm:$0xff]  }
 0xf61   : > { %4933 = vmatpush2.bf16.msra.mxu0 %v9549_v13  ;;  %v4988_v13 = vmax.f32 %v10899_v9, 0.0  ;;  %v9621_v9 = vld [vmem:[#allocation19 + $0x2d0] ss:$12 sps:$4 sm:$0xff]  }
 0xf62   : > { %6960 = vmatpush1.bf16.msra.mxu1 %v9552_v18  ;;  %4934 = vmatprep.subr.bf16.mxu0 %v9557_v14  ;;  %v9620_v18 = vld [vmem:[#allocation19 + $0x3ac] ss:$12 sps:$4 sm:$0xff]   ;;  %v3018_v14 = vsub.s32 5, %v10697_v3 }
 0xf63   : > { %6961 = vmatprep.subr.bf16.mxu1 %v9560_v20  ;;  %v9615_v20 = vld [vmem:[#allocation19 + $0x2e8] ss:$12 sps:$4 sm:$0xff]  }
 0xf65   : > { %4935 = vmatpush2.bf16.msra.mxu0 %v9555_v15  ;;  %v9618_v15 = vld [vmem:[#allocation19 + $0x3a8] ss:$12 sps:$4 sm:$0xff]  }
 0xf66   : > { %6962 = vmatpush1.bf16.msra.mxu1 %v9558_v16  ;;  %4936 = vmatprep.subr.bf16.mxu0 %v9563_v47  ;;  %v9623_v16 = vld [vmem:[#allocation19 + $0x2d4] ss:$12 sps:$4 sm:$0xff]   ;;  %v10925_v47 = vpack.c.bf16 %v4988_v13, %v4988_v13  ;;  %v9668_v13 = vld [vmem:[#allocation19 + $0x46c] ss:$12 sps:$4 sm:$0xff]  }
 0xf67   : > { %6963 = vmatprep.subr.bf16.mxu1 %v9566_v21  ;;  %v9626_v21 = vld [vmem:[#allocation19 + $0x394] ss:$12 sps:$4 sm:$0xff]  }
 0xf69   : > { %4937 = vmatpush2.bf16.msra.mxu0 %v9561_v32 }
 0xf6a   : > { %6964 = vmatpush1.bf16.msra.mxu1 %v9564_v58  ;;  %6990 = vmatprep.subr.bf16.mxu0 %v9569_v28  ;;  %v3019_v58 = vrot.slane %v10892_v51, %v3018_v14 }
 0xf6b   : > { %6965 = vmatprep.subr.bf16.mxu1 %v9572_v22 }
 0xf6c   : > { %v10916_v27 = vpop.f32.mrf.mxu0  ;;  %4939 = vmatmul.mubr.bf16.vlgmr.msra.gmra.mxu0 %v10873_v36  ;;  %v9587_v36 = vld [vmem:[#allocation19 + $0x1e4] ss:$12 sps:$4 sm:$0xff]  }
 0xf6d   : > { %6991 = vmatpush1.bf16.msra.mxu0 %v9567_v24  ;;  %v9624_v24 = vld [vmem:[#allocation19 + $0x390] ss:$12 sps:$4 sm:$0xff]  }
 0xf6e   : > { %v4614_v30 = vpop.f32.mrf.mxu0  ;;  %6966 = vmatpush2.bf16.msra.mxu1 %v9570_v4  ;;  %6992 = vmatprep.subr.bf16.mxu0 %v9575_v25  ;;  %v9629_v4 = vld [vmem:[#allocation19 + $0x2bc] ss:$12 sps:$4 sm:$0xff]  }
 0xf6f   : > { %v4615_v35 = vadd.f32 %v4614_v30, %v3011_v2  ;;  %6967 = vmatprep.subr.bf16.mxu1 %v9578_v26  ;;  %v9632_v2 = vld [vmem:[#allocation19 + $0x37c] ss:$12 sps:$4 sm:$0xff]  }
 0xf70   : > { %v4616_v38 = vpop.f32.mrf.mxu0 }
 0xf71   : > { %v4656_v39 = vadd.f32 %v10910_v54, %v4615_v35  ;;  %6993 = vmatpush1.bf16.msra.mxu0 %v9573_v29  ;;  %v9596_v54 = vld [vmem:[#allocation19 + $0x10c] ss:$12 sps:$4 sm:$0xff]   ;;  %v9635_v38 = vld [vmem:[#allocation19 + $0x2a4] ss:$12 sps:$4 sm:$0xff]  }
 0xf72   : > { %v4617_v41 = vpop.f32.mrf.mxu0  ;;  %6968 = vmatpush2.bf16.msra.mxu1 %v9576_v34  ;;  %6994 = vmatprep.subr.bf16.mxu0 %v9581_v17  ;;  %v9627_v34 = vld [vmem:[#allocation19 + $0x2b8] ss:$12 sps:$4 sm:$0xff]  }
 0xf73   : > { %v4991_v44 = vmax.f32 %v4656_v39, 0.0  ;;  %6969 = vmatprep.subr.bf16.mxu1 %v9584_v31  ;;  %v9630_v31 = vld [vmem:[#allocation19 + $0x378] ss:$12 sps:$4 sm:$0xff]  }
 0xf75   : > { %v10920_v46 = vpack.c.bf16 %v4991_v44, %v4991_v44  ;;  %6995 = vmatpush1.bf16.msra.mxu0 %v9579_v40  ;;  %v9638_v40 = vld [vmem:[#allocation19 + $0x364] ss:$12 sps:$4 sm:$0xff]   ;;  %v9636_v44 = vld [vmem:[#allocation19 + $0x360] ss:$12 sps:$4 sm:$0xff]  }
 0xf76   : > { %6970 = vmatpush2.bf16.msra.mxu1 %v9582_v43  ;;  %6996 = vmatprep.subr.bf16.mxu0 %v9587_v36  ;;  %v9633_v43 = vld [vmem:[#allocation19 + $0x2a0] ss:$12 sps:$4 sm:$0xff]  }
 0xf77   : > { %7022 = vmatprep.mubr.bf16.mxu0 %v10920_v46  ;;  %6971 = vmatprep.subr.bf16.mxu1 %v9590_v45  ;;  %v9641_v45 = vld [vmem:[#allocation19 + $0x28c] ss:$12 sps:$4 sm:$0xff]  }
 0xf79   : > { %6997 = vmatpush1.bf16.msra.mxu0 %v9585_v50  ;;  %v9644_v50 = vld [vmem:[#allocation19 + $0x34c] ss:$12 sps:$4 sm:$0xff]  }
 0xf7a   : > { %6972 = vmatpush2.bf16.msra.mxu1 %v9588_v52  ;;  %6998 = vmatprep.subr.bf16.mxu0 %v9593_v53  ;;  %v9639_v52 = vld [vmem:[#allocation19 + $0x288] ss:$12 sps:$4 sm:$0xff]   ;;  %v3007_v53 = vrot.slane %v10892_v51, %v10703_v7 }
 0xf7b   : > { %6973 = vmatprep.subr.bf16.mxu1 %v9596_v54  ;;  %v9642_v54 = vld [vmem:[#allocation19 + $0x348] ss:$12 sps:$4 sm:$0xff]  }
 0xf7d   : > { %6999 = vmatpush1.bf16.msra.mxu0 %v9591_v55  ;;  %v9647_v55 = vld [vmem:[#allocation19 + $0x274] ss:$12 sps:$4 sm:$0xff]  }
 0xf7e   : > { %6974 = vmatpush2.bf16.msra.mxu1 %v9594_v56  ;;  %7000 = vmatprep.subr.bf16.mxu0 %v9599_v57  ;;  %v9650_v56 = vld [vmem:[#allocation19 + $0x334] ss:$12 sps:$4 sm:$0xff]   ;;  %v9645_v57 = vld [vmem:[#allocation19 + $0x270] ss:$12 sps:$4 sm:$0xff]  }
 0xf7f   : > { %6975 = vmatprep.subr.bf16.mxu1 %v9602_v59  ;;  %v4613_v59 = vadd.f32 %v10916_v27, %v3007_v53  ;;  %v9660_v27 = vld [vmem:[#allocation19 + $0x300] ss:$12 sps:$4 sm:$0xff]  }
 0xf81   : > { %7001 = vmatpush1.bf16.msra.mxu0 %v9597_v60  ;;  %v9648_v60 = vld [vmem:[#allocation19 + $0x330] ss:$12 sps:$4 sm:$0xff]  }
 0xf82   : > { %6976 = vmatpush2.bf16.msra.mxu1 %v9600_v61  ;;  %7002 = vmatprep.subr.bf16.mxu0 %v9605_v19  ;;  %v9653_v61 = vld [vmem:[#allocation19 + $0x25c] ss:$12 sps:$4 sm:$0xff]  }
 0xf83   : > { %6977 = vmatprep.subr.bf16.mxu1 %v9608_v62  ;;  %v9656_v19 = vld [vmem:[#allocation19 + $0x31c] ss:$12 sps:$4 sm:$0xff]   ;;  %v9651_v62 = vld [vmem:[#allocation19 + $0x258] ss:$12 sps:$4 sm:$0xff]  }
 0xf85   : > { %7003 = vmatpush1.bf16.msra.mxu0 %v9603_v63  ;;  %v4654_v63 = vadd.f32 %v10906_v49, %v4613_v59  ;;  %v9666_v49 = vld [vmem:[#allocation19 + $0x468] ss:$12 sps:$4 sm:$0xff]  }
 0xf86   : > { %6978 = vmatpush2.bf16.msra.mxu1 %v9606_v0  ;;  %7004 = vmatprep.subr.bf16.mxu0 %v9611_v1  ;;  %v9654_v0 = vld [vmem:[#allocation19 + $0x318] ss:$12 sps:$4 sm:$0xff]  }
 0xf87   : > { %6979 = vmatprep.subr.bf16.mxu1 %v9614_v6  ;;  %v9659_v1 = vld [vmem:[#allocation19 + $0x244] ss:$12 sps:$4 sm:$0xff]  }
 0xf88   : > { %v9662_v6 = vld [vmem:[#allocation19 + $0x304] ss:$12 sps:$4 sm:$0xff]  }
 0xf89   : > { %7005 = vmatpush1.bf16.msra.mxu0 %v9609_v10  ;;  %v9657_v10 = vld [vmem:[#allocation19 + $0x240] ss:$12 sps:$4 sm:$0xff]  }
 0xf8a   : > { %6980 = vmatpush2.bf16.msra.mxu1 %v9612_v12  ;;  %7006 = vmatprep.subr.bf16.mxu0 %v9617_v11  ;;  %v4990_v12 = vmax.f32 %v4654_v63, 0.0  ;;  %v9665_v11 = vld [vmem:[#allocation19 + $0x52c] ss:$12 sps:$4 sm:$0xff]  }
 0xf8b   : > { %7031 = vmatprep.subr.bf16.mxu1 %v9620_v18  ;;  %v9663_v18 = vld [vmem:[#allocation19 + $0x528] ss:$12 sps:$4 sm:$0xff]  }
 0xf8c   : > { %v10927_v32 = vpop.f32.mrf.mxu0  ;;  %v10940_v14 = vpack.c.bf16 %v4990_v12, %v4990_v12 }
 0xf8d   : > { %v10930_v28 = vpop.f32.mrf.mxu1  ;;  %6982 = vmatmul.mubr.bf16.vlgmr.msra.gmra.mxu1 %v10925_v47  ;;  %7007 = vmatpush2.bf16.msra.mxu0 %v9615_v20  ;;  %v9671_v20 = vld [vmem:[#allocation19 + $0x514] ss:$12 sps:$4 sm:$0xff]  }
 0xf8e   : > { %v4737_v22 = vpop.f32.mrf.mxu0  ;;  %7032 = vmatpush1.bf16.msra.mxu1 %v9618_v15  ;;  %7008 = vmatprep.subr.bf16.mxu0 %v9623_v16  ;;  %v9674_v15 = vld [vmem:[#allocation19 + $0x454] ss:$12 sps:$4 sm:$0xff]  }
 0xf8f   : > { %v4696_v25 = vpop.f32.mrf.mxu1  ;;  %7033 = vmatprep.subr.bf16.mxu1 %v9626_v21  ;;  %v9669_v21 = vld [vmem:[#allocation19 + $0x510] ss:$12 sps:$4 sm:$0xff]  }
 0xf90   : > { %v4697_v26 = vadd.f32 %v4696_v25, %v3019_v58  ;;  %v4739_v29 = vpop.f32.mrf.mxu0  ;;  %v9672_v58 = vld [vmem:[#allocation19 + $0x450] ss:$12 sps:$4 sm:$0xff]   ;;  %v9675_v25 = vld [vmem:[#allocation19 + $0x4f8] ss:$12 sps:$4 sm:$0xff]  }
 0xf91   : > { %v4698_v30 = vpop.f32.mrf.mxu1  ;;  %7009 = vmatpush2.bf16.msra.mxu0 %v9621_v9  ;;  %v9677_v9 = vld [vmem:[#allocation19 + $0x4fc] ss:$12 sps:$4 sm:$0xff]  }
 0xf92   : > { %v4738_v17 = vadd.f32 %v4737_v22, %v4697_v26  ;;  %v4740_v35 = vpop.f32.mrf.mxu0  ;;  %7034 = vmatpush1.bf16.msra.mxu1 %v9624_v24  ;;  %7010 = vmatprep.subr.bf16.mxu0 %v9629_v4  ;;  %v9680_v24 = vld [vmem:[#allocation19 + $0x43c] ss:$12 sps:$4 sm:$0xff]   ;;  %v9683_v26 = vld [vmem:[#allocation19 + $0x4e4] ss:$12 sps:$4 sm:$0xff]  }
 0xf93   : > { %v4699_v39 = vpop.f32.mrf.mxu1  ;;  %7035 = vmatprep.subr.bf16.mxu1 %v9632_v2  ;;  %v9678_v2 = vld [vmem:[#allocation19 + $0x438] ss:$12 sps:$4 sm:$0xff]  }
 0xf94   : > { %v4993_v41 = vmax.f32 %v4738_v17, 0.0  ;;  %v9686_v30 = vld [vmem:[#allocation19 + $0x424] ss:$12 sps:$4 sm:$0xff]   ;;  %v9684_v17 = vld [vmem:[#allocation19 + $0x420] ss:$12 sps:$4 sm:$0xff]  }
 0xf95   : > { %7011 = vmatpush2.bf16.msra.mxu0 %v9627_v34  ;;  %v9681_v34 = vld [vmem:[#allocation19 + $0x4e0] ss:$12 sps:$4 sm:$0xff]   ;;  %v9687_v39 = vld [vmem:[#allocation19 + $0x4c8] ss:$12 sps:$4 sm:$0xff]  }
 0xf96   : > { %v10933_v36 = vpack.c.bf16 %v4993_v41, %v4993_v41  ;;  %7036 = vmatpush1.bf16.msra.mxu1 %v9630_v31  ;;  %7012 = vmatprep.subr.bf16.mxu0 %v9635_v38  ;;  %v9689_v35 = vld [vmem:[#allocation19 + $0x4cc] ss:$12 sps:$4 sm:$0xff]   ;;  %v3014_v31 = vsub.s32 4, %v10697_v3  ;;  %v9695_v41 = vld [vmem:[#allocation19 + $0x4b4] ss:$12 sps:$4 sm:$0xff]  }
 0xf97   : > { %7037 = vmatprep.subr.bf16.mxu1 %v9638_v40  ;;  %v9692_v38 = vld [vmem:[#allocation19 + $0x40c] ss:$12 sps:$4 sm:$0xff]   ;;  %v9690_v40 = vld [vmem:[#allocation19 + $0x408] ss:$12 sps:$4 sm:$0xff]  }
 0xf98   : > { %7063 = vmatprep.mubr.bf16.mxu1 %v10933_v36 }
 0xf99   : > { %7013 = vmatpush2.bf16.msra.mxu0 %v9633_v43  ;;  %v3015_v43 = vrot.slane %v10892_v51, %v3014_v31  ;;  %v9740_v31 = vld [vmem:[#allocation19 + $0x64c] ss:$12 sps:$4 sm:$0xff]  }
 0xf9a   : > { %7038 = vmatpush1.bf16.msra.mxu1 %v9636_v44  ;;  %7014 = vmatprep.subr.bf16.mxu0 %v9641_v45  ;;  %v9698_v44 = vld [vmem:[#allocation19 + $0x3f4] ss:$12 sps:$4 sm:$0xff]   ;;  %v9693_v45 = vld [vmem:[#allocation19 + $0x4b0] ss:$12 sps:$4 sm:$0xff]  }
 0xf9b   : > { %7039 = vmatprep.subr.bf16.mxu1 %v9644_v50  ;;  %v9696_v50 = vld [vmem:[#allocation19 + $0x3f0] ss:$12 sps:$4 sm:$0xff]   ;;  %v4695_v53 = vadd.f32 %v10930_v28, %v3015_v43  ;;  %v9716_v28 = vld [vmem:[#allocation19 + $0x6ac] ss:$12 sps:$4 sm:$0xff]   ;;  %v9746_v43 = vld [vmem:[#allocation19 + $0x634] ss:$12 sps:$4 sm:$0xff]  }
 0xf9d   : > { %7015 = vmatpush2.bf16.msra.mxu0 %v9639_v52  ;;  %v9701_v52 = vld [vmem:[#allocation19 + $0x49c] ss:$12 sps:$4 sm:$0xff]   ;;  %v4736_v59 = vadd.f32 %v10927_v32, %v4695_v53 }
 0xf9e   : > { %7040 = vmatpush1.bf16.msra.mxu1 %v9642_v54  ;;  %7016 = vmatprep.subr.bf16.mxu0 %v9647_v55  ;;  %v9704_v54 = vld [vmem:[#allocation19 + $0x3dc] ss:$12 sps:$4 sm:$0xff]   ;;  %v9699_v55 = vld [vmem:[#allocation19 + $0x498] ss:$12 sps:$4 sm:$0xff]  }
 0xf9f   : > { %7041 = vmatprep.subr.bf16.mxu1 %v9650_v56  ;;  %v9702_v56 = vld [vmem:[#allocation19 + $0x3d8] ss:$12 sps:$4 sm:$0xff]   ;;  %v4992_v63 = vmax.f32 %v4736_v59, 0.0  ;;  %v9752_v53 = vld [vmem:[#allocation19 + $0x61c] ss:$12 sps:$4 sm:$0xff]  }
 0xfa0   : > { %v9753_v59 = vld [vmem:[#allocation19 + $0x540] ss:$12 sps:$4 sm:$0xff]  }
 0xfa1   : > { %7017 = vmatpush2.bf16.msra.mxu0 %v9645_v57  ;;  %v9707_v57 = vld [vmem:[#allocation19 + $0x484] ss:$12 sps:$4 sm:$0xff]   ;;  %v10952_v32 = vpack.c.bf16 %v4992_v63, %v4992_v63  ;;  %v9768_v63 = vld [vmem:[#allocation19 + $0x828] ss:$12 sps:$4 sm:$0xff]  }
 0xfa2   : > { %7042 = vmatpush1.bf16.msra.mxu1 %v9648_v60  ;;  %7018 = vmatprep.subr.bf16.mxu0 %v9653_v61  ;;  %v9710_v60 = vld [vmem:[#allocation19 + $0x3c4] ss:$12 sps:$4 sm:$0xff]   ;;  %v9705_v61 = vld [vmem:[#allocation19 + $0x480] ss:$12 sps:$4 sm:$0xff]  }
 0xfa3   : > { %7043 = vmatprep.subr.bf16.mxu1 %v9656_v19  ;;  %v9708_v19 = vld [vmem:[#allocation19 + $0x3c0] ss:$12 sps:$4 sm:$0xff]  }
 0xfa5   : > { %7019 = vmatpush2.bf16.msra.mxu0 %v9651_v62  ;;  %v9713_v62 = vld [vmem:[#allocation19 + $0x5ec] ss:$12 sps:$4 sm:$0xff]  }
 0xfa6   : > { %7044 = vmatpush1.bf16.msra.mxu1 %v9654_v0  ;;  %7020 = vmatprep.subr.bf16.mxu0 %v9659_v1  ;;  %v3026_v0 = vsub.s32 7, %v10697_v3  ;;  %v9711_v1 = vld [vmem:[#allocation19 + $0x5e8] ss:$12 sps:$4 sm:$0xff]  }
 0xfa7   : > { %7045 = vmatprep.subr.bf16.mxu1 %v9662_v6  ;;  %v9714_v6 = vld [vmem:[#allocation19 + $0x6a8] ss:$12 sps:$4 sm:$0xff]  }
 0xfa8   : > { %v3027_v12 = vrot.slane %v10892_v51, %v3026_v0  ;;  %v9776_v0 = vld [vmem:[#allocation19 + $0x814] ss:$12 sps:$4 sm:$0xff]  }
 0xfa9   : > { %7021 = vmatpush2.bf16.msra.mxu0 %v9657_v10  ;;  %v9719_v10 = vld [vmem:[#allocation19 + $0x5d4] ss:$12 sps:$4 sm:$0xff]  }
 0xfaa   : > { %7046 = vmatpush1.bf16.msra.mxu1 %v9660_v27  ;;  %7072 = vmatprep.subr.bf16.mxu0 %v9665_v11  ;;  %v9722_v27 = vld [vmem:[#allocation19 + $0x694] ss:$12 sps:$4 sm:$0xff]  }
 0xfab   : > { %7047 = vmatprep.subr.bf16.mxu1 %v9668_v13  ;;  %v9717_v13 = vld [vmem:[#allocation19 + $0x5d0] ss:$12 sps:$4 sm:$0xff]  }
 0xfac   : > { %7023 = vmatmul.mubr.bf16.vlgmr.msra.gmra.mxu0 %v10940_v14 }
 0xfad   : > { %v10943_v16 = vpop.f32.mrf.mxu1  ;;  %7073 = vmatpush1.bf16.msra.mxu0 %v9663_v18 }
 0xfae   : > { %7048 = vmatpush2.bf16.msra.mxu1 %v9666_v49  ;;  %7074 = vmatprep.subr.bf16.mxu0 %v9671_v20  ;;  %v9720_v49 = vld [vmem:[#allocation19 + $0x690] ss:$12 sps:$4 sm:$0xff]  }
 0xfaf   : > { %v10945_v22 = vpop.f32.mrf.mxu1  ;;  %7049 = vmatprep.subr.bf16.mxu1 %v9674_v15  ;;  %v9725_v20 = vld [vmem:[#allocation19 + $0x5bc] ss:$12 sps:$4 sm:$0xff]  }
 0xfb1   : > { %v4821_v4 = vpop.f32.mrf.mxu1  ;;  %7075 = vmatpush1.bf16.msra.mxu0 %v9669_v21  ;;  %v9728_v21 = vld [vmem:[#allocation19 + $0x67c] ss:$12 sps:$4 sm:$0xff]  }
 0xfb2   : > { %7050 = vmatpush2.bf16.msra.mxu1 %v9672_v58  ;;  %7076 = vmatprep.subr.bf16.mxu0 %v9677_v9 }
 0xfb3   : > { %v4822_v29 = vpop.f32.mrf.mxu1  ;;  %7051 = vmatprep.subr.bf16.mxu1 %v9680_v24  ;;  %v9723_v24 = vld [vmem:[#allocation19 + $0x5b8] ss:$12 sps:$4 sm:$0xff]  }
 0xfb4   : > { %v9734_v29 = vld [vmem:[#allocation19 + $0x664] ss:$12 sps:$4 sm:$0xff]  }
 0xfb5   : > { %7077 = vmatpush1.bf16.msra.mxu0 %v9675_v25  ;;  %v9726_v25 = vld [vmem:[#allocation19 + $0x678] ss:$12 sps:$4 sm:$0xff]  }
 0xfb6   : > { %7052 = vmatpush2.bf16.msra.mxu1 %v9678_v2  ;;  %7078 = vmatprep.subr.bf16.mxu0 %v9683_v26  ;;  %v9731_v2 = vld [vmem:[#allocation19 + $0x5a4] ss:$12 sps:$4 sm:$0xff]  }
 0xfb7   : > { %7053 = vmatprep.subr.bf16.mxu1 %v9686_v30 }
 0xfb9   : > { %7079 = vmatpush1.bf16.msra.mxu0 %v9681_v34  ;;  %v9729_v34 = vld [vmem:[#allocation19 + $0x5a0] ss:$12 sps:$4 sm:$0xff]  }
 0xfba   : > { %7054 = vmatpush2.bf16.msra.mxu1 %v9684_v17  ;;  %7080 = vmatprep.subr.bf16.mxu0 %v9689_v35  ;;  %v3022_v17 = vsub.s32 6, %v10697_v3  ;;  %v9732_v35 = vld [vmem:[#allocation19 + $0x660] ss:$12 sps:$4 sm:$0xff]  }
 0xfbb   : > { %7055 = vmatprep.subr.bf16.mxu1 %v9692_v38  ;;  %v9735_v38 = vld [vmem:[#allocation19 + $0x588] ss:$12 sps:$4 sm:$0xff]  }
 0xfbd   : > { %7081 = vmatpush1.bf16.msra.mxu0 %v9687_v39  ;;  %v3023_v39 = vrot.slane %v10892_v51, %v3022_v17  ;;  %v9750_v51 = vld [vmem:[#allocation19 + $0x618] ss:$12 sps:$4 sm:$0xff]  }
 0xfbe   : > { %7056 = vmatpush2.bf16.msra.mxu1 %v9690_v40  ;;  %7082 = vmatprep.subr.bf16.mxu0 %v9695_v41  ;;  %v9738_v40 = vld [vmem:[#allocation19 + $0x648] ss:$12 sps:$4 sm:$0xff]  }
 0xfbf   : > { %7057 = vmatprep.subr.bf16.mxu1 %v9698_v44  ;;  %v9743_v41 = vld [vmem:[#allocation19 + $0x574] ss:$12 sps:$4 sm:$0xff]   ;;  %v9741_v44 = vld [vmem:[#allocation19 + $0x570] ss:$12 sps:$4 sm:$0xff]  }
 0xfc1   : > { %7083 = vmatpush1.bf16.msra.mxu0 %v9693_v45 }
 0xfc2   : > { %7058 = vmatpush2.bf16.msra.mxu1 %v9696_v50  ;;  %7084 = vmatprep.subr.bf16.mxu0 %v9701_v52  ;;  %v9744_v50 = vld [vmem:[#allocation19 + $0x630] ss:$12 sps:$4 sm:$0xff]  }
 0xfc3   : > { %7059 = vmatprep.subr.bf16.mxu1 %v9704_v54  ;;  %v9749_v52 = vld [vmem:[#allocation19 + $0x55c] ss:$12 sps:$4 sm:$0xff]   ;;  %v9747_v54 = vld [vmem:[#allocation19 + $0x558] ss:$12 sps:$4 sm:$0xff]  }
 0xfc5   : > { %7085 = vmatpush1.bf16.msra.mxu0 %v9699_v55 }
 0xfc6   : > { %7060 = vmatpush2.bf16.msra.mxu1 %v9702_v56  ;;  %7086 = vmatprep.subr.bf16.mxu0 %v9707_v57  ;;  %v9755_v56 = vld [vmem:[#allocation19 + $0x544] ss:$12 sps:$4 sm:$0xff]  }
 0xfc7   : > { %7061 = vmatprep.subr.bf16.mxu1 %v9710_v60  ;;  %v9758_v57 = vld [vmem:[#allocation19 + $0x604] ss:$12 sps:$4 sm:$0xff]  }
 0xfc9   : > { %7087 = vmatpush1.bf16.msra.mxu0 %v9705_v61  ;;  %v9756_v61 = vld [vmem:[#allocation19 + $0x600] ss:$12 sps:$4 sm:$0xff]  }
 0xfca   : > { %7062 = vmatpush2.bf16.msra.mxu1 %v9708_v19  ;;  %7088 = vmatprep.subr.bf16.mxu0 %v9713_v62  ;;  %v9770_v19 = vld [vmem:[#allocation19 + $0x82c] ss:$12 sps:$4 sm:$0xff]  }
 0xfcb   : > { %7113 = vmatprep.subr.bf16.mxu1 %v9716_v28  ;;  %v9761_v62 = vld [vmem:[#allocation19 + $0x76c] ss:$12 sps:$4 sm:$0xff]  }
 0xfcc   : > { %v4776_v11 = vpop.f32.mrf.mxu0 }
 0xfcd   : > { %7064 = vmatmul.mubr.bf16.vlgmr.msra.gmra.mxu1 %v10952_v32  ;;  %7089 = vmatpush2.bf16.msra.mxu0 %v9711_v1  ;;  %v4777_v45 = vadd.f32 %v4776_v11, %v3023_v39  ;;  %v10965_v1 = vld [vmem:[#allocation17 + $0x8] sm:$0xf]  ;;  %v9779_v39 = vld [vmem:[#allocation19 + $0x70c] ss:$12 sps:$4 sm:$0xff]  }
 0xfce   : > { %v4778_v18 = vpop.f32.mrf.mxu0  ;;  %7114 = vmatpush1.bf16.msra.mxu1 %v9714_v6  ;;  %7090 = vmatprep.subr.bf16.mxu0 %v9719_v10  ;;  %v9764_v6 = vld [vmem:[#allocation19 + $0x754] ss:$12 sps:$4 sm:$0xff]   ;;  %v9774_v11 = vld [vmem:[#allocation19 + $0x810] ss:$12 sps:$4 sm:$0xff]  }
 0xfcf   : > { %v4779_v15 = vadd.f32 %v4778_v18, %v3027_v12  ;;  %7115 = vmatprep.subr.bf16.mxu1 %v9722_v27  ;;  %v4818_v55 = vadd.f32 %v10943_v16, %v4777_v45  ;;  %v9759_v16 = vld [vmem:[#allocation19 + $0x768] ss:$12 sps:$4 sm:$0xff]   ;;  %v3035_v12 = vrot.slane %v10965_v1, %v10700_v5  ;;  %v9762_v18 = vld [vmem:[#allocation19 + $0x750] ss:$12 sps:$4 sm:$0xff]  }
 0xfd0   : > { %v4780_v58 = vpop.f32.mrf.mxu0  ;;  %v9785_v45 = vld [vmem:[#allocation19 + $0x6f4] ss:$12 sps:$4 sm:$0xff]  }
 0xfd1   : > { %v4820_v9 = vadd.f32 %v10945_v22, %v4779_v15  ;;  %7091 = vmatpush2.bf16.msra.mxu0 %v9717_v13  ;;  %v9737_v22 = vld [vmem:[#allocation19 + $0x58c] ss:$12 sps:$4 sm:$0xff]   ;;  %v4994_v60 = vmax.f32 %v4818_v55, 0.0  ;;  %v9767_v15 = vld [vmem:[#allocation19 + $0x73c] ss:$12 sps:$4 sm:$0xff]  }
 0xfd2   : > { %v4781_v4 = vpop.f32.mrf.mxu0  ;;  %7116 = vmatpush1.bf16.msra.mxu1 %v9720_v49  ;;  %7092 = vmatprep.subr.bf16.mxu0 %v9725_v20  ;;  %v9782_v49 = vld [vmem:[#allocation19 + $0x7fc] ss:$12 sps:$4 sm:$0xff]  }
 0xfd3   : > { %v4995_v26 = vmax.f32 %v4820_v9, 0.0  ;;  %7117 = vmatprep.subr.bf16.mxu1 %v9728_v21  ;;  %v10963_v28 = vpack.c.bf16 %v4994_v60, %v4994_v60  ;;  %v9791_v55 = vld [vmem:[#allocation19 + $0x6dc] ss:$12 sps:$4 sm:$0xff]   ;;  %v9797_v60 = vld [vmem:[#allocation19 + $0x6c4] ss:$12 sps:$4 sm:$0xff]  }
 0xfd5   : > { %v10957_v30 = vpack.c.bf16 %v4995_v26, %v4995_v26  ;;  %7093 = vmatpush2.bf16.msra.mxu0 %v9723_v24  ;;  %v9780_v24 = vld [vmem:[#allocation19 + $0x7f8] ss:$12 sps:$4 sm:$0xff]  }
 0xfd6   : > { %7118 = vmatpush1.bf16.msra.mxu1 %v9726_v25  ;;  %7094 = vmatprep.subr.bf16.mxu0 %v9731_v2  ;;  %v9765_v2 = vld [vmem:[#allocation19 + $0x738] ss:$12 sps:$4 sm:$0xff]  }
 0xfd7   : > { %7104 = vmatprep.mubr.bf16.mxu0 %v10957_v30  ;;  %7119 = vmatprep.subr.bf16.mxu1 %v9734_v29  ;;  %v9788_v26 = vld [vmem:[#allocation19 + $0x7e4] ss:$12 sps:$4 sm:$0xff]  }
 0xfd9   : > { %7095 = vmatpush2.bf16.msra.mxu0 %v9729_v34  ;;  %v9773_v34 = vld [vmem:[#allocation19 + $0x724] ss:$12 sps:$4 sm:$0xff]  }
 0xfda   : > { %7120 = vmatpush1.bf16.msra.mxu1 %v9732_v35  ;;  %7096 = vmatprep.subr.bf16.mxu0 %v9737_v22  ;;  %v9786_v35 = vld [vmem:[#allocation19 + $0x7e0] ss:$12 sps:$4 sm:$0xff]  }
 0xfdb   : > { %7121 = vmatprep.subr.bf16.mxu1 %v9740_v31  ;;  %v9771_v31 = vld [vmem:[#allocation19 + $0x720] ss:$12 sps:$4 sm:$0xff]  }
 0xfdd   : > { %7097 = vmatpush2.bf16.msra.mxu0 %v9735_v38  ;;  %v9794_v38 = vld [vmem:[#allocation19 + $0x7cc] ss:$12 sps:$4 sm:$0xff]  }
 0xfde   : > { %7122 = vmatpush1.bf16.msra.mxu1 %v9738_v40  ;;  %7098 = vmatprep.subr.bf16.mxu0 %v9743_v41  ;;  %v9792_v40 = vld [vmem:[#allocation19 + $0x7c8] ss:$12 sps:$4 sm:$0xff]  }
 0xfdf   : > { %7123 = vmatprep.subr.bf16.mxu1 %v9746_v43  ;;  %v9777_v41 = vld [vmem:[#allocation19 + $0x708] ss:$12 sps:$4 sm:$0xff]  }
 0xfe0   : > { %v9800_v43 = vld [vmem:[#allocation19 + $0x7b4] ss:$12 sps:$4 sm:$0xff]  }
 0xfe1   : > { %7099 = vmatpush2.bf16.msra.mxu0 %v9741_v44  ;;  %v3031_v44 = vrot.slane %v10965_v1, %v10706_v8 }
 0xfe2   : > { %7124 = vmatpush1.bf16.msra.mxu1 %v9744_v50  ;;  %7100 = vmatprep.subr.bf16.mxu0 %v9749_v52  ;;  %v9798_v50 = vld [vmem:[#allocation19 + $0x7b0] ss:$12 sps:$4 sm:$0xff]  }
 0xfe3   : > { %7125 = vmatprep.subr.bf16.mxu1 %v9752_v53  ;;  %v9783_v52 = vld [vmem:[#allocation19 + $0x6f0] ss:$12 sps:$4 sm:$0xff]  }
 0xfe4   : > { %v9805_v53 = vld [vmem:[#allocation19 + $0x79c] ss:$12 sps:$4 sm:$0xff]  }
 0xfe5   : > { %7101 = vmatpush2.bf16.msra.mxu0 %v9747_v54 }
 0xfe6   : > { %7126 = vmatpush1.bf16.msra.mxu1 %v9750_v51  ;;  %7102 = vmatprep.subr.bf16.mxu0 %v9755_v56  ;;  %v9803_v51 = vld [vmem:[#allocation19 + $0x798] ss:$12 sps:$4 sm:$0xff]  }
 0xfe7   : > { %7127 = vmatprep.subr.bf16.mxu1 %v9758_v57  ;;  %v9789_v56 = vld [vmem:[#allocation19 + $0x6d8] ss:$12 sps:$4 sm:$0xff]  }
 0xfe8   : > { %v9810_v57 = vld [vmem:[#allocation19 + $0x784] ss:$12 sps:$4 sm:$0xff]  }
 0xfe9   : > { %7103 = vmatpush2.bf16.msra.mxu0 %v9753_v59 }
 0xfea   : > { %7128 = vmatpush1.bf16.msra.mxu1 %v9756_v61  ;;  %7154 = vmatprep.subr.bf16.mxu0 %v9770_v19  ;;  %v9808_v61 = vld [vmem:[#allocation19 + $0x780] ss:$12 sps:$4 sm:$0xff]  }
 0xfeb   : > { %7129 = vmatprep.subr.bf16.mxu1 %v9761_v62  ;;  %v9795_v19 = vld [vmem:[#allocation19 + $0x6c0] ss:$12 sps:$4 sm:$0xff]  }
 0xfec   : > { %v10967_v10 = vpop.f32.mrf.mxu0  ;;  %7105 = vmatmul.mubr.bf16.vlgmr.msra.gmra.mxu0 %v10963_v28  ;;  %v9815_v62 = vld [vmem:[#allocation19 + $0x8ec] ss:$12 sps:$4 sm:$0xff]  }
 0xfed   : > { %v4858_v27 = vpop.f32.mrf.mxu1  ;;  %7155 = vmatpush1.bf16.msra.mxu0 %v9768_v63 }
 0xfee   : > { %v4901_v13 = vpop.f32.mrf.mxu0  ;;  %7130 = vmatpush2.bf16.msra.mxu1 %v9759_v16  ;;  %7156 = vmatprep.subr.bf16.mxu0 %v9776_v0  ;;  %v4859_v54 = vadd.f32 %v4858_v27, %v3031_v44  ;;  %v9801_v16 = vld [vmem:[#allocation19 + $0x170] ss:$12 sps:$4 sm:$0xff]   ;;  %v9813_v0 = vld [vmem:[#allocation19 + $0x8e8] ss:$12 sps:$4 sm:$0xff]   ;;  %v9832_v44 = vld [vmem:[#allocation19 + $0x20] ss:$12 sps:$4 sm:$0xff]  }
 0xfef   : > { %v4860_v20 = vpop.f32.mrf.mxu1  ;;  %7131 = vmatprep.subr.bf16.mxu1 %v9764_v6  ;;  %v9802_v6 = vld [vmem:[#allocation19 + $0xb0] ss:$12 sps:$4 sm:$0xff]   ;;  %v9820_v27 = vld [vmem:[#allocation19 + $0x8d4] ss:$12 sps:$4 sm:$0xff]  }
 0xff0   : > { %v4861_v21 = vadd.f32 %v4860_v20, %v3035_v12  ;;  %v4903_v58 = vpop.f32.mrf.mxu0  ;;  %v4900_v59 = vadd.f32 %v10967_v10, %v4859_v54  ;;  %v9806_v10 = vld [vmem:[#allocation19 + $0x158] ss:$12 sps:$4 sm:$0xff]   ;;  %v9853_v54 = vld [vmem:[#allocation19 + $0x2f0] ss:$12 sps:$4 sm:$0xff]  }
 0xff1   : > { %v4862_v9 = vpop.f32.mrf.mxu1  ;;  %7157 = vmatpush1.bf16.msra.mxu0 %v9774_v11  ;;  %v9823_v58 = vld [vmem:[#allocation19 + $0x8b8] ss:$12 sps:$4 sm:$0xff]  }
 0xff2   : > { %v4902_v4 = vadd.f32 %v4901_v13, %v4861_v21  ;;  %v4904_v25 = vpop.f32.mrf.mxu0  ;;  %7132 = vmatpush2.bf16.msra.mxu1 %v9762_v18  ;;  %7158 = vmatprep.subr.bf16.mxu0 %v9782_v49  ;;  %v4996_v63 = vmax.f32 %v4900_v59, 0.0  ;;  %v9818_v13 = vld [vmem:[#allocation19 + $0x8d0] ss:$12 sps:$4 sm:$0xff]   ;;  %v9807_v18 = vld [vmem:[#allocation19 + $0x98] ss:$12 sps:$4 sm:$0xff]  }
 0xff3   : > { %v4863_v29 = vpop.f32.mrf.mxu1  ;;  %7133 = vmatprep.subr.bf16.mxu1 %v9767_v15  ;;  %v9825_v49 = vld [vmem:[#allocation19 + $0x8bc] ss:$12 sps:$4 sm:$0xff]   ;;  %v9811_v15 = vld [vmem:[#allocation19 + $0x140] ss:$12 sps:$4 sm:$0xff]   ;;  %v9846_v59 = vld [vmem:[#allocation19 + $0x458] ss:$12 sps:$4 sm:$0xff]  }
 0xff4   : > { %v4997_v17 = vmax.f32 %v4902_v4, 0.0  ;;  %v10978_v12 = vpack.c.bf16 %v4996_v63, %v4996_v63  ;;  %v9812_v9 = vld [vmem:[#allocation19 + $0x80] ss:$12 sps:$4 sm:$0xff]   ;;  %v9816_v25 = vld [vmem:[#allocation19 + $0x128] ss:$12 sps:$4 sm:$0xff]  }
 0xff5   : > { %7159 = vmatpush1.bf16.msra.mxu0 %v9780_v24  ;;  %v9830_v24 = vld [vmem:[#allocation19 + $0x8a4] ss:$12 sps:$4 sm:$0xff]  }
 0xff6   : > { %v10972_v22 = vpack.c.bf16 %v4997_v17, %v4997_v17  ;;  %7134 = vmatpush2.bf16.msra.mxu1 %v9765_v2  ;;  %7160 = vmatprep.subr.bf16.mxu0 %v9788_v26  ;;  %v9828_v2 = vld [vmem:[#allocation19 + $0x8a0] ss:$12 sps:$4 sm:$0xff]   ;;  %v9821_v29 = vld [vmem:[#allocation19 + $0x110] ss:$12 sps:$4 sm:$0xff]  }
 0xff7   : > { %7135 = vmatprep.subr.bf16.mxu1 %v9773_v34  ;;  %v9835_v26 = vld [vmem:[#allocation19 + $0x88c] ss:$12 sps:$4 sm:$0xff]   ;;  %v9833_v34 = vld [vmem:[#allocation19 + $0x888] ss:$12 sps:$4 sm:$0xff]   ;;  %v9822_v17 = vld [vmem:[#allocation19 + $0x50] ss:$12 sps:$4 sm:$0xff]  }
 0xff8   : > { %7145 = vmatprep.mubr.bf16.mxu1 %v10972_v22 }
 0xff9   : > { %7161 = vmatpush1.bf16.msra.mxu0 %v9786_v35  ;;  %v9840_v35 = vld [vmem:[#allocation19 + $0x874] ss:$12 sps:$4 sm:$0xff]  }
 0xffa   : > { %7136 = vmatpush2.bf16.msra.mxu1 %v9771_v31  ;;  %7162 = vmatprep.subr.bf16.mxu0 %v9794_v38  ;;  %v9826_v31 = vld [vmem:[#allocation19 + $0xf8] ss:$12 sps:$4 sm:$0xff]   ;;  %v9838_v38 = vld [vmem:[#allocation19 + $0x870] ss:$12 sps:$4 sm:$0xff]  }
 0xffb   : > { %7137 = vmatprep.subr.bf16.mxu1 %v9779_v39  ;;  %v9827_v39 = vld [vmem:[#allocation19 + $0x38] ss:$12 sps:$4 sm:$0xff]  }
 0xffd   : > { %7163 = vmatpush1.bf16.msra.mxu0 %v9792_v40  ;;  %v9845_v40 = vld [vmem:[#allocation19 + $0x85c] ss:$12 sps:$4 sm:$0xff]  }
 0xffe   : > { %7138 = vmatpush2.bf16.msra.mxu1 %v9777_v41  ;;  %7164 = vmatprep.subr.bf16.mxu0 %v9800_v43  ;;  %v9831_v41 = vld [vmem:[#allocation19 + $0xe0] ss:$12 sps:$4 sm:$0xff]   ;;  %v9843_v43 = vld [vmem:[#allocation19 + $0x858] ss:$12 sps:$4 sm:$0xff]  }
 0xfff   : > { %7139 = vmatprep.subr.bf16.mxu1 %v9785_v45  ;;  %v9850_v45 = vld [vmem:[#allocation19 + $0x844] ss:$12 sps:$4 sm:$0xff]  }
0x1001   : > { %7165 = vmatpush1.bf16.msra.mxu0 %v9798_v50  ;;  %v9836_v50 = vld [vmem:[#allocation19 + $0xc8] ss:$12 sps:$4 sm:$0xff]  }
0x1002   : > { %7140 = vmatpush2.bf16.msra.mxu1 %v9783_v52  ;;  %7166 = vmatprep.subr.bf16.mxu0 %v9805_v53  ;;  %v9848_v52 = vld [vmem:[#allocation19 + $0x840] ss:$12 sps:$4 sm:$0xff]   ;;  %v9837_v53 = vld [vmem:[#allocation19 + $0x8] ss:$12 sps:$4 sm:$0xff]  }
0x1003   : > { %7141 = vmatprep.subr.bf16.mxu1 %v9791_v55  ;;  %v9841_v55 = vld [vmem:[#allocation19 + $0x470] ss:$12 sps:$4 sm:$0xff]  }
0x1005   : > { %7167 = vmatpush1.bf16.msra.mxu0 %v9803_v51  ;;  %v3039_v51 = vrot.slane %v10965_v1, %v10703_v7 }
0x1006   : > { %7142 = vmatpush2.bf16.msra.mxu1 %v9789_v56  ;;  %7168 = vmatprep.subr.bf16.mxu0 %v9810_v57  ;;  %v9842_v56 = vld [vmem:[#allocation19 + $0x3b0] ss:$12 sps:$4 sm:$0xff]   ;;  %v3043_v57 = vrot.slane %v10965_v1, %v3010_v23  ;;  %v9852_v1 = vld [vmem:[#allocation19 + $0x380] ss:$12 sps:$4 sm:$0xff]  }
0x1007   : > { %7143 = vmatprep.subr.bf16.mxu1 %v9797_v60 }
0x1009   : > { %7169 = vmatpush1.bf16.msra.mxu0 %v9808_v61 }
0x100a   : > { %7144 = vmatpush2.bf16.msra.mxu1 %v9795_v19  ;;  %7170 = vmatprep.subr.bf16.mxu0 %v9815_v62  ;;  %v9847_v62 = vld [vmem:[#allocation19 + $0x398] ss:$12 sps:$4 sm:$0xff]  }
0x100b   : > { %8475 = vmatprep.subr.bf16.mxu1 %v9801_v16 }
0x100d   : > { %v10980_v11 = vpop.f32.mrf.mxu1  ;;  %7146 = vmatmul.mubr.bf16.vlgmr.msra.gmra.mxu1 %v10978_v12  ;;  %7171 = vmatpush2.bf16.msra.mxu0 %v9813_v0  ;;  %v9851_v0 = vld [vmem:[#allocation19 + $0x440] ss:$12 sps:$4 sm:$0xff]  }
0x100e   : > { %8476 = vmatpush3.bf16.msra.mxu1 %v9802_v6  ;;  %7227 = vmatprep.mubr.bf16.mxu1 %v10904_v48  ;;  %v9817_v48 = vld [vmem:[#allocation19 + $0x68] ss:$12 sps:$4 sm:$0xff]  }
0x100f   : > { %v10984_v20 = vpop.f32.mrf.mxu1  ;;  %8477 = vmatprep.subr.bf16.mxu1 %v9806_v10  ;;  %7172 = vmatprep.subr.bf16.mxu0 %v9820_v27 }
0x1011   : > { %v4985_v21 = vpop.f32.mrf.mxu1  ;;  %7173 = vmatpush2.bf16.msra.mxu0 %v9818_v13 }
0x1012   : > { %8478 = vmatpush3.bf16.msra.mxu1 %v9807_v18  ;;  %7174 = vmatprep.subr.bf16.mxu0 %v9825_v49  ;;  %v9854_v18 = vld [vmem:[#allocation19 + $0x230] ss:$12 sps:$4 sm:$0xff]   ;;  %v9857_v49 = vld [vmem:[#allocation19 + $0x2d8] ss:$12 sps:$4 sm:$0xff]  }
0x1013   : > { %v4986_v4 = vpop.f32.mrf.mxu1  ;;  %8479 = vmatprep.subr.bf16.mxu1 %v9811_v15  ;;  %v9859_v15 = vld [vmem:[#allocation19 + $0x410] ss:$12 sps:$4 sm:$0xff]  }
0x1014   : > { %v9860_v21 = vld [vmem:[#allocation19 + $0x350] ss:$12 sps:$4 sm:$0xff]   ;;  %v9864_v4 = vld [vmem:[#allocation19 + $0x338] ss:$12 sps:$4 sm:$0xff]  }
0x1015   : > { %7175 = vmatpush2.bf16.msra.mxu0 %v9823_v58  ;;  %v9861_v58 = vld [vmem:[#allocation19 + $0x2c0] ss:$12 sps:$4 sm:$0xff]  }
0x1016   : > { %8480 = vmatpush3.bf16.msra.mxu1 %v9812_v9  ;;  %7176 = vmatprep.subr.bf16.mxu0 %v9830_v24  ;;  %v9863_v9 = vld [vmem:[#allocation19 + $0x3f8] ss:$12 sps:$4 sm:$0xff]   ;;  %v9862_v24 = vld [vmem:[#allocation19 + $0x200] ss:$12 sps:$4 sm:$0xff]  }
0x1017   : > { %8481 = vmatprep.subr.bf16.mxu1 %v9816_v25  ;;  %v9865_v25 = vld [vmem:[#allocation19 + $0x2a8] ss:$12 sps:$4 sm:$0xff]  }
0x1019   : > { %7177 = vmatpush2.bf16.msra.mxu0 %v9828_v2  ;;  %v9867_v2 = vld [vmem:[#allocation19 + $0x3e0] ss:$12 sps:$4 sm:$0xff]  }
0x101a   : > { %8482 = vmatpush3.bf16.msra.mxu1 %v9817_v48  ;;  %7178 = vmatprep.subr.bf16.mxu0 %v9835_v26  ;;  %v9866_v48 = vld [vmem:[#allocation19 + $0x1e8] ss:$12 sps:$4 sm:$0xff]   ;;  %v9869_v26 = vld [vmem:[#allocation19 + $0x290] ss:$12 sps:$4 sm:$0xff]  }
0x101b   : > { %8483 = vmatprep.subr.bf16.mxu1 %v9821_v29  ;;  %v9871_v29 = vld [vmem:[#allocation19 + $0x3c8] ss:$12 sps:$4 sm:$0xff]  }
0x101d   : > { %7179 = vmatpush2.bf16.msra.mxu0 %v9833_v34  ;;  %v9870_v34 = vld [vmem:[#allocation19 + $0x1d0] ss:$12 sps:$4 sm:$0xff]  }
0x101e   : > { %8484 = vmatpush3.bf16.msra.mxu1 %v9822_v17  ;;  %7180 = vmatprep.subr.bf16.mxu0 %v9840_v35  ;;  %v9872_v17 = vld [vmem:[#allocation19 + $0x308] ss:$12 sps:$4 sm:$0xff]   ;;  %v9873_v35 = vld [vmem:[#allocation19 + $0x278] ss:$12 sps:$4 sm:$0xff]  }
0x101f   : > { %8485 = vmatprep.subr.bf16.mxu1 %v9826_v31  ;;  %v9875_v31 = vld [vmem:[#allocation19 + $0x770] ss:$12 sps:$4 sm:$0xff]  }
0x1021   : > { %7181 = vmatpush2.bf16.msra.mxu0 %v9838_v38  ;;  %v9874_v38 = vld [vmem:[#allocation19 + $0x1b8] ss:$12 sps:$4 sm:$0xff]  }
0x1022   : > { %8486 = vmatpush3.bf16.msra.mxu1 %v9827_v39  ;;  %7182 = vmatprep.subr.bf16.mxu0 %v9845_v40  ;;  %v9876_v39 = vld [vmem:[#allocation19 + $0x6b0] ss:$12 sps:$4 sm:$0xff]   ;;  %v9877_v40 = vld [vmem:[#allocation19 + $0x260] ss:$12 sps:$4 sm:$0xff]  }
0x1023   : > { %8487 = vmatprep.subr.bf16.mxu1 %v9831_v41  ;;  %v9879_v41 = vld [vmem:[#allocation19 + $0x758] ss:$12 sps:$4 sm:$0xff]  }
0x1025   : > { %7183 = vmatpush2.bf16.msra.mxu0 %v9843_v43 }
0x1026   : > { %8488 = vmatpush3.bf16.msra.mxu1 %v9832_v44  ;;  %7184 = vmatprep.subr.bf16.mxu0 %v9850_v45  ;;  %v9878_v44 = vld [vmem:[#allocation19 + $0x1a0] ss:$12 sps:$4 sm:$0xff]   ;;  %v9880_v45 = vld [vmem:[#allocation19 + $0x698] ss:$12 sps:$4 sm:$0xff]  }
0x1027   : > { %8489 = vmatprep.subr.bf16.mxu1 %v9836_v50  ;;  %v9881_v50 = vld [vmem:[#allocation19 + $0x248] ss:$12 sps:$4 sm:$0xff]  }
0x1029   : > { %7185 = vmatpush2.bf16.msra.mxu0 %v9848_v52 }
0x102a   : > { %8490 = vmatpush3.bf16.msra.mxu1 %v9837_v53  ;;  %8497 = vmatprep.subr.bf16.mxu0 %v9853_v54  ;;  %v9883_v53 = vld [vmem:[#allocation19 + $0x740] ss:$12 sps:$4 sm:$0xff]  }
0x102b   : > { %8519 = vmatprep.subr.bf16.mxu1 %v9841_v55  ;;  %v9882_v55 = vld [vmem:[#allocation19 + $0x188] ss:$12 sps:$4 sm:$0xff]  }
0x102c   : > { %v4940_v60 = vpop.f32.mrf.mxu0 }
0x102d   : > { %v4941_v61 = vadd.f32 %v4940_v60, %v3039_v51  ;;  %7228 = vmatmul.mubr.bf16.vlgmr.msra.gmra.mxu1 %v10925_v47  ;;  %v9855_v47 = vld [vmem:[#allocation19 + $0x428] ss:$12 sps:$4 sm:$0xff]   ;;  %v9884_v51 = vld [vmem:[#allocation19 + $0x680] ss:$12 sps:$4 sm:$0xff]   ;;  %v9889_v60 = vld [vmem:[#allocation19 + $0x5d8] ss:$12 sps:$4 sm:$0xff]  }
0x102e   : > { %v4942_v19 = vpop.f32.mrf.mxu0  ;;  %8520 = vmatpush3.bf16.msra.mxu1 %v9842_v56  ;;  %7307 = vmatprep.mubr.bf16.mxu1 %v10933_v36  ;;  %v9885_v56 = vld [vmem:[#allocation19 + $0x5f0] ss:$12 sps:$4 sm:$0xff]  }
0x102f   : > { %v4982_v63 = vadd.f32 %v10980_v11, %v4941_v61  ;;  %v4943_v16 = vadd.f32 %v4942_v19, %v3043_v57  ;;  %8521 = vmatprep.subr.bf16.mxu1 %v9846_v59  ;;  %v9856_v11 = vld [vmem:[#allocation19 + $0x368] ss:$12 sps:$4 sm:$0xff]   ;;  %v9886_v59 = vld [vmem:[#allocation19 + $0x530] ss:$12 sps:$4 sm:$0xff]   ;;  %v9890_v19 = vld [vmem:[#allocation19 + $0x518] ss:$12 sps:$4 sm:$0xff]  }
0x1030   : > { %v4944_v6 = vpop.f32.mrf.mxu0  ;;  %v9891_v61 = vld [vmem:[#allocation19 + $0x710] ss:$12 sps:$4 sm:$0xff]  }
0x1031   : > { %v4984_v3 = vadd.f32 %v10984_v20, %v4943_v16  ;;  %v4998_v10 = vmax.f32 %v4982_v63, 0.0  ;;  %v9858_v20 = vld [vmem:[#allocation19 + $0x218] ss:$12 sps:$4 sm:$0xff]   ;;  %v9893_v63 = vld [vmem:[#allocation19 + $0x5c0] ss:$12 sps:$4 sm:$0xff]  }
0x1032   : > { %v4945_v23 = vpop.f32.mrf.mxu0  ;;  %8522 = vmatpush3.bf16.msra.mxu1 %v9847_v62  ;;  %v9892_v62 = vld [vmem:[#allocation19 + $0x650] ss:$12 sps:$4 sm:$0xff]   ;;  %v9895_v16 = vld [vmem:[#allocation19 + $0x6f8] ss:$12 sps:$4 sm:$0xff]  }
0x1033   : > { %v4999_v27 = vmax.f32 %v4984_v3, 0.0  ;;  %8523 = vmatprep.subr.bf16.mxu1 %v9851_v0  ;;  %v10997_v36 = vpack.c.bf16 %v4998_v10, %v4998_v10  ;;  %v9894_v0 = vld [vmem:[#allocation19 + $0x500] ss:$12 sps:$4 sm:$0xff]   ;;  %v9896_v6 = vld [vmem:[#allocation19 + $0x638] ss:$12 sps:$4 sm:$0xff]  }
0x1034   : > { %v9897_v3 = vld [vmem:[#allocation19 + $0x5a8] ss:$12 sps:$4 sm:$0xff]   ;;  %v9899_v10 = vld [vmem:[#allocation19 + $0x6e0] ss:$12 sps:$4 sm:$0xff]   ;;  %v9901_v23 = vld [vmem:[#allocation19 + $0x590] ss:$12 sps:$4 sm:$0xff]  }
0x1035   : > { %v10995_v13 = vpack.c.bf16 %v4999_v27, %v4999_v27  ;;  %v11010_v27 = vld [vmem:[#allocation20] sm:$0x7] }
0x1036   : > { %8524 = vmatpush3.bf16.msra.mxu1 %v9852_v1  ;;  %v9903_v1 = vld [vmem:[#allocation19 + $0x6c8] ss:$12 sps:$4 sm:$0xff]  }
0x1037   : > { %7186 = vmatprep.mubr.bf16.mxu0 %v10995_v13  ;;  %8525 = vmatprep.subr.bf16.mxu1 %v9855_v47  ;;  %v9902_v47 = vld [vmem:[#allocation19 + $0x4d0] ss:$12 sps:$4 sm:$0xff]  }
0x1038   : > { %7187 = vmatmul.mubr.bf16.vlgmr.msra.gmra.mxu0 %v10997_v36 }
0x1039   : > { %8498 = vmatpush3.bf16.msra.mxu0 %v9854_v18  ;;  %7267 = vmatprep.mubr.bf16.mxu0 %v10920_v46  ;;  %v9868_v46 = vld [vmem:[#allocation19 + $0x320] ss:$12 sps:$4 sm:$0xff]   ;;  %v9904_v18 = vld [vmem:[#allocation19 + $0x608] ss:$12 sps:$4 sm:$0xff]  }
0x103a   : > { %8526 = vmatpush3.bf16.msra.mxu1 %v9856_v11  ;;  %8499 = vmatprep.subr.bf16.mxu0 %v9857_v49  ;;  %v9905_v11 = vld [vmem:[#allocation19 + $0x578] ss:$12 sps:$4 sm:$0xff]   ;;  %v5401_v49 = vrot.slane %v11010_v27, %v10706_v8 }
0x103b   : > { %8527 = vmatprep.subr.bf16.mxu1 %v9859_v15  ;;  %v5405_v15 = vrot.slane %v11010_v27, %v10700_v5 }
0x103d   : > { %8500 = vmatpush3.bf16.msra.mxu0 %v9858_v20  ;;  %v9906_v20 = vld [vmem:[#allocation19 + $0x4b8] ss:$12 sps:$4 sm:$0xff]  }
0x103e   : > { %8528 = vmatpush3.bf16.msra.mxu1 %v9860_v21  ;;  %8501 = vmatprep.subr.bf16.mxu0 %v9861_v58  ;;  %v9907_v21 = vld [vmem:[#allocation19 + $0x560] ss:$12 sps:$4 sm:$0xff]  }
0x103f   : > { %8529 = vmatprep.subr.bf16.mxu1 %v9863_v9 }
0x1041   : > { %8502 = vmatpush3.bf16.msra.mxu0 %v9862_v24 }
0x1042   : > { %8530 = vmatpush3.bf16.msra.mxu1 %v9864_v4  ;;  %8503 = vmatprep.subr.bf16.mxu0 %v9865_v25  ;;  %v9908_v25 = vld [vmem:[#allocation19 + $0x4a0] ss:$12 sps:$4 sm:$0xff]  }
0x1043   : > { %8531 = vmatprep.subr.bf16.mxu1 %v9867_v2  ;;  %v9909_v2 = vld [vmem:[#allocation19 + $0x548] ss:$12 sps:$4 sm:$0xff]  }
0x1045   : > { %8504 = vmatpush3.bf16.msra.mxu0 %v9866_v48 }
0x1046   : > { %8532 = vmatpush3.bf16.msra.mxu1 %v9868_v46  ;;  %8505 = vmatprep.subr.bf16.mxu0 %v9869_v26  ;;  %v9910_v46 = vld [vmem:[#allocation19 + $0x488] ss:$12 sps:$4 sm:$0xff]  }
0x1047   : > { %8533 = vmatprep.subr.bf16.mxu1 %v9871_v29  ;;  %v9911_v29 = vld [vmem:[#allocation19 + $0x8f0] ss:$12 sps:$4 sm:$0xff]  }
0x1049   : > { %8506 = vmatpush3.bf16.msra.mxu0 %v9870_v34  ;;  %v9912_v34 = vld [vmem:[#allocation19 + $0x830] ss:$12 sps:$4 sm:$0xff]  }
0x104a   : > { %8534 = vmatpush3.bf16.msra.mxu1 %v9872_v17  ;;  %8507 = vmatprep.subr.bf16.mxu0 %v9873_v35  ;;  %v9913_v17 = vld [vmem:[#allocation19 + $0x8d8] ss:$12 sps:$4 sm:$0xff]   ;;  %v9915_v35 = vld [vmem:[#allocation19 + $0x8c0] ss:$12 sps:$4 sm:$0xff]  }
0x104b   : > { %8563 = vmatprep.subr.bf16.mxu1 %v9875_v31  ;;  %v9916_v31 = vld [vmem:[#allocation19 + $0x800] ss:$12 sps:$4 sm:$0xff]  }
0x104d   : > { %8508 = vmatpush3.bf16.msra.mxu0 %v9874_v38  ;;  %v11002_v43 = vpop.f32.mrf.mxu1  ;;  %7308 = vmatmul.mubr.bf16.vlgmr.msra.gmra.mxu1 %v10952_v32  ;;  %v9887_v32 = vld [vmem:[#allocation19 + $0x728] ss:$12 sps:$4 sm:$0xff]  }
0x104e   : > { %8564 = vmatpush3.bf16.msra.mxu1 %v9876_v39  ;;  %7387 = vmatprep.mubr.bf16.mxu1 %v10972_v22  ;;  %v9888_v22 = vld [vmem:[#allocation19 + $0x668] ss:$12 sps:$4 sm:$0xff]   ;;  %v6984_v58 = vadd.f32 %v11002_v43, %v5401_v49  ;;  %v9921_v43 = vld [vmem:[#allocation19 + $0x878] ss:$12 sps:$4 sm:$0xff]  }
0x104f   : > { %v11006_v52 = vpop.f32.mrf.mxu1  ;;  %8509 = vmatprep.subr.bf16.mxu0 %v9877_v40  ;;  %8565 = vmatprep.subr.bf16.mxu1 %v9879_v41  ;;  %v9917_v38 = vld [vmem:[#allocation19 + $0x8a8] ss:$12 sps:$4 sm:$0xff]   ;;  %v9919_v40 = vld [vmem:[#allocation19 + $0x890] ss:$12 sps:$4 sm:$0xff]  }
0x1050   : > { %v6986_v24 = vadd.f32 %v11006_v52, %v5405_v15  ;;  %v9918_v39 = vld [vmem:[#allocation19 + $0x7e8] ss:$12 sps:$4 sm:$0xff]   ;;  %v9920_v41 = vld [vmem:[#allocation19 + $0x7d0] ss:$12 sps:$4 sm:$0xff]  }
0x1051   : > { %8510 = vmatpush3.bf16.msra.mxu0 %v9878_v44  ;;  %v6987_v54 = vpop.f32.mrf.mxu1  ;;  %v9923_v44 = vld [vmem:[#allocation19 + $0x860] ss:$12 sps:$4 sm:$0xff]   ;;  %v9925_v52 = vld [vmem:[#allocation19 + $0x848] ss:$12 sps:$4 sm:$0xff]  }
0x1052   : > { %8566 = vmatpush3.bf16.msra.mxu1 %v9880_v45  ;;  %8511 = vmatprep.subr.bf16.mxu0 %v9881_v50  ;;  %v9924_v45 = vld [vmem:[#allocation19 + $0x7a0] ss:$12 sps:$4 sm:$0xff]  }
0x1053   : > { %v6988_v57 = vpop.f32.mrf.mxu1  ;;  %8567 = vmatprep.subr.bf16.mxu1 %v9883_v53 }
0x1055   : > { %8512 = vmatpush3.bf16.msra.mxu0 %v9882_v55 }
0x1056   : > { %8568 = vmatpush3.bf16.msra.mxu1 %v9884_v51  ;;  %8541 = vmatprep.subr.bf16.mxu0 %v9885_v56  ;;  %v9926_v51 = vld [vmem:[#allocation19 + $0x788] ss:$12 sps:$4 sm:$0xff]  }
0x1057   : > { %8569 = vmatprep.subr.bf16.mxu1 %v9887_v32 }
0x1058   : > { %7268 = vmatmul.mubr.bf16.vlgmr.msra.gmra.mxu0 %v10940_v14  ;;  %v9898_v14 = vld [vmem:[#allocation19 + $0x4e8] ss:$12 sps:$4 sm:$0xff]  }
0x1059   : > { %8542 = vmatpush3.bf16.msra.mxu0 %v9886_v59  ;;  %7347 = vmatprep.mubr.bf16.mxu0 %v10957_v30  ;;  %v9900_v30 = vld [vmem:[#allocation19 + $0x620] ss:$12 sps:$4 sm:$0xff]  }
0x105a   : > { %8570 = vmatpush3.bf16.msra.mxu1 %v9888_v22  ;;  %8543 = vmatprep.subr.bf16.mxu0 %v9889_v60 }
0x105b   : > { %8571 = vmatprep.subr.bf16.mxu1 %v9891_v61 }
0x105d   : > { %8544 = vmatpush3.bf16.msra.mxu0 %v9890_v19 }
0x105e   : > { %8572 = vmatpush3.bf16.msra.mxu1 %v9892_v62  ;;  %8545 = vmatprep.subr.bf16.mxu0 %v9893_v63 }
0x105f   : > { %8573 = vmatprep.subr.bf16.mxu1 %v9895_v16 }
0x1061   : > { %8546 = vmatpush3.bf16.msra.mxu0 %v9894_v0 }
0x1062   : > { %8574 = vmatpush3.bf16.msra.mxu1 %v9896_v6  ;;  %8547 = vmatprep.subr.bf16.mxu0 %v9897_v3 }
0x1063   : > { %8575 = vmatprep.subr.bf16.mxu1 %v9899_v10 }
0x1065   : > { %8548 = vmatpush3.bf16.msra.mxu0 %v9898_v14 }
0x1066   : > { %8576 = vmatpush3.bf16.msra.mxu1 %v9900_v30  ;;  %8549 = vmatprep.subr.bf16.mxu0 %v9901_v23 }
0x1067   : > { %8577 = vmatprep.subr.bf16.mxu1 %v9903_v1 }
0x1069   : > { %8550 = vmatpush3.bf16.msra.mxu0 %v9902_v47 }
0x106a   : > { %8578 = vmatpush3.bf16.msra.mxu1 %v9904_v18  ;;  %8551 = vmatprep.subr.bf16.mxu0 %v9905_v11 }
0x106c   : > { %v7024_v9 = vpop.f32.mrf.mxu0 }
0x106d   : > { %v7025_v4 = vadd.f32 %v7024_v9, %v6984_v58  ;;  %8552 = vmatpush3.bf16.msra.mxu0 %v9906_v20  ;;  %7388 = vmatmul.mubr.bf16.vlgmr.msra.gmra.mxu1 %v10978_v12  ;;  %v9914_v12 = vld [vmem:[#allocation19 + $0x818] ss:$12 sps:$4 sm:$0xff]  }
0x106e   : > { %v7026_v8 = vpop.f32.mrf.mxu0  ;;  %8553 = vmatprep.subr.bf16.mxu0 %v9907_v21 }
0x106f   : > { %v7027_v48 = vadd.f32 %v7026_v8, %v6986_v24 }
0x1070   : > { %v7028_v5 = vpop.f32.mrf.mxu0 }
0x1071   : > { %8554 = vmatpush3.bf16.msra.mxu0 %v9908_v25 }
0x1072   : > { %v7029_v26 = vpop.f32.mrf.mxu0  ;;  %8555 = vmatprep.subr.bf16.mxu0 %v9909_v2 }
0x1075   : > { %8556 = vmatpush3.bf16.msra.mxu0 %v9910_v46 }
0x1076   : > { %8585 = vmatprep.subr.bf16.mxu0 %v9911_v29 }
0x1078   : > { %7348 = vmatmul.mubr.bf16.vlgmr.msra.gmra.mxu0 %v10963_v28  ;;  %v9922_v28 = vld [vmem:[#allocation19 + $0x7b8] ss:$12 sps:$4 sm:$0xff]  }
0x1079   : > { %8586 = vmatpush3.bf16.msra.mxu0 %v9912_v34  ;;  %7427 = vmatprep.mubr.bf16.mxu0 %v10995_v13 }
0x107a   : > { %8587 = vmatprep.subr.bf16.mxu0 %v9913_v17 }
0x107d   : > { %8588 = vmatpush3.bf16.msra.mxu0 %v9914_v12 }
0x107e   : > { %8589 = vmatprep.subr.bf16.mxu0 %v9915_v35 }
0x1081   : > { %8590 = vmatpush3.bf16.msra.mxu0 %v9916_v31 }
0x1082   : > { %8591 = vmatprep.subr.bf16.mxu0 %v9917_v38 }
0x1085   : > { %8592 = vmatpush3.bf16.msra.mxu0 %v9918_v39 }
0x1086   : > { %8593 = vmatprep.subr.bf16.mxu0 %v9919_v40 }
0x1089   : > { %8594 = vmatpush3.bf16.msra.mxu0 %v9920_v41 }
0x108a   : > { %8595 = vmatprep.subr.bf16.mxu0 %v9921_v43 }
0x108d   : > { %8596 = vmatpush3.bf16.msra.mxu0 %v9922_v28  ;;  %v7065_v13 = vpop.f32.mrf.mxu1 }
0x108e   : > { %v7066_v50 = vadd.f32 %v7065_v13, %v7025_v4  ;;  %8597 = vmatprep.subr.bf16.mxu0 %v9923_v44 }
0x108f   : > { %v7067_v53 = vpop.f32.mrf.mxu1 }
0x1090   : > { %v7068_v54 = vadd.f32 %v7067_v53, %v7027_v48 }
0x1091   : > { %8598 = vmatpush3.bf16.msra.mxu0 %v9924_v45  ;;  %v7069_v55 = vpop.f32.mrf.mxu1 }
0x1092   : > { %8599 = vmatprep.subr.bf16.mxu0 %v9925_v52 }
0x1093   : > { %v7070_v56 = vpop.f32.mrf.mxu1 }
0x1095   : > { %8600 = vmatpush3.bf16.msra.mxu0 %v9926_v51 }
0x1098   : > { %7428 = vmatmul.mubr.bf16.vlgmr.msra.gmra.mxu0 %v10997_v36 }
0x10ac   : > { %v7106_v57 = vpop.f32.mrf.mxu0 }
0x10ad   : > { %v7107_v32 = vadd.f32 %v7106_v57, %v7066_v50 }
0x10ae   : > { %v7108_v59 = vpop.f32.mrf.mxu0 }
0x10af   : > { %v7109_v22 = vadd.f32 %v7108_v59, %v7068_v54 }
0x10b0   : > { %v7110_v60 = vpop.f32.mrf.mxu0 }
0x10b2   : > { %v7111_v61 = vpop.f32.mrf.mxu0 }
0x10cd   : > { %v7147_v19 = vpop.f32.mrf.mxu1 }
0x10ce   : > { %v7148_v30 = vadd.f32 %v7147_v19, %v7107_v32 }
0x10cf   : > { %v7149_v62 = vpop.f32.mrf.mxu1 }
0x10d0   : > { %v7150_v1 = vadd.f32 %v7149_v62, %v7109_v22 }
0x10d1   : > { %v7151_v63 = vpop.f32.mrf.mxu1 }
0x10d3   : > { %v7152_v16 = vpop.f32.mrf.mxu1 }
0x10ed   : > { %v8491_v0 = vpop.f32.mrf.mxu1 }
0x10ef   : > { %v8492_v6 = vpop.f32.mrf.mxu1 }
0x10f0   : > { %v8493_v3 = vadd.f32 %v8492_v6, %v8491_v0 }
0x10f1   : > { %v8494_v10 = vpop.f32.mrf.mxu1 }
0x10f3   : > { %v8495_v14 = vpop.f32.mrf.mxu1 }
0x10f8   : > { %v7188_v23 = vpop.f32.mrf.mxu0 }
0x10f9   : > { %v7189_v36 = vadd.f32 %v7188_v23, %v7148_v30 }
0x10fa   : > { %v7190_v47 = vpop.f32.mrf.mxu0 }
0x10fb   : > { %v7435_v18 = vadd.f32 %v7189_v36, %v10834_v33  ;;  %v7191_v11 = vadd.f32 %v7190_v47, %v7150_v1  ;;  %v5409_v33 = vrot.slane %v11010_v27, %v10703_v7 }
0x10fc   : > { %v7192_v49 = vpop.f32.mrf.mxu0 }
0x10fd   : > { %7438 = vst [vmem:[%s11025_s3] sm:$0xff] %v7435_v18  ;;  %v7436_v15 = vadd.f32 %v7191_v11, %v10837_v37  ;;  %v7230_v2 = vadd.f32 %v8493_v3, %v5409_v33 }
0x10fe   : > { %v7193_v20 = vpop.f32.mrf.mxu0 }
0x10ff   : > { %7439 = vst [vmem:[%s11025_s3 + $0x8] sm:$0xff] %v7436_v15 }
0x110d   : > { %v8535_v21 = vpop.f32.mrf.mxu1 }
0x110f   : > { %v8536_v58 = vpop.f32.mrf.mxu1 }
0x1110   : > { %v8537_v9 = vadd.f32 %v8536_v58, %v8535_v21 }
0x1111   : > { %v8538_v24 = vpop.f32.mrf.mxu1 }
0x1113   : > { %v8539_v4 = vpop.f32.mrf.mxu1 }
0x1118   : > { %v8513_v25 = vpop.f32.mrf.mxu0 }
0x111a   : > { %v8514_v8 = vpop.f32.mrf.mxu0 }
0x111b   : > { %v8515_v48 = vadd.f32 %v8514_v8, %v8513_v25 }
0x111c   : > { %v8516_v5 = vpop.f32.mrf.mxu0 }
0x111d   : > { %v7270_v46 = vadd.f32 %v8515_v48, %v7230_v2 }
0x111e   : > { %v8517_v26 = vpop.f32.mrf.mxu0 }
0x111f   : > { %v7310_v29 = vadd.f32 %v8537_v9, %v7270_v46 }
0x112d   : > { %v8579_v37 = vpop.f32.mrf.mxu1 }
0x112f   : > { %v8580_v34 = vpop.f32.mrf.mxu1 }
0x1130   : > { %v8581_v41 = vadd.f32 %v8580_v34, %v8579_v37 }
0x1131   : > { %v8582_v17 = vpop.f32.mrf.mxu1 }
0x1133   : > { %v8583_v12 = vpop.f32.mrf.mxu1 }
0x1138   : > { %v8557_v35 = vpop.f32.mrf.mxu0 }
0x113a   : > { %v8558_v31 = vpop.f32.mrf.mxu0 }
0x113b   : > { %v8559_v7 = vadd.f32 %v8558_v31, %v8557_v35 }
0x113c   : > { %v8560_v38 = vpop.f32.mrf.mxu0 }
0x113d   : > { %v7350_v27 = vadd.f32 %v8559_v7, %v7310_v29 }
0x113e   : > { %v8561_v39 = vpop.f32.mrf.mxu0 }
0x113f   : > { %v7390_v28 = vadd.f32 %v8581_v41, %v7350_v27 }
0x1158   : > { %v8601_v40 = vpop.f32.mrf.mxu0 }
0x115a   : > { %v8602_v43 = vpop.f32.mrf.mxu0 }
0x115b   : > { %v8603_v44 = vadd.f32 %v8602_v43, %v8601_v40 }
0x115c   : > { %v8604_v13 = vpop.f32.mrf.mxu0 }
0x115d   : > { %v7430_v45 = vadd.f32 %v8603_v44, %v7390_v28 }
0x115e   : > { %v8605_v50 = vpop.f32.mrf.mxu0 }
0x115f   : > { %v7437_v52 = vadd.f32 %v7430_v45, %v10840_v42 }
0x1161   : > { %7440 = vst [vmem:[%s11025_s3 + $0x10] sm:$0xff] %v7437_v52 }
0x1162   : > { %10277 = shalt.err (!%p10274_p11)
}
0x1163   : > { %s10278_s16 = scalar_lea.hbm %s7454_s15, 384  ;;  %s10282_s6 = scalar_lea.hbm %s11082_s12, 768 }
0x1164   : > { %p10279_p10 = scmp.ne.s32.totalorder %s7454_s15, %s10278_s16  ;;  %p10283_p2 = scmp.lt.s32.totalorder %s7454_s15, %s11082_s12 }
0x1165   : > { %p10284_p4 = scmp.lt.s32.totalorder %s10282_s6, %s10278_s16 }
0x1166   : > { %p10280_p12 = pnand %p10279_p10, %p11127_p13 }
0x1167   : > { %p10285_p5 = por %p10284_p4, %p10283_p2 }
0x1168   : > { %p10281_p0 = pneg %p10280_p12 }
0x116a   : > { %p10286_p8 = pnand %p10285_p5, %p10281_p0 }
0x116c   : > { %10289 = shalt.err (!%p10286_p8)
}
0x116d   : > { %8705 = dma.vmem_to_hbm [thread:$0]  (%p11127_p13), %s7457_s20, 384, %s7454_s15, %s7442_s25  }
0x116e PF: > { %s7468_s3 = sand.u32 1, %s10340_s21   ;;  %p11128_p6 = scmp.ne.s32.totalorder %s11111_s1, 0 }
0x116f   : > { %p11129_p1 = scmp.ge.s32.totalorder %s10352_s24, 2  ;;  %s7469_s28 = scalar_lea.sflag [#allocation4], %s7468_s3 }
0x1171   : > { %p8746_p3 = pnand %p11129_p1, %p11128_p6 }
0x1173   : > { %p8747_p7 = pneg %p8746_p3 }
0x1175   : > { %10335 = dma.done.wait (%p8747_p7), %s7469_s28, 384  }
0x1176   : > { %10337 = vsyncadd (%p8747_p7), %s7469_s28, 4294966912  ;;  %p31_p9 = scmp.ge.s32.totalorder %s10587_s13, 4   ;;  %s11130_s21 = smov %s10344_s22 }
0x1177   : > { %s11131_s22 = smov %s10348_s23  ;;  %s11132_s23 = smov %s10599_s17 }
0x1178   : > { %s11133_s24 = smov %s10587_s13  ;;  %33 = sbr.rel (!%p31_p9) target bundleno = 19 (0x13), region = 157 }
0x117d   :  { %7474 = vsyncpa [#allocation3], 1 }
0x117e   :  { %7476 = vsyncpa [#allocation3 + $0x1], 1 }
0x117f   :  { %7477 = vsyncpa [#allocation6], 1 }
0x1180   :  { %7478 = vsyncpa [#allocation9], 1 }
0x1181   :  { %7479 = vsyncpa [#allocation12], 1 }
0x1182   :  { %7480 = vsyncpa [#allocation15], 1 }
0x1183   :  { %7481 = vsyncpa [#allocation18], 1 }
0x1184   :  { %7482 = vsyncpa [#allocation21], 1 }
0x1185   :  { %7483 = vsyncpa [#allocation4], 1 }
0x1186   :  { %7485 = vsyncpa [#allocation4 + $0x1], 1 }

// kernel: tpu_custom_call.1
= control target key start
LH: loop header
LB: loop body
LE: loop exit
PB: predicated region body
PF: predicated region fallthrough
CT: control target
= control target key end

     0   :  { %s11070_s0 = inlined_call_operand.hbm [shape: f32[2,8,384], index: 0, kind: input, shape index: {}]   ;;  %s11071_s1 = inlined_call_operand.hbm [shape: f32[1,384], index: 1, kind: input, shape index: {}]   ;;  %s11072_s2 = inlined_call_operand.hbm [shape: f32[1,384], index: 2, kind: input, shape index: {}]   ;;  %s11073_s3 = inlined_call_operand.hbm [shape: bf16[384,768], index: 3, kind: input, shape index: {}]   ;;  %s11074_s4 = inlined_call_operand.hbm [shape: bf16[256,384], index: 4, kind: input, shape index: {}]   ;;  %s11075_s5 = inlined_call_operand.hbm [shape: f32[1,384], index: 5, kind: input, shape index: {}]   ;;  %s11076_s6 = inlined_call_operand.hbm [shape: f32[1,384], index: 6, kind: input, shape index: {}]   ;;  %s11077_s7 = inlined_call_operand.hbm [shape: f32[1,384], index: 7, kind: input, shape index: {}]   ;;  %s11078_s8 = inlined_call_operand.hbm [shape: bf16[384,1536], index: 8, kind: input, shape index: {}]   ;;  %s11079_s9 = inlined_call_operand.hbm [shape: f32[1,1536], index: 9, kind: input, shape index: {}]   ;;  %s11080_s10 = inlined_call_operand.hbm [shape: bf16[1536,384], index: 10, kind: input, shape index: {}]   ;;  %s11081_s11 = inlined_call_operand.hbm [shape: f32[1,384], index: 11, kind: input, shape index: {}]   ;;  %s11082_s12 = inlined_call_operand.hbm [shape: f32[2,8,384], index: 12, kind: output, shape index: {}]  }
   0x1   :  { %11089 = sst [smem:[#allocation31_spill]] %s11071_s1 }
   0x2   :  { %11090 = sst [smem:[#allocation32_spill]] %s11072_s2 }
   0x3   :  { %11091 = sst [smem:[#allocation33_spill]] %s11073_s3 }
   0x4   :  { %11092 = sst [smem:[#allocation34_spill]] %s11074_s4 }
   0x5   :  { %11093 = sst [smem:[#allocation35_spill]] %s11075_s5 }
   0x6   :  { %11094 = sst [smem:[#allocation36_spill]] %s11076_s6 }
   0x7   :  { %11095 = sst [smem:[#allocation37_spill]] %s11077_s7 }
   0x8   :  { %17 = vsyncpa [#allocation3], 0 }
   0x9   :  { %19 = vsyncpa [#allocation3 + $0x1], 0 }
   0xa   :  { %20 = vsyncpa [#allocation6], 0 }
   0xb   :  { %21 = vsyncpa [#allocation9], 0 }
   0xc   :  { %22 = vsyncpa [#allocation12], 0 }
   0xd   :  { %23 = vsyncpa [#allocation15], 0 }
   0xe   :  { %24 = vsyncpa [#allocation18], 0 }
   0xf   :  { %25 = vsyncpa [#allocation21], 0 }
  0x10   :  { %26 = vsyncpa [#allocation4], 0 }
  0x11   :  { %28 = vsyncpa [#allocation4 + $0x1], 0  ;;  %s10442_s21 = smov 0   ;;  %s10444_s22 = smov 0  }
  0x12   :  { %s10446_s23 = smov 0   ;;  %s10448_s24 = smov 0  }
  0x13 LB: > { %s10354_s25 = smov [#allocation5]   ;;  %s10463_s27 = sadd.s32 4294967295, %s10352_s24   ;;  %s10352_s24 = sphi %s10448_s24, %s11133_s24   ;;  %s10348_s23 = sphi %s10446_s23, %s11132_s23   ;;  %s10344_s22 = sphi %s10444_s22, %s11131_s22   ;;  %s10340_s21 = sphi %s10442_s21, %s11130_s21  }
  0x14   : > { %s335_s26 = sshll.u32 %s10354_s25, 4  ;;  %p7632_p0 = scmp.ge.s32.totalorder %s10352_s24, 1  ;;  %s336_s26 = int_to_ptr.vmem [resolvable:$true] %s335_s26 }
  0x15   : > { %p11083_p1 = scmp.eq.s32.totalorder %s10463_s27, 0  ;;  %p322_p2 = scmp.lt.s32.totalorder %s10352_s24, 3 }
  0x16   : > { %s10355_s29 = smov [#allocation8]   ;;  %s10356_s14 = smov [#allocation11]  }
  0x17   : > { %p10468_p3 = pnand %p7632_p0, %p322_p2  ;;  %s356_s30 = sshll.u32 %s10355_s29, 4  ;;  %s10475_s30 = int_to_ptr.vmem [resolvable:$true] %s356_s30 }
  0x18   : > { %s383_s15 = sshll.u32 %s10356_s14, 4  ;;  %s9961_s17 = scalar_lea.vmem %s336_s26, 48  ;;  %s10483_s15 = int_to_ptr.vmem [resolvable:$true] %s383_s15 }
  0x19   : > { %s11096_s28 = scalar_select %p10468_p3, 1, 0 }
  0x1a   : > { %p8707_p5 = pneg %p10468_p3  ;;  %p9962_p8 = scmp.ne.s32.totalorder %s336_s26, %s9961_s17 }
  0x1b   : > { %s9968_s18 = scalar_lea.vmem %s336_s26, 64  ;;  %p9969_p11 = scmp.lt.s32.totalorder %s336_s26, %s336_s26 }
  0x1c   : > { %p10479_p6 = pnand %p8707_p5, %p11083_p1  ;;  %p9970_p12 = scmp.lt.s32.totalorder %s9968_s18, %s9961_s17 }
  0x1e   : > { %p10487_p7 = pneg %p10479_p6  ;;  %p9971_p13 = por %p9970_p12, %p9969_p11 }
  0x20   : > { %p9964_p9 = pnand %p9962_p8, %p10487_p7 }
  0x22   : > { %p9965_p10 = pneg %p9964_p9 }
  0x24   : > { %p9972_p0 = pnand %p9971_p13, %p9965_p10 }
  0x26   : > { %9975 = shalt.err (!%p9972_p0)
}
  0x27   : > { %s11099_s1 = sld [smem:[#allocation31_spill]]  ;;  %s9987_s25 = scalar_lea.vmem %s10475_s30, 18432 }
  0x28   : > { %p9988_p2 = scmp.ne.s32.totalorder %s10475_s30, %s9987_s25  ;;  %p9995_p9 = scmp.lt.s32.totalorder %s10475_s30, %s10475_s30 }
  0x29   : > { %p9996_p11 = scmp.lt.s32.totalorder %s9987_s25, %s9987_s25 }
  0x2a   : > { %p9990_p5 = pnand %p9988_p2, %p10487_p7 }
  0x2b   : > { %p9997_p10 = por %p9996_p11, %p9995_p9 }
  0x2c   : > { %p9991_p8 = pneg %p9990_p5 }
  0x2d   : > { %8710 = dma.hbm_to_vmem [thread:$0]  (!%p10479_p6), %s11099_s1, 48, %s336_s26, [#allocation6]  }
  0x2e   : > { %p9998_p12 = pnand %p9997_p10, %p9991_p8 }
  0x30   : > { %10001 = shalt.err (!%p9998_p12)
}
  0x31   : > { %s10357_s29 = smov 384   ;;  %s10358_s26 = smov 24  }
  0x32   : > { %s11100_s3 = sld [smem:[#allocation33_spill]]  ;;  %s10013_s18 = scalar_lea.vmem %s10483_s15, 48 }
  0x33   : > { %p10014_p13 = scmp.ne.s32.totalorder %s10483_s15, %s10013_s18  ;;  %s10020_s19 = scalar_lea.vmem %s10483_s15, 64 }
  0x34   : > { %p10021_p5 = scmp.lt.s32.totalorder %s10483_s15, %s10483_s15  ;;  %p10022_p8 = scmp.lt.s32.totalorder %s10020_s19, %s10013_s18 }
  0x35   : > { %p10016_p0 = pnand %p10014_p13, %p10487_p7 }
  0x36   : > { %p10023_p9 = por %p10022_p8, %p10021_p5 }
  0x37   : > { %p10017_p2 = pneg %p10016_p0 }
  0x38   : > { %8716 = dma.hbm_to_vmem [thread:$0]  (!%p10479_p6), %s11100_s3, 18432, %s10475_s30, [#allocation9], %s10357_s29, %s10357_s29, %s10358_s26  }
  0x39   : > { %p10024_p11 = pnand %p10023_p9, %p10017_p2 }
  0x3b   : > { %10027 = shalt.err (!%p10024_p11)
}
  0x3c   : > { %s11101_s5 = sld [smem:[#allocation35_spill]]  ;;  %s10359_s30 = smov [#allocation14]  }
  0x3d   : > { %s405_s29 = sshll.u32 %s10359_s30, 4  ;;  %s10360_s26 = smov [#allocation17]   ;;  %s406_s29 = int_to_ptr.vmem [resolvable:$true] %s405_s29 }
  0x3e   : > { %s429_s14 = sshll.u32 %s10360_s26, 4  ;;  %s10039_s17 = scalar_lea.vmem %s406_s29, 48  ;;  %s430_s14 = int_to_ptr.vmem [resolvable:$true] %s429_s14 }
  0x3f   : > { %p10040_p10 = scmp.ne.s32.totalorder %s406_s29, %s10039_s17  ;;  %s10046_s18 = scalar_lea.vmem %s406_s29, 64 }
  0x40   : > { %p10047_p0 = scmp.lt.s32.totalorder %s406_s29, %s406_s29  ;;  %p10048_p2 = scmp.lt.s32.totalorder %s10046_s18, %s10039_s17 }
  0x41   : > { %p10042_p12 = pnand %p10040_p10, %p10487_p7 }
  0x42   : > { %8722 = dma.hbm_to_vmem [thread:$0]  (!%p10479_p6), %s11101_s5, 48, %s10483_s15, [#allocation12]  }
  0x43   : > { %p10043_p13 = pneg %p10042_p12  ;;  %p10049_p5 = por %p10048_p2, %p10047_p0 }
  0x45   : > { %p10050_p8 = pnand %p10049_p5, %p10043_p13 }
  0x47   : > { %10053 = shalt.err (!%p10050_p8)
}
  0x48   : > { %s11102_s7 = sld [smem:[#allocation37_spill]]  ;;  %s10065_s20 = scalar_lea.vmem %s430_s14, 192 }
  0x49   : > { %p10066_p9 = scmp.ne.s32.totalorder %s430_s14, %s10065_s20  ;;  %p10073_p12 = scmp.lt.s32.totalorder %s430_s14, %s430_s14 }
  0x4a   : > { %p10074_p4 = scmp.lt.s32.totalorder %s10065_s20, %s10065_s20 }
  0x4b   : > { %p10068_p11 = pnand %p10066_p9, %p10487_p7 }
  0x4c   : > { %p10075_p1 = por %p10074_p4, %p10073_p12 }
  0x4d   : > { %p10069_p10 = pneg %p10068_p11 }
  0x4e   : > { %8728 = dma.hbm_to_vmem [thread:$0]  (!%p10479_p6), %s11102_s7, 48, %s406_s29, [#allocation15]  }
  0x4f   : > { %p10076_p3 = pnand %p10075_p1, %p10069_p10 }
  0x51   : > { %10079 = shalt.err (!%p10076_p3)
}
  0x52   : > { %8734 = dma.hbm_to_vmem [thread:$0]  (!%p10479_p6), %s11079_s9, 192, %s430_s14, [#allocation18]  }
  0x53   : > { %s10361_s26 = smov [#allocation7]   ;;  %s10362_s17 = smov [#allocation10]  }
  0x54   : > { %s346_s29 = sshll.u32 %s10361_s26, 4  ;;  %s369_s18 = sshll.u32 %s10362_s17, 4  ;;  %s347_s29 = int_to_ptr.vmem [resolvable:$true] %s346_s29  ;;  %s370_s18 = int_to_ptr.vmem [resolvable:$true] %s369_s18 }
  0x55   : > { %s10091_s19 = scalar_lea.vmem %s347_s29, 48  ;;  %s10098_s15 = scalar_lea.vmem %s347_s29, 64 }
  0x56   : > { %p10092_p13 = scmp.ne.s32.totalorder %s347_s29, %s10091_s19  ;;  %p10099_p1 = scmp.lt.s32.totalorder %s347_s29, %s347_s29 }
  0x57   : > { %p10100_p3 = scmp.lt.s32.totalorder %s10098_s15, %s10091_s19 }
  0x58   : > { %p10094_p0 = pnand %p10092_p13, %p10487_p7 }
  0x59   : > { %p10101_p4 = por %p10100_p3, %p10099_p1 }
  0x5a   : > { %p10095_p2 = pneg %p10094_p0 }
  0x5c   : > { %p10102_p5 = pnand %p10101_p4, %p10095_p2 }
  0x5e   : > { %10105 = shalt.err (!%p10102_p5)
}
  0x5f   : > { %s11103_s2 = sld [smem:[#allocation32_spill]]  ;;  %s10117_s25 = scalar_lea.vmem %s370_s18, 6144 }
  0x60   : > { %p10118_p8 = scmp.ne.s32.totalorder %s370_s18, %s10117_s25  ;;  %p10125_p10 = scmp.lt.s32.totalorder %s370_s18, %s370_s18 }
  0x61   : > { %p10126_p12 = scmp.lt.s32.totalorder %s10117_s25, %s10117_s25 }
  0x62   : > { %p10120_p9 = pnand %p10118_p8, %p10487_p7 }
  0x63   : > { %p10127_p13 = por %p10126_p12, %p10125_p10 }
  0x64   : > { %p10121_p11 = pneg %p10120_p9 }
  0x65   : > { %8713 = dma.hbm_to_vmem [thread:$0]  (!%p10479_p6), %s11103_s2, 48, %s347_s29, [#allocation6]  }
  0x66   : > { %p10128_p0 = pnand %p10127_p13, %p10121_p11 }
  0x68   : > { %10131 = shalt.err (!%p10128_p0)
}
  0x69   : > { %s11085_s30 = smov 192   ;;  %s11086_s26 = smov 12  }
  0x6a   : > { %s11104_s4 = sld [smem:[#allocation34_spill]]  ;;  %s10365_s19 = smov [#allocation13]  }
  0x6b   : > { %s394_s15 = sshll.u32 %s10365_s19, 4  ;;  %s10366_s20 = smov [#allocation16]   ;;  %s395_s15 = int_to_ptr.vmem [resolvable:$true] %s394_s15 }
  0x6c   : > { %s415_s14 = sshll.u32 %s10366_s20, 4  ;;  %s10143_s25 = scalar_lea.vmem %s395_s15, 48  ;;  %s416_s14 = int_to_ptr.vmem [resolvable:$true] %s415_s14 }
  0x6d   : > { %p10144_p2 = scmp.ne.s32.totalorder %s395_s15, %s10143_s25  ;;  %s10150_s1 = scalar_lea.vmem %s395_s15, 64 }
  0x6e   : > { %p10151_p4 = scmp.lt.s32.totalorder %s395_s15, %s395_s15  ;;  %p10152_p5 = scmp.lt.s32.totalorder %s10150_s1, %s10143_s25 }
  0x6f   : > { %p10146_p1 = pnand %p10144_p2, %p10487_p7 }
  0x70   : > { %8719 = dma.hbm_to_vmem [thread:$0]  (!%p10479_p6), %s11104_s4, 6144, %s370_s18, [#allocation9], %s11085_s30, %s11085_s30, %s11086_s26  }
  0x71   : > { %p10147_p3 = pneg %p10146_p1  ;;  %p10153_p8 = por %p10152_p5, %p10151_p4 }
  0x73   : > { %p10154_p9 = pnand %p10153_p8, %p10147_p3 }
  0x75   : > { %10157 = shalt.err (!%p10154_p9)
}
  0x76   : > { %s11105_s6 = sld [smem:[#allocation36_spill]]  ;;  %s10169_s17 = scalar_lea.vmem %s416_s14, 36864 }
  0x77   : > { %p10170_p11 = scmp.ne.s32.totalorder %s416_s14, %s10169_s17  ;;  %p10177_p13 = scmp.lt.s32.totalorder %s416_s14, %s416_s14 }
  0x78   : > { %p10178_p0 = scmp.lt.s32.totalorder %s10169_s17, %s10169_s17 }
  0x79   : > { %p10172_p10 = pnand %p10170_p11, %p10487_p7 }
  0x7a   : > { %p10179_p2 = por %p10178_p0, %p10177_p13 }
  0x7b   : > { %p10173_p12 = pneg %p10172_p10 }
  0x7c   : > { %8725 = dma.hbm_to_vmem [thread:$0]  (!%p10479_p6), %s11105_s6, 48, %s395_s15, [#allocation12]  }
  0x7d   : > { %p10180_p1 = pnand %p10179_p2, %p10173_p12 }
  0x7f   : > { %10183 = shalt.err (!%p10180_p1)
}
  0x80   : > { %s10367_s1 = smov 768   ;;  %s10368_s19 = smov 48  }
  0x81   : > { %8731 = dma.hbm_to_vmem [thread:$0]  (!%p10479_p6), %s11078_s8, 36864, %s416_s14, [#allocation15], %s10367_s1, %s10367_s1, %s10368_s19  }
  0x82   : > { %s10369_s15 = smov [#allocation19]   ;;  %s10370_s18 = smov [#allocation20]  }
  0x83   : > { %s439_s29 = sshll.u32 %s10369_s15, 4  ;;  %s453_s30 = sshll.u32 %s10370_s18, 4  ;;  %s440_s29 = int_to_ptr.vmem [resolvable:$true] %s439_s29  ;;  %s454_s30 = int_to_ptr.vmem [resolvable:$true] %s453_s30 }
  0x84   : > { %s10195_s26 = scalar_lea.vmem %s440_s29, 36864  ;;  %p10203_p8 = scmp.lt.s32.totalorder %s440_s29, %s440_s29 }
  0x85   : > { %p10196_p3 = scmp.ne.s32.totalorder %s440_s29, %s10195_s26  ;;  %p10204_p9 = scmp.lt.s32.totalorder %s10195_s26, %s10195_s26 }
  0x87   : > { %p10198_p4 = pnand %p10196_p3, %p10487_p7  ;;  %p10205_p11 = por %p10204_p9, %p10203_p8 }
  0x89   : > { %p10199_p5 = pneg %p10198_p4 }
  0x8b   : > { %p10206_p10 = pnand %p10205_p11, %p10199_p5 }
  0x8d   : > { %10209 = shalt.err (!%p10206_p10)
}
  0x8e   : > { %s11106_s17 = smov 12   ;;  %s11107_s20 = smov 192  }
  0x8f   : > { %8737 = dma.hbm_to_vmem [thread:$0]  (!%p10479_p6), %s11080_s10, 36864, %s440_s29, [#allocation18], %s11107_s20, %s11107_s20, %s11106_s17  }
  0x90   : > { %s10221_s19 = scalar_lea.vmem %s454_s30, 48  ;;  %s10228_s26 = scalar_lea.vmem %s454_s30, 64 }
  0x91   : > { %p10222_p12 = scmp.ne.s32.totalorder %s454_s30, %s10221_s19  ;;  %p10229_p2 = scmp.lt.s32.totalorder %s454_s30, %s454_s30 }
  0x92   : > { %p10230_p1 = scmp.lt.s32.totalorder %s10228_s26, %s10221_s19 }
  0x93   : > { %p10224_p13 = pnand %p10222_p12, %p10487_p7 }
  0x94   : > { %p10231_p3 = por %p10230_p1, %p10229_p2 }
  0x95   : > { %p10225_p0 = pneg %p10224_p13 }
  0x97   : > { %p10232_p4 = pnand %p10231_p3, %p10225_p0 }
  0x99   : > { %10235 = shalt.err (!%p10232_p4)
}
  0x9a   : > { %8740 = dma.hbm_to_vmem [thread:$0]  (!%p10479_p6), %s11081_s11, 48, %s454_s30, [#allocation21]  }
  0x9b   : > { %s7631_s16 = sadd.s32 4294967294, %s10352_s24   ;;  %s10587_s13 = sadd.s32 1, %s10352_s24  }
  0x9c   : > { %s41_s29 = sadd.s32 1, %s10348_s23  ;;  %s38_s18 = ssub.s32 %s10352_s24, %s10587_s13 }
  0x9d   : > { %p48_p7 = scmp.ne.s32.totalorder %s10348_s23, %s10344_s22  ;;  %p39_p5 = scmp.eq.s32.totalorder %s38_s18, 0 }
  0x9e   : > { %p49_p8 = scmp.eq.s32.totalorder %s10352_s24, 0  ;;  %p54_p9 = scmp.ne.s32.totalorder %s10344_s22, %s10340_s21 }
  0x9f   : > { %p309_p11 = scmp.eq.s32.totalorder %s10463_s27, 1  ;;  %p11108_p12 = scmp.eq.s32.totalorder %s10463_s27, 0 }
  0xa0   : > { %s10599_s17 = scalar_select %p39_p5, %s10348_s23, %s41_s29  }
  0xa1   : > { %p50_p10 = por %p49_p8, %p48_p7  ;;  %p10603_p13 = por %p11108_p12, %p54_p9 }
  0xa2   : > { %p10607_p6 = por %p309_p11, %p48_p7  ;;  %p315_p0 = scmp.eq.s32.totalorder %s7631_s16, 1 }
  0xa3   : > { %s11109_s20 = scalar_select %p10603_p13, 1, 0 }
  0xa4   : > { %s11110_s30 = scalar_select %p10607_p6, 1, 0 }
  0xa5   : > { %p8760_p2 = scmp.lt.s32.totalorder %s10352_s24, 2  ;;  %s464_s14 = sand.u32 1, %s10348_s23  }
  0xa6   : > { %p10613_p1 = por %p315_p0, %p54_p9  ;;  %s8655_s19 = smul.u32 24, %s464_s14 }
  0xa7   : > { %p10617_p3 = pnand %p8760_p2, %p50_p10  ;;  %s8656_s25 = smul.u32 384, %s10352_s24 }
  0xa8   : > { %s11111_s1 = scalar_select %p10613_p1, 1, 0 }
  0xa9   : > { %s10625_s18 = scalar_lea.hbm %s11070_s0, %s8656_s25  ;;  %s468_s16 = scalar_lea.vmem [#allocation2], %s8655_s19 }
  0xaa   : > { %s476_s2 = sshll.u32 %s468_s16, 4  ;;  %s465_s3 = scalar_lea.sflag [#allocation3], %s464_s14  ;;  %s477_s2 = int_to_ptr.vmem [resolvable:$true] %s476_s2 }
  0xab   : > { %s10236_s4 = scalar_lea.hbm %s10625_s18, 384  ;;  %p10238_p7 = pneg %p10617_p3 }
  0xac   : > { %p10237_p4 = scmp.ne.s32.totalorder %s10625_s18, %s10236_s4  ;;  %s10241_s7 = scalar_lea.hbm %s11070_s0, 768 }
  0xad   : > { %p10242_p9 = scmp.lt.s32.totalorder %s10625_s18, %s11070_s0  ;;  %p10243_p11 = scmp.lt.s32.totalorder %s10241_s7, %s10236_s4 }
  0xae   : > { %p10239_p5 = pnand %p10238_p7, %p10237_p4 }
  0xaf   : > { %p10244_p10 = por %p10243_p11, %p10242_p9 }
  0xb0   : > { %p10240_p8 = pneg %p10239_p5 }
  0xb2   : > { %p10245_p12 = pnand %p10244_p10, %p10240_p8 }
  0xb4   : > { %10248 = shalt.err (!%p10245_p12)
}
  0xb5   : > { %s10249_s19 = scalar_lea.vmem %s477_s2, 384  ;;  %s10371_s14 = smov [#allocation2]  }
  0xb6   : > { %p10250_p0 = scmp.ne.s32.totalorder %s477_s2, %s10249_s19  ;;  %s10254_s29 = sshll.u32 %s10371_s14, 4  ;;  %s10255_s29 = int_to_ptr.vmem [resolvable:$false] %s10254_s29 }
  0xb7   : > { %s10256_s16 = scalar_lea.vmem %s10255_s29, 768  ;;  %p10257_p4 = scmp.lt.s32.totalorder %s477_s2, %s10255_s29 }
  0xb8   : > { %p10252_p2 = pnand %p10250_p0, %p10238_p7  ;;  %p10258_p5 = scmp.lt.s32.totalorder %s10256_s16, %s10249_s19 }
  0xba   : > { %p10253_p1 = pneg %p10252_p2  ;;  %p10259_p6 = por %p10258_p5, %p10257_p4 }
  0xbc   : > { %p10260_p13 = pnand %p10259_p6, %p10253_p1 }
  0xbe   : > { %10263 = shalt.err (!%p10260_p13)
}
  0xbf   : > { %8744 = dma.hbm_to_vmem [thread:$0]  (!%p10617_p3), %s10625_s18, 384, %s477_s2, %s465_s3  }
  0xc0   : > { %p11113_p8 = scmp.ne.s32.totalorder %s11096_s28, 0 }
  0xc1   : > { %s10644_s4 = sand.u32 (!%p11113_p8), 1, %s10344_s22   ;;  %p11114_p13 = scmp.ne.s32.totalorder (!%p11113_p8), %s11109_s20, 0 }
  0xc2   : > { %485 = sbr.rel (%p11113_p8) target bundleno = 4462 (0x116e), region = 68  ;;  %s488_s6 = scalar_lea.sflag (!%p11113_p8), [#allocation3], %s10644_s4 }
  0xc3   : > { %s8657_s5 = smul.u32 (!%p11113_p8), 24, %s10644_s4 }
  0xc5   : > { %s10650_s7 = scalar_lea.vmem (!%p11113_p8), [#allocation2], %s8657_s5 }
  0xc7   : > { %10307 = dma.done.wait (%p11114_p13), %s488_s6, 384  }
  0xc8   : > { %10309 = vsyncadd (%p11114_p13), %s488_s6, 4294966912  ;;  %p11115_p6 = scmp.eq.s32.totalorder %s10463_s27, 0 }
  0xca   : > { %10311 = dma.done.wait (%p11115_p6), [#allocation6], 96   ;;  %p11116_p1 = pmov %p11115_p6 }
  0xcc   : > { %10313 = vsyncadd (%p11116_p1), [#allocation6], 4294967200  ;;  %p11117_p3 = pmov %p11116_p1 }
  0xcd   : > { %p11118_p7 = pmov %p11116_p1 }
  0xce   : > { %10315 = dma.done.wait (%p11117_p3), [#allocation9], 24576  }
  0xcf   : > { %10317 = vsyncadd (%p11118_p7), [#allocation9], 4294942720  ;;  %p11119_p9 = pmov %p11116_p1 }
  0xd0   : > { %p11120_p11 = pmov %p11116_p1 }
  0xd1   : > { %10319 = dma.done.wait (%p11119_p9), [#allocation12], 96  }
  0xd2   : > { %10321 = vsyncadd (%p11120_p11), [#allocation12], 4294967200  ;;  %p11121_p10 = pmov %p11116_p1 }
  0xd3   : > { %p11122_p12 = pmov %p11116_p1 }
  0xd4   : > { %10323 = dma.done.wait (%p11121_p10), [#allocation15], 36912  }
  0xd5   : > { %10325 = vsyncadd (%p11122_p12), [#allocation15], 4294930384  ;;  %p11123_p0 = pmov %p11116_p1 }
  0xd7   : > { %10327 = dma.done.wait (%p11123_p0), [#allocation18], 37056   ;;  %p11124_p2 = pmov %p11123_p0 }
  0xd8   : > { %p11125_p4 = pmov %p11123_p0 }
  0xd9   : > { %10329 = vsyncadd (%p11124_p2), [#allocation18], 4294930240 }
  0xda   : > { %10331 = dma.done.wait (%p11125_p4), [#allocation21], 48   ;;  %p11126_p5 = pmov %p11123_p0 }
  0xdb   : > { %v577_v0 = vld [vmem:[%s10650_s7] sm:$0xff]  ;;  %v578_v1 = vld [vmem:[%s10650_s7 + $0x8] sm:$0xff]  ;;  %v579_v2 = vld [vmem:[%s10650_s7 + $0x10] sm:$0xff]  ;;  %v10372_v58 = vmov 0   ;;  %vm10374_vm0 = vmmov 0   ;;  %vm1762_vm1 = vcmask 523264  }
  0xdc   : > { %10333 = vsyncadd (%p11126_p5), [#allocation21], 4294967248  ;;  %v582_v3 = vadd.f32 %v578_v1, %v577_v0  ;;  %v8831_v5 = vld [vmem:[#allocation8 + $0x154] ss:$24 sps:$4 sm:$0xff]   ;;  %v8833_v6 = vld [vmem:[#allocation8 + $0x150] ss:$24 sps:$4 sm:$0xff]   ;;  %1582 = vmatprep.mubr.bf16.mxu1 %v10372_v58 }
  0xdd   : > { %v8834_v7 = vld [vmem:[#allocation8 + $0x124] ss:$24 sps:$4 sm:$0xff]   ;;  %1509 = vmatprep.subr.bf16.mxu0 %v8831_v5  ;;  %v8836_v8 = vld [vmem:[#allocation8 + $0x120] ss:$24 sps:$4 sm:$0xff]   ;;  %v8837_v9 = vld [vmem:[#allocation8 + $0xf4] ss:$24 sps:$4 sm:$0xff]  }
  0xde   : > { %v583_v4 = vadd.f32 %v582_v3, %v579_v2  ;;  %1510 = vmatpush1.bf16.msra.mxu0 %v8833_v6  ;;  %v8855_v10 = vld [vmem:[#allocation8 + $0x454] ss:$24 sps:$4 sm:$0xff]   ;;  %v8859_v11 = vld [vmem:[#allocation8 + $0x450] ss:$24 sps:$4 sm:$0xff]   ;;  %v8861_v12 = vld [vmem:[#allocation8 + $0x424] ss:$24 sps:$4 sm:$0xff]  }
  0xdf   : > { %1511 = vmatprep.subr.bf16.mxu0 %v8834_v7  ;;  %v8839_v13 = vld [vmem:[#allocation8 + $0xf0] ss:$24 sps:$4 sm:$0xff]   ;;  %v8840_v14 = vld [vmem:[#allocation8 + $0xc4] ss:$24 sps:$4 sm:$0xff]   ;;  %1550 = vmatprep.subr.bf16.mxu1 %v8855_v10  ;;  %v8865_v15 = vld [vmem:[#allocation8 + $0x420] ss:$24 sps:$4 sm:$0xff]  }
  0xe0   : > { %584 = vadd.xlane.f32.xlu0 %v583_v4  ;;  %1551 = vmatpush1.bf16.msra.mxu1 %v8859_v11  ;;  %v8842_v16 = vld [vmem:[#allocation8 + $0xc0] ss:$24 sps:$4 sm:$0xff]   ;;  %v8843_v17 = vld [vmem:[#allocation8 + $0x94] ss:$24 sps:$4 sm:$0xff]   ;;  %v8845_v18 = vld [vmem:[#allocation8 + $0x90] ss:$24 sps:$4 sm:$0xff]  }
  0xe1   : > { %1552 = vmatprep.subr.bf16.mxu1 %v8861_v12  ;;  %v8846_v19 = vld [vmem:[#allocation8 + $0x64] ss:$24 sps:$4 sm:$0xff]   ;;  %v8848_v20 = vld [vmem:[#allocation8 + $0x60] ss:$24 sps:$4 sm:$0xff]   ;;  %v8849_v21 = vld [vmem:[#allocation8 + $0x34] ss:$24 sps:$4 sm:$0xff]  }
  0xe2   : > { %1512 = vmatpush1.bf16.msra.mxu0 %v8836_v8  ;;  %v8851_v22 = vld [vmem:[#allocation8 + $0x30] ss:$24 sps:$4 sm:$0xff]   ;;  %v8852_v23 = vld [vmem:[#allocation8 + $0x4] ss:$24 sps:$4 sm:$0xff]   ;;  %v8854_v24 = vld [vmem:[#allocation8] ss:$24 sps:$4 sm:$0xff]  }
  0xe3   : > { %1513 = vmatprep.subr.bf16.mxu0 %v8837_v9  ;;  %v8857_v25 = vld [vmem:[#allocation8 + $0x2d4] ss:$24 sps:$4 sm:$0xff]   ;;  %v8860_v26 = vld [vmem:[#allocation8 + $0x2d0] ss:$24 sps:$4 sm:$0xff]   ;;  %v8863_v27 = vld [vmem:[#allocation8 + $0x2a4] ss:$24 sps:$4 sm:$0xff]  }
  0xe4   : > { %1553 = vmatpush1.bf16.msra.mxu1 %v8865_v15  ;;  %v8866_v28 = vld [vmem:[#allocation8 + $0x2a0] ss:$24 sps:$4 sm:$0xff]   ;;  %v8867_v39 = vld [vmem:[#allocation8 + $0x3f4] ss:$24 sps:$4 sm:$0xff]   ;;  %v8871_v41 = vld [vmem:[#allocation8 + $0x3f0] ss:$24 sps:$4 sm:$0xff]  }
  0xe5   : > { %v8869_v40 = vld [vmem:[#allocation8 + $0x274] ss:$24 sps:$4 sm:$0xff]   ;;  %1554 = vmatprep.subr.bf16.mxu1 %v8867_v39  ;;  %v8872_v42 = vld [vmem:[#allocation8 + $0x270] ss:$24 sps:$4 sm:$0xff]   ;;  %v8873_v43 = vld [vmem:[#allocation8 + $0x3c4] ss:$24 sps:$4 sm:$0xff]  }
  0xe6   : > { %1514 = vmatpush1.bf16.msra.mxu0 %v8839_v13  ;;  %v8875_v44 = vld [vmem:[#allocation8 + $0x244] ss:$24 sps:$4 sm:$0xff]   ;;  %v8877_v45 = vld [vmem:[#allocation8 + $0x3c0] ss:$24 sps:$4 sm:$0xff]   ;;  %v8879_v47 = vld [vmem:[#allocation8 + $0x394] ss:$24 sps:$4 sm:$0xff]  }
  0xe7   : > { %1515 = vmatprep.subr.bf16.mxu0 %v8840_v14  ;;  %v8878_v46 = vld [vmem:[#allocation8 + $0x240] ss:$24 sps:$4 sm:$0xff]   ;;  %v8881_v48 = vld [vmem:[#allocation8 + $0x214] ss:$24 sps:$4 sm:$0xff]   ;;  %v8883_v49 = vld [vmem:[#allocation8 + $0x390] ss:$24 sps:$4 sm:$0xff]  }
  0xe8   : > { %1555 = vmatpush1.bf16.msra.mxu1 %v8871_v41  ;;  %v8884_v50 = vld [vmem:[#allocation8 + $0x210] ss:$24 sps:$4 sm:$0xff]   ;;  %v8885_v51 = vld [vmem:[#allocation8 + $0x364] ss:$24 sps:$4 sm:$0xff]   ;;  %v8889_v53 = vld [vmem:[#allocation8 + $0x360] ss:$24 sps:$4 sm:$0xff]  }
  0xe9   : > { %1556 = vmatprep.subr.bf16.mxu1 %v8873_v43  ;;  %v8887_v52 = vld [vmem:[#allocation8 + $0x1e4] ss:$24 sps:$4 sm:$0xff]   ;;  %v8890_v54 = vld [vmem:[#allocation8 + $0x1e0] ss:$24 sps:$4 sm:$0xff]   ;;  %v8891_v55 = vld [vmem:[#allocation8 + $0x334] ss:$24 sps:$4 sm:$0xff]  }
  0xea   : > { %1516 = vmatpush1.bf16.msra.mxu0 %v8842_v16  ;;  %v8893_v56 = vld [vmem:[#allocation8 + $0x1b4] ss:$24 sps:$4 sm:$0xff]   ;;  %v8895_v57 = vld [vmem:[#allocation8 + $0x330] ss:$24 sps:$4 sm:$0xff]   ;;  %v8897_v60 = vld [vmem:[#allocation8 + $0x304] ss:$24 sps:$4 sm:$0xff]  }
  0xeb   : > { %1517 = vmatprep.subr.bf16.mxu0 %v8843_v17  ;;  %v8896_v59 = vld [vmem:[#allocation8 + $0x1b0] ss:$24 sps:$4 sm:$0xff]   ;;  %v8899_v61 = vld [vmem:[#allocation8 + $0x184] ss:$24 sps:$4 sm:$0xff]   ;;  %v8901_v62 = vld [vmem:[#allocation8 + $0x300] ss:$24 sps:$4 sm:$0xff]  }
  0xec   : > { %1557 = vmatpush1.bf16.msra.mxu1 %v8877_v45  ;;  %v8902_v63 = vld [vmem:[#allocation8 + $0x180] ss:$24 sps:$4 sm:$0xff]   ;;  %v581_v11 = vld [vmem:[#allocation7] sm:$0x7]  ;;  %v8923_v41 = vld [vmem:[#allocation8 + $0xcc] ss:$24 sps:$4 sm:$0xff]  }
  0xed   : > { %1558 = vmatprep.subr.bf16.mxu1 %v8879_v47  ;;  %v580_v10 = vld [vmem:[#allocation5] sm:$0x7]  ;;  %v8921_v43 = vld [vmem:[#allocation8 + $0xc8] ss:$24 sps:$4 sm:$0xff]   ;;  %v8929_v45 = vld [vmem:[#allocation8 + $0x9c] ss:$24 sps:$4 sm:$0xff]  }
  0xee   : > { %1518 = vmatpush1.bf16.msra.mxu0 %v8845_v18  ;;  %v8915_v39 = vld [vmem:[#allocation8 + $0xf8] ss:$24 sps:$4 sm:$0xff]   ;;  %s10375_s2 = smov 64   ;;  %vm1827_vm2 = vcmask 1043456   ;;  %vm1810_vm4 = vcmask 64512   ;;  %s11025_s3 = scalar_lea.vmem [#allocation22], %s8657_s5 }
  0xef   : > { %1519 = vmatprep.subr.bf16.mxu0 %v8846_v19  ;;  %v8927_v47 = vld [vmem:[#allocation8 + $0x98] ss:$24 sps:$4 sm:$0xff]   ;;  %s8658_s28 = smul.u32 384, %s10463_s27  ;;  %s7456_s20 = sshll.u32 %s11025_s3, 4  ;;  %s7457_s20 = int_to_ptr.vmem [resolvable:$true] %s7456_s20 }
  0xf0   : > { %1559 = vmatpush1.bf16.msra.mxu1 %v8883_v49  ;;  %v8935_v49 = vld [vmem:[#allocation8 + $0x6c] ss:$24 sps:$4 sm:$0xff]   ;;  %s7442_s25 = scalar_lea.sflag [#allocation4], %s10644_s4  ;;  %s10264_s19 = scalar_lea.vmem %s7457_s20, 384 }
  0xf1   : > { %1560 = vmatprep.subr.bf16.mxu1 %v8885_v51  ;;  %v8933_v51 = vld [vmem:[#allocation8 + $0x68] ss:$24 sps:$4 sm:$0xff]   ;;  %s7454_s15 = scalar_lea.hbm %s11082_s12, %s8658_s28  ;;  %p10265_p8 = scmp.ne.s32.totalorder %s7457_s20, %s10264_s19 }
  0xf2   : > { %1520 = vmatpush1.bf16.msra.mxu0 %v8848_v20  ;;  %p11127_p13 = scmp.ne.s32.totalorder %s11110_s30, 0  ;;  %s10376_s14 = smov [#allocation22]  }
  0xf3   : > { %1521 = vmatprep.subr.bf16.mxu0 %v8849_v21  ;;  %s10268_s27 = sshll.u32 %s10376_s14, 4  ;;  %s10269_s27 = int_to_ptr.vmem [resolvable:$false] %s10268_s27 }
  0xf4   : > { %1561 = vmatpush1.bf16.msra.mxu1 %v8889_v53  ;;  %v8941_v53 = vld [vmem:[#allocation8 + $0x3c] ss:$24 sps:$4 sm:$0xff]   ;;  %p10266_p6 = pnand %p10265_p8, %p11127_p13  ;;  %s10270_s29 = scalar_lea.vmem %s10269_s27, 768 }
  0xf5   : > { %1562 = vmatprep.subr.bf16.mxu1 %v8891_v55  ;;  %v8939_v55 = vld [vmem:[#allocation8 + $0x38] ss:$24 sps:$4 sm:$0xff]   ;;  %p10271_p3 = scmp.lt.s32.totalorder %s7457_s20, %s10269_s27  ;;  %p10272_p7 = scmp.lt.s32.totalorder %s10270_s29, %s10264_s19 }
  0xf6   : > { %1522 = vmatpush1.bf16.msra.mxu0 %v8851_v22  ;;  %p10267_p1 = pneg %p10266_p6 }
  0xf7   : > { %1523 = vmatprep.subr.bf16.mxu0 %v8852_v23  ;;  %p10273_p9 = por %p10272_p7, %p10271_p3 }
  0xf8   : > { %1563 = vmatpush1.bf16.msra.mxu1 %v8895_v57  ;;  %v8947_v57 = vld [vmem:[#allocation8 + $0xc] ss:$24 sps:$4 sm:$0xff]  }
  0xf9   : > { %1564 = vmatprep.subr.bf16.mxu1 %v8897_v60  ;;  %v8945_v60 = vld [vmem:[#allocation8 + $0x8] ss:$24 sps:$4 sm:$0xff]   ;;  %p10274_p11 = pnand %p10273_p9, %p10267_p1 }
  0xfa   : > { %1524 = vmatpush1.bf16.msra.mxu0 %v8854_v24 }
  0xfb   : > { %1525 = vmatprep.subr.bf16.mxu0 %v8857_v25  ;;  %v8903_v25 = vld [vmem:[#allocation8 + $0x158] ss:$24 sps:$4 sm:$0xff]  }
  0xfc   : > { %1565 = vmatpush1.bf16.msra.mxu1 %v8901_v62  ;;  %v8953_v62 = vld [vmem:[#allocation8 + $0x2dc] ss:$24 sps:$4 sm:$0xff]  }
  0xfe   : > { %1526 = vmatpush2.bf16.msra.mxu0 %v8860_v26 }
  0xff   : > { %1527 = vmatprep.subr.bf16.mxu0 %v8863_v27 }
 0x102   : > { %1528 = vmatpush2.bf16.msra.mxu0 %v8866_v28  ;;  %v8906_v28 = vld [vmem:[#allocation8 + $0x458] ss:$24 sps:$4 sm:$0xff]  }
 0x103   : > { %1529 = vmatprep.subr.bf16.mxu0 %v8869_v40  ;;  %v8918_v40 = vld [vmem:[#allocation8 + $0x3f8] ss:$24 sps:$4 sm:$0xff]  }
 0x106   : > { %1530 = vmatpush2.bf16.msra.mxu0 %v8872_v42  ;;  %v8926_v42 = vld [vmem:[#allocation8 + $0x3cc] ss:$24 sps:$4 sm:$0xff]  }
 0x107   : > { %1531 = vmatprep.subr.bf16.mxu0 %v8875_v44  ;;  %v8924_v44 = vld [vmem:[#allocation8 + $0x3c8] ss:$24 sps:$4 sm:$0xff]  }
 0x10a   : > { %1532 = vmatpush2.bf16.msra.mxu0 %v8878_v46  ;;  %v8932_v46 = vld [vmem:[#allocation8 + $0x39c] ss:$24 sps:$4 sm:$0xff]  }
 0x10b   : > { %1533 = vmatprep.subr.bf16.mxu0 %v8881_v48  ;;  %v8930_v48 = vld [vmem:[#allocation8 + $0x398] ss:$24 sps:$4 sm:$0xff]  }
 0x10e   : > { %1534 = vmatpush2.bf16.msra.mxu0 %v8884_v50  ;;  %v8938_v50 = vld [vmem:[#allocation8 + $0x36c] ss:$24 sps:$4 sm:$0xff]  }
 0x10f   : > { %1535 = vmatprep.subr.bf16.mxu0 %v8887_v52  ;;  %v8936_v52 = vld [vmem:[#allocation8 + $0x368] ss:$24 sps:$4 sm:$0xff]  }
 0x112   : > { %1536 = vmatpush2.bf16.msra.mxu0 %v8890_v54  ;;  %v8944_v54 = vld [vmem:[#allocation8 + $0x33c] ss:$24 sps:$4 sm:$0xff]  }
 0x113   : > { %1537 = vmatprep.subr.bf16.mxu0 %v8893_v56  ;;  %v8942_v56 = vld [vmem:[#allocation8 + $0x338] ss:$24 sps:$4 sm:$0xff]  }
 0x116   : > { %1538 = vmatpush2.bf16.msra.mxu0 %v8896_v59  ;;  %v8950_v59 = vld [vmem:[#allocation8 + $0x30c] ss:$24 sps:$4 sm:$0xff]  }
 0x117   : > { %1539 = vmatprep.subr.bf16.mxu0 %v8899_v61  ;;  %v8948_v61 = vld [vmem:[#allocation8 + $0x308] ss:$24 sps:$4 sm:$0xff]  }
 0x11a   : > { %1540 = vmatpush2.bf16.msra.mxu0 %v8902_v63  ;;  %v8956_v63 = vld [vmem:[#allocation8 + $0x164] ss:$24 sps:$4 sm:$0xff]  }
 0x169   : > { %v585_v29 = vpop.xlane.xlu0 %584 }
 0x16a   : > { %v587_v30 = vmul.f32 0.0026041667, %v585_v29 }
 0x16c   : > { %v10683_v31 = vsub.f32 %v577_v0, %v587_v30  ;;  %v10685_v32 = vsub.f32 %v578_v1, %v587_v30  ;;  %v10687_v33 = vsub.f32 %v579_v2, %v587_v30  ;;  %v8905_v0 = vld [vmem:[#allocation8 + $0x15c] ss:$24 sps:$4 sm:$0xff]   ;;  %v605_v2 = vlaneseq  ;;  %v8911_v30 = vld [vmem:[#allocation8 + $0x12c] ss:$24 sps:$4 sm:$0xff]  }
 0x16d   : > { %1591 = vmatprep.subr.bf16.mxu1 %v8905_v0  ;;  %v8908_v1 = vld [vmem:[#allocation8 + $0x45c] ss:$24 sps:$4 sm:$0xff]   ;;  %v8951_v0 = vld [vmem:[#allocation8 + $0x2d8] ss:$24 sps:$4 sm:$0xff]  }
 0x16e   : > { %v591_v34 = vmul.f32 %v10683_v31, %v10683_v31  ;;  %v592_v35 = vmul.f32 %v10685_v32, %v10685_v32  ;;  %v593_v36 = vmul.f32 %v10687_v33, %v10687_v33  ;;  %1632 = vmatprep.subr.bf16.mxu0 %v8908_v1  ;;  %v10697_v3 = vshrl.u32 %v605_v2, 7  ;;  %v8954_v1 = vld [vmem:[#allocation8 + $0x160] ss:$24 sps:$4 sm:$0xff]  }
 0x170   : > { %v594_v37 = vadd.f32 %v592_v35, %v591_v34  ;;  %v10700_v5 = vsub.s32 1, %v10697_v3  ;;  %v10703_v7 = vsub.s32 2, %v10697_v3  ;;  %v10706_v8 = vsub.s32 0, %v10697_v3  ;;  %v8914_v34 = vld [vmem:[#allocation8 + $0x42c] ss:$24 sps:$4 sm:$0xff]  }
 0x172   : > { %v595_v38 = vadd.f32 %v594_v37, %v593_v36  ;;  %v612_v12 = vrot.slane %v580_v10, %v10700_v5  ;;  %v616_v13 = vrot.slane %v580_v10, %v10703_v7  ;;  %v608_v14 = vrot.slane %v580_v10, %v10706_v8  ;;  %v8917_v37 = vld [vmem:[#allocation8 + $0xfc] ss:$24 sps:$4 sm:$0xff]   ;;  %v8960_v10 = vld [vmem:[#allocation8 + $0x130] ss:$24 sps:$4 sm:$0xff]  }
 0x173   : > { %v631_v16 = vrot.slane %v581_v11, %v10700_v5  ;;  %v635_v17 = vrot.slane %v581_v11, %v10703_v7  ;;  %v627_v21 = vrot.slane %v581_v11, %v10706_v8  ;;  %v8965_v11 = vld [vmem:[#allocation8 + $0x27c] ss:$24 sps:$4 sm:$0xff]  }
 0x174   : > { %596 = vadd.xlane.f32.xlu0 %v595_v38  ;;  %v8920_v38 = vld [vmem:[#allocation8 + $0x3fc] ss:$24 sps:$4 sm:$0xff]  }
 0x1fd   : > { %v597_v4 = vpop.xlane.xlu0 %596 }
 0x1fe   : > { %v598_v6 = vmul.f32 0.0026041667, %v597_v4  ;;  %v8959_v4 = vld [vmem:[#allocation8 + $0x2ac] ss:$24 sps:$4 sm:$0xff]  }
 0x200   : > { %v599_v9 = vadd.f32 1e-05, %v598_v6  ;;  %v8962_v6 = vld [vmem:[#allocation8 + $0x134] ss:$24 sps:$4 sm:$0xff]  }
 0x202   : > { %9927 = vrsqrt.f32 %v599_v9  ;;  %v8957_v9 = vld [vmem:[#allocation8 + $0x2a8] ss:$24 sps:$4 sm:$0xff]  }
 0x20f   : > { %v9928_v15 = vpop.eup %9927 }
 0x210   : > { %v602_v18 = vmul.f32 %v9928_v15, %v10685_v32  ;;  %v603_v19 = vmul.f32 %v9928_v15, %v10687_v33  ;;  %v601_v20 = vmul.f32 %v9928_v15, %v10683_v31  ;;  %v8909_v33 = vld [vmem:[#allocation8 + $0x128] ss:$24 sps:$4 sm:$0xff]   ;;  %v8971_v15 = vld [vmem:[#allocation8 + $0x24c] ss:$24 sps:$4 sm:$0xff]  }
 0x211   : > { %v8912_v31 = vld [vmem:[#allocation8 + $0x428] ss:$24 sps:$4 sm:$0xff]  }
 0x212   : > { %v621_v22 = vmul.f32 %v612_v12, %v602_v18  ;;  %v622_v23 = vmul.f32 %v616_v13, %v603_v19  ;;  %v620_v24 = vmul.f32 %v608_v14, %v601_v20  ;;  %v8968_v12 = vld [vmem:[#allocation8 + $0x104] ss:$24 sps:$4 sm:$0xff]   ;;  %v8963_v13 = vld [vmem:[#allocation8 + $0x278] ss:$24 sps:$4 sm:$0xff]  }
 0x213   : > { %v8966_v14 = vld [vmem:[#allocation8 + $0x100] ss:$24 sps:$4 sm:$0xff]   ;;  %v8972_v18 = vld [vmem:[#allocation8 + $0xd0] ss:$24 sps:$4 sm:$0xff]   ;;  %v8977_v19 = vld [vmem:[#allocation8 + $0x21c] ss:$24 sps:$4 sm:$0xff]  }
 0x214   : > { %v640_v26 = vadd.f32 %v631_v16, %v621_v22  ;;  %v641_v27 = vadd.f32 %v635_v17, %v622_v23  ;;  %v639_v29 = vadd.f32 %v627_v21, %v620_v24  ;;  %v8974_v16 = vld [vmem:[#allocation8 + $0xd4] ss:$24 sps:$4 sm:$0xff]   ;;  %v8969_v17 = vld [vmem:[#allocation8 + $0x248] ss:$24 sps:$4 sm:$0xff]   ;;  %v8980_v20 = vld [vmem:[#allocation8 + $0xa4] ss:$24 sps:$4 sm:$0xff]  }
 0x215   : > { %v8975_v21 = vld [vmem:[#allocation8 + $0x218] ss:$24 sps:$4 sm:$0xff]   ;;  %v8983_v23 = vld [vmem:[#allocation8 + $0x1ec] ss:$24 sps:$4 sm:$0xff]  }
 0x216   : > { %v10717_v35 = vpack.c.bf16 %v640_v26, %v640_v26  ;;  %v10719_v36 = vpack.c.bf16 %v641_v27, %v641_v27  ;;  %v10721_v32 = vpack.c.bf16 %v639_v29, %v639_v29  ;;  %v8978_v22 = vld [vmem:[#allocation8 + $0xa0] ss:$24 sps:$4 sm:$0xff]   ;;  %v8986_v24 = vld [vmem:[#allocation8 + $0x74] ss:$24 sps:$4 sm:$0xff]   ;;  %v8984_v26 = vld [vmem:[#allocation8 + $0x70] ss:$24 sps:$4 sm:$0xff]  }
 0x217   : > { %v8989_v27 = vld [vmem:[#allocation8 + $0x1bc] ss:$24 sps:$4 sm:$0xff]   ;;  %v8987_v29 = vld [vmem:[#allocation8 + $0x1b8] ss:$24 sps:$4 sm:$0xff]  }
 0x218   : > { %1541 = vmatprep.mubr.bf16.mxu0 %v10717_v35  ;;  %1583 = vmatmul.mubr.bf16.vlgmr.msra.gmra.mxu1 %v10719_v36 }
 0x219   : > { %1592 = vmatpush1.bf16.msra.mxu1 %v8903_v25  ;;  %1542 = vmatmul.mubr.bf16.vlgmr.msra.gmra.mxu0 %v10721_v32  ;;  %v8981_v25 = vld [vmem:[#allocation8 + $0x1e8] ss:$24 sps:$4 sm:$0xff]  }
 0x21a   : > { %1623 = vmatprep.mubr.bf16.mxu1 %v10717_v35  ;;  %1633 = vmatpush1.bf16.msra.mxu0 %v8906_v28  ;;  %v8992_v28 = vld [vmem:[#allocation8 + $0x44] ss:$24 sps:$4 sm:$0xff]  }
 0x21b   : > { %1593 = vmatprep.subr.bf16.mxu1 %v8911_v30  ;;  %1634 = vmatprep.subr.bf16.mxu0 %v8914_v34  ;;  %v8990_v30 = vld [vmem:[#allocation8 + $0x40] ss:$24 sps:$4 sm:$0xff]   ;;  %v8995_v34 = vld [vmem:[#allocation8 + $0x18c] ss:$24 sps:$4 sm:$0xff]  }
 0x21c   : > { %1664 = vmatprep.mubr.bf16.mxu0 %v10372_v58 }
 0x21d   : > { %1594 = vmatpush1.bf16.msra.mxu1 %v8909_v33  ;;  %v8993_v33 = vld [vmem:[#allocation8 + $0x188] ss:$24 sps:$4 sm:$0xff]  }
 0x21e   : > { %1635 = vmatpush1.bf16.msra.mxu0 %v8912_v31  ;;  %1595 = vmatprep.subr.bf16.mxu1 %v8917_v37  ;;  %v8996_v31 = vld [vmem:[#allocation8 + $0x10] ss:$24 sps:$4 sm:$0xff]   ;;  %v9001_v37 = vld [vmem:[#allocation8 + $0x464] ss:$24 sps:$4 sm:$0xff]  }
 0x21f   : > { %1636 = vmatprep.subr.bf16.mxu0 %v8920_v38  ;;  %v9004_v38 = vld [vmem:[#allocation8 + $0x2e4] ss:$24 sps:$4 sm:$0xff]  }
 0x221   : > { %1596 = vmatpush1.bf16.msra.mxu1 %v8915_v39  ;;  %v8999_v39 = vld [vmem:[#allocation8 + $0x460] ss:$24 sps:$4 sm:$0xff]  }
 0x222   : > { %1637 = vmatpush1.bf16.msra.mxu0 %v8918_v40  ;;  %1597 = vmatprep.subr.bf16.mxu1 %v8923_v41  ;;  %v9002_v40 = vld [vmem:[#allocation8 + $0x2e0] ss:$24 sps:$4 sm:$0xff]   ;;  %v9007_v41 = vld [vmem:[#allocation8 + $0x434] ss:$24 sps:$4 sm:$0xff]  }
 0x223   : > { %1638 = vmatprep.subr.bf16.mxu0 %v8926_v42  ;;  %v9010_v42 = vld [vmem:[#allocation8 + $0x2b4] ss:$24 sps:$4 sm:$0xff]  }
 0x225   : > { %1598 = vmatpush1.bf16.msra.mxu1 %v8921_v43  ;;  %v9005_v43 = vld [vmem:[#allocation8 + $0x430] ss:$24 sps:$4 sm:$0xff]  }
 0x226   : > { %1639 = vmatpush1.bf16.msra.mxu0 %v8924_v44  ;;  %1599 = vmatprep.subr.bf16.mxu1 %v8929_v45  ;;  %v9008_v44 = vld [vmem:[#allocation8 + $0x2b0] ss:$24 sps:$4 sm:$0xff]   ;;  %v9013_v45 = vld [vmem:[#allocation8 + $0x404] ss:$24 sps:$4 sm:$0xff]  }
 0x227   : > { %1640 = vmatprep.subr.bf16.mxu0 %v8932_v46  ;;  %v9016_v46 = vld [vmem:[#allocation8 + $0x284] ss:$24 sps:$4 sm:$0xff]  }
 0x229   : > { %1600 = vmatpush1.bf16.msra.mxu1 %v8927_v47  ;;  %v9011_v47 = vld [vmem:[#allocation8 + $0x400] ss:$24 sps:$4 sm:$0xff]  }
 0x22a   : > { %1641 = vmatpush1.bf16.msra.mxu0 %v8930_v48  ;;  %1601 = vmatprep.subr.bf16.mxu1 %v8935_v49  ;;  %v9014_v48 = vld [vmem:[#allocation8 + $0x280] ss:$24 sps:$4 sm:$0xff]   ;;  %v9019_v49 = vld [vmem:[#allocation8 + $0x3d4] ss:$24 sps:$4 sm:$0xff]  }
 0x22b   : > { %1642 = vmatprep.subr.bf16.mxu0 %v8938_v50  ;;  %v9022_v50 = vld [vmem:[#allocation8 + $0x254] ss:$24 sps:$4 sm:$0xff]  }
 0x22d   : > { %1602 = vmatpush1.bf16.msra.mxu1 %v8933_v51  ;;  %v9017_v51 = vld [vmem:[#allocation8 + $0x3d0] ss:$24 sps:$4 sm:$0xff]  }
 0x22e   : > { %1643 = vmatpush1.bf16.msra.mxu0 %v8936_v52  ;;  %1603 = vmatprep.subr.bf16.mxu1 %v8941_v53  ;;  %v9020_v52 = vld [vmem:[#allocation8 + $0x250] ss:$24 sps:$4 sm:$0xff]   ;;  %v9025_v53 = vld [vmem:[#allocation8 + $0x3a4] ss:$24 sps:$4 sm:$0xff]  }
 0x22f   : > { %1644 = vmatprep.subr.bf16.mxu0 %v8944_v54  ;;  %v9028_v54 = vld [vmem:[#allocation8 + $0x224] ss:$24 sps:$4 sm:$0xff]  }
 0x231   : > { %1604 = vmatpush1.bf16.msra.mxu1 %v8939_v55  ;;  %v9023_v55 = vld [vmem:[#allocation8 + $0x3a0] ss:$24 sps:$4 sm:$0xff]  }
 0x232   : > { %1645 = vmatpush1.bf16.msra.mxu0 %v8942_v56  ;;  %1605 = vmatprep.subr.bf16.mxu1 %v8947_v57  ;;  %v9026_v56 = vld [vmem:[#allocation8 + $0x220] ss:$24 sps:$4 sm:$0xff]   ;;  %v9031_v57 = vld [vmem:[#allocation8 + $0x374] ss:$24 sps:$4 sm:$0xff]  }
 0x233   : > { %1646 = vmatprep.subr.bf16.mxu0 %v8950_v59  ;;  %v9034_v59 = vld [vmem:[#allocation8 + $0x1f4] ss:$24 sps:$4 sm:$0xff]  }
 0x235   : > { %1606 = vmatpush1.bf16.msra.mxu1 %v8945_v60  ;;  %v9029_v60 = vld [vmem:[#allocation8 + $0x370] ss:$24 sps:$4 sm:$0xff]  }
 0x236   : > { %1647 = vmatpush1.bf16.msra.mxu0 %v8948_v61  ;;  %1607 = vmatprep.subr.bf16.mxu1 %v8953_v62  ;;  %v9032_v61 = vld [vmem:[#allocation8 + $0x1f0] ss:$24 sps:$4 sm:$0xff]   ;;  %v9037_v62 = vld [vmem:[#allocation8 + $0x344] ss:$24 sps:$4 sm:$0xff]  }
 0x237   : > { %1673 = vmatprep.subr.bf16.mxu0 %v8956_v63  ;;  %v9040_v63 = vld [vmem:[#allocation8 + $0x1c4] ss:$24 sps:$4 sm:$0xff]  }
 0x239   : > { %1608 = vmatpush2.bf16.msra.mxu1 %v8951_v0  ;;  %1665 = vmatmul.mubr.bf16.vlgmr.msra.gmra.mxu0 %v10719_v36  ;;  %v9035_v0 = vld [vmem:[#allocation8 + $0x340] ss:$24 sps:$4 sm:$0xff]  }
 0x23a   : > { %1674 = vmatpush1.bf16.msra.mxu0 %v8954_v1  ;;  %1705 = vmatprep.mubr.bf16.mxu0 %v10717_v35  ;;  %v8998_v35 = vld [vmem:[#allocation8 + $0x14] ss:$24 sps:$4 sm:$0xff]   ;;  %v9038_v1 = vld [vmem:[#allocation8 + $0x1c0] ss:$24 sps:$4 sm:$0xff]  }
 0x23b   : > { %1609 = vmatprep.subr.bf16.mxu1 %v8959_v4  ;;  %1675 = vmatprep.subr.bf16.mxu0 %v8962_v6  ;;  %v9043_v4 = vld [vmem:[#allocation8 + $0x314] ss:$24 sps:$4 sm:$0xff]  }
 0x23c   : > { %v9046_v6 = vld [vmem:[#allocation8 + $0x194] ss:$24 sps:$4 sm:$0xff]  }
 0x23d   : > { %1610 = vmatpush2.bf16.msra.mxu1 %v8957_v9  ;;  %v9041_v9 = vld [vmem:[#allocation8 + $0x310] ss:$24 sps:$4 sm:$0xff]  }
 0x23e   : > { %1676 = vmatpush1.bf16.msra.mxu0 %v8960_v10  ;;  %1611 = vmatprep.subr.bf16.mxu1 %v8965_v11  ;;  %v9044_v10 = vld [vmem:[#allocation8 + $0x190] ss:$24 sps:$4 sm:$0xff]   ;;  %v10373_v11 = vmov 0.0  }
 0x23f   : > { %1677 = vmatprep.subr.bf16.mxu0 %v8968_v12 }
 0x241   : > { %1612 = vmatpush2.bf16.msra.mxu1 %v8963_v13 }
 0x242   : > { %1678 = vmatpush1.bf16.msra.mxu0 %v8966_v14  ;;  %1613 = vmatprep.subr.bf16.mxu1 %v8971_v15 }
 0x243   : > { %1679 = vmatprep.subr.bf16.mxu0 %v8974_v16 }
 0x245   : > { %1614 = vmatpush2.bf16.msra.mxu1 %v8969_v17 }
 0x246   : > { %1680 = vmatpush1.bf16.msra.mxu0 %v8972_v18  ;;  %1615 = vmatprep.subr.bf16.mxu1 %v8977_v19 }
 0x247   : > { %1681 = vmatprep.subr.bf16.mxu0 %v8980_v20 }
 0x249   : > { %1616 = vmatpush2.bf16.msra.mxu1 %v8975_v21 }
 0x24a   : > { %1682 = vmatpush1.bf16.msra.mxu0 %v8978_v22  ;;  %1617 = vmatprep.subr.bf16.mxu1 %v8983_v23 }
 0x24b   : > { %1683 = vmatprep.subr.bf16.mxu0 %v8986_v24 }
 0x24d   : > { %1618 = vmatpush2.bf16.msra.mxu1 %v8981_v25 }
 0x24e   : > { %1684 = vmatpush1.bf16.msra.mxu0 %v8984_v26  ;;  %1619 = vmatprep.subr.bf16.mxu1 %v8989_v27 }
 0x24f   : > { %1685 = vmatprep.subr.bf16.mxu0 %v8992_v28 }
 0x251   : > { %1620 = vmatpush2.bf16.msra.mxu1 %v8987_v29 }
 0x252   : > { %1686 = vmatpush1.bf16.msra.mxu0 %v8990_v30  ;;  %1621 = vmatprep.subr.bf16.mxu1 %v8995_v34 }
 0x253   : > { %1687 = vmatprep.subr.bf16.mxu0 %v8998_v35 }
 0x255   : > { %1622 = vmatpush2.bf16.msra.mxu1 %v8993_v33 }
 0x256   : > { %1688 = vmatpush1.bf16.msra.mxu0 %v8996_v31  ;;  %1714 = vmatprep.subr.bf16.mxu1 %v9001_v37 }
 0x257   : > { %1689 = vmatprep.subr.bf16.mxu0 %v9004_v38 }
 0x258   : > { %1624 = vmatmul.mubr.bf16.vlgmr.msra.gmra.mxu1 %v10721_v32 }
 0x259   : > { %1715 = vmatpush1.bf16.msra.mxu1 %v8999_v39  ;;  %1746 = vmatprep.mubr.bf16.mxu1 %v10372_v58 }
 0x25a   : > { %1690 = vmatpush2.bf16.msra.mxu0 %v9002_v40  ;;  %1716 = vmatprep.subr.bf16.mxu1 %v9007_v41 }
 0x25b   : > { %1691 = vmatprep.subr.bf16.mxu0 %v9010_v42 }
 0x25d   : > { %1717 = vmatpush1.bf16.msra.mxu1 %v9005_v43 }
 0x25e   : > { %1692 = vmatpush2.bf16.msra.mxu0 %v9008_v44  ;;  %1718 = vmatprep.subr.bf16.mxu1 %v9013_v45 }
 0x25f   : > { %1693 = vmatprep.subr.bf16.mxu0 %v9016_v46 }
 0x261   : > { %1719 = vmatpush1.bf16.msra.mxu1 %v9011_v47  ;;  %v10752_v47 = vand.u32 127, %v605_v2 }
 0x262   : > { %1694 = vmatpush2.bf16.msra.mxu0 %v9014_v48  ;;  %1720 = vmatprep.subr.bf16.mxu1 %v9019_v49 }
 0x263   : > { %1695 = vmatprep.subr.bf16.mxu0 %v9022_v50  ;;  %vm1759_vm3 = vcmp.le.s32.totalorder %v10752_v47, %v10697_v3 }
 0x265   : > { %1721 = vmatpush1.bf16.msra.mxu1 %v9017_v51 }
 0x266   : > { %1696 = vmatpush2.bf16.msra.mxu0 %v9020_v52  ;;  %1722 = vmatprep.subr.bf16.mxu1 %v9025_v53 }
 0x267   : > { %1697 = vmatprep.subr.bf16.mxu0 %v9028_v54 }
 0x269   : > { %1723 = vmatpush1.bf16.msra.mxu1 %v9023_v55 }
 0x26a   : > { %1698 = vmatpush2.bf16.msra.mxu0 %v9026_v56  ;;  %1724 = vmatprep.subr.bf16.mxu1 %v9031_v57 }
 0x26b   : > { %1699 = vmatprep.subr.bf16.mxu0 %v9034_v59 }
 0x26d   : > { %1725 = vmatpush1.bf16.msra.mxu1 %v9029_v60 }
 0x26e   : > { %1700 = vmatpush2.bf16.msra.mxu0 %v9032_v61  ;;  %1726 = vmatprep.subr.bf16.mxu1 %v9037_v62 }
 0x26f   : > { %1701 = vmatprep.subr.bf16.mxu0 %v9040_v63 }
 0x271   : > { %1727 = vmatpush1.bf16.msra.mxu1 %v9035_v0 }
 0x272   : > { %1702 = vmatpush2.bf16.msra.mxu0 %v9038_v1  ;;  %1728 = vmatprep.subr.bf16.mxu1 %v9043_v4 }
 0x273   : > { %1703 = vmatprep.subr.bf16.mxu0 %v9046_v6 }
 0x275   : > { %1729 = vmatpush1.bf16.msra.mxu1 %v9041_v9 }
 0x276   : > { %1704 = vmatpush2.bf16.msra.mxu0 %v9044_v10  ;;  %8607 = vmatprep.subr.bf16.mxu1 %v10373_v11 }
 0x278   : > { %1747 = vmatmul.mubr.bf16.vlgmr.msra.gmra.mxu1 %v10719_v36 }
 0x279   : > { %1706 = vmatmul.mubr.bf16.vlgmr.msra.gmra.mxu0 %v10721_v32  ;;  %8609 = vmatprep.mubr.msk.bf16.mxu1 %vm10374_vm0, %v10373_v11 }
 0x2d8   : > { %v1584_v12 = vpop.f32.mrf.mxu1 }
 0x2d9   : > { %v1543_v13 = vpop.f32.mrf.mxu0 }
 0x2da   : > { %v1585_v14 = vadd.f32 %v1584_v12, %v1543_v13  ;;  %v1586_v15 = vpop.f32.mrf.mxu1 }
 0x2db   : > { %v1545_v16 = vpop.f32.mrf.mxu0 }
 0x2dc   : > { %v10737_v17 = vadd.f32 %v1586_v15, %v1545_v16  ;;  %v1588_v18 = vpop.f32.mrf.mxu1  ;;  %v1760_v35 = vpack.c.bf16 %v1585_v14, %v1585_v14 }
 0x2dd   : > { %v1547_v19 = vpop.f32.mrf.mxu0 }
 0x2de   : > { %v1589_v20 = vpop.f32.mrf.mxu1 }
 0x2df   : > { %v1548_v36 = vpop.f32.mrf.mxu0 }
 0x2f9   : > { %v1666_v21 = vpop.f32.mrf.mxu0 }
 0x2fb   : > { %v1668_v32 = vpop.f32.mrf.mxu0 }
 0x2fd   : > { %v1670_v22 = vpop.f32.mrf.mxu0 }
 0x2fe   : > { %v1985_v22 = vpack.c.bf16 %v10737_v17, %v10737_v17 }
 0x2ff   : > { %v1671_v23 = vpop.f32.mrf.mxu0 }
 0x318   : > { %v1625_v24 = vpop.f32.mrf.mxu1 }
 0x319   : > { %v1667_v25 = vadd.f32 %v1666_v21, %v1625_v24 }
 0x31a   : > { %v1627_v26 = vpop.f32.mrf.mxu1 }
 0x31b   : > { %v1761_v27 = vpack.c.bf16 %v1667_v25, %v1667_v25  ;;  %v10739_v28 = vadd.f32 %v1668_v32, %v1627_v26 }
 0x31c   : > { %v1629_v29 = vpop.f32.mrf.mxu1 }
 0x31d   : > { %v1767_v30 = vsel %vm1762_vm1, %v1761_v27, 0  ;;  %1875 = vrot.lane.b32.xlu0 %v1761_v27, %s10375_s2  ;;  %v1986_v27 = vpack.c.bf16 %v10739_v28, %v10739_v28 }
 0x31e   : > { %v1630_v34 = vpop.f32.mrf.mxu1  ;;  %8608 = vmatpush3.bf16.xpose.msra.mxu1 %v1767_v30 }
 0x31f   : > { %8613 = vmatprep.subr.bf16.mxu1 %v10373_v11  ;;  %v1991_v34 = vsel %vm1762_vm1, %v1986_v27, 0 }
 0x325   : > { %8610 = vmatmul.mubr.msk.bf16.vlgmr.msra.gmra.mxu1 %vm1762_vm1, %v1760_v35 }
 0x326   : > { %8615 = vmatprep.mubr.msk.bf16.mxu1 %vm10374_vm0, %v10373_v11 }
 0x338   : > { %v1748_v33 = vpop.f32.mrf.mxu1 }
 0x339   : > { %v1707_v31 = vpop.f32.mrf.mxu0 }
 0x33a   : > { %v1749_v37 = vadd.f32 %v1748_v33, %v1707_v31  ;;  %v1750_v38 = vpop.f32.mrf.mxu1 }
 0x33b   : > { %v1709_v39 = vpop.f32.mrf.mxu0 }
 0x33c   : > { %v1823_v40 = vpack.c.bf16 %v1749_v37, %v1749_v37  ;;  %v10747_v41 = vadd.f32 %v1750_v38, %v1709_v39  ;;  %v1752_v42 = vpop.f32.mrf.mxu1 }
 0x33d   : > { %v1711_v43 = vpop.f32.mrf.mxu0 }
 0x33e   : > { %v1829_v44 = vsel %vm1827_vm2, %v1823_v40, 0  ;;  %v1753_v45 = vpop.f32.mrf.mxu1  ;;  %v2046_v17 = vpack.c.bf16 %v10747_v41, %v10747_v41 }
 0x33f   : > { %v1712_v46 = vpop.f32.mrf.mxu0  ;;  %8614 = vmatpush3.bf16.msra.mxu1 %v1829_v44 }
 0x340   : > { %8619 = vmatprep.subr.bf16.mxu1 %v10373_v11 }
 0x38f   : > { %v1876_v62 = vpop.permute.xlu0 %1875 }
 0x390   : > { %v1881_v0 = vsel %vm1762_vm1, %v1876_v62, 0 }
 0x3e5   : > { %v1803_v48 = vpop.f32.mrf.mxu1 }
 0x3e6   : > { %v1809_v49 = vsel %vm1759_vm3, %v1803_v48, -1e+30 }
 0x3e7   : > { %v8611_v50 = vpop.f32.mrf.mxu1  ;;  %v1811_v51 = vsel %vm1810_vm4, %v1809_v49, -inf }
 0x3e8   : > { %1812 = vmax.xlane.f32.xlu1 %v1811_v51 }
 0x3e9   : > { %v1806_v52 = vpop.f32.mrf.mxu1 }
 0x3eb   : > { %v8612_v53 = vpop.f32.mrf.mxu1 }
 0x471   : > { %v1813_v54 = vpop.xlane.xlu1 %1812 }
 0x472   : > { %v1814_v55 = vsub.f32 %v1809_v49, %v1813_v54 }
 0x474   : > { %v1815_v56 = vmul.f32 1.442695, %v1814_v55 }
 0x476   : > { %9929 = vpow2.f32 %v1815_v56 }
 0x483   : > { %v9930_v2 = vpop.eup %9929 }
 0x484   : > { %v1817_v57 = vsel %vm1810_vm4, %v9930_v2, 0.0 }
 0x485   : > { %1818 = vadd.xlane.f32.xlu1 %v1817_v57 }
 0x496   : > { %1872 = vrot.lane.b32.xlu1 %v1760_v35, %s10375_s2  ;;  %v2051_v35 = vsel %vm1827_vm2, %v2046_v17, 0 }
 0x50e   : > { %v1819_v59 = vpop.xlane.xlu1 %1818 }
 0x50f   : > { %9931 = vrcp.f32 %v1819_v59 }
 0x512   : > { %v1873_v1 = vpop.permute.xlu1 %1872 }
 0x51c   : > { %v9932_v60 = vpop.eup %9931 }
 0x51d   : > { %v1821_v61 = vmul.f32 %v9932_v60, %v9930_v2 }
 0x51f   : > { %v1822_v63 = vpack.c.bf16 %v1821_v61, %v1821_v61 }
 0x521   : > { %8616 = vmatmul.mubr.msk.bf16.vlgmr.msra.gmra.mxu1 %vm1810_vm4, %v1822_v63 }
 0x522   : > { %8620 = vmatpush3.bf16.xpose.msra.mxu1 %v1881_v0  ;;  %8621 = vmatprep.mubr.msk.bf16.mxu1 %vm10374_vm0, %v10373_v11 }
 0x523   : > { %8625 = vmatprep.subr.bf16.mxu1 %v10373_v11 }
 0x529   : > { %8622 = vmatmul.mubr.msk.bf16.vlgmr.msra.gmra.mxu1 %vm1762_vm1, %v1873_v1 }
 0x52a   : > { %8627 = vmatprep.mubr.msk.bf16.mxu1 %vm10374_vm0, %v10373_v11 }
 0x5e1   : > { %v10770_v4 = vpop.f32.mrf.mxu1 }
 0x5e3   : > { %v8617_v6 = vpop.f32.mrf.mxu1 }
 0x5e5   : > { %v1868_v9 = vpop.f32.mrf.mxu1 }
 0x5e7   : > { %v8618_v10 = vpop.f32.mrf.mxu1 }
 0x5e9   : > { %v1917_v12 = vpop.f32.mrf.mxu1 }
 0x5ea   : > { %v1923_v13 = vsel %vm1759_vm3, %v1917_v12, -1e+30 }
 0x5eb   : > { %v8623_v14 = vpop.f32.mrf.mxu1  ;;  %v1924_v15 = vsel %vm1810_vm4, %v1923_v13, -inf }
 0x5ec   : > { %1925 = vmax.xlane.f32.xlu1 %v1924_v15 }
 0x5ed   : > { %v1920_v16 = vpop.f32.mrf.mxu1 }
 0x5ef   : > { %v8624_v18 = vpop.f32.mrf.mxu1 }
 0x675   : > { %v1926_v19 = vpop.xlane.xlu1 %1925 }
 0x676   : > { %v1927_v20 = vsub.f32 %v1923_v13, %v1926_v19 }
 0x678   : > { %v1928_v36 = vmul.f32 1.442695, %v1927_v20  ;;  %v9047_v20 = vld [vmem:[#allocation10 + $0xa8] ss:$12 sps:$4 sm:$0xff]  }
 0x67a   : > { %9933 = vpow2.f32 %v1928_v36  ;;  %v9049_v36 = vld [vmem:[#allocation10 + $0xac] ss:$12 sps:$4 sm:$0xff]  }
 0x67b   : > { %2556 = vmatprep.subr.bf16.mxu0 %v9049_v36 }
 0x67c   : > { %2557 = vmatpush1.bf16.msra.mxu0 %v9047_v20 }
 0x687   : > { %v9934_v21 = vpop.eup %9933 }
 0x688   : > { %v1930_v32 = vsel %vm1810_vm4, %v9934_v21, 0.0 }
 0x689   : > { %1931 = vadd.xlane.f32.xlu0 %v1930_v32  ;;  %v9050_v32 = vld [vmem:[#allocation10 + $0x90] ss:$12 sps:$4 sm:$0xff]  }
 0x69f   : > { %1937 = vrot.lane.b32.xlu0 %v1823_v40, %s10375_s2 }
 0x6a3   : > { %2094 = vrot.lane.b32.xlu0 %v1985_v22, %s10375_s2 }
 0x712   : > { %v1932_v23 = vpop.xlane.xlu0 %1931 }
 0x713   : > { %9935 = vrcp.f32 %v1932_v23  ;;  %v9074_v23 = vld [vmem:[#allocation10 + $0x170] ss:$12 sps:$4 sm:$0xff]  }
 0x716   : > { %v1938_v24 = vpop.permute.xlu0 %1937 }
 0x717   : > { %v1943_v25 = vsel %vm1827_vm2, %v1938_v24, 0  ;;  %v9075_v24 = vld [vmem:[#allocation10 + $0xb0] ss:$12 sps:$4 sm:$0xff]  }
 0x718   : > { %8626 = vmatpush3.bf16.msra.mxu1 %v1943_v25  ;;  %v9053_v25 = vld [vmem:[#allocation10 + $0x78] ss:$12 sps:$4 sm:$0xff]  }
 0x719   : > { %8631 = vmatprep.subr.bf16.mxu1 %v10373_v11 }
 0x71a   : > { %v2095_v56 = vpop.permute.xlu0 %2094 }
 0x720   : > { %v9936_v26 = vpop.eup %9935 }
 0x721   : > { %v1934_v29 = vmul.f32 %v9936_v26, %v9934_v21  ;;  %v9052_v21 = vld [vmem:[#allocation10 + $0x94] ss:$12 sps:$4 sm:$0xff]   ;;  %v9079_v26 = vld [vmem:[#allocation10 + $0x158] ss:$12 sps:$4 sm:$0xff]  }
 0x722   : > { %2558 = vmatprep.subr.bf16.mxu0 %v9052_v21 }
 0x723   : > { %v1935_v30 = vpack.c.bf16 %v1934_v29, %v1934_v29  ;;  %2559 = vmatpush1.bf16.msra.mxu0 %v9050_v32  ;;  %v9080_v29 = vld [vmem:[#allocation10 + $0x98] ss:$12 sps:$4 sm:$0xff]  }
 0x725   : > { %8628 = vmatmul.mubr.msk.bf16.vlgmr.msra.gmra.mxu1 %vm1810_vm4, %v1935_v30  ;;  %v9084_v30 = vld [vmem:[#allocation10 + $0x140] ss:$12 sps:$4 sm:$0xff]  }
 0x726   : > { %8632 = vmatpush3.bf16.xpose.msra.mxu1 %v1991_v34  ;;  %8633 = vmatprep.mubr.msk.bf16.mxu1 %vm10374_vm0, %v10373_v11  ;;  %v9056_v34 = vld [vmem:[#allocation10 + $0x60] ss:$12 sps:$4 sm:$0xff]  }
 0x727   : > { %8637 = vmatprep.subr.bf16.mxu1 %v10373_v11 }
 0x72d   : > { %8634 = vmatmul.mubr.msk.bf16.vlgmr.msra.gmra.mxu1 %vm1762_vm1, %v1985_v22  ;;  %v9055_v22 = vld [vmem:[#allocation10 + $0x7c] ss:$12 sps:$4 sm:$0xff]  }
 0x72e   : > { %8638 = vmatpush3.bf16.msra.mxu1 %v2051_v35  ;;  %8639 = vmatprep.mubr.msk.bf16.mxu1 %vm10374_vm0, %v10373_v11  ;;  %v9085_v35 = vld [vmem:[#allocation10 + $0x80] ss:$12 sps:$4 sm:$0xff]  }
 0x72f   : > { %8643 = vmatprep.subr.bf16.mxu1 %v10373_v11  ;;  %2560 = vmatprep.subr.bf16.mxu0 %v9055_v22 }
 0x730   : > { %2561 = vmatpush1.bf16.msra.mxu0 %v9053_v25 }
 0x7e5   : > { %v10797_v28 = vpop.f32.mrf.mxu1 }
 0x7e7   : > { %v8629_v33 = vpop.f32.mrf.mxu1 }
 0x7e8   : > { %v9089_v33 = vld [vmem:[#allocation10 + $0x128] ss:$12 sps:$4 sm:$0xff]  }
 0x7e9   : > { %v1982_v31 = vpop.f32.mrf.mxu1 }
 0x7ea   : > { %v9059_v31 = vld [vmem:[#allocation10 + $0x48] ss:$12 sps:$4 sm:$0xff]  }
 0x7eb   : > { %v8630_v37 = vpop.f32.mrf.mxu1 }
 0x7ec   : > { %v9064_v37 = vld [vmem:[#allocation10 + $0x34] ss:$12 sps:$4 sm:$0xff]  }
 0x7ed   : > { %v2027_v38 = vpop.f32.mrf.mxu1 }
 0x7ee   : > { %v2033_v39 = vsel %vm1759_vm3, %v2027_v38, -1e+30  ;;  %v9090_v38 = vld [vmem:[#allocation10 + $0x68] ss:$12 sps:$4 sm:$0xff]  }
 0x7ef   : > { %v8635_v40 = vpop.f32.mrf.mxu1  ;;  %v2034_v41 = vsel %vm1810_vm4, %v2033_v39, -inf }
 0x7f0   : > { %2035 = vmax.xlane.f32.xlu1 %v2034_v41  ;;  %v9062_v40 = vld [vmem:[#allocation10 + $0x30] ss:$12 sps:$4 sm:$0xff]  }
 0x7f1   : > { %v2030_v42 = vpop.f32.mrf.mxu1  ;;  %v9067_v41 = vld [vmem:[#allocation10 + $0x1c] ss:$12 sps:$4 sm:$0xff]  }
 0x7f2   : > { %v9095_v42 = vld [vmem:[#allocation10 + $0x50] ss:$12 sps:$4 sm:$0xff]  }
 0x7f3   : > { %v8636_v43 = vpop.f32.mrf.mxu1 }
 0x7f4   : > { %v9099_v43 = vld [vmem:[#allocation10 + $0xf8] ss:$12 sps:$4 sm:$0xff]  }
 0x879   : > { %v2036_v44 = vpop.xlane.xlu1 %2035 }
 0x87a   : > { %v2037_v45 = vsub.f32 %v2033_v39, %v2036_v44  ;;  %v9094_v39 = vld [vmem:[#allocation10 + $0x110] ss:$12 sps:$4 sm:$0xff]   ;;  %v9065_v44 = vld [vmem:[#allocation10 + $0x18] ss:$12 sps:$4 sm:$0xff]  }
 0x87c   : > { %v2038_v46 = vmul.f32 1.442695, %v2037_v45  ;;  %v9070_v45 = vld [vmem:[#allocation10 + $0x4] ss:$12 sps:$4 sm:$0xff]  }
 0x87e   : > { %9937 = vpow2.f32 %v2038_v46  ;;  %v9100_v46 = vld [vmem:[#allocation10 + $0x38] ss:$12 sps:$4 sm:$0xff]  }
 0x88b   : > { %v9938_v48 = vpop.eup %9937 }
 0x88c   : > { %v2040_v49 = vsel %vm1810_vm4, %v9938_v48, 0.0 }
 0x88d   : > { %2041 = vadd.xlane.f32.xlu1 %v2040_v49  ;;  %v9068_v49 = vld [vmem:[#allocation10] ss:$12 sps:$4 sm:$0xff]  }
 0x89e   : > { %2097 = vrot.lane.b32.xlu1 %v1986_v27, %s10375_s2  ;;  %v9058_v27 = vld [vmem:[#allocation10 + $0x64] ss:$12 sps:$4 sm:$0xff]  }
 0x89f   : > { %2562 = vmatprep.subr.bf16.mxu0 %v9058_v27 }
 0x8a0   : > { %2563 = vmatpush1.bf16.msra.mxu0 %v9056_v34 }
 0x916   : > { %v2042_v50 = vpop.xlane.xlu1 %2041 }
 0x917   : > { %9939 = vrcp.f32 %v2042_v50  ;;  %v9073_v50 = vld [vmem:[#allocation10 + $0x16c] ss:$12 sps:$4 sm:$0xff]  }
 0x91a   : > { %v2098_v53 = vpop.permute.xlu1 %2097 }
 0x91b   : > { %v2103_v55 = vsel %vm1762_vm1, %v2098_v53, 0  ;;  %v9078_v53 = vld [vmem:[#allocation10 + $0x154] ss:$12 sps:$4 sm:$0xff]  }
 0x924   : > { %v9940_v51 = vpop.eup %9939 }
 0x925   : > { %v2044_v52 = vmul.f32 %v9940_v51, %v9938_v48  ;;  %v9104_v48 = vld [vmem:[#allocation10 + $0xe0] ss:$12 sps:$4 sm:$0xff]  }
 0x926   : > { %v9105_v51 = vld [vmem:[#allocation10 + $0x20] ss:$12 sps:$4 sm:$0xff]  }
 0x927   : > { %v2045_v54 = vpack.c.bf16 %v2044_v52, %v2044_v52  ;;  %v9071_v52 = vld [vmem:[#allocation10 + $0x168] ss:$12 sps:$4 sm:$0xff]  }
 0x929   : > { %8640 = vmatmul.mubr.msk.bf16.vlgmr.msra.gmra.mxu1 %vm1810_vm4, %v2045_v54  ;;  %v9076_v54 = vld [vmem:[#allocation10 + $0x150] ss:$12 sps:$4 sm:$0xff]  }
 0x92a   : > { %8644 = vmatpush3.bf16.xpose.msra.mxu1 %v2103_v55  ;;  %8645 = vmatprep.mubr.msk.bf16.mxu1 %vm10374_vm0, %v10373_v11  ;;  %v9083_v55 = vld [vmem:[#allocation10 + $0x13c] ss:$12 sps:$4 sm:$0xff]  }
 0x92b   : > { %8649 = vmatprep.subr.bf16.mxu1 %v10373_v11 }
 0x931   : > { %8646 = vmatmul.mubr.msk.bf16.vlgmr.msra.gmra.mxu1 %vm1762_vm1, %v2095_v56  ;;  %v9081_v56 = vld [vmem:[#allocation10 + $0x138] ss:$12 sps:$4 sm:$0xff]  }
 0x932   : > { %8651 = vmatprep.mubr.msk.bf16.mxu1 %vm10374_vm0, %v10373_v11 }
 0x9e9   : > { %v10813_v2 = vpop.f32.mrf.mxu1 }
 0x9eb   : > { %v8641_v57 = vpop.f32.mrf.mxu1 }
 0x9ec   : > { %v9088_v57 = vld [vmem:[#allocation10 + $0x124] ss:$12 sps:$4 sm:$0xff]  }
 0x9ed   : > { %v2090_v59 = vpop.f32.mrf.mxu1 }
 0x9ee   : > { %v9086_v59 = vld [vmem:[#allocation10 + $0x120] ss:$12 sps:$4 sm:$0xff]  }
 0x9ef   : > { %v8642_v60 = vpop.f32.mrf.mxu1 }
 0x9f0   : > { %v9093_v60 = vld [vmem:[#allocation10 + $0x10c] ss:$12 sps:$4 sm:$0xff]  }
 0x9f1   : > { %v2139_v61 = vpop.f32.mrf.mxu1 }
 0x9f2   : > { %v2145_v62 = vsel %vm1759_vm3, %v2139_v61, -1e+30  ;;  %v9091_v61 = vld [vmem:[#allocation10 + $0x108] ss:$12 sps:$4 sm:$0xff]  }
 0x9f3   : > { %v8647_v63 = vpop.f32.mrf.mxu1  ;;  %v2146_v0 = vsel %vm1810_vm4, %v2145_v62, -inf }
 0x9f4   : > { %2147 = vmax.xlane.f32.xlu1 %v2146_v0  ;;  %v9096_v63 = vld [vmem:[#allocation10 + $0xf0] ss:$12 sps:$4 sm:$0xff]  }
 0x9f5   : > { %v2142_v1 = vpop.f32.mrf.mxu1  ;;  %v9103_v0 = vld [vmem:[#allocation10 + $0xdc] ss:$12 sps:$4 sm:$0xff]  }
 0x9f6   : > { %v9101_v1 = vld [vmem:[#allocation10 + $0xd8] ss:$12 sps:$4 sm:$0xff]  }
 0x9f7   : > { %v8648_v6 = vpop.f32.mrf.mxu1 }
 0x9f8   : > { %v9108_v6 = vld [vmem:[#allocation10 + $0xc4] ss:$12 sps:$4 sm:$0xff]  }
 0xa7d   : > { %v2148_v9 = vpop.xlane.xlu1 %2147 }
 0xa7e   : > { %v2149_v10 = vsub.f32 %v2145_v62, %v2148_v9  ;;  %v9098_v62 = vld [vmem:[#allocation10 + $0xf4] ss:$12 sps:$4 sm:$0xff]  }
 0xa7f   : > { %v9109_v9 = vld [vmem:[#allocation10 + $0xc8] ss:$12 sps:$4 sm:$0xff]  }
 0xa80   : > { %v2150_v12 = vmul.f32 1.442695, %v2149_v10  ;;  %v9106_v10 = vld [vmem:[#allocation10 + $0xc0] ss:$12 sps:$4 sm:$0xff]  }
 0xa82   : > { %9941 = vpow2.f32 %v2150_v12  ;;  %v9110_v12 = vld [vmem:[#allocation10 + $0x8] ss:$12 sps:$4 sm:$0xff]  }
 0xa8f   : > { %v9942_v11 = vpop.eup %9941 }
 0xa90   : > { %v2152_v13 = vsel %vm1810_vm4, %v9942_v11, 0.0 }
 0xa91   : > { %2153 = vadd.xlane.f32.xlu0 %v2152_v13 }
 0xaa7   : > { %2159 = vrot.lane.b32.xlu0 %v2046_v17, %s10375_s2  ;;  %v9061_v17 = vld [vmem:[#allocation10 + $0x4c] ss:$12 sps:$4 sm:$0xff]  }
 0xaa8   : > { %2564 = vmatprep.subr.bf16.mxu0 %v9061_v17 }
 0xaa9   : > { %2565 = vmatpush1.bf16.msra.mxu0 %v9059_v31  ;;  %v9948_v31 = vld [vmem:[%s10650_s7 + $0x8] sm:$0xff] }
 0xaaa   : > { %2566 = vmatprep.subr.bf16.mxu0 %v9064_v37 }
 0xaad   : > { %2567 = vmatpush1.bf16.msra.mxu0 %v9062_v40 }
 0xaae   : > { %2568 = vmatprep.subr.bf16.mxu0 %v9067_v41  ;;  %v9949_v41 = vld [vmem:[%s10650_s7 + $0x10] sm:$0xff] }
 0xab1   : > { %2569 = vmatpush1.bf16.msra.mxu0 %v9065_v44 }
 0xab2   : > { %2570 = vmatprep.subr.bf16.mxu0 %v9070_v45  ;;  %v9111_v45 = vld [vmem:[#allocation16 + $0x2a0] ss:$48 sps:$4 sm:$0xff]  }
 0xab5   : > { %2571 = vmatpush1.bf16.msra.mxu0 %v9068_v49  ;;  %v9114_v49 = vld [vmem:[#allocation16 + $0x240] ss:$48 sps:$4 sm:$0xff]  }
 0xab6   : > { %2572 = vmatprep.subr.bf16.mxu0 %v9073_v50  ;;  %v9119_v50 = vld [vmem:[#allocation16 + $0x1e4] ss:$48 sps:$4 sm:$0xff]  }
 0xab9   : > { %2573 = vmatpush2.bf16.msra.mxu0 %v9071_v52  ;;  %v9137_v52 = vld [vmem:[#allocation16 + $0x8a4] ss:$48 sps:$4 sm:$0xff]  }
 0xaba   : > { %2574 = vmatprep.subr.bf16.mxu0 %v9078_v53  ;;  %v9117_v53 = vld [vmem:[#allocation16 + $0x1e0] ss:$48 sps:$4 sm:$0xff]  }
 0xabd   : > { %2575 = vmatpush2.bf16.msra.mxu0 %v9076_v54  ;;  %v9143_v54 = vld [vmem:[#allocation16 + $0x844] ss:$48 sps:$4 sm:$0xff]  }
 0xabe   : > { %2576 = vmatprep.subr.bf16.mxu0 %v9083_v55  ;;  %v9122_v55 = vld [vmem:[#allocation16 + $0x184] ss:$48 sps:$4 sm:$0xff]  }
 0xac1   : > { %2577 = vmatpush2.bf16.msra.mxu0 %v9081_v56  ;;  %v9141_v56 = vld [vmem:[#allocation16 + $0x840] ss:$48 sps:$4 sm:$0xff]  }
 0xac2   : > { %2578 = vmatprep.subr.bf16.mxu0 %v9088_v57  ;;  %v9120_v57 = vld [vmem:[#allocation16 + $0x180] ss:$48 sps:$4 sm:$0xff]  }
 0xac5   : > { %2579 = vmatpush2.bf16.msra.mxu0 %v9086_v59  ;;  %v9125_v59 = vld [vmem:[#allocation16 + $0x124] ss:$48 sps:$4 sm:$0xff]  }
 0xac6   : > { %2580 = vmatprep.subr.bf16.mxu0 %v9093_v60  ;;  %v9123_v60 = vld [vmem:[#allocation16 + $0x120] ss:$48 sps:$4 sm:$0xff]  }
 0xac9   : > { %2581 = vmatpush2.bf16.msra.mxu0 %v9091_v61  ;;  %v9128_v61 = vld [vmem:[#allocation16 + $0xc4] ss:$48 sps:$4 sm:$0xff]  }
 0xaca   : > { %2582 = vmatprep.subr.bf16.mxu0 %v9098_v62  ;;  %v9126_v62 = vld [vmem:[#allocation16 + $0xc0] ss:$48 sps:$4 sm:$0xff]  }
 0xacd   : > { %2583 = vmatpush2.bf16.msra.mxu0 %v9096_v63  ;;  %v9131_v63 = vld [vmem:[#allocation16 + $0x64] ss:$48 sps:$4 sm:$0xff]  }
 0xace   : > { %2584 = vmatprep.subr.bf16.mxu0 %v9103_v0  ;;  %v9129_v0 = vld [vmem:[#allocation16 + $0x60] ss:$48 sps:$4 sm:$0xff]  }
 0xad1   : > { %2585 = vmatpush2.bf16.msra.mxu0 %v9101_v1  ;;  %v9134_v1 = vld [vmem:[#allocation16 + $0x4] ss:$48 sps:$4 sm:$0xff]  }
 0xad2   : > { %2586 = vmatprep.subr.bf16.mxu0 %v9108_v6  ;;  %v9132_v6 = vld [vmem:[#allocation16] ss:$48 sps:$4 sm:$0xff]  }
 0xad5   : > { %2587 = vmatpush2.bf16.msra.mxu0 %v9106_v10  ;;  %v9138_v10 = vld [vmem:[#allocation16 + $0x5a0] ss:$48 sps:$4 sm:$0xff]  }
 0xad6   : > { %4537 = vmatprep.subr.bf16.mxu0 %v9137_v52 }
 0xb1a   : > { %v2154_v14 = vpop.xlane.xlu0 %2153 }
 0xb1b   : > { %9943 = vrcp.f32 %v2154_v14 }
 0xb1e   : > { %v2160_v47 = vpop.permute.xlu0 %2159 }
 0xb1f   : > { %v2165_v15 = vsel %vm1827_vm2, %v2160_v47, 0 }
 0xb20   : > { %8650 = vmatpush3.bf16.msra.mxu1 %v2165_v15 }
 0xb21   : > { %8453 = vmatprep.subr.bf16.mxu1 %v9074_v23 }
 0xb28   : > { %v9944_v16 = vpop.eup %9943 }
 0xb29   : > { %v2156_v18 = vmul.f32 %v9944_v16, %v9942_v11 }
 0xb2b   : > { %v2157_v19 = vpack.c.bf16 %v2156_v18, %v2156_v18 }
 0xb2d   : > { %8652 = vmatmul.mubr.msk.bf16.vlgmr.msra.gmra.mxu1 %vm1810_vm4, %v2157_v19 }
 0xb2e   : > { %8454 = vmatpush3.bf16.msra.mxu1 %v9075_v24 }
 0xb2f   : > { %8455 = vmatprep.subr.bf16.mxu1 %v9079_v26 }
 0xb32   : > { %8456 = vmatpush3.bf16.msra.mxu1 %v9080_v29 }
 0xb33   : > { %8457 = vmatprep.subr.bf16.mxu1 %v9084_v30 }
 0xb36   : > { %8458 = vmatpush3.bf16.msra.mxu1 %v9085_v35  ;;  %v9947_v35 = vld [vmem:[%s10650_s7] sm:$0xff] }
 0xb37   : > { %8459 = vmatprep.subr.bf16.mxu1 %v9089_v33 }
 0xb3a   : > { %8460 = vmatpush3.bf16.msra.mxu1 %v9090_v38 }
 0xb3b   : > { %8461 = vmatprep.subr.bf16.mxu1 %v9094_v39 }
 0xb3e   : > { %8462 = vmatpush3.bf16.msra.mxu1 %v9095_v42 }
 0xb3f   : > { %8463 = vmatprep.subr.bf16.mxu1 %v9099_v43 }
 0xb42   : > { %8464 = vmatpush3.bf16.msra.mxu1 %v9100_v46  ;;  %v9113_v46 = vld [vmem:[#allocation16 + $0x2a4] ss:$48 sps:$4 sm:$0xff]  }
 0xb43   : > { %8465 = vmatprep.subr.bf16.mxu1 %v9104_v48  ;;  %v9116_v48 = vld [vmem:[#allocation16 + $0x244] ss:$48 sps:$4 sm:$0xff]  }
 0xb46   : > { %8466 = vmatpush3.bf16.msra.mxu1 %v9105_v51  ;;  %v9135_v51 = vld [vmem:[#allocation16 + $0x8a0] ss:$48 sps:$4 sm:$0xff]  }
 0xb47   : > { %8467 = vmatprep.subr.bf16.mxu1 %v9109_v9  ;;  %v9140_v9 = vld [vmem:[#allocation16 + $0x5a4] ss:$48 sps:$4 sm:$0xff]  }
 0xb4a   : > { %8468 = vmatpush3.bf16.msra.mxu1 %v9110_v12  ;;  %v9146_v12 = vld [vmem:[#allocation16 + $0x544] ss:$48 sps:$4 sm:$0xff]  }
 0xb4b   : > { %4496 = vmatprep.subr.bf16.mxu1 %v9113_v46  ;;  %v9180_v46 = vld [vmem:[#allocation16 + $0x300] ss:$48 sps:$4 sm:$0xff]  }
 0xbed   : > { %v2201_v11 = vpop.f32.mrf.mxu1 }
 0xbee   : > { %v8826_v13 = vpack.i.bf16 %v10797_v28, %v2201_v11  ;;  %v2283_v28 = vld [vmem:[#allocation11] sm:$0x7]  ;;  %v9144_v11 = vld [vmem:[#allocation16 + $0x540] ss:$48 sps:$4 sm:$0xff]  }
 0xbef   : > { %v8653_v14 = vpop.f32.mrf.mxu1  ;;  %v2288_v22 = vrot.slane %v2283_v28, %v10706_v8  ;;  %v2292_v23 = vrot.slane %v2283_v28, %v10700_v5 }
 0xbf0   : > { %8827 = vrot.lane.b32.xlu1 %v8826_v13, %s10375_s2 }
 0xbf1   : > { %v2204_v47 = vpop.f32.mrf.mxu1 }
 0xbf3   : > { %v8654_v15 = vpop.f32.mrf.mxu1 }
 0xc62   : > { %v8828_v16 = vpop.permute.xlu1 %8827 }
 0xc63   : > { %v8830_v18 = vunpack.i.h.bf16 %v8828_v16  ;;  %v8829_v19 = vunpack.i.l.bf16 %v8828_v16 }
 0xc65   : > { %v2215_v20 = vsel %vm1762_vm1, %v10770_v4, %v8830_v18  ;;  %v2216_v36 = vsel %vm1762_vm1, %v10813_v2, %v8829_v19  ;;  %v2296_v2 = vrot.slane %v2283_v28, %v10703_v7  ;;  %v9147_v28 = vld [vmem:[#allocation16 + $0x7e0] ss:$48 sps:$4 sm:$0xff]  }
 0xc66   : > { %v2217_v21 = vpack.c.bf16 %v2215_v20, %v2215_v20  ;;  %v2218_v32 = vpack.c.bf16 %v2216_v36, %v2216_v36 }
 0xc68   : > { %2588 = vmatprep.mubr.bf16.mxu0 %v2218_v32  ;;  %2629 = vmatprep.mubr.bf16.mxu1 %v2218_v32  ;;  %v9149_v32 = vld [vmem:[#allocation16 + $0x7e4] ss:$48 sps:$4 sm:$0xff]  }
 0xc69   : > { %2589 = vmatmul.mubr.bf16.vlgmr.msra.gmra.mxu0 %v2217_v21  ;;  %2630 = vmatmul.mubr.bf16.vlgmr.msra.gmra.mxu1 %v2217_v21 }
 0xc6a   : > { %4569 = vmatprep.mubr.bf16.mxu0 %v10372_v58  ;;  %4497 = vmatpush1.bf16.msra.mxu1 %v9111_v45  ;;  %v9177_v45 = vld [vmem:[#allocation16 + $0x600] ss:$48 sps:$4 sm:$0xff]  }
 0xc6b   : > { %4498 = vmatprep.subr.bf16.mxu1 %v9116_v48  ;;  %4538 = vmatpush1.bf16.msra.mxu0 %v9135_v51  ;;  %v9185_v48 = vld [vmem:[#allocation16 + $0x2ac] ss:$48 sps:$4 sm:$0xff]  }
 0xc6c   : > { %4539 = vmatprep.subr.bf16.mxu0 %v9143_v54  ;;  %v2641_v54 = vld [vmem:[#allocation14] sm:$0x7] }
 0xc6e   : > { %4499 = vmatpush1.bf16.msra.mxu1 %v9114_v49  ;;  %v9188_v49 = vld [vmem:[#allocation16 + $0x8ac] ss:$48 sps:$4 sm:$0xff]  }
 0xc6f   : > { %4500 = vmatprep.subr.bf16.mxu1 %v9119_v50  ;;  %4540 = vmatpush1.bf16.msra.mxu0 %v9141_v56 }
 0xc70   : > { %4541 = vmatprep.subr.bf16.mxu0 %v9149_v32  ;;  %v9197_v32 = vld [vmem:[#allocation16 + $0x1ec] ss:$48 sps:$4 sm:$0xff]  }
 0xc72   : > { %4501 = vmatpush1.bf16.msra.mxu1 %v9117_v53  ;;  %v2640_v53 = vld [vmem:[#allocation13] sm:$0x7] }
 0xc73   : > { %4502 = vmatprep.subr.bf16.mxu1 %v9122_v55  ;;  %4542 = vmatpush1.bf16.msra.mxu0 %v9147_v28  ;;  %v2671_v55 = vrot.slane %v2640_v53, %v10700_v5  ;;  %v2675_v56 = vrot.slane %v2640_v53, %v10703_v7  ;;  %v9200_v28 = vld [vmem:[#allocation16 + $0x7ec] ss:$48 sps:$4 sm:$0xff]  }
 0xc76   : > { %4503 = vmatpush1.bf16.msra.mxu1 %v9120_v57  ;;  %v2667_v57 = vrot.slane %v2640_v53, %v10706_v8  ;;  %v9242_v53 = vld [vmem:[#allocation16 + $0x254] ss:$48 sps:$4 sm:$0xff]  }
 0xc77   : > { %4504 = vmatprep.subr.bf16.mxu1 %v9125_v59 }
 0xc7a   : > { %4505 = vmatpush1.bf16.msra.mxu1 %v9123_v60  ;;  %v2690_v60 = vrot.slane %v2641_v54, %v10700_v5 }
 0xc7b   : > { %4506 = vmatprep.subr.bf16.mxu1 %v9128_v61  ;;  %v2694_v61 = vrot.slane %v2641_v54, %v10703_v7 }
 0xc7e   : > { %4507 = vmatpush1.bf16.msra.mxu1 %v9126_v62 }
 0xc7f   : > { %4508 = vmatprep.subr.bf16.mxu1 %v9131_v63 }
 0xc82   : > { %4509 = vmatpush1.bf16.msra.mxu1 %v9129_v0 }
 0xc83   : > { %4510 = vmatprep.subr.bf16.mxu1 %v9134_v1  ;;  %v2686_v1 = vrot.slane %v2641_v54, %v10706_v8  ;;  %v9237_v54 = vld [vmem:[#allocation16 + $0x548] ss:$48 sps:$4 sm:$0xff]  }
 0xc86   : > { %4511 = vmatpush1.bf16.msra.mxu1 %v9132_v6 }
 0xc87   : > { %4512 = vmatprep.subr.bf16.mxu1 %v9140_v9 }
 0xc8a   : > { %4513 = vmatpush2.bf16.msra.mxu1 %v9138_v10 }
 0xc8b   : > { %4514 = vmatprep.subr.bf16.mxu1 %v9146_v12 }
 0xc8e   : > { %4515 = vmatpush2.bf16.msra.mxu1 %v9144_v11 }
 0xd29   : > { %v2590_v24 = vpop.f32.mrf.mxu0  ;;  %v8469_v4 = vpop.f32.mrf.mxu1 }
 0xd2a   : > { %v2591_v25 = vadd.f32 %v2590_v24, %v2288_v22  ;;  %v9152_v22 = vld [vmem:[#allocation16 + $0x4e4] ss:$48 sps:$4 sm:$0xff]   ;;  %v9153_v24 = vld [vmem:[#allocation16 + $0x780] ss:$48 sps:$4 sm:$0xff]  }
 0xd2b   : > { %v2592_v26 = vpop.f32.mrf.mxu0  ;;  %v8470_v27 = vpop.f32.mrf.mxu1  ;;  %4516 = vmatprep.subr.bf16.mxu1 %v9152_v22  ;;  %v9195_v22 = vld [vmem:[#allocation16 + $0x1e8] ss:$48 sps:$4 sm:$0xff]  }
 0xd2c   : > { %v2593_v29 = vadd.f32 %v2592_v26, %v2292_v23  ;;  %v8471_v30 = vadd.f32 %v8470_v27, %v8469_v4  ;;  %v10834_v33 = vadd.f32 %v9947_v35, %v2591_v25  ;;  %v9150_v23 = vld [vmem:[#allocation16 + $0x4e0] ss:$48 sps:$4 sm:$0xff]   ;;  %v9155_v4 = vld [vmem:[#allocation16 + $0x784] ss:$48 sps:$4 sm:$0xff]  }
 0xd2d   : > { %v2594_v34 = vpop.f32.mrf.mxu0  ;;  %v8472_v17 = vpop.f32.mrf.mxu1  ;;  %4517 = vmatpush2.bf16.msra.mxu1 %v9150_v23  ;;  %v9156_v25 = vld [vmem:[#allocation16 + $0x480] ss:$48 sps:$4 sm:$0xff]   ;;  %v9161_v26 = vld [vmem:[#allocation16 + $0x724] ss:$48 sps:$4 sm:$0xff]   ;;  %4543 = vmatprep.subr.bf16.mxu0 %v9155_v4  ;;  %v9198_v23 = vld [vmem:[#allocation16 + $0x7e8] ss:$48 sps:$4 sm:$0xff]  }
 0xd2e   : > { %v10837_v37 = vadd.f32 %v9948_v31, %v2593_v29  ;;  %v2632_v38 = vadd.f32 %v8471_v30, %v2296_v2  ;;  %v9158_v2 = vld [vmem:[#allocation16 + $0x484] ss:$48 sps:$4 sm:$0xff]   ;;  %4544 = vmatpush1.bf16.msra.mxu0 %v9153_v24  ;;  %v9159_v29 = vld [vmem:[#allocation16 + $0x720] ss:$48 sps:$4 sm:$0xff]   ;;  %v9203_v24 = vld [vmem:[#allocation16 + $0x18c] ss:$48 sps:$4 sm:$0xff]  }
 0xd2f   : > { %v2595_v39 = vpop.f32.mrf.mxu0  ;;  %v8473_v40 = vpop.f32.mrf.mxu1  ;;  %v9164_v27 = vld [vmem:[#allocation16 + $0x424] ss:$48 sps:$4 sm:$0xff]   ;;  %4518 = vmatprep.subr.bf16.mxu1 %v9158_v2  ;;  %4545 = vmatprep.subr.bf16.mxu0 %v9161_v26  ;;  %v9162_v30 = vld [vmem:[#allocation16 + $0x420] ss:$48 sps:$4 sm:$0xff]   ;;  %v9206_v4 = vld [vmem:[#allocation16 + $0x78c] ss:$48 sps:$4 sm:$0xff]  }
 0xd30   : > { %v10840_v42 = vadd.f32 %v9949_v41, %v2632_v38  ;;  %v2642_v43 = vadd.f32 %v10837_v37, %v10834_v33  ;;  %v9167_v34 = vld [vmem:[#allocation16 + $0x6c4] ss:$48 sps:$4 sm:$0xff]   ;;  %v9165_v35 = vld [vmem:[#allocation16 + $0x6c0] ss:$48 sps:$4 sm:$0xff]   ;;  %v9204_v2 = vld [vmem:[#allocation16 + $0x788] ss:$48 sps:$4 sm:$0xff]  }
 0xd31   : > { %4519 = vmatpush2.bf16.msra.mxu1 %v9156_v25  ;;  %v9170_v17 = vld [vmem:[#allocation16 + $0x3c4] ss:$48 sps:$4 sm:$0xff]   ;;  %v9168_v31 = vld [vmem:[#allocation16 + $0x3c0] ss:$48 sps:$4 sm:$0xff]   ;;  %v9201_v25 = vld [vmem:[#allocation16 + $0x188] ss:$48 sps:$4 sm:$0xff]  }
 0xd32   : > { %v2643_v44 = vadd.f32 %v2642_v43, %v10840_v42  ;;  %4520 = vmatprep.subr.bf16.mxu1 %v9164_v27  ;;  %4546 = vmatpush1.bf16.msra.mxu0 %v9159_v29  ;;  %v9173_v38 = vld [vmem:[#allocation16 + $0x664] ss:$48 sps:$4 sm:$0xff]   ;;  %v9171_v40 = vld [vmem:[#allocation16 + $0x660] ss:$48 sps:$4 sm:$0xff]   ;;  %v9209_v26 = vld [vmem:[#allocation16 + $0x12c] ss:$48 sps:$4 sm:$0xff]  }
 0xd33   : > { %4547 = vmatprep.subr.bf16.mxu0 %v9167_v34  ;;  %v9176_v39 = vld [vmem:[#allocation16 + $0x364] ss:$48 sps:$4 sm:$0xff]   ;;  %v9174_v41 = vld [vmem:[#allocation16 + $0x360] ss:$48 sps:$4 sm:$0xff]   ;;  %v9212_v27 = vld [vmem:[#allocation16 + $0x72c] ss:$48 sps:$4 sm:$0xff]  }
 0xd34   : > { %2644 = vadd.xlane.f32.xlu1 %v2643_v44  ;;  %v9179_v43 = vld [vmem:[#allocation16 + $0x604] ss:$48 sps:$4 sm:$0xff]   ;;  %v9207_v29 = vld [vmem:[#allocation16 + $0x128] ss:$48 sps:$4 sm:$0xff]   ;;  %v9215_v34 = vld [vmem:[#allocation16 + $0xcc] ss:$48 sps:$4 sm:$0xff]  }
 0xd35   : > { %4521 = vmatpush2.bf16.msra.mxu1 %v9162_v30  ;;  %v9182_v44 = vld [vmem:[#allocation16 + $0x304] ss:$48 sps:$4 sm:$0xff]   ;;  %v9210_v30 = vld [vmem:[#allocation16 + $0x728] ss:$48 sps:$4 sm:$0xff]  }
 0xd36   : > { %4522 = vmatprep.subr.bf16.mxu1 %v9170_v17  ;;  %4548 = vmatpush1.bf16.msra.mxu0 %v9165_v35  ;;  %v9218_v17 = vld [vmem:[#allocation16 + $0x6cc] ss:$48 sps:$4 sm:$0xff]   ;;  %v9213_v35 = vld [vmem:[#allocation16 + $0xc8] ss:$48 sps:$4 sm:$0xff]  }
 0xd37   : > { %4549 = vmatprep.subr.bf16.mxu0 %v9173_v38  ;;  %v9221_v38 = vld [vmem:[#allocation16 + $0x6c] ss:$48 sps:$4 sm:$0xff]  }
 0xd39   : > { %4523 = vmatpush2.bf16.msra.mxu1 %v9168_v31  ;;  %v9216_v31 = vld [vmem:[#allocation16 + $0x6c8] ss:$48 sps:$4 sm:$0xff]  }
 0xd3a   : > { %4524 = vmatprep.subr.bf16.mxu1 %v9176_v39  ;;  %4550 = vmatpush1.bf16.msra.mxu0 %v9171_v40  ;;  %v9224_v39 = vld [vmem:[#allocation16 + $0x66c] ss:$48 sps:$4 sm:$0xff]   ;;  %v9219_v40 = vld [vmem:[#allocation16 + $0x68] ss:$48 sps:$4 sm:$0xff]  }
 0xd3b   : > { %4551 = vmatprep.subr.bf16.mxu0 %v9179_v43  ;;  %v9227_v43 = vld [vmem:[#allocation16 + $0xc] ss:$48 sps:$4 sm:$0xff]  }
 0xd3d   : > { %4525 = vmatpush2.bf16.msra.mxu1 %v9174_v41  ;;  %v9222_v41 = vld [vmem:[#allocation16 + $0x668] ss:$48 sps:$4 sm:$0xff]  }
 0xd3e   : > { %4526 = vmatprep.subr.bf16.mxu1 %v9182_v44  ;;  %4552 = vmatpush1.bf16.msra.mxu0 %v9177_v45  ;;  %v9230_v44 = vld [vmem:[#allocation16 + $0x60c] ss:$48 sps:$4 sm:$0xff]   ;;  %v9225_v45 = vld [vmem:[#allocation16 + $0x8] ss:$48 sps:$4 sm:$0xff]  }
 0xd3f   : > { %4578 = vmatprep.subr.bf16.mxu0 %v9185_v48  ;;  %v9233_v48 = vld [vmem:[#allocation16 + $0x5ac] ss:$48 sps:$4 sm:$0xff]  }
 0xd41   : > { %4527 = vmatpush2.bf16.msra.mxu1 %v9180_v46  ;;  %v9228_v46 = vld [vmem:[#allocation16 + $0x608] ss:$48 sps:$4 sm:$0xff]  }
 0xd42   : > { %4619 = vmatprep.subr.bf16.mxu1 %v9188_v49  ;;  %v9236_v49 = vld [vmem:[#allocation16 + $0x2b4] ss:$48 sps:$4 sm:$0xff]  }
 0xdbd   : > { %v2645_v13 = vpop.xlane.xlu1 %2644 }
 0xdbe   : > { %v2646_v14 = vmul.f32 0.0026041667, %v2645_v13 }
 0xdc0   : > { %v10846_v47 = vsub.f32 %v10834_v33, %v2646_v14  ;;  %v10849_v15 = vsub.f32 %v10837_v37, %v2646_v14  ;;  %v10852_v16 = vsub.f32 %v10840_v42, %v2646_v14  ;;  %v9183_v14 = vld [vmem:[#allocation16 + $0x2a8] ss:$48 sps:$4 sm:$0xff]  }
 0xdc2   : > { %v2650_v18 = vmul.f32 %v10846_v47, %v10846_v47  ;;  %v2651_v19 = vmul.f32 %v10849_v15, %v10849_v15  ;;  %v2652_v20 = vmul.f32 %v10852_v16, %v10852_v16 }
 0xdc4   : > { %v2653_v36 = vadd.f32 %v2651_v19, %v2650_v18 }
 0xdc6   : > { %v2654_v21 = vadd.f32 %v2653_v36, %v2652_v20  ;;  %v9186_v20 = vld [vmem:[#allocation16 + $0x8a8] ss:$48 sps:$4 sm:$0xff]  }
 0xdc8   : > { %2655 = vadd.xlane.f32.xlu0 %v2654_v21  ;;  %v9192_v21 = vld [vmem:[#allocation16 + $0x848] ss:$48 sps:$4 sm:$0xff]  }
 0xe51   : > { %v2656_v50 = vpop.xlane.xlu0 %2655 }
 0xe52   : > { %v2657_v51 = vmul.f32 0.0026041667, %v2656_v50  ;;  %v9231_v50 = vld [vmem:[#allocation16 + $0x5a8] ss:$48 sps:$4 sm:$0xff]  }
 0xe54   : > { %v2658_v52 = vadd.f32 1e-05, %v2657_v51  ;;  %v9234_v51 = vld [vmem:[#allocation16 + $0x2b0] ss:$48 sps:$4 sm:$0xff]  }
 0xe56   : > { %9945 = vrsqrt.f32 %v2658_v52  ;;  %v9239_v52 = vld [vmem:[#allocation16 + $0x54c] ss:$48 sps:$4 sm:$0xff]  }
 0xe63   : > { %v9946_v59 = vpop.eup %9945 }
 0xe64   : > { %v2661_v62 = vmul.f32 %v9946_v59, %v10849_v15  ;;  %v2662_v63 = vmul.f32 %v9946_v59, %v10852_v16  ;;  %v2660_v0 = vmul.f32 %v9946_v59, %v10846_v47  ;;  %v9191_v15 = vld [vmem:[#allocation16 + $0x24c] ss:$48 sps:$4 sm:$0xff]   ;;  %v9189_v47 = vld [vmem:[#allocation16 + $0x248] ss:$48 sps:$4 sm:$0xff]  }
 0xe65   : > { %v9194_v16 = vld [vmem:[#allocation16 + $0x84c] ss:$48 sps:$4 sm:$0xff]   ;;  %v9243_v59 = vld [vmem:[#allocation16 + $0x4e8] ss:$48 sps:$4 sm:$0xff]  }
 0xe66   : > { %v2680_v6 = vmul.f32 %v2671_v55, %v2661_v62  ;;  %v2681_v9 = vmul.f32 %v2675_v56, %v2662_v63  ;;  %v2679_v10 = vmul.f32 %v2667_v57, %v2660_v0  ;;  %v9240_v55 = vld [vmem:[#allocation16 + $0x250] ss:$48 sps:$4 sm:$0xff]   ;;  %v9245_v56 = vld [vmem:[#allocation16 + $0x4ec] ss:$48 sps:$4 sm:$0xff]   ;;  %v9248_v57 = vld [vmem:[#allocation16 + $0x1f4] ss:$48 sps:$4 sm:$0xff]  }
 0xe67   : > { %v9254_v62 = vld [vmem:[#allocation16 + $0x194] ss:$48 sps:$4 sm:$0xff]   ;;  %v9249_v63 = vld [vmem:[#allocation16 + $0x488] ss:$48 sps:$4 sm:$0xff]   ;;  %v9252_v0 = vld [vmem:[#allocation16 + $0x190] ss:$48 sps:$4 sm:$0xff]  }
 0xe68   : > { %v2699_v12 = vadd.f32 %v2690_v60, %v2680_v6  ;;  %v2700_v11 = vadd.f32 %v2694_v61, %v2681_v9  ;;  %v2698_v13 = vadd.f32 %v2686_v1, %v2679_v10  ;;  %v9246_v60 = vld [vmem:[#allocation16 + $0x1f0] ss:$48 sps:$4 sm:$0xff]   ;;  %v9251_v61 = vld [vmem:[#allocation16 + $0x48c] ss:$48 sps:$4 sm:$0xff]   ;;  %v9260_v6 = vld [vmem:[#allocation16 + $0x134] ss:$48 sps:$4 sm:$0xff]  }
 0xe69   : > { %v9257_v1 = vld [vmem:[#allocation16 + $0x42c] ss:$48 sps:$4 sm:$0xff]   ;;  %v9255_v9 = vld [vmem:[#allocation16 + $0x428] ss:$48 sps:$4 sm:$0xff]   ;;  %v9258_v10 = vld [vmem:[#allocation16 + $0x130] ss:$48 sps:$4 sm:$0xff]  }
 0xe6a   : > { %v10869_v18 = vpack.c.bf16 %v2699_v12, %v2699_v12  ;;  %v10871_v19 = vpack.c.bf16 %v2700_v11, %v2700_v11  ;;  %v10873_v36 = vpack.c.bf16 %v2698_v13, %v2698_v13  ;;  %v9263_v12 = vld [vmem:[#allocation16 + $0x3cc] ss:$48 sps:$4 sm:$0xff]   ;;  %v9266_v11 = vld [vmem:[#allocation16 + $0xd4] ss:$48 sps:$4 sm:$0xff]   ;;  %v9261_v13 = vld [vmem:[#allocation16 + $0x3c8] ss:$48 sps:$4 sm:$0xff]  }
 0xe6c   : > { %4528 = vmatprep.mubr.bf16.mxu1 %v10869_v18  ;;  %4570 = vmatmul.mubr.bf16.vlgmr.msra.gmra.mxu0 %v10871_v19 }
 0xe6d   : > { %4579 = vmatpush1.bf16.msra.mxu0 %v9183_v14  ;;  %4529 = vmatmul.mubr.bf16.vlgmr.msra.gmra.mxu1 %v10873_v36  ;;  %v9264_v14 = vld [vmem:[#allocation16 + $0xd0] ss:$48 sps:$4 sm:$0xff]  }
 0xe6e   : > { %4610 = vmatprep.mubr.bf16.mxu0 %v10869_v18  ;;  %4620 = vmatpush1.bf16.msra.mxu1 %v9186_v20  ;;  %v9269_v20 = vld [vmem:[#allocation16 + $0x36c] ss:$48 sps:$4 sm:$0xff]  }
 0xe6f   : > { %4580 = vmatprep.subr.bf16.mxu0 %v9191_v15  ;;  %4621 = vmatprep.subr.bf16.mxu1 %v9194_v16  ;;  %v9272_v15 = vld [vmem:[#allocation16 + $0x74] ss:$48 sps:$4 sm:$0xff]   ;;  %v9267_v16 = vld [vmem:[#allocation16 + $0x368] ss:$48 sps:$4 sm:$0xff]  }
 0xe70   : > { %4651 = vmatprep.mubr.bf16.mxu1 %v10372_v58 }
 0xe71   : > { %4581 = vmatpush1.bf16.msra.mxu0 %v9189_v47  ;;  %v9270_v47 = vld [vmem:[#allocation16 + $0x70] ss:$48 sps:$4 sm:$0xff]  }
 0xe72   : > { %4622 = vmatpush1.bf16.msra.mxu1 %v9192_v21  ;;  %4582 = vmatprep.subr.bf16.mxu0 %v9197_v32  ;;  %v9275_v21 = vld [vmem:[#allocation16 + $0x30c] ss:$48 sps:$4 sm:$0xff]   ;;  %v9278_v32 = vld [vmem:[#allocation16 + $0x14] ss:$48 sps:$4 sm:$0xff]  }
 0xe73   : > { %4623 = vmatprep.subr.bf16.mxu1 %v9200_v28  ;;  %v9273_v28 = vld [vmem:[#allocation16 + $0x308] ss:$48 sps:$4 sm:$0xff]  }
 0xe75   : > { %4583 = vmatpush1.bf16.msra.mxu0 %v9195_v22  ;;  %v9276_v22 = vld [vmem:[#allocation16 + $0x10] ss:$48 sps:$4 sm:$0xff]  }
 0xe76   : > { %4624 = vmatpush1.bf16.msra.mxu1 %v9198_v23  ;;  %4584 = vmatprep.subr.bf16.mxu0 %v9203_v24  ;;  %v9281_v23 = vld [vmem:[#allocation16 + $0x8b4] ss:$48 sps:$4 sm:$0xff]  }
 0xe77   : > { %4625 = vmatprep.subr.bf16.mxu1 %v9206_v4  ;;  %v9284_v24 = vld [vmem:[#allocation16 + $0x5b4] ss:$48 sps:$4 sm:$0xff]   ;;  %v9279_v4 = vld [vmem:[#allocation16 + $0x8b0] ss:$48 sps:$4 sm:$0xff]  }
 0xe79   : > { %4585 = vmatpush1.bf16.msra.mxu0 %v9201_v25  ;;  %v9282_v25 = vld [vmem:[#allocation16 + $0x5b0] ss:$48 sps:$4 sm:$0xff]  }
 0xe7a   : > { %4626 = vmatpush1.bf16.msra.mxu1 %v9204_v2  ;;  %4586 = vmatprep.subr.bf16.mxu0 %v9209_v26  ;;  %v9287_v2 = vld [vmem:[#allocation16 + $0x854] ss:$48 sps:$4 sm:$0xff]  }
 0xe7b   : > { %4627 = vmatprep.subr.bf16.mxu1 %v9212_v27  ;;  %v9290_v26 = vld [vmem:[#allocation16 + $0x554] ss:$48 sps:$4 sm:$0xff]   ;;  %v9285_v27 = vld [vmem:[#allocation16 + $0x850] ss:$48 sps:$4 sm:$0xff]  }
 0xe7d   : > { %4587 = vmatpush1.bf16.msra.mxu0 %v9207_v29  ;;  %v9288_v29 = vld [vmem:[#allocation16 + $0x550] ss:$48 sps:$4 sm:$0xff]  }
 0xe7e   : > { %4628 = vmatpush1.bf16.msra.mxu1 %v9210_v30  ;;  %4588 = vmatprep.subr.bf16.mxu0 %v9215_v34  ;;  %v9293_v30 = vld [vmem:[#allocation16 + $0x7f4] ss:$48 sps:$4 sm:$0xff]  }
 0xe7f   : > { %4629 = vmatprep.subr.bf16.mxu1 %v9218_v17  ;;  %v9296_v34 = vld [vmem:[#allocation16 + $0x4f4] ss:$48 sps:$4 sm:$0xff]   ;;  %v9291_v17 = vld [vmem:[#allocation16 + $0x7f0] ss:$48 sps:$4 sm:$0xff]  }
 0xe81   : > { %4589 = vmatpush1.bf16.msra.mxu0 %v9213_v35  ;;  %v9294_v35 = vld [vmem:[#allocation16 + $0x4f0] ss:$48 sps:$4 sm:$0xff]  }
 0xe82   : > { %4630 = vmatpush1.bf16.msra.mxu1 %v9216_v31  ;;  %4590 = vmatprep.subr.bf16.mxu0 %v9221_v38  ;;  %v9299_v31 = vld [vmem:[#allocation16 + $0x794] ss:$48 sps:$4 sm:$0xff]  }
 0xe83   : > { %4631 = vmatprep.subr.bf16.mxu1 %v9224_v39  ;;  %v9302_v38 = vld [vmem:[#allocation16 + $0x494] ss:$48 sps:$4 sm:$0xff]   ;;  %v9297_v39 = vld [vmem:[#allocation16 + $0x790] ss:$48 sps:$4 sm:$0xff]  }
 0xe85   : > { %4591 = vmatpush1.bf16.msra.mxu0 %v9219_v40  ;;  %v9300_v40 = vld [vmem:[#allocation16 + $0x490] ss:$48 sps:$4 sm:$0xff]  }
 0xe86   : > { %4632 = vmatpush1.bf16.msra.mxu1 %v9222_v41  ;;  %4592 = vmatprep.subr.bf16.mxu0 %v9227_v43  ;;  %v9305_v41 = vld [vmem:[#allocation16 + $0x734] ss:$48 sps:$4 sm:$0xff]  }
 0xe87   : > { %4633 = vmatprep.subr.bf16.mxu1 %v9230_v44  ;;  %v9308_v43 = vld [vmem:[#allocation16 + $0x434] ss:$48 sps:$4 sm:$0xff]   ;;  %v9303_v44 = vld [vmem:[#allocation16 + $0x730] ss:$48 sps:$4 sm:$0xff]  }
 0xe89   : > { %4593 = vmatpush1.bf16.msra.mxu0 %v9225_v45  ;;  %v9306_v45 = vld [vmem:[#allocation16 + $0x430] ss:$48 sps:$4 sm:$0xff]  }
 0xe8a   : > { %4634 = vmatpush1.bf16.msra.mxu1 %v9228_v46  ;;  %4594 = vmatprep.subr.bf16.mxu0 %v9233_v48  ;;  %v9311_v46 = vld [vmem:[#allocation16 + $0x6d4] ss:$48 sps:$4 sm:$0xff]  }
 0xe8b   : > { %4660 = vmatprep.subr.bf16.mxu1 %v9236_v49  ;;  %v9314_v48 = vld [vmem:[#allocation16 + $0x3d4] ss:$48 sps:$4 sm:$0xff]   ;;  %v9309_v49 = vld [vmem:[#allocation16 + $0x6d0] ss:$48 sps:$4 sm:$0xff]  }
 0xe8d   : > { %4595 = vmatpush2.bf16.msra.mxu0 %v9231_v50  ;;  %4652 = vmatmul.mubr.bf16.vlgmr.msra.gmra.mxu1 %v10871_v19  ;;  %v9312_v50 = vld [vmem:[#allocation16 + $0x3d0] ss:$48 sps:$4 sm:$0xff]  }
 0xe8e   : > { %4661 = vmatpush1.bf16.msra.mxu1 %v9234_v51  ;;  %4692 = vmatprep.mubr.bf16.mxu1 %v10869_v18  ;;  %v9317_v51 = vld [vmem:[#allocation16 + $0x674] ss:$48 sps:$4 sm:$0xff]  }
 0xe8f   : > { %4596 = vmatprep.subr.bf16.mxu0 %v9239_v52  ;;  %4662 = vmatprep.subr.bf16.mxu1 %v9242_v53  ;;  %v9320_v52 = vld [vmem:[#allocation16 + $0x374] ss:$48 sps:$4 sm:$0xff]   ;;  %v9315_v53 = vld [vmem:[#allocation16 + $0x670] ss:$48 sps:$4 sm:$0xff]  }
 0xe91   : > { %4597 = vmatpush2.bf16.msra.mxu0 %v9237_v54  ;;  %v9318_v54 = vld [vmem:[#allocation16 + $0x370] ss:$48 sps:$4 sm:$0xff]  }
 0xe92   : > { %4663 = vmatpush1.bf16.msra.mxu1 %v9240_v55  ;;  %4598 = vmatprep.subr.bf16.mxu0 %v9245_v56  ;;  %v9323_v55 = vld [vmem:[#allocation16 + $0x614] ss:$48 sps:$4 sm:$0xff]  }
 0xe93   : > { %4664 = vmatprep.subr.bf16.mxu1 %v9248_v57  ;;  %v9326_v56 = vld [vmem:[#allocation16 + $0x314] ss:$48 sps:$4 sm:$0xff]   ;;  %v9321_v57 = vld [vmem:[#allocation16 + $0x610] ss:$48 sps:$4 sm:$0xff]  }
 0xe95   : > { %4599 = vmatpush2.bf16.msra.mxu0 %v9243_v59  ;;  %v9324_v59 = vld [vmem:[#allocation16 + $0x310] ss:$48 sps:$4 sm:$0xff]  }
 0xe96   : > { %4665 = vmatpush1.bf16.msra.mxu1 %v9246_v60  ;;  %4600 = vmatprep.subr.bf16.mxu0 %v9251_v61  ;;  %v9329_v60 = vld [vmem:[#allocation16 + $0x2bc] ss:$48 sps:$4 sm:$0xff]  }
 0xe97   : > { %4666 = vmatprep.subr.bf16.mxu1 %v9254_v62  ;;  %v9332_v61 = vld [vmem:[#allocation16 + $0x8bc] ss:$48 sps:$4 sm:$0xff]   ;;  %v9327_v62 = vld [vmem:[#allocation16 + $0x2b8] ss:$48 sps:$4 sm:$0xff]  }
 0xe99   : > { %4601 = vmatpush2.bf16.msra.mxu0 %v9249_v63  ;;  %v9330_v63 = vld [vmem:[#allocation16 + $0x8b8] ss:$48 sps:$4 sm:$0xff]  }
 0xe9a   : > { %4667 = vmatpush1.bf16.msra.mxu1 %v9252_v0  ;;  %4602 = vmatprep.subr.bf16.mxu0 %v9257_v1  ;;  %v9335_v0 = vld [vmem:[#allocation16 + $0x25c] ss:$48 sps:$4 sm:$0xff]  }
 0xe9b   : > { %4668 = vmatprep.subr.bf16.mxu1 %v9260_v6  ;;  %v9338_v1 = vld [vmem:[#allocation16 + $0x85c] ss:$48 sps:$4 sm:$0xff]   ;;  %v9333_v6 = vld [vmem:[#allocation16 + $0x258] ss:$48 sps:$4 sm:$0xff]  }
 0xe9d   : > { %4603 = vmatpush2.bf16.msra.mxu0 %v9255_v9  ;;  %v9336_v9 = vld [vmem:[#allocation16 + $0x858] ss:$48 sps:$4 sm:$0xff]  }
 0xe9e   : > { %4669 = vmatpush1.bf16.msra.mxu1 %v9258_v10  ;;  %4604 = vmatprep.subr.bf16.mxu0 %v9263_v12  ;;  %v9341_v10 = vld [vmem:[#allocation16 + $0x1fc] ss:$48 sps:$4 sm:$0xff]  }
 0xe9f   : > { %4670 = vmatprep.subr.bf16.mxu1 %v9266_v11  ;;  %v9344_v12 = vld [vmem:[#allocation16 + $0x7fc] ss:$48 sps:$4 sm:$0xff]   ;;  %v9339_v11 = vld [vmem:[#allocation16 + $0x1f8] ss:$48 sps:$4 sm:$0xff]  }
 0xea1   : > { %4605 = vmatpush2.bf16.msra.mxu0 %v9261_v13  ;;  %v9342_v13 = vld [vmem:[#allocation16 + $0x7f8] ss:$48 sps:$4 sm:$0xff]  }
 0xea2   : > { %4671 = vmatpush1.bf16.msra.mxu1 %v9264_v14  ;;  %4606 = vmatprep.subr.bf16.mxu0 %v9269_v20  ;;  %v9347_v14 = vld [vmem:[#allocation16 + $0x19c] ss:$48 sps:$4 sm:$0xff]  }
 0xea3   : > { %4672 = vmatprep.subr.bf16.mxu1 %v9272_v15  ;;  %v9350_v20 = vld [vmem:[#allocation16 + $0x79c] ss:$48 sps:$4 sm:$0xff]   ;;  %v9345_v15 = vld [vmem:[#allocation16 + $0x198] ss:$48 sps:$4 sm:$0xff]  }
 0xea5   : > { %4607 = vmatpush2.bf16.msra.mxu0 %v9267_v16  ;;  %v9348_v16 = vld [vmem:[#allocation16 + $0x798] ss:$48 sps:$4 sm:$0xff]  }
 0xea6   : > { %4673 = vmatpush1.bf16.msra.mxu1 %v9270_v47  ;;  %4608 = vmatprep.subr.bf16.mxu0 %v9275_v21  ;;  %v9353_v47 = vld [vmem:[#allocation16 + $0x13c] ss:$48 sps:$4 sm:$0xff]  }
 0xea7   : > { %4674 = vmatprep.subr.bf16.mxu1 %v9278_v32  ;;  %v9356_v21 = vld [vmem:[#allocation16 + $0x73c] ss:$48 sps:$4 sm:$0xff]   ;;  %v9351_v32 = vld [vmem:[#allocation16 + $0x138] ss:$48 sps:$4 sm:$0xff]  }
 0xea9   : > { %4609 = vmatpush2.bf16.msra.mxu0 %v9273_v28  ;;  %v9354_v28 = vld [vmem:[#allocation16 + $0x738] ss:$48 sps:$4 sm:$0xff]  }
 0xeaa   : > { %4675 = vmatpush1.bf16.msra.mxu1 %v9276_v22  ;;  %4701 = vmatprep.subr.bf16.mxu0 %v9281_v23  ;;  %v9359_v22 = vld [vmem:[#allocation16 + $0xdc] ss:$48 sps:$4 sm:$0xff]  }
 0xeab   : > { %4676 = vmatprep.subr.bf16.mxu1 %v9284_v24  ;;  %v9362_v23 = vld [vmem:[#allocation16 + $0x6dc] ss:$48 sps:$4 sm:$0xff]   ;;  %v9357_v24 = vld [vmem:[#allocation16 + $0xd8] ss:$48 sps:$4 sm:$0xff]  }
 0xeac   : > { %4611 = vmatmul.mubr.bf16.vlgmr.msra.gmra.mxu0 %v10873_v36 }
 0xead   : > { %4702 = vmatpush1.bf16.msra.mxu0 %v9279_v4  ;;  %4733 = vmatprep.mubr.bf16.mxu0 %v10372_v58  ;;  %v9360_v4 = vld [vmem:[#allocation16 + $0x6d8] ss:$48 sps:$4 sm:$0xff]  }
 0xeae   : > { %4677 = vmatpush2.bf16.msra.mxu1 %v9282_v25  ;;  %4703 = vmatprep.subr.bf16.mxu0 %v9287_v2  ;;  %v9365_v25 = vld [vmem:[#allocation16 + $0x7c] ss:$48 sps:$4 sm:$0xff]  }
 0xeaf   : > { %4678 = vmatprep.subr.bf16.mxu1 %v9290_v26  ;;  %v9368_v2 = vld [vmem:[#allocation16 + $0x67c] ss:$48 sps:$4 sm:$0xff]   ;;  %v9363_v26 = vld [vmem:[#allocation16 + $0x78] ss:$48 sps:$4 sm:$0xff]  }
 0xeb1   : > { %4704 = vmatpush1.bf16.msra.mxu0 %v9285_v27  ;;  %v9366_v27 = vld [vmem:[#allocation16 + $0x678] ss:$48 sps:$4 sm:$0xff]  }
 0xeb2   : > { %4679 = vmatpush2.bf16.msra.mxu1 %v9288_v29  ;;  %4705 = vmatprep.subr.bf16.mxu0 %v9293_v30  ;;  %v9371_v29 = vld [vmem:[#allocation16 + $0x1c] ss:$48 sps:$4 sm:$0xff]  }
 0xeb3   : > { %4680 = vmatprep.subr.bf16.mxu1 %v9296_v34  ;;  %v9374_v30 = vld [vmem:[#allocation16 + $0x61c] ss:$48 sps:$4 sm:$0xff]   ;;  %v9369_v34 = vld [vmem:[#allocation16 + $0x18] ss:$48 sps:$4 sm:$0xff]  }
 0xeb5   : > { %4706 = vmatpush1.bf16.msra.mxu0 %v9291_v17  ;;  %v9372_v17 = vld [vmem:[#allocation16 + $0x618] ss:$48 sps:$4 sm:$0xff]  }
 0xeb6   : > { %4681 = vmatpush2.bf16.msra.mxu1 %v9294_v35  ;;  %4707 = vmatprep.subr.bf16.mxu0 %v9299_v31  ;;  %v9377_v35 = vld [vmem:[#allocation16 + $0x5bc] ss:$48 sps:$4 sm:$0xff]   ;;  %v9380_v31 = vld [vmem:[#allocation16 + $0x2c4] ss:$48 sps:$4 sm:$0xff]  }
 0xeb7   : > { %4682 = vmatprep.subr.bf16.mxu1 %v9302_v38  ;;  %v9375_v38 = vld [vmem:[#allocation16 + $0x5b8] ss:$48 sps:$4 sm:$0xff]  }
 0xeb9   : > { %4708 = vmatpush1.bf16.msra.mxu0 %v9297_v39  ;;  %v9378_v39 = vld [vmem:[#allocation16 + $0x2c0] ss:$48 sps:$4 sm:$0xff]  }
 0xeba   : > { %4683 = vmatpush2.bf16.msra.mxu1 %v9300_v40  ;;  %4709 = vmatprep.subr.bf16.mxu0 %v9305_v41  ;;  %v9383_v40 = vld [vmem:[#allocation16 + $0x55c] ss:$48 sps:$4 sm:$0xff]   ;;  %v9386_v41 = vld [vmem:[#allocation16 + $0x264] ss:$48 sps:$4 sm:$0xff]  }
 0xebb   : > { %4684 = vmatprep.subr.bf16.mxu1 %v9308_v43  ;;  %v9381_v43 = vld [vmem:[#allocation16 + $0x558] ss:$48 sps:$4 sm:$0xff]  }
 0xebd   : > { %4710 = vmatpush1.bf16.msra.mxu0 %v9303_v44  ;;  %v9384_v44 = vld [vmem:[#allocation16 + $0x260] ss:$48 sps:$4 sm:$0xff]  }
 0xebe   : > { %4685 = vmatpush2.bf16.msra.mxu1 %v9306_v45  ;;  %4711 = vmatprep.subr.bf16.mxu0 %v9311_v46  ;;  %v9389_v45 = vld [vmem:[#allocation16 + $0x4fc] ss:$48 sps:$4 sm:$0xff]   ;;  %v9392_v46 = vld [vmem:[#allocation16 + $0x204] ss:$48 sps:$4 sm:$0xff]  }
 0xebf   : > { %4686 = vmatprep.subr.bf16.mxu1 %v9314_v48  ;;  %v9387_v48 = vld [vmem:[#allocation16 + $0x4f8] ss:$48 sps:$4 sm:$0xff]  }
 0xec1   : > { %4712 = vmatpush1.bf16.msra.mxu0 %v9309_v49  ;;  %v9390_v49 = vld [vmem:[#allocation16 + $0x200] ss:$48 sps:$4 sm:$0xff]  }
 0xec2   : > { %4687 = vmatpush2.bf16.msra.mxu1 %v9312_v50  ;;  %4713 = vmatprep.subr.bf16.mxu0 %v9317_v51  ;;  %v9395_v50 = vld [vmem:[#allocation16 + $0x49c] ss:$48 sps:$4 sm:$0xff]   ;;  %v9398_v51 = vld [vmem:[#allocation16 + $0x1a4] ss:$48 sps:$4 sm:$0xff]  }
 0xec3   : > { %4688 = vmatprep.subr.bf16.mxu1 %v9320_v52  ;;  %v9393_v52 = vld [vmem:[#allocation16 + $0x498] ss:$48 sps:$4 sm:$0xff]  }
 0xec5   : > { %4714 = vmatpush1.bf16.msra.mxu0 %v9315_v53  ;;  %v9396_v53 = vld [vmem:[#allocation16 + $0x1a0] ss:$48 sps:$4 sm:$0xff]  }
 0xec6   : > { %4689 = vmatpush2.bf16.msra.mxu1 %v9318_v54  ;;  %4715 = vmatprep.subr.bf16.mxu0 %v9323_v55  ;;  %v9401_v54 = vld [vmem:[#allocation16 + $0x43c] ss:$48 sps:$4 sm:$0xff]   ;;  %v9404_v55 = vld [vmem:[#allocation16 + $0x144] ss:$48 sps:$4 sm:$0xff]  }
 0xec7   : > { %4690 = vmatprep.subr.bf16.mxu1 %v9326_v56  ;;  %v9399_v56 = vld [vmem:[#allocation16 + $0x438] ss:$48 sps:$4 sm:$0xff]  }
 0xec9   : > { %4716 = vmatpush1.bf16.msra.mxu0 %v9321_v57  ;;  %v9402_v57 = vld [vmem:[#allocation16 + $0x140] ss:$48 sps:$4 sm:$0xff]  }
 0xeca   : > { %4691 = vmatpush2.bf16.msra.mxu1 %v9324_v59  ;;  %4742 = vmatprep.subr.bf16.mxu0 %v9329_v60  ;;  %v9407_v59 = vld [vmem:[#allocation16 + $0x3dc] ss:$48 sps:$4 sm:$0xff]   ;;  %v9410_v60 = vld [vmem:[#allocation16 + $0xe4] ss:$48 sps:$4 sm:$0xff]  }
 0xecb   : > { %4783 = vmatprep.subr.bf16.mxu1 %v9332_v61  ;;  %v9405_v61 = vld [vmem:[#allocation16 + $0x3d8] ss:$48 sps:$4 sm:$0xff]  }
 0xecc   : > { %4734 = vmatmul.mubr.bf16.vlgmr.msra.gmra.mxu0 %v10871_v19 }
 0xecd   : > { %4693 = vmatmul.mubr.bf16.vlgmr.msra.gmra.mxu1 %v10873_v36  ;;  %4743 = vmatpush1.bf16.msra.mxu0 %v9327_v62  ;;  %v9408_v62 = vld [vmem:[#allocation16 + $0xe0] ss:$48 sps:$4 sm:$0xff]  }
 0xece   : > { %4774 = vmatprep.mubr.bf16.mxu0 %v10869_v18  ;;  %4784 = vmatpush1.bf16.msra.mxu1 %v9330_v63  ;;  %v9413_v63 = vld [vmem:[#allocation16 + $0x37c] ss:$48 sps:$4 sm:$0xff]  }
 0xecf   : > { %4744 = vmatprep.subr.bf16.mxu0 %v9335_v0  ;;  %4785 = vmatprep.subr.bf16.mxu1 %v9338_v1  ;;  %v9416_v0 = vld [vmem:[#allocation16 + $0x84] ss:$48 sps:$4 sm:$0xff]   ;;  %v9411_v1 = vld [vmem:[#allocation16 + $0x378] ss:$48 sps:$4 sm:$0xff]  }
 0xed0   : > { %4815 = vmatprep.mubr.bf16.mxu1 %v10372_v58 }
 0xed1   : > { %4745 = vmatpush1.bf16.msra.mxu0 %v9333_v6  ;;  %v9414_v6 = vld [vmem:[#allocation16 + $0x80] ss:$48 sps:$4 sm:$0xff]  }
 0xed2   : > { %4786 = vmatpush1.bf16.msra.mxu1 %v9336_v9  ;;  %4746 = vmatprep.subr.bf16.mxu0 %v9341_v10  ;;  %v9419_v9 = vld [vmem:[#allocation16 + $0x31c] ss:$48 sps:$4 sm:$0xff]   ;;  %v9422_v10 = vld [vmem:[#allocation16 + $0x24] ss:$48 sps:$4 sm:$0xff]  }
 0xed3   : > { %4787 = vmatprep.subr.bf16.mxu1 %v9344_v12  ;;  %v9417_v12 = vld [vmem:[#allocation16 + $0x318] ss:$48 sps:$4 sm:$0xff]  }
 0xed5   : > { %4747 = vmatpush1.bf16.msra.mxu0 %v9339_v11  ;;  %v9420_v11 = vld [vmem:[#allocation16 + $0x20] ss:$48 sps:$4 sm:$0xff]  }
 0xed6   : > { %4788 = vmatpush1.bf16.msra.mxu1 %v9342_v13  ;;  %4748 = vmatprep.subr.bf16.mxu0 %v9347_v14  ;;  %v9425_v13 = vld [vmem:[#allocation16 + $0x8c4] ss:$48 sps:$4 sm:$0xff]  }
 0xed7   : > { %4789 = vmatprep.subr.bf16.mxu1 %v9350_v20  ;;  %v9428_v14 = vld [vmem:[#allocation16 + $0x5c4] ss:$48 sps:$4 sm:$0xff]   ;;  %v9423_v20 = vld [vmem:[#allocation16 + $0x8c0] ss:$48 sps:$4 sm:$0xff]  }
 0xed9   : > { %4749 = vmatpush1.bf16.msra.mxu0 %v9345_v15  ;;  %v9426_v15 = vld [vmem:[#allocation16 + $0x5c0] ss:$48 sps:$4 sm:$0xff]  }
 0xeda   : > { %4790 = vmatpush1.bf16.msra.mxu1 %v9348_v16  ;;  %4750 = vmatprep.subr.bf16.mxu0 %v9353_v47  ;;  %v9431_v16 = vld [vmem:[#allocation16 + $0x864] ss:$48 sps:$4 sm:$0xff]  }
 0xedb   : > { %4791 = vmatprep.subr.bf16.mxu1 %v9356_v21  ;;  %v9434_v47 = vld [vmem:[#allocation16 + $0x564] ss:$48 sps:$4 sm:$0xff]   ;;  %v9429_v21 = vld [vmem:[#allocation16 + $0x860] ss:$48 sps:$4 sm:$0xff]  }
 0xedd   : > { %4751 = vmatpush1.bf16.msra.mxu0 %v9351_v32  ;;  %v9432_v32 = vld [vmem:[#allocation16 + $0x560] ss:$48 sps:$4 sm:$0xff]  }
 0xede   : > { %4792 = vmatpush1.bf16.msra.mxu1 %v9354_v28  ;;  %4752 = vmatprep.subr.bf16.mxu0 %v9359_v22  ;;  %v9437_v28 = vld [vmem:[#allocation16 + $0x804] ss:$48 sps:$4 sm:$0xff]  }
 0xedf   : > { %4793 = vmatprep.subr.bf16.mxu1 %v9362_v23  ;;  %v9440_v22 = vld [vmem:[#allocation16 + $0x504] ss:$48 sps:$4 sm:$0xff]   ;;  %v9435_v23 = vld [vmem:[#allocation16 + $0x800] ss:$48 sps:$4 sm:$0xff]  }
 0xee1   : > { %4753 = vmatpush1.bf16.msra.mxu0 %v9357_v24  ;;  %v9438_v24 = vld [vmem:[#allocation16 + $0x500] ss:$48 sps:$4 sm:$0xff]  }
 0xee2   : > { %4794 = vmatpush1.bf16.msra.mxu1 %v9360_v4  ;;  %4754 = vmatprep.subr.bf16.mxu0 %v9365_v25  ;;  %v9443_v4 = vld [vmem:[#allocation16 + $0x7a4] ss:$48 sps:$4 sm:$0xff]  }
 0xee3   : > { %4795 = vmatprep.subr.bf16.mxu1 %v9368_v2  ;;  %v9446_v25 = vld [vmem:[#allocation16 + $0x4a4] ss:$48 sps:$4 sm:$0xff]   ;;  %v9441_v2 = vld [vmem:[#allocation16 + $0x7a0] ss:$48 sps:$4 sm:$0xff]  }
 0xee5   : > { %4755 = vmatpush1.bf16.msra.mxu0 %v9363_v26  ;;  %v9444_v26 = vld [vmem:[#allocation16 + $0x4a0] ss:$48 sps:$4 sm:$0xff]  }
 0xee6   : > { %4796 = vmatpush1.bf16.msra.mxu1 %v9366_v27  ;;  %4756 = vmatprep.subr.bf16.mxu0 %v9371_v29  ;;  %v9449_v27 = vld [vmem:[#allocation16 + $0x744] ss:$48 sps:$4 sm:$0xff]  }
 0xee7   : > { %4797 = vmatprep.subr.bf16.mxu1 %v9374_v30  ;;  %v9452_v29 = vld [vmem:[#allocation16 + $0x444] ss:$48 sps:$4 sm:$0xff]   ;;  %v9447_v30 = vld [vmem:[#allocation16 + $0x740] ss:$48 sps:$4 sm:$0xff]  }
 0xee9   : > { %4757 = vmatpush1.bf16.msra.mxu0 %v9369_v34  ;;  %v9450_v34 = vld [vmem:[#allocation16 + $0x440] ss:$48 sps:$4 sm:$0xff]  }
 0xeea   : > { %4798 = vmatpush1.bf16.msra.mxu1 %v9372_v17  ;;  %4758 = vmatprep.subr.bf16.mxu0 %v9377_v35  ;;  %v9455_v17 = vld [vmem:[#allocation16 + $0x6e4] ss:$48 sps:$4 sm:$0xff]  }
 0xeeb   : > { %4824 = vmatprep.subr.bf16.mxu1 %v9380_v31  ;;  %v9458_v35 = vld [vmem:[#allocation16 + $0x3e4] ss:$48 sps:$4 sm:$0xff]   ;;  %v9453_v31 = vld [vmem:[#allocation16 + $0x6e0] ss:$48 sps:$4 sm:$0xff]  }
 0xeed   : > { %4759 = vmatpush2.bf16.msra.mxu0 %v9375_v38  ;;  %4816 = vmatmul.mubr.bf16.vlgmr.msra.gmra.mxu1 %v10871_v19  ;;  %v9456_v38 = vld [vmem:[#allocation16 + $0x3e0] ss:$48 sps:$4 sm:$0xff]  }
 0xeee   : > { %4825 = vmatpush1.bf16.msra.mxu1 %v9378_v39  ;;  %4856 = vmatprep.mubr.bf16.mxu1 %v10869_v18  ;;  %v9461_v39 = vld [vmem:[#allocation16 + $0x684] ss:$48 sps:$4 sm:$0xff]  }
 0xeef   : > { %4760 = vmatprep.subr.bf16.mxu0 %v9383_v40  ;;  %4826 = vmatprep.subr.bf16.mxu1 %v9386_v41  ;;  %v9464_v40 = vld [vmem:[#allocation16 + $0x384] ss:$48 sps:$4 sm:$0xff]   ;;  %v9459_v41 = vld [vmem:[#allocation16 + $0x680] ss:$48 sps:$4 sm:$0xff]  }
 0xef1   : > { %4761 = vmatpush2.bf16.msra.mxu0 %v9381_v43  ;;  %v9462_v43 = vld [vmem:[#allocation16 + $0x380] ss:$48 sps:$4 sm:$0xff]  }
 0xef2   : > { %4827 = vmatpush1.bf16.msra.mxu1 %v9384_v44  ;;  %4762 = vmatprep.subr.bf16.mxu0 %v9389_v45  ;;  %v9467_v44 = vld [vmem:[#allocation16 + $0x624] ss:$48 sps:$4 sm:$0xff]  }
 0xef3   : > { %4828 = vmatprep.subr.bf16.mxu1 %v9392_v46  ;;  %v9470_v45 = vld [vmem:[#allocation16 + $0x324] ss:$48 sps:$4 sm:$0xff]   ;;  %v9465_v46 = vld [vmem:[#allocation16 + $0x620] ss:$48 sps:$4 sm:$0xff]  }
 0xef5   : > { %4763 = vmatpush2.bf16.msra.mxu0 %v9387_v48  ;;  %v9468_v48 = vld [vmem:[#allocation16 + $0x320] ss:$48 sps:$4 sm:$0xff]  }
 0xef6   : > { %4829 = vmatpush1.bf16.msra.mxu1 %v9390_v49  ;;  %4764 = vmatprep.subr.bf16.mxu0 %v9395_v50  ;;  %v9473_v49 = vld [vmem:[#allocation16 + $0x2cc] ss:$48 sps:$4 sm:$0xff]  }
 0xef7   : > { %4830 = vmatprep.subr.bf16.mxu1 %v9398_v51  ;;  %v9476_v50 = vld [vmem:[#allocation16 + $0x8cc] ss:$48 sps:$4 sm:$0xff]   ;;  %v10892_v51 = vld [vmem:[#allocation17] sm:$0xff] }
 0xef9   : > { %4765 = vmatpush2.bf16.msra.mxu0 %v9393_v52  ;;  %v9471_v52 = vld [vmem:[#allocation16 + $0x2c8] ss:$48 sps:$4 sm:$0xff]  }
 0xefa   : > { %4831 = vmatpush1.bf16.msra.mxu1 %v9396_v53  ;;  %4766 = vmatprep.subr.bf16.mxu0 %v9401_v54  ;;  %v9474_v53 = vld [vmem:[#allocation16 + $0x8c8] ss:$48 sps:$4 sm:$0xff]   ;;  %v2999_v54 = vrot.slane %v10892_v51, %v10706_v8 }
 0xefb   : > { %4832 = vmatprep.subr.bf16.mxu1 %v9404_v55  ;;  %v9479_v55 = vld [vmem:[#allocation16 + $0x26c] ss:$48 sps:$4 sm:$0xff]  }
 0xefd   : > { %4767 = vmatpush2.bf16.msra.mxu0 %v9399_v56  ;;  %v9482_v56 = vld [vmem:[#allocation16 + $0x86c] ss:$48 sps:$4 sm:$0xff]  }
 0xefe   : > { %4833 = vmatpush1.bf16.msra.mxu1 %v9402_v57  ;;  %4768 = vmatprep.subr.bf16.mxu0 %v9407_v59 }
 0xeff   : > { %4834 = vmatprep.subr.bf16.mxu1 %v9410_v60  ;;  %v9477_v60 = vld [vmem:[#allocation16 + $0x268] ss:$48 sps:$4 sm:$0xff]  }
 0xf01   : > { %4769 = vmatpush2.bf16.msra.mxu0 %v9405_v61 }
 0xf02   : > { %4835 = vmatpush1.bf16.msra.mxu1 %v9408_v62  ;;  %4770 = vmatprep.subr.bf16.mxu0 %v9413_v63  ;;  %v9480_v63 = vld [vmem:[#allocation16 + $0x868] ss:$48 sps:$4 sm:$0xff]  }
 0xf03   : > { %4836 = vmatprep.subr.bf16.mxu1 %v9416_v0  ;;  %v9485_v0 = vld [vmem:[#allocation16 + $0x20c] ss:$48 sps:$4 sm:$0xff]  }
 0xf05   : > { %4771 = vmatpush2.bf16.msra.mxu0 %v9411_v1 }
 0xf06   : > { %4837 = vmatpush1.bf16.msra.mxu1 %v9414_v6  ;;  %4772 = vmatprep.subr.bf16.mxu0 %v9419_v9  ;;  %v9488_v6 = vld [vmem:[#allocation16 + $0x80c] ss:$48 sps:$4 sm:$0xff]  }
 0xf07   : > { %4838 = vmatprep.subr.bf16.mxu1 %v9422_v10 }
 0xf09   : > { %4773 = vmatpush2.bf16.msra.mxu0 %v9417_v12 }
 0xf0a   : > { %4839 = vmatpush1.bf16.msra.mxu1 %v9420_v11  ;;  %4865 = vmatprep.subr.bf16.mxu0 %v9425_v13  ;;  %v9483_v11 = vld [vmem:[#allocation16 + $0x208] ss:$48 sps:$4 sm:$0xff]  }
 0xf0b   : > { %4840 = vmatprep.subr.bf16.mxu1 %v9428_v14  ;;  %v9491_v14 = vld [vmem:[#allocation16 + $0x1ac] ss:$48 sps:$4 sm:$0xff]  }
 0xf0c   : > { %4775 = vmatmul.mubr.bf16.vlgmr.msra.gmra.mxu0 %v10873_v36 }
 0xf0d   : > { %4866 = vmatpush1.bf16.msra.mxu0 %v9423_v20  ;;  %4897 = vmatprep.mubr.bf16.mxu0 %v10372_v58 }
 0xf0e   : > { %4841 = vmatpush2.bf16.msra.mxu1 %v9426_v15  ;;  %4867 = vmatprep.subr.bf16.mxu0 %v9431_v16  ;;  %v9494_v15 = vld [vmem:[#allocation16 + $0x7ac] ss:$48 sps:$4 sm:$0xff]   ;;  %v9489_v16 = vld [vmem:[#allocation16 + $0x1a8] ss:$48 sps:$4 sm:$0xff]  }
 0xf0f   : > { %4842 = vmatprep.subr.bf16.mxu1 %v9434_v47  ;;  %v9492_v47 = vld [vmem:[#allocation16 + $0x7a8] ss:$48 sps:$4 sm:$0xff]  }
 0xf11   : > { %4868 = vmatpush1.bf16.msra.mxu0 %v9429_v21  ;;  %v9497_v21 = vld [vmem:[#allocation16 + $0x14c] ss:$48 sps:$4 sm:$0xff]  }
 0xf12   : > { %4843 = vmatpush2.bf16.msra.mxu1 %v9432_v32  ;;  %4869 = vmatprep.subr.bf16.mxu0 %v9437_v28  ;;  %v9500_v32 = vld [vmem:[#allocation16 + $0x74c] ss:$48 sps:$4 sm:$0xff]   ;;  %v9498_v28 = vld [vmem:[#allocation16 + $0x748] ss:$48 sps:$4 sm:$0xff]  }
 0xf13   : > { %4844 = vmatprep.subr.bf16.mxu1 %v9440_v22  ;;  %v9503_v22 = vld [vmem:[#allocation16 + $0xec] ss:$48 sps:$4 sm:$0xff]  }
 0xf15   : > { %4870 = vmatpush1.bf16.msra.mxu0 %v9435_v23  ;;  %v9506_v23 = vld [vmem:[#allocation16 + $0x6ec] ss:$48 sps:$4 sm:$0xff]  }
 0xf16   : > { %4845 = vmatpush2.bf16.msra.mxu1 %v9438_v24  ;;  %4871 = vmatprep.subr.bf16.mxu0 %v9443_v4  ;;  %v3003_v24 = vrot.slane %v10892_v51, %v10700_v5  ;;  %v9501_v4 = vld [vmem:[#allocation16 + $0xe8] ss:$48 sps:$4 sm:$0xff]  }
 0xf17   : > { %4846 = vmatprep.subr.bf16.mxu1 %v9446_v25  ;;  %v9504_v25 = vld [vmem:[#allocation16 + $0x6e8] ss:$48 sps:$4 sm:$0xff]  }
 0xf19   : > { %4872 = vmatpush1.bf16.msra.mxu0 %v9441_v2  ;;  %v9509_v2 = vld [vmem:[#allocation16 + $0x8c] ss:$48 sps:$4 sm:$0xff]  }
 0xf1a   : > { %4847 = vmatpush2.bf16.msra.mxu1 %v9444_v26  ;;  %4873 = vmatprep.subr.bf16.mxu0 %v9449_v27  ;;  %v9512_v26 = vld [vmem:[#allocation16 + $0x68c] ss:$48 sps:$4 sm:$0xff]  }
 0xf1b   : > { %4848 = vmatprep.subr.bf16.mxu1 %v9452_v29  ;;  %v9507_v29 = vld [vmem:[#allocation16 + $0x88] ss:$48 sps:$4 sm:$0xff]  }
 0xf1d   : > { %4874 = vmatpush1.bf16.msra.mxu0 %v9447_v30  ;;  %v9510_v30 = vld [vmem:[#allocation16 + $0x688] ss:$48 sps:$4 sm:$0xff]  }
 0xf1e   : > { %4849 = vmatpush2.bf16.msra.mxu1 %v9450_v34  ;;  %4875 = vmatprep.subr.bf16.mxu0 %v9455_v17  ;;  %v9515_v34 = vld [vmem:[#allocation16 + $0x2c] ss:$48 sps:$4 sm:$0xff]  }
 0xf1f   : > { %4850 = vmatprep.subr.bf16.mxu1 %v9458_v35  ;;  %v9518_v17 = vld [vmem:[#allocation16 + $0x62c] ss:$48 sps:$4 sm:$0xff]  }
 0xf21   : > { %4876 = vmatpush1.bf16.msra.mxu0 %v9453_v31  ;;  %v9513_v31 = vld [vmem:[#allocation16 + $0x28] ss:$48 sps:$4 sm:$0xff]  }
 0xf22   : > { %4851 = vmatpush2.bf16.msra.mxu1 %v9456_v38  ;;  %4877 = vmatprep.subr.bf16.mxu0 %v9461_v39  ;;  %v9516_v38 = vld [vmem:[#allocation16 + $0x628] ss:$48 sps:$4 sm:$0xff]   ;;  %v9521_v39 = vld [vmem:[#allocation16 + $0x5cc] ss:$48 sps:$4 sm:$0xff]  }
 0xf23   : > { %4852 = vmatprep.subr.bf16.mxu1 %v9464_v40  ;;  %v9524_v40 = vld [vmem:[#allocation19 + $0xac] ss:$12 sps:$4 sm:$0xff]  }
 0xf25   : > { %4878 = vmatpush1.bf16.msra.mxu0 %v9459_v41 }
 0xf26   : > { %4853 = vmatpush2.bf16.msra.mxu1 %v9462_v43  ;;  %4879 = vmatprep.subr.bf16.mxu0 %v9467_v44  ;;  %v9519_v43 = vld [vmem:[#allocation16 + $0x5c8] ss:$48 sps:$4 sm:$0xff]   ;;  %v9522_v44 = vld [vmem:[#allocation19 + $0xa8] ss:$12 sps:$4 sm:$0xff]  }
 0xf27   : > { %4854 = vmatprep.subr.bf16.mxu1 %v9470_v45  ;;  %v9527_v45 = vld [vmem:[#allocation16 + $0x56c] ss:$48 sps:$4 sm:$0xff]  }
 0xf29   : > { %4880 = vmatpush1.bf16.msra.mxu0 %v9465_v46  ;;  %v9530_v46 = vld [vmem:[#allocation19 + $0x94] ss:$12 sps:$4 sm:$0xff]  }
 0xf2a   : > { %4855 = vmatpush2.bf16.msra.mxu1 %v9468_v48  ;;  %4906 = vmatprep.subr.bf16.mxu0 %v9473_v49 }
 0xf2b   : > { %4947 = vmatprep.subr.bf16.mxu1 %v9476_v50  ;;  %v9525_v50 = vld [vmem:[#allocation16 + $0x568] ss:$48 sps:$4 sm:$0xff]  }
 0xf2c   : > { %4898 = vmatmul.mubr.bf16.vlgmr.msra.gmra.mxu0 %v10871_v19  ;;  %v4571_v57 = vpop.f32.mrf.mxu0 }
 0xf2d   : > { %4857 = vmatmul.mubr.bf16.vlgmr.msra.gmra.mxu1 %v10873_v36  ;;  %4907 = vmatpush1.bf16.msra.mxu0 %v9471_v52  ;;  %v4530_v59 = vpop.f32.mrf.mxu1  ;;  %v9528_v52 = vld [vmem:[#allocation19 + $0x90] ss:$12 sps:$4 sm:$0xff]  }
 0xf2e   : > { %4938 = vmatprep.mubr.bf16.mxu0 %v10869_v18  ;;  %v4531_v61 = vadd.f32 %v4530_v59, %v2999_v54  ;;  %4948 = vmatpush1.bf16.msra.mxu1 %v9474_v53  ;;  %v4573_v62 = vpop.f32.mrf.mxu0  ;;  %v9486_v18 = vld [vmem:[#allocation16 + $0x808] ss:$48 sps:$4 sm:$0xff]   ;;  %v9533_v53 = vld [vmem:[#allocation16 + $0x50c] ss:$48 sps:$4 sm:$0xff]   ;;  %v9534_v59 = vld [vmem:[#allocation19 + $0x78] ss:$12 sps:$4 sm:$0xff]  }
 0xf2f   : > { %v4532_v1 = vpop.f32.mrf.mxu1  ;;  %4908 = vmatprep.subr.bf16.mxu0 %v9479_v55  ;;  %4949 = vmatprep.subr.bf16.mxu1 %v9482_v56  ;;  %v9536_v55 = vld [vmem:[#allocation19 + $0x7c] ss:$12 sps:$4 sm:$0xff]  }
 0xf30   : > { %v10899_v9 = vadd.f32 %v4571_v57, %v4531_v61  ;;  %v4575_v10 = vpop.f32.mrf.mxu0  ;;  %4979 = vmatprep.mubr.bf16.mxu1 %v10372_v58  ;;  %v9495_v58 = vld [vmem:[#allocation16 + $0x148] ss:$48 sps:$4 sm:$0xff]   ;;  %v4533_v27 = vadd.f32 %v4532_v1, %v3003_v24  ;;  %v9567_v24 = vld [vmem:[#allocation19 + $0x228] ss:$12 sps:$4 sm:$0xff]  }
 0xf31   : > { %4909 = vmatpush1.bf16.msra.mxu0 %v9477_v60  ;;  %v4534_v12 = vpop.f32.mrf.mxu1  ;;  %v9531_v57 = vld [vmem:[#allocation16 + $0x508] ss:$48 sps:$4 sm:$0xff]   ;;  %v9539_v60 = vld [vmem:[#allocation16 + $0x4ac] ss:$48 sps:$4 sm:$0xff]   ;;  %v9546_v10 = vld [vmem:[#allocation19 + $0x48] ss:$12 sps:$4 sm:$0xff]  }
 0xf32   : > { %4950 = vmatpush1.bf16.msra.mxu1 %v9480_v63  ;;  %v4576_v13 = vpop.f32.mrf.mxu0  ;;  %4910 = vmatprep.subr.bf16.mxu0 %v9485_v0  ;;  %v4574_v35 = vadd.f32 %v4573_v62, %v4533_v27  ;;  %v9537_v62 = vld [vmem:[#allocation16 + $0x4a8] ss:$48 sps:$4 sm:$0xff]   ;;  %v9545_v0 = vld [vmem:[#allocation16 + $0x44c] ss:$48 sps:$4 sm:$0xff]  }
 0xf33   : > { %v4535_v20 = vpop.f32.mrf.mxu1  ;;  %4951 = vmatprep.subr.bf16.mxu1 %v9488_v6  ;;  %v9540_v63 = vld [vmem:[#allocation19 + $0x60] ss:$12 sps:$4 sm:$0xff]  }
 0xf34   : > { %v4989_v41 = vmax.f32 %v4574_v35, 0.0  ;;  %v9548_v1 = vld [vmem:[#allocation19 + $0x4c] ss:$12 sps:$4 sm:$0xff]   ;;  %v9551_v12 = vld [vmem:[#allocation16 + $0x3ec] ss:$48 sps:$4 sm:$0xff]  }
 0xf35   : > { %4911 = vmatpush1.bf16.msra.mxu0 %v9483_v11  ;;  %v9543_v6 = vld [vmem:[#allocation16 + $0x448] ss:$48 sps:$4 sm:$0xff]   ;;  %v9554_v11 = vld [vmem:[#allocation19 + $0x34] ss:$12 sps:$4 sm:$0xff]  }
 0xf36   : > { %4952 = vmatpush1.bf16.msra.mxu1 %v9486_v18  ;;  %4912 = vmatprep.subr.bf16.mxu0 %v9491_v14  ;;  %v10904_v48 = vpack.c.bf16 %v4989_v41, %v4989_v41  ;;  %v9549_v13 = vld [vmem:[#allocation16 + $0x3e8] ss:$48 sps:$4 sm:$0xff]   ;;  %v9557_v14 = vld [vmem:[#allocation16 + $0x38c] ss:$48 sps:$4 sm:$0xff]  }
 0xf37   : > { %4953 = vmatprep.subr.bf16.mxu1 %v9494_v15  ;;  %v9552_v18 = vld [vmem:[#allocation19 + $0x30] ss:$12 sps:$4 sm:$0xff]  }
 0xf38   : > { %v9560_v20 = vld [vmem:[#allocation19 + $0x1c] ss:$12 sps:$4 sm:$0xff]  }
 0xf39   : > { %4913 = vmatpush1.bf16.msra.mxu0 %v9489_v16  ;;  %v9555_v15 = vld [vmem:[#allocation16 + $0x388] ss:$48 sps:$4 sm:$0xff]   ;;  %v9558_v16 = vld [vmem:[#allocation19 + $0x18] ss:$12 sps:$4 sm:$0xff]  }
 0xf3a   : > { %4954 = vmatpush1.bf16.msra.mxu1 %v9492_v47  ;;  %4914 = vmatprep.subr.bf16.mxu0 %v9497_v21  ;;  %v9563_v47 = vld [vmem:[#allocation16 + $0x32c] ss:$48 sps:$4 sm:$0xff]  }
 0xf3b   : > { %4955 = vmatprep.subr.bf16.mxu1 %v9500_v32  ;;  %v9566_v21 = vld [vmem:[#allocation19 + $0x4] ss:$12 sps:$4 sm:$0xff]   ;;  %v9561_v32 = vld [vmem:[#allocation16 + $0x328] ss:$48 sps:$4 sm:$0xff]  }
 0xf3d   : > { %4915 = vmatpush1.bf16.msra.mxu0 %v9495_v58  ;;  %v9564_v58 = vld [vmem:[#allocation19] ss:$12 sps:$4 sm:$0xff]  }
 0xf3e   : > { %4956 = vmatpush1.bf16.msra.mxu1 %v9498_v28  ;;  %4916 = vmatprep.subr.bf16.mxu0 %v9503_v22  ;;  %v9569_v28 = vld [vmem:[#allocation19 + $0x22c] ss:$12 sps:$4 sm:$0xff]  }
 0xf3f   : > { %4957 = vmatprep.subr.bf16.mxu1 %v9506_v23  ;;  %v9572_v22 = vld [vmem:[#allocation19 + $0x16c] ss:$12 sps:$4 sm:$0xff]   ;;  %v3010_v23 = vsub.s32 3, %v10697_v3 }
 0xf41   : > { %4917 = vmatpush1.bf16.msra.mxu0 %v9501_v4  ;;  %v9570_v4 = vld [vmem:[#allocation19 + $0x168] ss:$12 sps:$4 sm:$0xff]  }
 0xf42   : > { %4958 = vmatpush1.bf16.msra.mxu1 %v9504_v25  ;;  %4918 = vmatprep.subr.bf16.mxu0 %v9509_v2  ;;  %v9575_v25 = vld [vmem:[#allocation19 + $0x214] ss:$12 sps:$4 sm:$0xff]   ;;  %v3011_v2 = vrot.slane %v10892_v51, %v3010_v23 }
 0xf43   : > { %4959 = vmatprep.subr.bf16.mxu1 %v9512_v26  ;;  %v9578_v26 = vld [vmem:[#allocation19 + $0x154] ss:$12 sps:$4 sm:$0xff]  }
 0xf45   : > { %4919 = vmatpush1.bf16.msra.mxu0 %v9507_v29  ;;  %v9573_v29 = vld [vmem:[#allocation19 + $0x210] ss:$12 sps:$4 sm:$0xff]  }
 0xf46   : > { %4960 = vmatpush1.bf16.msra.mxu1 %v9510_v30  ;;  %4920 = vmatprep.subr.bf16.mxu0 %v9515_v34  ;;  %v9576_v34 = vld [vmem:[#allocation19 + $0x150] ss:$12 sps:$4 sm:$0xff]  }
 0xf47   : > { %4961 = vmatprep.subr.bf16.mxu1 %v9518_v17  ;;  %v9581_v17 = vld [vmem:[#allocation19 + $0x1fc] ss:$12 sps:$4 sm:$0xff]  }
 0xf49   : > { %4921 = vmatpush1.bf16.msra.mxu0 %v9513_v31  ;;  %v9584_v31 = vld [vmem:[#allocation19 + $0x13c] ss:$12 sps:$4 sm:$0xff]  }
 0xf4a   : > { %4962 = vmatpush1.bf16.msra.mxu1 %v9516_v38  ;;  %4922 = vmatprep.subr.bf16.mxu0 %v9521_v39 }
 0xf4b   : > { %6949 = vmatprep.subr.bf16.mxu1 %v9524_v40  ;;  %v9579_v40 = vld [vmem:[#allocation19 + $0x1f8] ss:$12 sps:$4 sm:$0xff]  }
 0xf4d   : > { %v10906_v49 = vpop.f32.mrf.mxu1  ;;  %4923 = vmatpush2.bf16.msra.mxu0 %v9519_v43  ;;  %4980 = vmatmul.mubr.bf16.vlgmr.msra.gmra.mxu1 %v10871_v19  ;;  %v9542_v19 = vld [vmem:[#allocation19 + $0x64] ss:$12 sps:$4 sm:$0xff]  }
 0xf4e   : > { %6950 = vmatpush1.bf16.msra.mxu1 %v9522_v44  ;;  %6981 = vmatprep.mubr.bf16.mxu1 %v10904_v48  ;;  %v9582_v43 = vld [vmem:[#allocation19 + $0x138] ss:$12 sps:$4 sm:$0xff]  }
 0xf4f   : > { %v10910_v54 = vpop.f32.mrf.mxu1  ;;  %4924 = vmatprep.subr.bf16.mxu0 %v9527_v45  ;;  %6951 = vmatprep.subr.bf16.mxu1 %v9530_v46  ;;  %v9590_v45 = vld [vmem:[#allocation19 + $0x124] ss:$12 sps:$4 sm:$0xff]  }
 0xf51   : > { %v4657_v56 = vpop.f32.mrf.mxu1  ;;  %4925 = vmatpush2.bf16.msra.mxu0 %v9525_v50  ;;  %v9585_v50 = vld [vmem:[#allocation19 + $0x1e0] ss:$12 sps:$4 sm:$0xff]  }
 0xf52   : > { %6952 = vmatpush1.bf16.msra.mxu1 %v9528_v52  ;;  %4926 = vmatprep.subr.bf16.mxu0 %v9533_v53  ;;  %v9588_v52 = vld [vmem:[#allocation19 + $0x120] ss:$12 sps:$4 sm:$0xff]   ;;  %v9594_v56 = vld [vmem:[#allocation19 + $0x108] ss:$12 sps:$4 sm:$0xff]  }
 0xf53   : > { %v4658_v61 = vpop.f32.mrf.mxu1  ;;  %6953 = vmatprep.subr.bf16.mxu1 %v9536_v55  ;;  %v9593_v53 = vld [vmem:[#allocation19 + $0x1cc] ss:$12 sps:$4 sm:$0xff]   ;;  %v9591_v55 = vld [vmem:[#allocation19 + $0x1c8] ss:$12 sps:$4 sm:$0xff]  }
 0xf54   : > { %v9600_v61 = vld [vmem:[#allocation19 + $0xf0] ss:$12 sps:$4 sm:$0xff]  }
 0xf55   : > { %4927 = vmatpush2.bf16.msra.mxu0 %v9531_v57  ;;  %v9599_v57 = vld [vmem:[#allocation19 + $0x1b4] ss:$12 sps:$4 sm:$0xff]  }
 0xf56   : > { %6954 = vmatpush1.bf16.msra.mxu1 %v9534_v59  ;;  %4928 = vmatprep.subr.bf16.mxu0 %v9539_v60  ;;  %v9602_v59 = vld [vmem:[#allocation19 + $0xf4] ss:$12 sps:$4 sm:$0xff]   ;;  %v9597_v60 = vld [vmem:[#allocation19 + $0x1b0] ss:$12 sps:$4 sm:$0xff]  }
 0xf57   : > { %6955 = vmatprep.subr.bf16.mxu1 %v9542_v19  ;;  %v9605_v19 = vld [vmem:[#allocation19 + $0x19c] ss:$12 sps:$4 sm:$0xff]  }
 0xf59   : > { %4929 = vmatpush2.bf16.msra.mxu0 %v9537_v62  ;;  %v9608_v62 = vld [vmem:[#allocation19 + $0xdc] ss:$12 sps:$4 sm:$0xff]  }
 0xf5a   : > { %6956 = vmatpush1.bf16.msra.mxu1 %v9540_v63  ;;  %4930 = vmatprep.subr.bf16.mxu0 %v9545_v0  ;;  %v9603_v63 = vld [vmem:[#allocation19 + $0x198] ss:$12 sps:$4 sm:$0xff]  }
 0xf5b   : > { %6957 = vmatprep.subr.bf16.mxu1 %v9548_v1  ;;  %v9606_v0 = vld [vmem:[#allocation19 + $0xd8] ss:$12 sps:$4 sm:$0xff]  }
 0xf5c   : > { %v9611_v1 = vld [vmem:[#allocation19 + $0x184] ss:$12 sps:$4 sm:$0xff]  }
 0xf5d   : > { %4931 = vmatpush2.bf16.msra.mxu0 %v9543_v6  ;;  %v9614_v6 = vld [vmem:[#allocation19 + $0xc4] ss:$12 sps:$4 sm:$0xff]  }
 0xf5e   : > { %6958 = vmatpush1.bf16.msra.mxu1 %v9546_v10  ;;  %4932 = vmatprep.subr.bf16.mxu0 %v9551_v12  ;;  %v9609_v10 = vld [vmem:[#allocation19 + $0x180] ss:$12 sps:$4 sm:$0xff]  }
 0xf5f   : > { %6959 = vmatprep.subr.bf16.mxu1 %v9554_v11  ;;  %v9612_v12 = vld [vmem:[#allocation19 + $0xc0] ss:$12 sps:$4 sm:$0xff]  }
 0xf60   : > { %v9617_v11 = vld [vmem:[#allocation19 + $0x2ec] ss:$12 sps:$4 sm:$0xff]  }
 0xf61   : > { %4933 = vmatpush2.bf16.msra.mxu0 %v9549_v13  ;;  %v4988_v13 = vmax.f32 %v10899_v9, 0.0  ;;  %v9621_v9 = vld [vmem:[#allocation19 + $0x2d0] ss:$12 sps:$4 sm:$0xff]  }
 0xf62   : > { %6960 = vmatpush1.bf16.msra.mxu1 %v9552_v18  ;;  %4934 = vmatprep.subr.bf16.mxu0 %v9557_v14  ;;  %v9620_v18 = vld [vmem:[#allocation19 + $0x3ac] ss:$12 sps:$4 sm:$0xff]   ;;  %v3018_v14 = vsub.s32 5, %v10697_v3 }
 0xf63   : > { %6961 = vmatprep.subr.bf16.mxu1 %v9560_v20  ;;  %v9615_v20 = vld [vmem:[#allocation19 + $0x2e8] ss:$12 sps:$4 sm:$0xff]  }
 0xf65   : > { %4935 = vmatpush2.bf16.msra.mxu0 %v9555_v15  ;;  %v9618_v15 = vld [vmem:[#allocation19 + $0x3a8] ss:$12 sps:$4 sm:$0xff]  }
 0xf66   : > { %6962 = vmatpush1.bf16.msra.mxu1 %v9558_v16  ;;  %4936 = vmatprep.subr.bf16.mxu0 %v9563_v47  ;;  %v9623_v16 = vld [vmem:[#allocation19 + $0x2d4] ss:$12 sps:$4 sm:$0xff]   ;;  %v10925_v47 = vpack.c.bf16 %v4988_v13, %v4988_v13  ;;  %v9668_v13 = vld [vmem:[#allocation19 + $0x46c] ss:$12 sps:$4 sm:$0xff]  }
 0xf67   : > { %6963 = vmatprep.subr.bf16.mxu1 %v9566_v21  ;;  %v9626_v21 = vld [vmem:[#allocation19 + $0x394] ss:$12 sps:$4 sm:$0xff]  }
 0xf69   : > { %4937 = vmatpush2.bf16.msra.mxu0 %v9561_v32 }
 0xf6a   : > { %6964 = vmatpush1.bf16.msra.mxu1 %v9564_v58  ;;  %6990 = vmatprep.subr.bf16.mxu0 %v9569_v28  ;;  %v3019_v58 = vrot.slane %v10892_v51, %v3018_v14 }
 0xf6b   : > { %6965 = vmatprep.subr.bf16.mxu1 %v9572_v22 }
 0xf6c   : > { %v10916_v27 = vpop.f32.mrf.mxu0  ;;  %4939 = vmatmul.mubr.bf16.vlgmr.msra.gmra.mxu0 %v10873_v36  ;;  %v9587_v36 = vld [vmem:[#allocation19 + $0x1e4] ss:$12 sps:$4 sm:$0xff]  }
 0xf6d   : > { %6991 = vmatpush1.bf16.msra.mxu0 %v9567_v24  ;;  %v9624_v24 = vld [vmem:[#allocation19 + $0x390] ss:$12 sps:$4 sm:$0xff]  }
 0xf6e   : > { %v4614_v30 = vpop.f32.mrf.mxu0  ;;  %6966 = vmatpush2.bf16.msra.mxu1 %v9570_v4  ;;  %6992 = vmatprep.subr.bf16.mxu0 %v9575_v25  ;;  %v9629_v4 = vld [vmem:[#allocation19 + $0x2bc] ss:$12 sps:$4 sm:$0xff]  }
 0xf6f   : > { %v4615_v35 = vadd.f32 %v4614_v30, %v3011_v2  ;;  %6967 = vmatprep.subr.bf16.mxu1 %v9578_v26  ;;  %v9632_v2 = vld [vmem:[#allocation19 + $0x37c] ss:$12 sps:$4 sm:$0xff]  }
 0xf70   : > { %v4616_v38 = vpop.f32.mrf.mxu0 }
 0xf71   : > { %v4656_v39 = vadd.f32 %v10910_v54, %v4615_v35  ;;  %6993 = vmatpush1.bf16.msra.mxu0 %v9573_v29  ;;  %v9596_v54 = vld [vmem:[#allocation19 + $0x10c] ss:$12 sps:$4 sm:$0xff]   ;;  %v9635_v38 = vld [vmem:[#allocation19 + $0x2a4] ss:$12 sps:$4 sm:$0xff]  }
 0xf72   : > { %v4617_v41 = vpop.f32.mrf.mxu0  ;;  %6968 = vmatpush2.bf16.msra.mxu1 %v9576_v34  ;;  %6994 = vmatprep.subr.bf16.mxu0 %v9581_v17  ;;  %v9627_v34 = vld [vmem:[#allocation19 + $0x2b8] ss:$12 sps:$4 sm:$0xff]  }
 0xf73   : > { %v4991_v44 = vmax.f32 %v4656_v39, 0.0  ;;  %6969 = vmatprep.subr.bf16.mxu1 %v9584_v31  ;;  %v9630_v31 = vld [vmem:[#allocation19 + $0x378] ss:$12 sps:$4 sm:$0xff]  }
 0xf75   : > { %v10920_v46 = vpack.c.bf16 %v4991_v44, %v4991_v44  ;;  %6995 = vmatpush1.bf16.msra.mxu0 %v9579_v40  ;;  %v9638_v40 = vld [vmem:[#allocation19 + $0x364] ss:$12 sps:$4 sm:$0xff]   ;;  %v9636_v44 = vld [vmem:[#allocation19 + $0x360] ss:$12 sps:$4 sm:$0xff]  }
 0xf76   : > { %6970 = vmatpush2.bf16.msra.mxu1 %v9582_v43  ;;  %6996 = vmatprep.subr.bf16.mxu0 %v9587_v36  ;;  %v9633_v43 = vld [vmem:[#allocation19 + $0x2a0] ss:$12 sps:$4 sm:$0xff]  }
 0xf77   : > { %7022 = vmatprep.mubr.bf16.mxu0 %v10920_v46  ;;  %6971 = vmatprep.subr.bf16.mxu1 %v9590_v45  ;;  %v9641_v45 = vld [vmem:[#allocation19 + $0x28c] ss:$12 sps:$4 sm:$0xff]  }
 0xf79   : > { %6997 = vmatpush1.bf16.msra.mxu0 %v9585_v50  ;;  %v9644_v50 = vld [vmem:[#allocation19 + $0x34c] ss:$12 sps:$4 sm:$0xff]  }
 0xf7a   : > { %6972 = vmatpush2.bf16.msra.mxu1 %v9588_v52  ;;  %6998 = vmatprep.subr.bf16.mxu0 %v9593_v53  ;;  %v9639_v52 = vld [vmem:[#allocation19 + $0x288] ss:$12 sps:$4 sm:$0xff]   ;;  %v3007_v53 = vrot.slane %v10892_v51, %v10703_v7 }
 0xf7b   : > { %6973 = vmatprep.subr.bf16.mxu1 %v9596_v54  ;;  %v9642_v54 = vld [vmem:[#allocation19 + $0x348] ss:$12 sps:$4 sm:$0xff]  }
 0xf7d   : > { %6999 = vmatpush1.bf16.msra.mxu0 %v9591_v55  ;;  %v9647_v55 = vld [vmem:[#allocation19 + $0x274] ss:$12 sps:$4 sm:$0xff]  }
 0xf7e   : > { %6974 = vmatpush2.bf16.msra.mxu1 %v9594_v56  ;;  %7000 = vmatprep.subr.bf16.mxu0 %v9599_v57  ;;  %v9650_v56 = vld [vmem:[#allocation19 + $0x334] ss:$12 sps:$4 sm:$0xff]   ;;  %v9645_v57 = vld [vmem:[#allocation19 + $0x270] ss:$12 sps:$4 sm:$0xff]  }
 0xf7f   : > { %6975 = vmatprep.subr.bf16.mxu1 %v9602_v59  ;;  %v4613_v59 = vadd.f32 %v10916_v27, %v3007_v53  ;;  %v9660_v27 = vld [vmem:[#allocation19 + $0x300] ss:$12 sps:$4 sm:$0xff]  }
 0xf81   : > { %7001 = vmatpush1.bf16.msra.mxu0 %v9597_v60  ;;  %v9648_v60 = vld [vmem:[#allocation19 + $0x330] ss:$12 sps:$4 sm:$0xff]  }
 0xf82   : > { %6976 = vmatpush2.bf16.msra.mxu1 %v9600_v61  ;;  %7002 = vmatprep.subr.bf16.mxu0 %v9605_v19  ;;  %v9653_v61 = vld [vmem:[#allocation19 + $0x25c] ss:$12 sps:$4 sm:$0xff]  }
 0xf83   : > { %6977 = vmatprep.subr.bf16.mxu1 %v9608_v62  ;;  %v9656_v19 = vld [vmem:[#allocation19 + $0x31c] ss:$12 sps:$4 sm:$0xff]   ;;  %v9651_v62 = vld [vmem:[#allocation19 + $0x258] ss:$12 sps:$4 sm:$0xff]  }
 0xf85   : > { %7003 = vmatpush1.bf16.msra.mxu0 %v9603_v63  ;;  %v4654_v63 = vadd.f32 %v10906_v49, %v4613_v59  ;;  %v9666_v49 = vld [vmem:[#allocation19 + $0x468] ss:$12 sps:$4 sm:$0xff]  }
 0xf86   : > { %6978 = vmatpush2.bf16.msra.mxu1 %v9606_v0  ;;  %7004 = vmatprep.subr.bf16.mxu0 %v9611_v1  ;;  %v9654_v0 = vld [vmem:[#allocation19 + $0x318] ss:$12 sps:$4 sm:$0xff]  }
 0xf87   : > { %6979 = vmatprep.subr.bf16.mxu1 %v9614_v6  ;;  %v9659_v1 = vld [vmem:[#allocation19 + $0x244] ss:$12 sps:$4 sm:$0xff]  }
 0xf88   : > { %v9662_v6 = vld [vmem:[#allocation19 + $0x304] ss:$12 sps:$4 sm:$0xff]  }
 0xf89   : > { %7005 = vmatpush1.bf16.msra.mxu0 %v9609_v10  ;;  %v9657_v10 = vld [vmem:[#allocation19 + $0x240] ss:$12 sps:$4 sm:$0xff]  }
 0xf8a   : > { %6980 = vmatpush2.bf16.msra.mxu1 %v9612_v12  ;;  %7006 = vmatprep.subr.bf16.mxu0 %v9617_v11  ;;  %v4990_v12 = vmax.f32 %v4654_v63, 0.0  ;;  %v9665_v11 = vld [vmem:[#allocation19 + $0x52c] ss:$12 sps:$4 sm:$0xff]  }
 0xf8b   : > { %7031 = vmatprep.subr.bf16.mxu1 %v9620_v18  ;;  %v9663_v18 = vld [vmem:[#allocation19 + $0x528] ss:$12 sps:$4 sm:$0xff]  }
 0xf8c   : > { %v10927_v32 = vpop.f32.mrf.mxu0  ;;  %v10940_v14 = vpack.c.bf16 %v4990_v12, %v4990_v12 }
 0xf8d   : > { %v10930_v28 = vpop.f32.mrf.mxu1  ;;  %6982 = vmatmul.mubr.bf16.vlgmr.msra.gmra.mxu1 %v10925_v47  ;;  %7007 = vmatpush2.bf16.msra.mxu0 %v9615_v20  ;;  %v9671_v20 = vld [vmem:[#allocation19 + $0x514] ss:$12 sps:$4 sm:$0xff]  }
 0xf8e   : > { %v4737_v22 = vpop.f32.mrf.mxu0  ;;  %7032 = vmatpush1.bf16.msra.mxu1 %v9618_v15  ;;  %7008 = vmatprep.subr.bf16.mxu0 %v9623_v16  ;;  %v9674_v15 = vld [vmem:[#allocation19 + $0x454] ss:$12 sps:$4 sm:$0xff]  }
 0xf8f   : > { %v4696_v25 = vpop.f32.mrf.mxu1  ;;  %7033 = vmatprep.subr.bf16.mxu1 %v9626_v21  ;;  %v9669_v21 = vld [vmem:[#allocation19 + $0x510] ss:$12 sps:$4 sm:$0xff]  }
 0xf90   : > { %v4697_v26 = vadd.f32 %v4696_v25, %v3019_v58  ;;  %v4739_v29 = vpop.f32.mrf.mxu0  ;;  %v9672_v58 = vld [vmem:[#allocation19 + $0x450] ss:$12 sps:$4 sm:$0xff]   ;;  %v9675_v25 = vld [vmem:[#allocation19 + $0x4f8] ss:$12 sps:$4 sm:$0xff]  }
 0xf91   : > { %v4698_v30 = vpop.f32.mrf.mxu1  ;;  %7009 = vmatpush2.bf16.msra.mxu0 %v9621_v9  ;;  %v9677_v9 = vld [vmem:[#allocation19 + $0x4fc] ss:$12 sps:$4 sm:$0xff]  }
 0xf92   : > { %v4738_v17 = vadd.f32 %v4737_v22, %v4697_v26  ;;  %v4740_v35 = vpop.f32.mrf.mxu0  ;;  %7034 = vmatpush1.bf16.msra.mxu1 %v9624_v24  ;;  %7010 = vmatprep.subr.bf16.mxu0 %v9629_v4  ;;  %v9680_v24 = vld [vmem:[#allocation19 + $0x43c] ss:$12 sps:$4 sm:$0xff]   ;;  %v9683_v26 = vld [vmem:[#allocation19 + $0x4e4] ss:$12 sps:$4 sm:$0xff]  }
 0xf93   : > { %v4699_v39 = vpop.f32.mrf.mxu1  ;;  %7035 = vmatprep.subr.bf16.mxu1 %v9632_v2  ;;  %v9678_v2 = vld [vmem:[#allocation19 + $0x438] ss:$12 sps:$4 sm:$0xff]  }
 0xf94   : > { %v4993_v41 = vmax.f32 %v4738_v17, 0.0  ;;  %v9686_v30 = vld [vmem:[#allocation19 + $0x424] ss:$12 sps:$4 sm:$0xff]   ;;  %v9684_v17 = vld [vmem:[#allocation19 + $0x420] ss:$12 sps:$4 sm:$0xff]  }
 0xf95   : > { %7011 = vmatpush2.bf16.msra.mxu0 %v9627_v34  ;;  %v9681_v34 = vld [vmem:[#allocation19 + $0x4e0] ss:$12 sps:$4 sm:$0xff]   ;;  %v9687_v39 = vld [vmem:[#allocation19 + $0x4c8] ss:$12 sps:$4 sm:$0xff]  }
 0xf96   : > { %v10933_v36 = vpack.c.bf16 %v4993_v41, %v4993_v41  ;;  %7036 = vmatpush1.bf16.msra.mxu1 %v9630_v31  ;;  %7012 = vmatprep.subr.bf16.mxu0 %v9635_v38  ;;  %v9689_v35 = vld [vmem:[#allocation19 + $0x4cc] ss:$12 sps:$4 sm:$0xff]   ;;  %v3014_v31 = vsub.s32 4, %v10697_v3  ;;  %v9695_v41 = vld [vmem:[#allocation19 + $0x4b4] ss:$12 sps:$4 sm:$0xff]  }
 0xf97   : > { %7037 = vmatprep.subr.bf16.mxu1 %v9638_v40  ;;  %v9692_v38 = vld [vmem:[#allocation19 + $0x40c] ss:$12 sps:$4 sm:$0xff]   ;;  %v9690_v40 = vld [vmem:[#allocation19 + $0x408] ss:$12 sps:$4 sm:$0xff]  }
 0xf98   : > { %7063 = vmatprep.mubr.bf16.mxu1 %v10933_v36 }
 0xf99   : > { %7013 = vmatpush2.bf16.msra.mxu0 %v9633_v43  ;;  %v3015_v43 = vrot.slane %v10892_v51, %v3014_v31  ;;  %v9740_v31 = vld [vmem:[#allocation19 + $0x64c] ss:$12 sps:$4 sm:$0xff]  }
 0xf9a   : > { %7038 = vmatpush1.bf16.msra.mxu1 %v9636_v44  ;;  %7014 = vmatprep.subr.bf16.mxu0 %v9641_v45  ;;  %v9698_v44 = vld [vmem:[#allocation19 + $0x3f4] ss:$12 sps:$4 sm:$0xff]   ;;  %v9693_v45 = vld [vmem:[#allocation19 + $0x4b0] ss:$12 sps:$4 sm:$0xff]  }
 0xf9b   : > { %7039 = vmatprep.subr.bf16.mxu1 %v9644_v50  ;;  %v9696_v50 = vld [vmem:[#allocation19 + $0x3f0] ss:$12 sps:$4 sm:$0xff]   ;;  %v4695_v53 = vadd.f32 %v10930_v28, %v3015_v43  ;;  %v9716_v28 = vld [vmem:[#allocation19 + $0x6ac] ss:$12 sps:$4 sm:$0xff]   ;;  %v9746_v43 = vld [vmem:[#allocation19 + $0x634] ss:$12 sps:$4 sm:$0xff]  }
 0xf9d   : > { %7015 = vmatpush2.bf16.msra.mxu0 %v9639_v52  ;;  %v9701_v52 = vld [vmem:[#allocation19 + $0x49c] ss:$12 sps:$4 sm:$0xff]   ;;  %v4736_v59 = vadd.f32 %v10927_v32, %v4695_v53 }
 0xf9e   : > { %7040 = vmatpush1.bf16.msra.mxu1 %v9642_v54  ;;  %7016 = vmatprep.subr.bf16.mxu0 %v9647_v55  ;;  %v9704_v54 = vld [vmem:[#allocation19 + $0x3dc] ss:$12 sps:$4 sm:$0xff]   ;;  %v9699_v55 = vld [vmem:[#allocation19 + $0x498] ss:$12 sps:$4 sm:$0xff]  }
 0xf9f   : > { %7041 = vmatprep.subr.bf16.mxu1 %v9650_v56  ;;  %v9702_v56 = vld [vmem:[#allocation19 + $0x3d8] ss:$12 sps:$4 sm:$0xff]   ;;  %v4992_v63 = vmax.f32 %v4736_v59, 0.0  ;;  %v9752_v53 = vld [vmem:[#allocation19 + $0x61c] ss:$12 sps:$4 sm:$0xff]  }
 0xfa0   : > { %v9753_v59 = vld [vmem:[#allocation19 + $0x540] ss:$12 sps:$4 sm:$0xff]  }
 0xfa1   : > { %7017 = vmatpush2.bf16.msra.mxu0 %v9645_v57  ;;  %v9707_v57 = vld [vmem:[#allocation19 + $0x484] ss:$12 sps:$4 sm:$0xff]   ;;  %v10952_v32 = vpack.c.bf16 %v4992_v63, %v4992_v63  ;;  %v9768_v63 = vld [vmem:[#allocation19 + $0x828] ss:$12 sps:$4 sm:$0xff]  }
 0xfa2   : > { %7042 = vmatpush1.bf16.msra.mxu1 %v9648_v60  ;;  %7018 = vmatprep.subr.bf16.mxu0 %v9653_v61  ;;  %v9710_v60 = vld [vmem:[#allocation19 + $0x3c4] ss:$12 sps:$4 sm:$0xff]   ;;  %v9705_v61 = vld [vmem:[#allocation19 + $0x480] ss:$12 sps:$4 sm:$0xff]  }
 0xfa3   : > { %7043 = vmatprep.subr.bf16.mxu1 %v9656_v19  ;;  %v9708_v19 = vld [vmem:[#allocation19 + $0x3c0] ss:$12 sps:$4 sm:$0xff]  }
 0xfa5   : > { %7019 = vmatpush2.bf16.msra.mxu0 %v9651_v62  ;;  %v9713_v62 = vld [vmem:[#allocation19 + $0x5ec] ss:$12 sps:$4 sm:$0xff]  }
 0xfa6   : > { %7044 = vmatpush1.bf16.msra.mxu1 %v9654_v0  ;;  %7020 = vmatprep.subr.bf16.mxu0 %v9659_v1  ;;  %v3026_v0 = vsub.s32 7, %v10697_v3  ;;  %v9711_v1 = vld [vmem:[#allocation19 + $0x5e8] ss:$12 sps:$4 sm:$0xff]  }
 0xfa7   : > { %7045 = vmatprep.subr.bf16.mxu1 %v9662_v6  ;;  %v9714_v6 = vld [vmem:[#allocation19 + $0x6a8] ss:$12 sps:$4 sm:$0xff]  }
 0xfa8   : > { %v3027_v12 = vrot.slane %v10892_v51, %v3026_v0  ;;  %v9776_v0 = vld [vmem:[#allocation19 + $0x814] ss:$12 sps:$4 sm:$0xff]  }
 0xfa9   : > { %7021 = vmatpush2.bf16.msra.mxu0 %v9657_v10  ;;  %v9719_v10 = vld [vmem:[#allocation19 + $0x5d4] ss:$12 sps:$4 sm:$0xff]  }
 0xfaa   : > { %7046 = vmatpush1.bf16.msra.mxu1 %v9660_v27  ;;  %7072 = vmatprep.subr.bf16.mxu0 %v9665_v11  ;;  %v9722_v27 = vld [vmem:[#allocation19 + $0x694] ss:$12 sps:$4 sm:$0xff]  }
 0xfab   : > { %7047 = vmatprep.subr.bf16.mxu1 %v9668_v13  ;;  %v9717_v13 = vld [vmem:[#allocation19 + $0x5d0] ss:$12 sps:$4 sm:$0xff]  }
 0xfac   : > { %7023 = vmatmul.mubr.bf16.vlgmr.msra.gmra.mxu0 %v10940_v14 }
 0xfad   : > { %v10943_v16 = vpop.f32.mrf.mxu1  ;;  %7073 = vmatpush1.bf16.msra.mxu0 %v9663_v18 }
 0xfae   : > { %7048 = vmatpush2.bf16.msra.mxu1 %v9666_v49  ;;  %7074 = vmatprep.subr.bf16.mxu0 %v9671_v20  ;;  %v9720_v49 = vld [vmem:[#allocation19 + $0x690] ss:$12 sps:$4 sm:$0xff]  }
 0xfaf   : > { %v10945_v22 = vpop.f32.mrf.mxu1  ;;  %7049 = vmatprep.subr.bf16.mxu1 %v9674_v15  ;;  %v9725_v20 = vld [vmem:[#allocation19 + $0x5bc] ss:$12 sps:$4 sm:$0xff]  }
 0xfb1   : > { %v4821_v4 = vpop.f32.mrf.mxu1  ;;  %7075 = vmatpush1.bf16.msra.mxu0 %v9669_v21  ;;  %v9728_v21 = vld [vmem:[#allocation19 + $0x67c] ss:$12 sps:$4 sm:$0xff]  }
 0xfb2   : > { %7050 = vmatpush2.bf16.msra.mxu1 %v9672_v58  ;;  %7076 = vmatprep.subr.bf16.mxu0 %v9677_v9 }
 0xfb3   : > { %v4822_v29 = vpop.f32.mrf.mxu1  ;;  %7051 = vmatprep.subr.bf16.mxu1 %v9680_v24  ;;  %v9723_v24 = vld [vmem:[#allocation19 + $0x5b8] ss:$12 sps:$4 sm:$0xff]  }
 0xfb4   : > { %v9734_v29 = vld [vmem:[#allocation19 + $0x664] ss:$12 sps:$4 sm:$0xff]  }
 0xfb5   : > { %7077 = vmatpush1.bf16.msra.mxu0 %v9675_v25  ;;  %v9726_v25 = vld [vmem:[#allocation19 + $0x678] ss:$12 sps:$4 sm:$0xff]  }
 0xfb6   : > { %7052 = vmatpush2.bf16.msra.mxu1 %v9678_v2  ;;  %7078 = vmatprep.subr.bf16.mxu0 %v9683_v26  ;;  %v9731_v2 = vld [vmem:[#allocation19 + $0x5a4] ss:$12 sps:$4 sm:$0xff]  }
 0xfb7   : > { %7053 = vmatprep.subr.bf16.mxu1 %v9686_v30 }
 0xfb9   : > { %7079 = vmatpush1.bf16.msra.mxu0 %v9681_v34  ;;  %v9729_v34 = vld [vmem:[#allocation19 + $0x5a0] ss:$12 sps:$4 sm:$0xff]  }
 0xfba   : > { %7054 = vmatpush2.bf16.msra.mxu1 %v9684_v17  ;;  %7080 = vmatprep.subr.bf16.mxu0 %v9689_v35  ;;  %v3022_v17 = vsub.s32 6, %v10697_v3  ;;  %v9732_v35 = vld [vmem:[#allocation19 + $0x660] ss:$12 sps:$4 sm:$0xff]  }
 0xfbb   : > { %7055 = vmatprep.subr.bf16.mxu1 %v9692_v38  ;;  %v9735_v38 = vld [vmem:[#allocation19 + $0x588] ss:$12 sps:$4 sm:$0xff]  }
 0xfbd   : > { %7081 = vmatpush1.bf16.msra.mxu0 %v9687_v39  ;;  %v3023_v39 = vrot.slane %v10892_v51, %v3022_v17  ;;  %v9750_v51 = vld [vmem:[#allocation19 + $0x618] ss:$12 sps:$4 sm:$0xff]  }
 0xfbe   : > { %7056 = vmatpush2.bf16.msra.mxu1 %v9690_v40  ;;  %7082 = vmatprep.subr.bf16.mxu0 %v9695_v41  ;;  %v9738_v40 = vld [vmem:[#allocation19 + $0x648] ss:$12 sps:$4 sm:$0xff]  }
 0xfbf   : > { %7057 = vmatprep.subr.bf16.mxu1 %v9698_v44  ;;  %v9743_v41 = vld [vmem:[#allocation19 + $0x574] ss:$12 sps:$4 sm:$0xff]   ;;  %v9741_v44 = vld [vmem:[#allocation19 + $0x570] ss:$12 sps:$4 sm:$0xff]  }
 0xfc1   : > { %7083 = vmatpush1.bf16.msra.mxu0 %v9693_v45 }
 0xfc2   : > { %7058 = vmatpush2.bf16.msra.mxu1 %v9696_v50  ;;  %7084 = vmatprep.subr.bf16.mxu0 %v9701_v52  ;;  %v9744_v50 = vld [vmem:[#allocation19 + $0x630] ss:$12 sps:$4 sm:$0xff]  }
 0xfc3   : > { %7059 = vmatprep.subr.bf16.mxu1 %v9704_v54  ;;  %v9749_v52 = vld [vmem:[#allocation19 + $0x55c] ss:$12 sps:$4 sm:$0xff]   ;;  %v9747_v54 = vld [vmem:[#allocation19 + $0x558] ss:$12 sps:$4 sm:$0xff]  }
 0xfc5   : > { %7085 = vmatpush1.bf16.msra.mxu0 %v9699_v55 }
 0xfc6   : > { %7060 = vmatpush2.bf16.msra.mxu1 %v9702_v56  ;;  %7086 = vmatprep.subr.bf16.mxu0 %v9707_v57  ;;  %v9755_v56 = vld [vmem:[#allocation19 + $0x544] ss:$12 sps:$4 sm:$0xff]  }
 0xfc7   : > { %7061 = vmatprep.subr.bf16.mxu1 %v9710_v60  ;;  %v9758_v57 = vld [vmem:[#allocation19 + $0x604] ss:$12 sps:$4 sm:$0xff]  }
 0xfc9   : > { %7087 = vmatpush1.bf16.msra.mxu0 %v9705_v61  ;;  %v9756_v61 = vld [vmem:[#allocation19 + $0x600] ss:$12 sps:$4 sm:$0xff]  }
 0xfca   : > { %7062 = vmatpush2.bf16.msra.mxu1 %v9708_v19  ;;  %7088 = vmatprep.subr.bf16.mxu0 %v9713_v62  ;;  %v9770_v19 = vld [vmem:[#allocation19 + $0x82c] ss:$12 sps:$4 sm:$0xff]  }
 0xfcb   : > { %7113 = vmatprep.subr.bf16.mxu1 %v9716_v28  ;;  %v9761_v62 = vld [vmem:[#allocation19 + $0x76c] ss:$12 sps:$4 sm:$0xff]  }
 0xfcc   : > { %v4776_v11 = vpop.f32.mrf.mxu0 }
 0xfcd   : > { %7064 = vmatmul.mubr.bf16.vlgmr.msra.gmra.mxu1 %v10952_v32  ;;  %7089 = vmatpush2.bf16.msra.mxu0 %v9711_v1  ;;  %v4777_v45 = vadd.f32 %v4776_v11, %v3023_v39  ;;  %v10965_v1 = vld [vmem:[#allocation17 + $0x8] sm:$0xf]  ;;  %v9779_v39 = vld [vmem:[#allocation19 + $0x70c] ss:$12 sps:$4 sm:$0xff]  }
 0xfce   : > { %v4778_v18 = vpop.f32.mrf.mxu0  ;;  %7114 = vmatpush1.bf16.msra.mxu1 %v9714_v6  ;;  %7090 = vmatprep.subr.bf16.mxu0 %v9719_v10  ;;  %v9764_v6 = vld [vmem:[#allocation19 + $0x754] ss:$12 sps:$4 sm:$0xff]   ;;  %v9774_v11 = vld [vmem:[#allocation19 + $0x810] ss:$12 sps:$4 sm:$0xff]  }
 0xfcf   : > { %v4779_v15 = vadd.f32 %v4778_v18, %v3027_v12  ;;  %7115 = vmatprep.subr.bf16.mxu1 %v9722_v27  ;;  %v4818_v55 = vadd.f32 %v10943_v16, %v4777_v45  ;;  %v9759_v16 = vld [vmem:[#allocation19 + $0x768] ss:$12 sps:$4 sm:$0xff]   ;;  %v3035_v12 = vrot.slane %v10965_v1, %v10700_v5  ;;  %v9762_v18 = vld [vmem:[#allocation19 + $0x750] ss:$12 sps:$4 sm:$0xff]  }
 0xfd0   : > { %v4780_v58 = vpop.f32.mrf.mxu0  ;;  %v9785_v45 = vld [vmem:[#allocation19 + $0x6f4] ss:$12 sps:$4 sm:$0xff]  }
 0xfd1   : > { %v4820_v9 = vadd.f32 %v10945_v22, %v4779_v15  ;;  %7091 = vmatpush2.bf16.msra.mxu0 %v9717_v13  ;;  %v9737_v22 = vld [vmem:[#allocation19 + $0x58c] ss:$12 sps:$4 sm:$0xff]   ;;  %v4994_v60 = vmax.f32 %v4818_v55, 0.0  ;;  %v9767_v15 = vld [vmem:[#allocation19 + $0x73c] ss:$12 sps:$4 sm:$0xff]  }
 0xfd2   : > { %v4781_v4 = vpop.f32.mrf.mxu0  ;;  %7116 = vmatpush1.bf16.msra.mxu1 %v9720_v49  ;;  %7092 = vmatprep.subr.bf16.mxu0 %v9725_v20  ;;  %v9782_v49 = vld [vmem:[#allocation19 + $0x7fc] ss:$12 sps:$4 sm:$0xff]  }
 0xfd3   : > { %v4995_v26 = vmax.f32 %v4820_v9, 0.0  ;;  %7117 = vmatprep.subr.bf16.mxu1 %v9728_v21  ;;  %v10963_v28 = vpack.c.bf16 %v4994_v60, %v4994_v60  ;;  %v9791_v55 = vld [vmem:[#allocation19 + $0x6dc] ss:$12 sps:$4 sm:$0xff]   ;;  %v9797_v60 = vld [vmem:[#allocation19 + $0x6c4] ss:$12 sps:$4 sm:$0xff]  }
 0xfd5   : > { %v10957_v30 = vpack.c.bf16 %v4995_v26, %v4995_v26  ;;  %7093 = vmatpush2.bf16.msra.mxu0 %v9723_v24  ;;  %v9780_v24 = vld [vmem:[#allocation19 + $0x7f8] ss:$12 sps:$4 sm:$0xff]  }
 0xfd6   : > { %7118 = vmatpush1.bf16.msra.mxu1 %v9726_v25  ;;  %7094 = vmatprep.subr.bf16.mxu0 %v9731_v2  ;;  %v9765_v2 = vld [vmem:[#allocation19 + $0x738] ss:$12 sps:$4 sm:$0xff]  }
 0xfd7   : > { %7104 = vmatprep.mubr.bf16.mxu0 %v10957_v30  ;;  %7119 = vmatprep.subr.bf16.mxu1 %v9734_v29  ;;  %v9788_v26 = vld [vmem:[#allocation19 + $0x7e4] ss:$12 sps:$4 sm:$0xff]  }
 0xfd9   : > { %7095 = vmatpush2.bf16.msra.mxu0 %v9729_v34  ;;  %v9773_v34 = vld [vmem:[#allocation19 + $0x724] ss:$12 sps:$4 sm:$0xff]  }
 0xfda   : > { %7120 = vmatpush1.bf16.msra.mxu1 %v9732_v35  ;;  %7096 = vmatprep.subr.bf16.mxu0 %v9737_v22  ;;  %v9786_v35 = vld [vmem:[#allocation19 + $0x7e0] ss:$12 sps:$4 sm:$0xff]  }
 0xfdb   : > { %7121 = vmatprep.subr.bf16.mxu1 %v9740_v31  ;;  %v9771_v31 = vld [vmem:[#allocation19 + $0x720] ss:$12 sps:$4 sm:$0xff]  }
 0xfdd   : > { %7097 = vmatpush2.bf16.msra.mxu0 %v9735_v38  ;;  %v9794_v38 = vld [vmem:[#allocation19 + $0x7cc] ss:$12 sps:$4 sm:$0xff]  }
 0xfde   : > { %7122 = vmatpush1.bf16.msra.mxu1 %v9738_v40  ;;  %7098 = vmatprep.subr.bf16.mxu0 %v9743_v41  ;;  %v9792_v40 = vld [vmem:[#allocation19 + $0x7c8] ss:$12 sps:$4 sm:$0xff]  }
 0xfdf   : > { %7123 = vmatprep.subr.bf16.mxu1 %v9746_v43  ;;  %v9777_v41 = vld [vmem:[#allocation19 + $0x708] ss:$12 sps:$4 sm:$0xff]  }
 0xfe0   : > { %v9800_v43 = vld [vmem:[#allocation19 + $0x7b4] ss:$12 sps:$4 sm:$0xff]  }
 0xfe1   : > { %7099 = vmatpush2.bf16.msra.mxu0 %v9741_v44  ;;  %v3031_v44 = vrot.slane %v10965_v1, %v10706_v8 }
 0xfe2   : > { %7124 = vmatpush1.bf16.msra.mxu1 %v9744_v50  ;;  %7100 = vmatprep.subr.bf16.mxu0 %v9749_v52  ;;  %v9798_v50 = vld [vmem:[#allocation19 + $0x7b0] ss:$12 sps:$4 sm:$0xff]  }
 0xfe3   : > { %7125 = vmatprep.subr.bf16.mxu1 %v9752_v53  ;;  %v9783_v52 = vld [vmem:[#allocation19 + $0x6f0] ss:$12 sps:$4 sm:$0xff]  }
 0xfe4   : > { %v9805_v53 = vld [vmem:[#allocation19 + $0x79c] ss:$12 sps:$4 sm:$0xff]  }
 0xfe5   : > { %7101 = vmatpush2.bf16.msra.mxu0 %v9747_v54 }
 0xfe6   : > { %7126 = vmatpush1.bf16.msra.mxu1 %v9750_v51  ;;  %7102 = vmatprep.subr.bf16.mxu0 %v9755_v56  ;;  %v9803_v51 = vld [vmem:[#allocation19 + $0x798] ss:$12 sps:$4 sm:$0xff]  }
 0xfe7   : > { %7127 = vmatprep.subr.bf16.mxu1 %v9758_v57  ;;  %v9789_v56 = vld [vmem:[#allocation19 + $0x6d8] ss:$12 sps:$4 sm:$0xff]  }
 0xfe8   : > { %v9810_v57 = vld [vmem:[#allocation19 + $0x784] ss:$12 sps:$4 sm:$0xff]  }
 0xfe9   : > { %7103 = vmatpush2.bf16.msra.mxu0 %v9753_v59 }
 0xfea   : > { %7128 = vmatpush1.bf16.msra.mxu1 %v9756_v61  ;;  %7154 = vmatprep.subr.bf16.mxu0 %v9770_v19  ;;  %v9808_v61 = vld [vmem:[#allocation19 + $0x780] ss:$12 sps:$4 sm:$0xff]  }
 0xfeb   : > { %7129 = vmatprep.subr.bf16.mxu1 %v9761_v62  ;;  %v9795_v19 = vld [vmem:[#allocation19 + $0x6c0] ss:$12 sps:$4 sm:$0xff]  }
 0xfec   : > { %v10967_v10 = vpop.f32.mrf.mxu0  ;;  %7105 = vmatmul.mubr.bf16.vlgmr.msra.gmra.mxu0 %v10963_v28  ;;  %v9815_v62 = vld [vmem:[#allocation19 + $0x8ec] ss:$12 sps:$4 sm:$0xff]  }
 0xfed   : > { %v4858_v27 = vpop.f32.mrf.mxu1  ;;  %7155 = vmatpush1.bf16.msra.mxu0 %v9768_v63 }
 0xfee   : > { %v4901_v13 = vpop.f32.mrf.mxu0  ;;  %7130 = vmatpush2.bf16.msra.mxu1 %v9759_v16  ;;  %7156 = vmatprep.subr.bf16.mxu0 %v9776_v0  ;;  %v4859_v54 = vadd.f32 %v4858_v27, %v3031_v44  ;;  %v9801_v16 = vld [vmem:[#allocation19 + $0x170] ss:$12 sps:$4 sm:$0xff]   ;;  %v9813_v0 = vld [vmem:[#allocation19 + $0x8e8] ss:$12 sps:$4 sm:$0xff]   ;;  %v9832_v44 = vld [vmem:[#allocation19 + $0x20] ss:$12 sps:$4 sm:$0xff]  }
 0xfef   : > { %v4860_v20 = vpop.f32.mrf.mxu1  ;;  %7131 = vmatprep.subr.bf16.mxu1 %v9764_v6  ;;  %v9802_v6 = vld [vmem:[#allocation19 + $0xb0] ss:$12 sps:$4 sm:$0xff]   ;;  %v9820_v27 = vld [vmem:[#allocation19 + $0x8d4] ss:$12 sps:$4 sm:$0xff]  }
 0xff0   : > { %v4861_v21 = vadd.f32 %v4860_v20, %v3035_v12  ;;  %v4903_v58 = vpop.f32.mrf.mxu0  ;;  %v4900_v59 = vadd.f32 %v10967_v10, %v4859_v54  ;;  %v9806_v10 = vld [vmem:[#allocation19 + $0x158] ss:$12 sps:$4 sm:$0xff]   ;;  %v9853_v54 = vld [vmem:[#allocation19 + $0x2f0] ss:$12 sps:$4 sm:$0xff]  }
 0xff1   : > { %v4862_v9 = vpop.f32.mrf.mxu1  ;;  %7157 = vmatpush1.bf16.msra.mxu0 %v9774_v11  ;;  %v9823_v58 = vld [vmem:[#allocation19 + $0x8b8] ss:$12 sps:$4 sm:$0xff]  }
 0xff2   : > { %v4902_v4 = vadd.f32 %v4901_v13, %v4861_v21  ;;  %v4904_v25 = vpop.f32.mrf.mxu0  ;;  %7132 = vmatpush2.bf16.msra.mxu1 %v9762_v18  ;;  %7158 = vmatprep.subr.bf16.mxu0 %v9782_v49  ;;  %v4996_v63 = vmax.f32 %v4900_v59, 0.0  ;;  %v9818_v13 = vld [vmem:[#allocation19 + $0x8d0] ss:$12 sps:$4 sm:$0xff]   ;;  %v9807_v18 = vld [vmem:[#allocation19 + $0x98] ss:$12 sps:$4 sm:$0xff]  }
 0xff3   : > { %v4863_v29 = vpop.f32.mrf.mxu1  ;;  %7133 = vmatprep.subr.bf16.mxu1 %v9767_v15  ;;  %v9825_v49 = vld [vmem:[#allocation19 + $0x8bc] ss:$12 sps:$4 sm:$0xff]   ;;  %v9811_v15 = vld [vmem:[#allocation19 + $0x140] ss:$12 sps:$4 sm:$0xff]   ;;  %v9846_v59 = vld [vmem:[#allocation19 + $0x458] ss:$12 sps:$4 sm:$0xff]  }
 0xff4   : > { %v4997_v17 = vmax.f32 %v4902_v4, 0.0  ;;  %v10978_v12 = vpack.c.bf16 %v4996_v63, %v4996_v63  ;;  %v9812_v9 = vld [vmem:[#allocation19 + $0x80] ss:$12 sps:$4 sm:$0xff]   ;;  %v9816_v25 = vld [vmem:[#allocation19 + $0x128] ss:$12 sps:$4 sm:$0xff]  }
 0xff5   : > { %7159 = vmatpush1.bf16.msra.mxu0 %v9780_v24  ;;  %v9830_v24 = vld [vmem:[#allocation19 + $0x8a4] ss:$12 sps:$4 sm:$0xff]  }
 0xff6   : > { %v10972_v22 = vpack.c.bf16 %v4997_v17, %v4997_v17  ;;  %7134 = vmatpush2.bf16.msra.mxu1 %v9765_v2  ;;  %7160 = vmatprep.subr.bf16.mxu0 %v9788_v26  ;;  %v9828_v2 = vld [vmem:[#allocation19 + $0x8a0] ss:$12 sps:$4 sm:$0xff]   ;;  %v9821_v29 = vld [vmem:[#allocation19 + $0x110] ss:$12 sps:$4 sm:$0xff]  }
 0xff7   : > { %7135 = vmatprep.subr.bf16.mxu1 %v9773_v34  ;;  %v9835_v26 = vld [vmem:[#allocation19 + $0x88c] ss:$12 sps:$4 sm:$0xff]   ;;  %v9833_v34 = vld [vmem:[#allocation19 + $0x888] ss:$12 sps:$4 sm:$0xff]   ;;  %v9822_v17 = vld [vmem:[#allocation19 + $0x50] ss:$12 sps:$4 sm:$0xff]  }
 0xff8   : > { %7145 = vmatprep.mubr.bf16.mxu1 %v10972_v22 }
 0xff9   : > { %7161 = vmatpush1.bf16.msra.mxu0 %v9786_v35  ;;  %v9840_v35 = vld [vmem:[#allocation19 + $0x874] ss:$12 sps:$4 sm:$0xff]  }
 0xffa   : > { %7136 = vmatpush2.bf16.msra.mxu1 %v9771_v31  ;;  %7162 = vmatprep.subr.bf16.mxu0 %v9794_v38  ;;  %v9826_v31 = vld [vmem:[#allocation19 + $0xf8] ss:$12 sps:$4 sm:$0xff]   ;;  %v9838_v38 = vld [vmem:[#allocation19 + $0x870] ss:$12 sps:$4 sm:$0xff]  }
 0xffb   : > { %7137 = vmatprep.subr.bf16.mxu1 %v9779_v39  ;;  %v9827_v39 = vld [vmem:[#allocation19 + $0x38] ss:$12 sps:$4 sm:$0xff]  }
 0xffd   : > { %7163 = vmatpush1.bf16.msra.mxu0 %v9792_v40  ;;  %v9845_v40 = vld [vmem:[#allocation19 + $0x85c] ss:$12 sps:$4 sm:$0xff]  }
 0xffe   : > { %7138 = vmatpush2.bf16.msra.mxu1 %v9777_v41  ;;  %7164 = vmatprep.subr.bf16.mxu0 %v9800_v43  ;;  %v9831_v41 = vld [vmem:[#allocation19 + $0xe0] ss:$12 sps:$4 sm:$0xff]   ;;  %v9843_v43 = vld [vmem:[#allocation19 + $0x858] ss:$12 sps:$4 sm:$0xff]  }
 0xfff   : > { %7139 = vmatprep.subr.bf16.mxu1 %v9785_v45  ;;  %v9850_v45 = vld [vmem:[#allocation19 + $0x844] ss:$12 sps:$4 sm:$0xff]  }
0x1001   : > { %7165 = vmatpush1.bf16.msra.mxu0 %v9798_v50  ;;  %v9836_v50 = vld [vmem:[#allocation19 + $0xc8] ss:$12 sps:$4 sm:$0xff]  }
0x1002   : > { %7140 = vmatpush2.bf16.msra.mxu1 %v9783_v52  ;;  %7166 = vmatprep.subr.bf16.mxu0 %v9805_v53  ;;  %v9848_v52 = vld [vmem:[#allocation19 + $0x840] ss:$12 sps:$4 sm:$0xff]   ;;  %v9837_v53 = vld [vmem:[#allocation19 + $0x8] ss:$12 sps:$4 sm:$0xff]  }
0x1003   : > { %7141 = vmatprep.subr.bf16.mxu1 %v9791_v55  ;;  %v9841_v55 = vld [vmem:[#allocation19 + $0x470] ss:$12 sps:$4 sm:$0xff]  }
0x1005   : > { %7167 = vmatpush1.bf16.msra.mxu0 %v9803_v51  ;;  %v3039_v51 = vrot.slane %v10965_v1, %v10703_v7 }
0x1006   : > { %7142 = vmatpush2.bf16.msra.mxu1 %v9789_v56  ;;  %7168 = vmatprep.subr.bf16.mxu0 %v9810_v57  ;;  %v9842_v56 = vld [vmem:[#allocation19 + $0x3b0] ss:$12 sps:$4 sm:$0xff]   ;;  %v3043_v57 = vrot.slane %v10965_v1, %v3010_v23  ;;  %v9852_v1 = vld [vmem:[#allocation19 + $0x380] ss:$12 sps:$4 sm:$0xff]  }
0x1007   : > { %7143 = vmatprep.subr.bf16.mxu1 %v9797_v60 }
0x1009   : > { %7169 = vmatpush1.bf16.msra.mxu0 %v9808_v61 }
0x100a   : > { %7144 = vmatpush2.bf16.msra.mxu1 %v9795_v19  ;;  %7170 = vmatprep.subr.bf16.mxu0 %v9815_v62  ;;  %v9847_v62 = vld [vmem:[#allocation19 + $0x398] ss:$12 sps:$4 sm:$0xff]  }
0x100b   : > { %8475 = vmatprep.subr.bf16.mxu1 %v9801_v16 }
0x100d   : > { %v10980_v11 = vpop.f32.mrf.mxu1  ;;  %7146 = vmatmul.mubr.bf16.vlgmr.msra.gmra.mxu1 %v10978_v12  ;;  %7171 = vmatpush2.bf16.msra.mxu0 %v9813_v0  ;;  %v9851_v0 = vld [vmem:[#allocation19 + $0x440] ss:$12 sps:$4 sm:$0xff]  }
0x100e   : > { %8476 = vmatpush3.bf16.msra.mxu1 %v9802_v6  ;;  %7227 = vmatprep.mubr.bf16.mxu1 %v10904_v48  ;;  %v9817_v48 = vld [vmem:[#allocation19 + $0x68] ss:$12 sps:$4 sm:$0xff]  }
0x100f   : > { %v10984_v20 = vpop.f32.mrf.mxu1  ;;  %8477 = vmatprep.subr.bf16.mxu1 %v9806_v10  ;;  %7172 = vmatprep.subr.bf16.mxu0 %v9820_v27 }
0x1011   : > { %v4985_v21 = vpop.f32.mrf.mxu1  ;;  %7173 = vmatpush2.bf16.msra.mxu0 %v9818_v13 }
0x1012   : > { %8478 = vmatpush3.bf16.msra.mxu1 %v9807_v18  ;;  %7174 = vmatprep.subr.bf16.mxu0 %v9825_v49  ;;  %v9854_v18 = vld [vmem:[#allocation19 + $0x230] ss:$12 sps:$4 sm:$0xff]   ;;  %v9857_v49 = vld [vmem:[#allocation19 + $0x2d8] ss:$12 sps:$4 sm:$0xff]  }
0x1013   : > { %v4986_v4 = vpop.f32.mrf.mxu1  ;;  %8479 = vmatprep.subr.bf16.mxu1 %v9811_v15  ;;  %v9859_v15 = vld [vmem:[#allocation19 + $0x410] ss:$12 sps:$4 sm:$0xff]  }
0x1014   : > { %v9860_v21 = vld [vmem:[#allocation19 + $0x350] ss:$12 sps:$4 sm:$0xff]   ;;  %v9864_v4 = vld [vmem:[#allocation19 + $0x338] ss:$12 sps:$4 sm:$0xff]  }
0x1015   : > { %7175 = vmatpush2.bf16.msra.mxu0 %v9823_v58  ;;  %v9861_v58 = vld [vmem:[#allocation19 + $0x2c0] ss:$12 sps:$4 sm:$0xff]  }
0x1016   : > { %8480 = vmatpush3.bf16.msra.mxu1 %v9812_v9  ;;  %7176 = vmatprep.subr.bf16.mxu0 %v9830_v24  ;;  %v9863_v9 = vld [vmem:[#allocation19 + $0x3f8] ss:$12 sps:$4 sm:$0xff]   ;;  %v9862_v24 = vld [vmem:[#allocation19 + $0x200] ss:$12 sps:$4 sm:$0xff]  }
0x1017   : > { %8481 = vmatprep.subr.bf16.mxu1 %v9816_v25  ;;  %v9865_v25 = vld [vmem:[#allocation19 + $0x2a8] ss:$12 sps:$4 sm:$0xff]  }
0x1019   : > { %7177 = vmatpush2.bf16.msra.mxu0 %v9828_v2  ;;  %v9867_v2 = vld [vmem:[#allocation19 + $0x3e0] ss:$12 sps:$4 sm:$0xff]  }
0x101a   : > { %8482 = vmatpush3.bf16.msra.mxu1 %v9817_v48  ;;  %7178 = vmatprep.subr.bf16.mxu0 %v9835_v26  ;;  %v9866_v48 = vld [vmem:[#allocation19 + $0x1e8] ss:$12 sps:$4 sm:$0xff]   ;;  %v9869_v26 = vld [vmem:[#allocation19 + $0x290] ss:$12 sps:$4 sm:$0xff]  }
0x101b   : > { %8483 = vmatprep.subr.bf16.mxu1 %v9821_v29  ;;  %v9871_v29 = vld [vmem:[#allocation19 + $0x3c8] ss:$12 sps:$4 sm:$0xff]  }
0x101d   : > { %7179 = vmatpush2.bf16.msra.mxu0 %v9833_v34  ;;  %v9870_v34 = vld [vmem:[#allocation19 + $0x1d0] ss:$12 sps:$4 sm:$0xff]  }
0x101e   : > { %8484 = vmatpush3.bf16.msra.mxu1 %v9822_v17  ;;  %7180 = vmatprep.subr.bf16.mxu0 %v9840_v35  ;;  %v9872_v17 = vld [vmem:[#allocation19 + $0x308] ss:$12 sps:$4 sm:$0xff]   ;;  %v9873_v35 = vld [vmem:[#allocation19 + $0x278] ss:$12 sps:$4 sm:$0xff]  }
0x101f   : > { %8485 = vmatprep.subr.bf16.mxu1 %v9826_v31  ;;  %v9875_v31 = vld [vmem:[#allocation19 + $0x770] ss:$12 sps:$4 sm:$0xff]  }
0x1021   : > { %7181 = vmatpush2.bf16.msra.mxu0 %v9838_v38  ;;  %v9874_v38 = vld [vmem:[#allocation19 + $0x1b8] ss:$12 sps:$4 sm:$0xff]  }
0x1022   : > { %8486 = vmatpush3.bf16.msra.mxu1 %v9827_v39  ;;  %7182 = vmatprep.subr.bf16.mxu0 %v9845_v40  ;;  %v9876_v39 = vld [vmem:[#allocation19 + $0x6b0] ss:$12 sps:$4 sm:$0xff]   ;;  %v9877_v40 = vld [vmem:[#allocation19 + $0x260] ss:$12 sps:$4 sm:$0xff]  }
0x1023   : > { %8487 = vmatprep.subr.bf16.mxu1 %v9831_v41  ;;  %v9879_v41 = vld [vmem:[#allocation19 + $0x758] ss:$12 sps:$4 sm:$0xff]  }
0x1025   : > { %7183 = vmatpush2.bf16.msra.mxu0 %v9843_v43 }
0x1026   : > { %8488 = vmatpush3.bf16.msra.mxu1 %v9832_v44  ;;  %7184 = vmatprep.subr.bf16.mxu0 %v9850_v45  ;;  %v9878_v44 = vld [vmem:[#allocation19 + $0x1a0] ss:$12 sps:$4 sm:$0xff]   ;;  %v9880_v45 = vld [vmem:[#allocation19 + $0x698] ss:$12 sps:$4 sm:$0xff]  }
0x1027   : > { %8489 = vmatprep.subr.bf16.mxu1 %v9836_v50  ;;  %v9881_v50 = vld [vmem:[#allocation19 + $0x248] ss:$12 sps:$4 sm:$0xff]  }
0x1029   : > { %7185 = vmatpush2.bf16.msra.mxu0 %v9848_v52 }
0x102a   : > { %8490 = vmatpush3.bf16.msra.mxu1 %v9837_v53  ;;  %8497 = vmatprep.subr.bf16.mxu0 %v9853_v54  ;;  %v9883_v53 = vld [vmem:[#allocation19 + $0x740] ss:$12 sps:$4 sm:$0xff]  }
0x102b   : > { %8519 = vmatprep.subr.bf16.mxu1 %v9841_v55  ;;  %v9882_v55 = vld [vmem:[#allocation19 + $0x188] ss:$12 sps:$4 sm:$0xff]  }
0x102c   : > { %v4940_v60 = vpop.f32.mrf.mxu0 }
0x102d   : > { %v4941_v61 = vadd.f32 %v4940_v60, %v3039_v51  ;;  %7228 = vmatmul.mubr.bf16.vlgmr.msra.gmra.mxu1 %v10925_v47  ;;  %v9855_v47 = vld [vmem:[#allocation19 + $0x428] ss:$12 sps:$4 sm:$0xff]   ;;  %v9884_v51 = vld [vmem:[#allocation19 + $0x680] ss:$12 sps:$4 sm:$0xff]   ;;  %v9889_v60 = vld [vmem:[#allocation19 + $0x5d8] ss:$12 sps:$4 sm:$0xff]  }
0x102e   : > { %v4942_v19 = vpop.f32.mrf.mxu0  ;;  %8520 = vmatpush3.bf16.msra.mxu1 %v9842_v56  ;;  %7307 = vmatprep.mubr.bf16.mxu1 %v10933_v36  ;;  %v9885_v56 = vld [vmem:[#allocation19 + $0x5f0] ss:$12 sps:$4 sm:$0xff]  }
0x102f   : > { %v4982_v63 = vadd.f32 %v10980_v11, %v4941_v61  ;;  %v4943_v16 = vadd.f32 %v4942_v19, %v3043_v57  ;;  %8521 = vmatprep.subr.bf16.mxu1 %v9846_v59  ;;  %v9856_v11 = vld [vmem:[#allocation19 + $0x368] ss:$12 sps:$4 sm:$0xff]   ;;  %v9886_v59 = vld [vmem:[#allocation19 + $0x530] ss:$12 sps:$4 sm:$0xff]   ;;  %v9890_v19 = vld [vmem:[#allocation19 + $0x518] ss:$12 sps:$4 sm:$0xff]  }
0x1030   : > { %v4944_v6 = vpop.f32.mrf.mxu0  ;;  %v9891_v61 = vld [vmem:[#allocation19 + $0x710] ss:$12 sps:$4 sm:$0xff]  }
0x1031   : > { %v4984_v3 = vadd.f32 %v10984_v20, %v4943_v16  ;;  %v4998_v10 = vmax.f32 %v4982_v63, 0.0  ;;  %v9858_v20 = vld [vmem:[#allocation19 + $0x218] ss:$12 sps:$4 sm:$0xff]   ;;  %v9893_v63 = vld [vmem:[#allocation19 + $0x5c0] ss:$12 sps:$4 sm:$0xff]  }
0x1032   : > { %v4945_v23 = vpop.f32.mrf.mxu0  ;;  %8522 = vmatpush3.bf16.msra.mxu1 %v9847_v62  ;;  %v9892_v62 = vld [vmem:[#allocation19 + $0x650] ss:$12 sps:$4 sm:$0xff]   ;;  %v9895_v16 = vld [vmem:[#allocation19 + $0x6f8] ss:$12 sps:$4 sm:$0xff]  }
0x1033   : > { %v4999_v27 = vmax.f32 %v4984_v3, 0.0  ;;  %8523 = vmatprep.subr.bf16.mxu1 %v9851_v0  ;;  %v10997_v36 = vpack.c.bf16 %v4998_v10, %v4998_v10  ;;  %v9894_v0 = vld [vmem:[#allocation19 + $0x500] ss:$12 sps:$4 sm:$0xff]   ;;  %v9896_v6 = vld [vmem:[#allocation19 + $0x638] ss:$12 sps:$4 sm:$0xff]  }
0x1034   : > { %v9897_v3 = vld [vmem:[#allocation19 + $0x5a8] ss:$12 sps:$4 sm:$0xff]   ;;  %v9899_v10 = vld [vmem:[#allocation19 + $0x6e0] ss:$12 sps:$4 sm:$0xff]   ;;  %v9901_v23 = vld [vmem:[#allocation19 + $0x590] ss:$12 sps:$4 sm:$0xff]  }
0x1035   : > { %v10995_v13 = vpack.c.bf16 %v4999_v27, %v4999_v27  ;;  %v11010_v27 = vld [vmem:[#allocation20] sm:$0x7] }
0x1036   : > { %8524 = vmatpush3.bf16.msra.mxu1 %v9852_v1  ;;  %v9903_v1 = vld [vmem:[#allocation19 + $0x6c8] ss:$12 sps:$4 sm:$0xff]  }
0x1037   : > { %7186 = vmatprep.mubr.bf16.mxu0 %v10995_v13  ;;  %8525 = vmatprep.subr.bf16.mxu1 %v9855_v47  ;;  %v9902_v47 = vld [vmem:[#allocation19 + $0x4d0] ss:$12 sps:$4 sm:$0xff]  }
0x1038   : > { %7187 = vmatmul.mubr.bf16.vlgmr.msra.gmra.mxu0 %v10997_v36 }
0x1039   : > { %8498 = vmatpush3.bf16.msra.mxu0 %v9854_v18  ;;  %7267 = vmatprep.mubr.bf16.mxu0 %v10920_v46  ;;  %v9868_v46 = vld [vmem:[#allocation19 + $0x320] ss:$12 sps:$4 sm:$0xff]   ;;  %v9904_v18 = vld [vmem:[#allocation19 + $0x608] ss:$12 sps:$4 sm:$0xff]  }
0x103a   : > { %8526 = vmatpush3.bf16.msra.mxu1 %v9856_v11  ;;  %8499 = vmatprep.subr.bf16.mxu0 %v9857_v49  ;;  %v9905_v11 = vld [vmem:[#allocation19 + $0x578] ss:$12 sps:$4 sm:$0xff]   ;;  %v5401_v49 = vrot.slane %v11010_v27, %v10706_v8 }
0x103b   : > { %8527 = vmatprep.subr.bf16.mxu1 %v9859_v15  ;;  %v5405_v15 = vrot.slane %v11010_v27, %v10700_v5 }
0x103d   : > { %8500 = vmatpush3.bf16.msra.mxu0 %v9858_v20  ;;  %v9906_v20 = vld [vmem:[#allocation19 + $0x4b8] ss:$12 sps:$4 sm:$0xff]  }
0x103e   : > { %8528 = vmatpush3.bf16.msra.mxu1 %v9860_v21  ;;  %8501 = vmatprep.subr.bf16.mxu0 %v9861_v58  ;;  %v9907_v21 = vld [vmem:[#allocation19 + $0x560] ss:$12 sps:$4 sm:$0xff]  }
0x103f   : > { %8529 = vmatprep.subr.bf16.mxu1 %v9863_v9 }
0x1041   : > { %8502 = vmatpush3.bf16.msra.mxu0 %v9862_v24 }
0x1042   : > { %8530 = vmatpush3.bf16.msra.mxu1 %v9864_v4  ;;  %8503 = vmatprep.subr.bf16.mxu0 %v9865_v25  ;;  %v9908_v25 = vld [vmem:[#allocation19 + $0x4a0] ss:$12 sps:$4 sm:$0xff]  }
0x1043   : > { %8531 = vmatprep.subr.bf16.mxu1 %v9867_v2  ;;  %v9909_v2 = vld [vmem:[#allocation19 + $0x548] ss:$12 sps:$4 sm:$0xff]  }
0x1045   : > { %8504 = vmatpush3.bf16.msra.mxu0 %v9866_v48 }
0x1046   : > { %8532 = vmatpush3.bf16.msra.mxu1 %v9868_v46  ;;  %8505 = vmatprep.subr.bf16.mxu0 %v9869_v26  ;;  %v9910_v46 = vld [vmem:[#allocation19 + $0x488] ss:$12 sps:$4 sm:$0xff]  }
0x1047   : > { %8533 = vmatprep.subr.bf16.mxu1 %v9871_v29  ;;  %v9911_v29 = vld [vmem:[#allocation19 + $0x8f0] ss:$12 sps:$4 sm:$0xff]  }
0x1049   : > { %8506 = vmatpush3.bf16.msra.mxu0 %v9870_v34  ;;  %v9912_v34 = vld [vmem:[#allocation19 + $0x830] ss:$12 sps:$4 sm:$0xff]  }
0x104a   : > { %8534 = vmatpush3.bf16.msra.mxu1 %v9872_v17  ;;  %8507 = vmatprep.subr.bf16.mxu0 %v9873_v35  ;;  %v9913_v17 = vld [vmem:[#allocation19 + $0x8d8] ss:$12 sps:$4 sm:$0xff]   ;;  %v9915_v35 = vld [vmem:[#allocation19 + $0x8c0] ss:$12 sps:$4 sm:$0xff]  }
0x104b   : > { %8563 = vmatprep.subr.bf16.mxu1 %v9875_v31  ;;  %v9916_v31 = vld [vmem:[#allocation19 + $0x800] ss:$12 sps:$4 sm:$0xff]  }
0x104d   : > { %8508 = vmatpush3.bf16.msra.mxu0 %v9874_v38  ;;  %v11002_v43 = vpop.f32.mrf.mxu1  ;;  %7308 = vmatmul.mubr.bf16.vlgmr.msra.gmra.mxu1 %v10952_v32  ;;  %v9887_v32 = vld [vmem:[#allocation19 + $0x728] ss:$12 sps:$4 sm:$0xff]  }
0x104e   : > { %8564 = vmatpush3.bf16.msra.mxu1 %v9876_v39  ;;  %7387 = vmatprep.mubr.bf16.mxu1 %v10972_v22  ;;  %v9888_v22 = vld [vmem:[#allocation19 + $0x668] ss:$12 sps:$4 sm:$0xff]   ;;  %v6984_v58 = vadd.f32 %v11002_v43, %v5401_v49  ;;  %v9921_v43 = vld [vmem:[#allocation19 + $0x878] ss:$12 sps:$4 sm:$0xff]  }
0x104f   : > { %v11006_v52 = vpop.f32.mrf.mxu1  ;;  %8509 = vmatprep.subr.bf16.mxu0 %v9877_v40  ;;  %8565 = vmatprep.subr.bf16.mxu1 %v9879_v41  ;;  %v9917_v38 = vld [vmem:[#allocation19 + $0x8a8] ss:$12 sps:$4 sm:$0xff]   ;;  %v9919_v40 = vld [vmem:[#allocation19 + $0x890] ss:$12 sps:$4 sm:$0xff]  }
0x1050   : > { %v6986_v24 = vadd.f32 %v11006_v52, %v5405_v15  ;;  %v9918_v39 = vld [vmem:[#allocation19 + $0x7e8] ss:$12 sps:$4 sm:$0xff]   ;;  %v9920_v41 = vld [vmem:[#allocation19 + $0x7d0] ss:$12 sps:$4 sm:$0xff]  }
0x1051   : > { %8510 = vmatpush3.bf16.msra.mxu0 %v9878_v44  ;;  %v6987_v54 = vpop.f32.mrf.mxu1  ;;  %v9923_v44 = vld [vmem:[#allocation19 + $0x860] ss:$12 sps:$4 sm:$0xff]   ;;  %v9925_v52 = vld [vmem:[#allocation19 + $0x848] ss:$12 sps:$4 sm:$0xff]  }
0x1052   : > { %8566 = vmatpush3.bf16.msra.mxu1 %v9880_v45  ;;  %8511 = vmatprep.subr.bf16.mxu0 %v9881_v50  ;;  %v9924_v45 = vld [vmem:[#allocation19 + $0x7a0] ss:$12 sps:$4 sm:$0xff]  }
0x1053   : > { %v6988_v57 = vpop.f32.mrf.mxu1  ;;  %8567 = vmatprep.subr.bf16.mxu1 %v9883_v53 }
0x1055   : > { %8512 = vmatpush3.bf16.msra.mxu0 %v9882_v55 }
0x1056   : > { %8568 = vmatpush3.bf16.msra.mxu1 %v9884_v51  ;;  %8541 = vmatprep.subr.bf16.mxu0 %v9885_v56  ;;  %v9926_v51 = vld [vmem:[#allocation19 + $0x788] ss:$12 sps:$4 sm:$0xff]  }
0x1057   : > { %8569 = vmatprep.subr.bf16.mxu1 %v9887_v32 }
0x1058   : > { %7268 = vmatmul.mubr.bf16.vlgmr.msra.gmra.mxu0 %v10940_v14  ;;  %v9898_v14 = vld [vmem:[#allocation19 + $0x4e8] ss:$12 sps:$4 sm:$0xff]  }
0x1059   : > { %8542 = vmatpush3.bf16.msra.mxu0 %v9886_v59  ;;  %7347 = vmatprep.mubr.bf16.mxu0 %v10957_v30  ;;  %v9900_v30 = vld [vmem:[#allocation19 + $0x620] ss:$12 sps:$4 sm:$0xff]  }
0x105a   : > { %8570 = vmatpush3.bf16.msra.mxu1 %v9888_v22  ;;  %8543 = vmatprep.subr.bf16.mxu0 %v9889_v60 }
0x105b   : > { %8571 = vmatprep.subr.bf16.mxu1 %v9891_v61 }
0x105d   : > { %8544 = vmatpush3.bf16.msra.mxu0 %v9890_v19 }
0x105e   : > { %8572 = vmatpush3.bf16.msra.mxu1 %v9892_v62  ;;  %8545 = vmatprep.subr.bf16.mxu0 %v9893_v63 }
0x105f   : > { %8573 = vmatprep.subr.bf16.mxu1 %v9895_v16 }
0x1061   : > { %8546 = vmatpush3.bf16.msra.mxu0 %v9894_v0 }
0x1062   : > { %8574 = vmatpush3.bf16.msra.mxu1 %v9896_v6  ;;  %8547 = vmatprep.subr.bf16.mxu0 %v9897_v3 }
0x1063   : > { %8575 = vmatprep.subr.bf16.mxu1 %v9899_v10 }
0x1065   : > { %8548 = vmatpush3.bf16.msra.mxu0 %v9898_v14 }
0x1066   : > { %8576 = vmatpush3.bf16.msra.mxu1 %v9900_v30  ;;  %8549 = vmatprep.subr.bf16.mxu0 %v9901_v23 }
0x1067   : > { %8577 = vmatprep.subr.bf16.mxu1 %v9903_v1 }
0x1069   : > { %8550 = vmatpush3.bf16.msra.mxu0 %v9902_v47 }
0x106a   : > { %8578 = vmatpush3.bf16.msra.mxu1 %v9904_v18  ;;  %8551 = vmatprep.subr.bf16.mxu0 %v9905_v11 }
0x106c   : > { %v7024_v9 = vpop.f32.mrf.mxu0 }
0x106d   : > { %v7025_v4 = vadd.f32 %v7024_v9, %v6984_v58  ;;  %8552 = vmatpush3.bf16.msra.mxu0 %v9906_v20  ;;  %7388 = vmatmul.mubr.bf16.vlgmr.msra.gmra.mxu1 %v10978_v12  ;;  %v9914_v12 = vld [vmem:[#allocation19 + $0x818] ss:$12 sps:$4 sm:$0xff]  }
0x106e   : > { %v7026_v8 = vpop.f32.mrf.mxu0  ;;  %8553 = vmatprep.subr.bf16.mxu0 %v9907_v21 }
0x106f   : > { %v7027_v48 = vadd.f32 %v7026_v8, %v6986_v24 }
0x1070   : > { %v7028_v5 = vpop.f32.mrf.mxu0 }
0x1071   : > { %8554 = vmatpush3.bf16.msra.mxu0 %v9908_v25 }
0x1072   : > { %v7029_v26 = vpop.f32.mrf.mxu0  ;;  %8555 = vmatprep.subr.bf16.mxu0 %v9909_v2 }
0x1075   : > { %8556 = vmatpush3.bf16.msra.mxu0 %v9910_v46 }
0x1076   : > { %8585 = vmatprep.subr.bf16.mxu0 %v9911_v29 }
0x1078   : > { %7348 = vmatmul.mubr.bf16.vlgmr.msra.gmra.mxu0 %v10963_v28  ;;  %v9922_v28 = vld [vmem:[#allocation19 + $0x7b8] ss:$12 sps:$4 sm:$0xff]  }
0x1079   : > { %8586 = vmatpush3.bf16.msra.mxu0 %v9912_v34  ;;  %7427 = vmatprep.mubr.bf16.mxu0 %v10995_v13 }
0x107a   : > { %8587 = vmatprep.subr.bf16.mxu0 %v9913_v17 }
0x107d   : > { %8588 = vmatpush3.bf16.msra.mxu0 %v9914_v12 }
0x107e   : > { %8589 = vmatprep.subr.bf16.mxu0 %v9915_v35 }
0x1081   : > { %8590 = vmatpush3.bf16.msra.mxu0 %v9916_v31 }
0x1082   : > { %8591 = vmatprep.subr.bf16.mxu0 %v9917_v38 }
0x1085   : > { %8592 = vmatpush3.bf16.msra.mxu0 %v9918_v39 }
0x1086   : > { %8593 = vmatprep.subr.bf16.mxu0 %v9919_v40 }
0x1089   : > { %8594 = vmatpush3.bf16.msra.mxu0 %v9920_v41 }
0x108a   : > { %8595 = vmatprep.subr.bf16.mxu0 %v9921_v43 }
0x108d   : > { %8596 = vmatpush3.bf16.msra.mxu0 %v9922_v28  ;;  %v7065_v13 = vpop.f32.mrf.mxu1 }
0x108e   : > { %v7066_v50 = vadd.f32 %v7065_v13, %v7025_v4  ;;  %8597 = vmatprep.subr.bf16.mxu0 %v9923_v44 }
0x108f   : > { %v7067_v53 = vpop.f32.mrf.mxu1 }
0x1090   : > { %v7068_v54 = vadd.f32 %v7067_v53, %v7027_v48 }
0x1091   : > { %8598 = vmatpush3.bf16.msra.mxu0 %v9924_v45  ;;  %v7069_v55 = vpop.f32.mrf.mxu1 }
0x1092   : > { %8599 = vmatprep.subr.bf16.mxu0 %v9925_v52 }
0x1093   : > { %v7070_v56 = vpop.f32.mrf.mxu1 }
0x1095   : > { %8600 = vmatpush3.bf16.msra.mxu0 %v9926_v51 }
0x1098   : > { %7428 = vmatmul.mubr.bf16.vlgmr.msra.gmra.mxu0 %v10997_v36 }
0x10ac   : > { %v7106_v57 = vpop.f32.mrf.mxu0 }
0x10ad   : > { %v7107_v32 = vadd.f32 %v7106_v57, %v7066_v50 }
0x10ae   : > { %v7108_v59 = vpop.f32.mrf.mxu0 }
0x10af   : > { %v7109_v22 = vadd.f32 %v7108_v59, %v7068_v54 }
0x10b0   : > { %v7110_v60 = vpop.f32.mrf.mxu0 }
0x10b2   : > { %v7111_v61 = vpop.f32.mrf.mxu0 }
0x10cd   : > { %v7147_v19 = vpop.f32.mrf.mxu1 }
0x10ce   : > { %v7148_v30 = vadd.f32 %v7147_v19, %v7107_v32 }
0x10cf   : > { %v7149_v62 = vpop.f32.mrf.mxu1 }
0x10d0   : > { %v7150_v1 = vadd.f32 %v7149_v62, %v7109_v22 }
0x10d1   : > { %v7151_v63 = vpop.f32.mrf.mxu1 }
0x10d3   : > { %v7152_v16 = vpop.f32.mrf.mxu1 }
0x10ed   : > { %v8491_v0 = vpop.f32.mrf.mxu1 }
0x10ef   : > { %v8492_v6 = vpop.f32.mrf.mxu1 }
0x10f0   : > { %v8493_v3 = vadd.f32 %v8492_v6, %v8491_v0 }
0x10f1   : > { %v8494_v10 = vpop.f32.mrf.mxu1 }
0x10f3   : > { %v8495_v14 = vpop.f32.mrf.mxu1 }
0x10f8   : > { %v7188_v23 = vpop.f32.mrf.mxu0 }
0x10f9   : > { %v7189_v36 = vadd.f32 %v7188_v23, %v7148_v30 }
0x10fa   : > { %v7190_v47 = vpop.f32.mrf.mxu0 }
0x10fb   : > { %v7435_v18 = vadd.f32 %v7189_v36, %v10834_v33  ;;  %v7191_v11 = vadd.f32 %v7190_v47, %v7150_v1  ;;  %v5409_v33 = vrot.slane %v11010_v27, %v10703_v7 }
0x10fc   : > { %v7192_v49 = vpop.f32.mrf.mxu0 }
0x10fd   : > { %7438 = vst [vmem:[%s11025_s3] sm:$0xff] %v7435_v18  ;;  %v7436_v15 = vadd.f32 %v7191_v11, %v10837_v37  ;;  %v7230_v2 = vadd.f32 %v8493_v3, %v5409_v33 }
0x10fe   : > { %v7193_v20 = vpop.f32.mrf.mxu0 }
0x10ff   : > { %7439 = vst [vmem:[%s11025_s3 + $0x8] sm:$0xff] %v7436_v15 }
0x110d   : > { %v8535_v21 = vpop.f32.mrf.mxu1 }
0x110f   : > { %v8536_v58 = vpop.f32.mrf.mxu1 }
0x1110   : > { %v8537_v9 = vadd.f32 %v8536_v58, %v8535_v21 }
0x1111   : > { %v8538_v24 = vpop.f32.mrf.mxu1 }
0x1113   : > { %v8539_v4 = vpop.f32.mrf.mxu1 }
0x1118   : > { %v8513_v25 = vpop.f32.mrf.mxu0 }
0x111a   : > { %v8514_v8 = vpop.f32.mrf.mxu0 }
0x111b   : > { %v8515_v48 = vadd.f32 %v8514_v8, %v8513_v25 }
0x111c   : > { %v8516_v5 = vpop.f32.mrf.mxu0 }
0x111d   : > { %v7270_v46 = vadd.f32 %v8515_v48, %v7230_v2 }
0x111e   : > { %v8517_v26 = vpop.f32.mrf.mxu0 }
0x111f   : > { %v7310_v29 = vadd.f32 %v8537_v9, %v7270_v46 }
0x112d   : > { %v8579_v37 = vpop.f32.mrf.mxu1 }
0x112f   : > { %v8580_v34 = vpop.f32.mrf.mxu1 }
0x1130   : > { %v8581_v41 = vadd.f32 %v8580_v34, %v8579_v37 }
0x1131   : > { %v8582_v17 = vpop.f32.mrf.mxu1 }
0x1133   : > { %v8583_v12 = vpop.f32.mrf.mxu1 }
0x1138   : > { %v8557_v35 = vpop.f32.mrf.mxu0 }
0x113a   : > { %v8558_v31 = vpop.f32.mrf.mxu0 }
0x113b   : > { %v8559_v7 = vadd.f32 %v8558_v31, %v8557_v35 }
0x113c   : > { %v8560_v38 = vpop.f32.mrf.mxu0 }
0x113d   : > { %v7350_v27 = vadd.f32 %v8559_v7, %v7310_v29 }
0x113e   : > { %v8561_v39 = vpop.f32.mrf.mxu0 }
0x113f   : > { %v7390_v28 = vadd.f32 %v8581_v41, %v7350_v27 }
0x1158   : > { %v8601_v40 = vpop.f32.mrf.mxu0 }
0x115a   : > { %v8602_v43 = vpop.f32.mrf.mxu0 }
0x115b   : > { %v8603_v44 = vadd.f32 %v8602_v43, %v8601_v40 }
0x115c   : > { %v8604_v13 = vpop.f32.mrf.mxu0 }
0x115d   : > { %v7430_v45 = vadd.f32 %v8603_v44, %v7390_v28 }
0x115e   : > { %v8605_v50 = vpop.f32.mrf.mxu0 }
0x115f   : > { %v7437_v52 = vadd.f32 %v7430_v45, %v10840_v42 }
0x1161   : > { %7440 = vst [vmem:[%s11025_s3 + $0x10] sm:$0xff] %v7437_v52 }
0x1162   : > { %10277 = shalt.err (!%p10274_p11)
}
0x1163   : > { %s10278_s16 = scalar_lea.hbm %s7454_s15, 384  ;;  %s10282_s6 = scalar_lea.hbm %s11082_s12, 768 }
0x1164   : > { %p10279_p10 = scmp.ne.s32.totalorder %s7454_s15, %s10278_s16  ;;  %p10283_p2 = scmp.lt.s32.totalorder %s7454_s15, %s11082_s12 }
0x1165   : > { %p10284_p4 = scmp.lt.s32.totalorder %s10282_s6, %s10278_s16 }
0x1166   : > { %p10280_p12 = pnand %p10279_p10, %p11127_p13 }
0x1167   : > { %p10285_p5 = por %p10284_p4, %p10283_p2 }
0x1168   : > { %p10281_p0 = pneg %p10280_p12 }
0x116a   : > { %p10286_p8 = pnand %p10285_p5, %p10281_p0 }
0x116c   : > { %10289 = shalt.err (!%p10286_p8)
}
0x116d   : > { %8705 = dma.vmem_to_hbm [thread:$0]  (%p11127_p13), %s7457_s20, 384, %s7454_s15, %s7442_s25  }
0x116e PF: > { %s7468_s3 = sand.u32 1, %s10340_s21   ;;  %p11128_p6 = scmp.ne.s32.totalorder %s11111_s1, 0 }
0x116f   : > { %p11129_p1 = scmp.ge.s32.totalorder %s10352_s24, 2  ;;  %s7469_s28 = scalar_lea.sflag [#allocation4], %s7468_s3 }
0x1171   : > { %p8746_p3 = pnand %p11129_p1, %p11128_p6 }
0x1173   : > { %p8747_p7 = pneg %p8746_p3 }
0x1175   : > { %10335 = dma.done.wait (%p8747_p7), %s7469_s28, 384  }
0x1176   : > { %10337 = vsyncadd (%p8747_p7), %s7469_s28, 4294966912  ;;  %p31_p9 = scmp.ge.s32.totalorder %s10587_s13, 4   ;;  %s11130_s21 = smov %s10344_s22 }
0x1177   : > { %s11131_s22 = smov %s10348_s23  ;;  %s11132_s23 = smov %s10599_s17 }
0x1178   : > { %s11133_s24 = smov %s10587_s13  ;;  %33 = sbr.rel (!%p31_p9) target bundleno = 19 (0x13), region = 157 }
0x117d   :  { %7474 = vsyncpa [#allocation3], 1 }
0x117e   :  { %7476 = vsyncpa [#allocation3 + $0x1], 1 }
0x117f   :  { %7477 = vsyncpa [#allocation6], 1 }
0x1180   :  { %7478 = vsyncpa [#allocation9], 1 }
0x1181   :  { %7479 = vsyncpa [#allocation12], 1 }
0x1182   :  { %7480 = vsyncpa [#allocation15], 1 }
0x1183   :  { %7481 = vsyncpa [#allocation18], 1 }
0x1184   :  { %7482 = vsyncpa [#allocation21], 1 }
0x1185   :  { %7483 = vsyncpa [#allocation4], 1 }
0x1186   :  { %7485 = vsyncpa [#allocation4 + $0x1], 1 }

</bundles_post_ra>
